<compile_context>
chip_gen: v7x
topology: tpu7x:2x2x1
jax: 0.10.0
libtpu: 0.0.40
codegen_flags: <defaults>
</compile_context>

<pallas_src>
import functools

import jax
import jax.numpy as jnp
from jax.experimental import pallas as pl
from jax.experimental.pallas import tpu as pltpu


# ----------------------------------------------------------------------------
# Stage 1: fused Q/K/V pointwise convs (one concatenated matmul) + mask
# ----------------------------------------------------------------------------
def qkv_mask_kernel(x_ref, w_ref, b_ref, cw_ref, avg_ref, qkv_ref, m_ref):
    x = x_ref[0]                                                   # (C, tn) f32
    qkv = jnp.dot(w_ref[...], x, preferred_element_type=jnp.float32) + b_ref[...]
    C = cw_ref.shape[1]
    qw = qkv[:C] * cw_ref[0]                                       # (C, tn)
    m_ref[0] = (qw >= avg_ref[0]).astype(jnp.bfloat16)             # exact 0/1
    qkv_ref[0] = qkv


# ----------------------------------------------------------------------------
# Stage 2: fused edge_conv (3x3x3 -> relu -> 3x3x3 -> sigmoid), no HBM im2col.
# Input: padded mask planes, layout (B, D+4, C, (H+2)*(W+2)); the 5-slice
# depth halo comes from 5 overlapping views of the same array.  conv1 taps are
# MXU matmuls on contiguous slices; conv2 (Cout=1) runs on the VPU via a
# shifted zero-bordered scratch plane.
# ----------------------------------------------------------------------------
def edge_conv_kernel(m0, m1, m2, m3, m4, w1_ref, b1_ref, w2_ref, b2_ref,
                     cmask_ref, o_ref, e1p_ref, *, H, W):
    Wp = W + 2
    L = H * Wp - 2                    # flattened-plane extent actually computed
    OFF = ((Wp + 1 + 127) // 128) * 128   # lane-aligned interior offset
    Ch = w1_ref.shape[1]
    d = pl.program_id(1)
    nD = pl.num_programs(1)
    mrefs = (m0, m1, m2, m3, m4)
    cmask = cmask_ref[...]            # (1, L): 1 on real columns, 0 on wrap cols

    # zero-bordered e1 plane (conv2's zero padding lives here)
    e1p_ref[...] = jnp.zeros_like(e1p_ref)

    acc2 = jnp.zeros((Ch, L), jnp.float32)
    for kd3 in range(3):              # e1 depth slice d' = d - 1 + kd3
        # ---- conv1: 27 taps as (Ch,C)@(C,L) MXU matmuls -------------------
        acc1 = jnp.zeros((Ch, L), jnp.float32)
        for kd in range(3):
            src = mrefs[kd3 + kd]     # (1, 1, C, (H+2)*(W+2)) bf16 window
            for kh in range(3):
                for kw in range(3):
                    tap = (kd * 3 + kh) * 3 + kw
                    off = kh * Wp + kw
                    acc1 = acc1 + jnp.dot(
                        w1_ref[tap],
                        src[0, 0, :, off:off + L].astype(jnp.float32),
                        preferred_element_type=jnp.float32)
        valid = jnp.logical_and(d - 1 + kd3 >= 0, d - 1 + kd3 <= nD - 1)
        e1 = jnp.maximum(acc1 + b1_ref[...], 0.0)                   # bias + relu
        e1 = e1 * cmask * valid.astype(jnp.float32)                 # kill wrap/oob
        e1p_ref[:, OFF:OFF + L] = e1

        # ---- conv2 (Cout=1): 27 VPU taps on the zero-bordered plane -------
        for kh2 in range(3):
            for kw2 in range(3):
                tap2 = (kd3 * 3 + kh2) * 3 + kw2
                roff = OFF - Wp - 1 + kh2 * Wp + kw2
                acc2 = acc2 + w2_ref[tap2] * e1p_ref[:, roff:roff + L]

    edge = jax.nn.sigmoid(jnp.sum(acc2, axis=0, keepdims=True) + b2_ref[...])
    o_ref[0, 0] = edge                                              # (1, L)


# ----------------------------------------------------------------------------
# Stage 3: fused attention scores + softmax over W + aw*V_edge + output conv
# ----------------------------------------------------------------------------
def attn_out_kernel(qkv_ref, e_ref, wo_ref, bo_ref, o_ref, rows_ref, flat_ref,
                    *, C, W, rt):
    e = e_ref[0]                                                   # (1, tn) f32
    qkv = qkv_ref[0]                                               # (3C, tn) f32
    q = qkv[:C]
    k = qkv[C:2 * C]
    v = qkv[2 * C:]

    # scores = sum_c (q*e)*(k*e) / sqrt(C) = e^2 * sum_c q*k / sqrt(C)
    s = jnp.sum(q * k, axis=0, keepdims=True) * (e * e) * (1.0 / (C ** 0.5))

    # regroup the flat scores into (rows, W) so softmax runs over the true W axis
    for r in range(rt):
        rows_ref[r:r + 1, :] = s[:, r * W:(r + 1) * W]
    srow = rows_ref[...]                                           # (rt, W)
    m = jnp.max(srow, axis=-1, keepdims=True)
    ex = jnp.exp(srow - m)
    aw = ex / jnp.sum(ex, axis=-1, keepdims=True)
    for r in range(rt):
        flat_ref[:, r * W:(r + 1) * W] = aw[r:r + 1, :]
    awf = flat_ref[...]                                            # (1, tn)

    att = awf * (v * e)                                            # (C, tn)
    out = jnp.dot(wo_ref[...], att, preferred_element_type=jnp.float32) + bo_ref[...]
    o_ref[0] = out


# ----------------------------------------------------------------------------
# Tile choice: rows of (d,h) per spatial tile (tile = rt*W lanes).
# Require rt | D*H and (rt*W) % 128 == 0 (lane aligned), else fall back to the
# full spatial extent (tn == N is always a legal block).
# ----------------------------------------------------------------------------
def _pick_rows(DH, W, max_lanes=2048):
    best = None
    for r in range(1, DH + 1):
        if DH % r == 0 and r * W <= max_lanes and (r * W) % 128 == 0:
            best = r
    return best if best is not None else DH


# ----------------------------------------------------------------------------
# Full forward (matches LearnableDynamicEdgeAttention.forward)
# ----------------------------------------------------------------------------
def edge_attention_forward(x, p):
    f32, bf16 = jnp.float32, jnp.bfloat16
    hi = jax.lax.Precision.HIGHEST
    B, C, D, H, W = x.shape
    N = D * H * W
    DH = D * H
    Ch = p["we1"].shape[0]            # C // 2
    Cr = p["wa1"].shape[0]            # C // 8

    rt = _pick_rows(DH, W)
    tn = rt * W
    NT = N // tn

    x2 = x.reshape(B, C, N).astype(f32)

    # ---- Stage 0: channel attention + mask threshold (tiny, plain JAX) ----
    wq = p["wq"].reshape(C, C); bq = p["bq"].reshape(C)
    wk = p["wk"].reshape(C, C); bk = p["bk"].reshape(C)
    wv = p["wv"].reshape(C, C); bv = p["bv"].reshape(C)
    xbar = jnp.mean(x2, axis=-1)                                   # (B, C)
    gapq = jnp.dot(xbar, wq.T, precision=hi) + bq                  # == GAP(Q)
    w1a = p["wa1"].reshape(Cr, C); b1a = p["ba1"].reshape(Cr)
    w2a = p["wa2"].reshape(C, Cr); b2a = p["ba2"].reshape(C)
    hmid = jnp.maximum(jnp.dot(gapq, w1a.T, precision=hi) + b1a, 0.0)
    cw = jax.nn.sigmoid(jnp.dot(hmid, w2a.T, precision=hi) + b2a)  # (B, C)
    avg = cw * gapq                                                # == mean(Q*cw)

    # ---- Stage 1: fused QKV + significance mask ----
    wqkv = jnp.concatenate([wq, wk, wv], axis=0).astype(f32)       # (3C, C)
    bqkv = jnp.concatenate([bq, bk, bv], axis=0).reshape(3 * C, 1).astype(f32)

    qkv, mask = pl.pallas_call(
        qkv_mask_kernel,
        out_shape=(jax.ShapeDtypeStruct((B, 3 * C, N), f32),
                   jax.ShapeDtypeStruct((B, C, N), bf16)),
        grid=(B, NT),
        in_specs=[pl.BlockSpec((1, C, tn), lambda b, n: (b, 0, n)),
                  pl.BlockSpec((3 * C, C), lambda b, n: (0, 0)),
                  pl.BlockSpec((3 * C, 1), lambda b, n: (0, 0)),
                  pl.BlockSpec((1, C, 1), lambda b, n: (b, 0, 0)),
                  pl.BlockSpec((1, C, 1), lambda b, n: (b, 0, 0))],
        out_specs=(pl.BlockSpec((1, 3 * C, tn), lambda b, n: (b, 0, n)),
                   pl.BlockSpec((1, C, tn), lambda b, n: (b, 0, n))),
        compiler_params=pltpu.CompilerParams(
            dimension_semantics=("parallel", "parallel")),
    )(x2, wqkv, bqkv, cw.reshape(B, C, 1), avg.reshape(B, C, 1))

    # ---- Stage 2: fused 3x3x3 edge convs ----
    Wp = W + 2
    Pp = (H + 2) * Wp
    Lw = H * Wp - 2
    OFF = ((Wp + 1 + 127) // 128) * 128
    SW = OFF + Lw + Wp + 1

    m5 = jnp.transpose(mask.reshape(B, C, D, H, W), (0, 2, 1, 3, 4))
    mpf = jnp.pad(m5, ((0, 0), (2, 2), (0, 0), (1, 1), (1, 1))).reshape(
        B, D + 4, C, Pp)                                           # bf16
    w1r = jnp.transpose(p["we1"], (2, 3, 4, 0, 1)).reshape(27, Ch, C).astype(f32)
    b1r = p["be1"].reshape(Ch, 1).astype(f32)
    w2r = jnp.transpose(p["we2"][0], (1, 2, 3, 0)).reshape(27, Ch, 1).astype(f32)
    b2r = p["be2"].reshape(1, 1).astype(f32)
    col_ids = jnp.arange(Lw, dtype=jnp.int32) % Wp
    cmask = (col_ids < W).astype(f32).reshape(1, Lw)

    def win_spec(j):
        return pl.BlockSpec((1, 1, C, Pp), lambda b, d, j=j: (b, d + j, 0, 0))

    def rep(shp):
        return pl.BlockSpec(shp, lambda b, d: (0,) * len(shp))

    edge_wide = pl.pallas_call(
        functools.partial(edge_conv_kernel, H=H, W=W),
        out_shape=jax.ShapeDtypeStruct((B, D, 1, Lw), f32),
        grid=(B, D),
        in_specs=[win_spec(0), win_spec(1), win_spec(2), win_spec(3), win_spec(4),
                  rep((27, Ch, C)), rep((Ch, 1)), rep((27, Ch, 1)), rep((1, 1)),
                  rep((1, Lw))],
        out_specs=pl.BlockSpec((1, 1, 1, Lw), lambda b, d: (b, d, 0, 0)),
        scratch_shapes=[pltpu.VMEM((Ch, SW), f32)],
        compiler_params=pltpu.CompilerParams(
            dimension_semantics=("parallel", "parallel")),
    )(mpf, mpf, mpf, mpf, mpf, w1r, b1r, w2r, b2r, cmask)

    # un-pad the flattened planes back to the true (B, 1, N) edge map (glue)
    ew = jnp.pad(edge_wide.reshape(B, D, Lw), ((0, 0), (0, 0), (0, 2)))
    edge = ew.reshape(B, D, H, Wp)[..., :W].reshape(B, 1, N).astype(f32)

    # ---- Stage 3: fused scores + softmax(W) + weighted V_edge + output conv ----
    wo = p["wo"].reshape(C, C).astype(f32)
    bo = p["bo"].reshape(C, 1).astype(f32)

    out = pl.pallas_call(
        functools.partial(attn_out_kernel, C=C, W=W, rt=rt),
        out_shape=jax.ShapeDtypeStruct((B, C, N), f32),
        grid=(B, NT),
        in_specs=[pl.BlockSpec((1, 3 * C, tn), lambda b, n: (b, 0, n)),
                  pl.BlockSpec((1, 1, tn), lambda b, n: (b, 0, n)),
                  pl.BlockSpec((C, C), lambda b, n: (0, 0)),
                  pl.BlockSpec((C, 1), lambda b, n: (0, 0))],
        out_specs=pl.BlockSpec((1, C, tn), lambda b, n: (b, 0, n)),
        scratch_shapes=[pltpu.VMEM((rt, W), f32), pltpu.VMEM((1, tn), f32)],
        compiler_params=pltpu.CompilerParams(
            dimension_semantics=("parallel", "parallel")),
    )(qkv, edge, wo, bo)

    return out.reshape(B, C, D, H, W)


# ----------------------------------------------------------------------------
# Pure-JAX reference (same math as the nn.Module), used for a sanity check
# ----------------------------------------------------------------------------
def reference_forward(x, p):
    f32 = jnp.float32
    hi = jax.lax.Precision.HIGHEST
    B, C, D, H, W = x.shape
    x = x.astype(f32)

    def conv1x1(t, w, b):
        w2 = w.reshape(w.shape[0], w.shape[1])
        return (jnp.einsum("oi,bidhw->bodhw", w2, t, precision=hi)
                + b.reshape(1, -1, 1, 1, 1))

    def conv3x3(t, w, b):
        y = jax.lax.conv_general_dilated(
            t, w, (1, 1, 1), [(1, 1), (1, 1), (1, 1)],
            dimension_numbers=("NCDHW", "OIDHW", "NCDHW"), precision=hi)
        return y + b.reshape(1, -1, 1, 1, 1)

    Q = conv1x1(x, p["wq"], p["bq"])
    K = conv1x1(x, p["wk"], p["bk"])
    V = conv1x1(x, p["wv"], p["bv"])
    gap = jnp.mean(Q, axis=(2, 3, 4), keepdims=True)
    h1 = jnp.maximum(conv1x1(gap, p["wa1"], p["ba1"]), 0.0)
    cwv = jax.nn.sigmoid(conv1x1(h1, p["wa2"], p["ba2"]))
    Qw = Q * cwv
    avg = jnp.mean(Qw, axis=(2, 3, 4), keepdims=True)
    mask = (Qw >= avg).astype(f32)
    e1 = jnp.maximum(conv3x3(mask, p["we1"], p["be1"]), 0.0)
    edge = jax.nn.sigmoid(conv3x3(e1, p["we2"], p["be2"]))
    Qe, Ke, Ve = Q * edge, K * edge, V * edge
    s = jnp.sum(Qe * Ke, axis=1) / (C ** 0.5)
    aw = jax.nn.softmax(s, axis=-1)
    att = aw[:, None] * Ve
    return conv1x1(att, p["wo"], p["bo"])


# ----------------------------------------------------------------------------
# Deterministic parameter initialization (same shapes as the nn.Module)
# ----------------------------------------------------------------------------
def _init_conv(key, cout, cin, ksize):
    fan_in = cin * ksize ** 3
    bound = 1.0 / (fan_in ** 0.5)
    kw, kb = jax.random.split(key)
    w = jax.random.uniform(kw, (cout, cin, ksize, ksize, ksize), jnp.float32,
                           -bound, bound)
    b = jax.random.uniform(kb, (cout,), jnp.float32, -bound, bound)
    return w, b


def init_params(key, in_channels):
    C = in_channels
    ks = jax.random.split(key, 8)
    p = {}
    p["wq"], p["bq"] = _init_conv(ks[0], C, C, 1)
    p["wk"], p["bk"] = _init_conv(ks[1], C, C, 1)
    p["wv"], p["bv"] = _init_conv(ks[2], C, C, 1)
    p["we1"], p["be1"] = _init_conv(ks[3], C // 2, C, 3)
    p["we2"], p["be2"] = _init_conv(ks[4], 1, C // 2, 3)
    p["wo"], p["bo"] = _init_conv(ks[5], C, C, 1)
    p["wa1"], p["ba1"] = _init_conv(ks[6], C // 8, C, 1)
    p["wa2"], p["ba2"] = _init_conv(ks[7], C, C // 8, 1)
    return p


if __name__ == "__main__":
    B, C, D, H, W = 2, 8, 8, 8, 8      # C // 8 must be >= 1
    key = jax.random.PRNGKey(0)
    kx, kp = jax.random.split(key)
    x = jax.random.normal(kx, (B, C, D, H, W), jnp.float32)
    params = init_params(kp, C)

    out = jax.jit(edge_attention_forward)(x, params)
    out = jax.block_until_ready(out)

    assert out.shape == (B, C, D, H, W), out.shape
    assert bool(jnp.all(jnp.isfinite(out)))

    ref = jax.block_until_ready(jax.jit(reference_forward)(x, params))
    err = float(jnp.max(jnp.abs(out - ref)))
    scale = max(1.0, float(jnp.max(jnp.abs(ref))))
    assert err <= 1e-2 * scale, f"max abs err {err} (scale {scale})"

    print("KERNEL_OK")
</pallas_src>

<mosaic_0001>
module attributes {stable_mosaic.version = 11 : i64} {
  func.func @qkv_mask_kernel(%arg0: i32, %arg1: i32, %arg2: memref<1x8x512xf32, #tpu.memory_space<vmem>>, %arg3: memref<24x8xf32, #tpu.memory_space<vmem>>, %arg4: memref<24x1xf32, #tpu.memory_space<vmem>>, %arg5: memref<1x8x1xf32, #tpu.memory_space<vmem>>, %arg6: memref<1x8x1xf32, #tpu.memory_space<vmem>>, %arg7: memref<1x24x512xf32, #tpu.memory_space<vmem>>, %arg8: memref<1x8x512xbf16, #tpu.memory_space<vmem>>) attributes {dimension_semantics = [#tpu.dimension_semantics<parallel>, #tpu.dimension_semantics<parallel>], iteration_bounds = array<i64: 2, 1>, scalar_prefetch = 0 : i64, scratch_operands = 0 : i64, tpu.core_type = #tpu.core_type<tc>, window_params = [{transform_indices = @transform_0, window_bounds = array<i64: 1, 8, 512>}, {pipeline_mode = #tpu.pipeline_mode<synchronous>, transform_indices = @transform_1, window_bounds = array<i64: 24, 8>}, {pipeline_mode = #tpu.pipeline_mode<synchronous>, transform_indices = @transform_2, window_bounds = array<i64: 24, 1>}, {transform_indices = @transform_3, window_bounds = array<i64: 1, 8, 1>}, {transform_indices = @transform_4, window_bounds = array<i64: 1, 8, 1>}, {transform_indices = @transform_5, window_bounds = array<i64: 1, 24, 512>}, {transform_indices = @transform_6, window_bounds = array<i64: 1, 8, 512>}]} {
    %c0 = arith.constant 0 : index
    %c0_0 = arith.constant 0 : index
    %c0_1 = arith.constant 0 : index
    %0 = vector.load %arg2[%c0, %c0_0, %c0_1] : memref<1x8x512xf32, #tpu.memory_space<vmem>>, vector<1x8x512xf32>
    %1 = vector.shape_cast %0 : vector<1x8x512xf32> to vector<8x512xf32>
    %c0_2 = arith.constant 0 : index
    %c0_3 = arith.constant 0 : index
    %2 = vector.load %arg3[%c0_2, %c0_3] : memref<24x8xf32, #tpu.memory_space<vmem>>, vector<24x8xf32>
    %cst = arith.constant dense<0.000000e+00> : vector<24x512xf32>
    %3 = tpu.matmul %2, %1, %cst {dimension_numbers = #tpu.dot_dimension_numbers<[1], [0], [0], [1], [0, 0, 1, 1], [], []>} : vector<24x8xf32>, vector<8x512xf32>, vector<24x512xf32> -> vector<24x512xf32>
    %c0_4 = arith.constant 0 : index
    %c0_5 = arith.constant 0 : index
    %4 = vector.load %arg4[%c0_4, %c0_5] : memref<24x1xf32, #tpu.memory_space<vmem>>, vector<24x1xf32>
    %5 = vector.broadcast %4 : vector<24x1xf32> to vector<24x512xf32>
    %6 = arith.addf %3, %5 : vector<24x512xf32>
    %7 = vector.extract_strided_slice %6 {offsets = [0, 0], sizes = [8, 512], strides = [1, 1]} : vector<24x512xf32> to vector<8x512xf32>
    %c0_6 = arith.constant 0 : index
    %c0_7 = arith.constant 0 : index
    %c0_8 = arith.constant 0 : index
    %8 = vector.load %arg5[%c0_6, %c0_7, %c0_8] : memref<1x8x1xf32, #tpu.memory_space<vmem>>, vector<1x8x1xf32>
    %9 = vector.shape_cast %8 : vector<1x8x1xf32> to vector<8x1xf32>
    %10 = vector.broadcast %9 : vector<8x1xf32> to vector<8x512xf32>
    %11 = arith.mulf %7, %10 : vector<8x512xf32>
    %c0_9 = arith.constant 0 : index
    %c0_10 = arith.constant 0 : index
    %c0_11 = arith.constant 0 : index
    %12 = vector.load %arg6[%c0_9, %c0_10, %c0_11] : memref<1x8x1xf32, #tpu.memory_space<vmem>>, vector<1x8x1xf32>
    %13 = vector.shape_cast %12 : vector<1x8x1xf32> to vector<8x1xf32>
    %14 = vector.broadcast %13 : vector<8x1xf32> to vector<8x512xf32>
    %15 = arith.cmpf oge, %11, %14 : vector<8x512xf32>
    %16 = arith.extui %15 : vector<8x512xi1> to vector<8x512xi32>
    %17 = arith.sitofp %16 : vector<8x512xi32> to vector<8x512xf32>
    %18 = arith.truncf %17 : vector<8x512xf32> to vector<8x512xbf16>
    %c0_12 = arith.constant 0 : index
    %c0_13 = arith.constant 0 : index
    %c0_14 = arith.constant 0 : index
    %19 = vector.load %arg8[%c0_12, %c0_13, %c0_14] : memref<1x8x512xbf16, #tpu.memory_space<vmem>>, vector<1x8x512xbf16>
    %20 = vector.shape_cast %19 : vector<1x8x512xbf16> to vector<8x512xbf16>
    %21 = vector.shape_cast %18 : vector<8x512xbf16> to vector<1x8x512xbf16>
    tpu.vector_store %arg8[%c0_12, %c0_13, %c0_14], %21 {strides = array<i32>} : memref<1x8x512xbf16, #tpu.memory_space<vmem>>, vector<1x8x512xbf16>,
    %c0_15 = arith.constant 0 : index
    %c0_16 = arith.constant 0 : index
    %c0_17 = arith.constant 0 : index
    %22 = vector.load %arg7[%c0_15, %c0_16, %c0_17] : memref<1x24x512xf32, #tpu.memory_space<vmem>>, vector<1x24x512xf32>
    %23 = vector.shape_cast %22 : vector<1x24x512xf32> to vector<24x512xf32>
    %24 = vector.shape_cast %6 : vector<24x512xf32> to vector<1x24x512xf32>
    tpu.vector_store %arg7[%c0_15, %c0_16, %c0_17], %24 {strides = array<i32>} : memref<1x24x512xf32, #tpu.memory_space<vmem>>, vector<1x24x512xf32>,
    return
  }
  func.func @transform_0(%arg0: i32, %arg1: i32) -> (i32, i32, i32) {
    %c0_i32 = arith.constant 0 : i32
    %c0_i32_0 = arith.constant 0 : i32
    return %arg0, %c0_i32, %arg1 : i32, i32, i32
  }
  func.func @transform_1(%arg0: i32, %arg1: i32) -> (i32, i32) {
    %c0_i32 = arith.constant 0 : i32
    %c0_i32_0 = arith.constant 0 : i32
    %c0_i32_1 = arith.constant 0 : i32
    return %c0_i32, %c0_i32_0 : i32, i32
  }
  func.func @transform_2(%arg0: i32, %arg1: i32) -> (i32, i32) {
    %c0_i32 = arith.constant 0 : i32
    %c0_i32_0 = arith.constant 0 : i32
    %c0_i32_1 = arith.constant 0 : i32
    return %c0_i32, %c0_i32_0 : i32, i32
  }
  func.func @transform_3(%arg0: i32, %arg1: i32) -> (i32, i32, i32) {
    %c0_i32 = arith.constant 0 : i32
    %c0_i32_0 = arith.constant 0 : i32
    %c0_i32_1 = arith.constant 0 : i32
    return %arg0, %c0_i32, %c0_i32_0 : i32, i32, i32
  }
  func.func @transform_4(%arg0: i32, %arg1: i32) -> (i32, i32, i32) {
    %c0_i32 = arith.constant 0 : i32
    %c0_i32_0 = arith.constant 0 : i32
    %c0_i32_1 = arith.constant 0 : i32
    return %arg0, %c0_i32, %c0_i32_0 : i32, i32, i32
  }
  func.func @transform_5(%arg0: i32, %arg1: i32) -> (i32, i32, i32) {
    %c0_i32 = arith.constant 0 : i32
    %c0_i32_0 = arith.constant 0 : i32
    return %arg0, %c0_i32, %arg1 : i32, i32, i32
  }
  func.func @transform_6(%arg0: i32, %arg1: i32) -> (i32, i32, i32) {
    %c0_i32 = arith.constant 0 : i32
    %c0_i32_0 = arith.constant 0 : i32
    return %arg0, %c0_i32, %arg1 : i32, i32, i32
  }
}

module attributes {stable_mosaic.version = 11 : i64} {
  func.func @edge_conv_kernel(%arg0: i32, %arg1: i32, %arg2: memref<1x1x8x100xbf16, #tpu.memory_space<vmem>>, %arg3: memref<1x1x8x100xbf16, #tpu.memory_space<vmem>>, %arg4: memref<1x1x8x100xbf16, #tpu.memory_space<vmem>>, %arg5: memref<1x1x8x100xbf16, #tpu.memory_space<vmem>>, %arg6: memref<1x1x8x100xbf16, #tpu.memory_space<vmem>>, %arg7: memref<27x4x8xf32, #tpu.memory_space<vmem>>, %arg8: memref<4x1xf32, #tpu.memory_space<vmem>>, %arg9: memref<27x4x1xf32, #tpu.memory_space<vmem>>, %arg10: memref<1x1xf32, #tpu.memory_space<vmem>>, %arg11: memref<1x78xf32, #tpu.memory_space<vmem>>, %arg12: memref<1x1x1x78xf32, #tpu.memory_space<vmem>>, %arg13: memref<4x217xf32, #tpu.memory_space<vmem>>) attributes {dimension_semantics = [#tpu.dimension_semantics<parallel>, #tpu.dimension_semantics<parallel>], iteration_bounds = array<i64: 2, 8>, scalar_prefetch = 0 : i64, scratch_operands = 1 : i64, tpu.core_type = #tpu.core_type<tc>, window_params = [{transform_indices = @transform_0, window_bounds = array<i64: 1, 1, 8, 100>}, {transform_indices = @transform_1, window_bounds = array<i64: 1, 1, 8, 100>}, {transform_indices = @transform_2, window_bounds = array<i64: 1, 1, 8, 100>}, {transform_indices = @transform_3, window_bounds = array<i64: 1, 1, 8, 100>}, {transform_indices = @transform_4, window_bounds = array<i64: 1, 1, 8, 100>}, {pipeline_mode = #tpu.pipeline_mode<synchronous>, transform_indices = @transform_5, window_bounds = array<i64: 27, 4, 8>}, {pipeline_mode = #tpu.pipeline_mode<synchronous>, transform_indices = @transform_6, window_bounds = array<i64: 4, 1>}, {pipeline_mode = #tpu.pipeline_mode<synchronous>, transform_indices = @transform_7, window_bounds = array<i64: 27, 4, 1>}, {pipeline_mode = #tpu.pipeline_mode<synchronous>, transform_indices = @transform_8, window_bounds = array<i64: 1, 1>}, {pipeline_mode = #tpu.pipeline_mode<synchronous>, transform_indices = @transform_9, window_bounds = array<i64: 1, 78>}, {transform_indices = @transform_10, window_bounds = array<i64: 1, 1, 1, 78>}]} {
    %c0 = arith.constant 0 : index
    %c0_0 = arith.constant 0 : index
    %0 = vector.load %arg11[%c0, %c0_0] : memref<1x78xf32, #tpu.memory_space<vmem>>, vector<1x78xf32>
    %cst = arith.constant 0.000000e+00 : f32
    %1 = vector.broadcast %cst : f32 to vector<4x217xf32>
    %c0_1 = arith.constant 0 : index
    %c0_2 = arith.constant 0 : index
    %2 = vector.load %arg13[%c0_1, %c0_2] : memref<4x217xf32, #tpu.memory_space<vmem>>, vector<4x217xf32>
    tpu.vector_store %arg13[%c0_1, %c0_2], %1 {strides = array<i32>} : memref<4x217xf32, #tpu.memory_space<vmem>>, vector<4x217xf32>,
    %cst_3 = arith.constant 0.000000e+00 : f32
    %3 = vector.broadcast %cst_3 : f32 to vector<4x78xf32>
    %cst_4 = arith.constant 0.000000e+00 : f32
    %4 = vector.broadcast %cst_4 : f32 to vector<4x78xf32>
    %c0_5 = arith.constant 0 : index
    %c0_6 = arith.constant 0 : index
    %c0_7 = arith.constant 0 : index
    %5 = vector.load %arg7[%c0_5, %c0_6, %c0_7] : memref<27x4x8xf32, #tpu.memory_space<vmem>>, vector<1x4x8xf32>
    %6 = vector.shape_cast %5 : vector<1x4x8xf32> to vector<4x8xf32>
    %c0_8 = arith.constant 0 : index
    %c0_9 = arith.constant 0 : index
    %c0_10 = arith.constant 0 : index
    %c0_11 = arith.constant 0 : index
    %7 = vector.load %arg2[%c0_8, %c0_9, %c0_10, %c0_11] : memref<1x1x8x100xbf16, #tpu.memory_space<vmem>>, vector<1x1x8x78xbf16>
    %8 = vector.shape_cast %7 : vector<1x1x8x78xbf16> to vector<8x78xbf16>
    %9 = arith.extf %8 : vector<8x78xbf16> to vector<8x78xf32>
    %cst_12 = arith.constant dense<0.000000e+00> : vector<4x78xf32>
    %10 = tpu.matmul %6, %9, %cst_12 {dimension_numbers = #tpu.dot_dimension_numbers<[1], [0], [0], [1], [0, 0, 1, 1], [], []>} : vector<4x8xf32>, vector<8x78xf32>, vector<4x78xf32> -> vector<4x78xf32>
    %11 = arith.addf %4, %10 : vector<4x78xf32>
    %c1 = arith.constant 1 : index
    %c0_13 = arith.constant 0 : index
    %c0_14 = arith.constant 0 : index
    %12 = vector.load %arg7[%c1, %c0_13, %c0_14] : memref<27x4x8xf32, #tpu.memory_space<vmem>>, vector<1x4x8xf32>
    %13 = vector.shape_cast %12 : vector<1x4x8xf32> to vector<4x8xf32>
    %c0_15 = arith.constant 0 : index
    %c0_16 = arith.constant 0 : index
    %c0_17 = arith.constant 0 : index
    %c1_18 = arith.constant 1 : index
    %14 = vector.load %arg2[%c0_15, %c0_16, %c0_17, %c1_18] : memref<1x1x8x100xbf16, #tpu.memory_space<vmem>>, vector<1x1x8x78xbf16>
    %15 = vector.shape_cast %14 : vector<1x1x8x78xbf16> to vector<8x78xbf16>
    %16 = arith.extf %15 : vector<8x78xbf16> to vector<8x78xf32>
    %cst_19 = arith.constant dense<0.000000e+00> : vector<4x78xf32>
    %17 = tpu.matmul %13, %16, %cst_19 {dimension_numbers = #tpu.dot_dimension_numbers<[1], [0], [0], [1], [0, 0, 1, 1], [], []>} : vector<4x8xf32>, vector<8x78xf32>, vector<4x78xf32> -> vector<4x78xf32>
    %18 = arith.addf %11, %17 : vector<4x78xf32>
    %c2 = arith.constant 2 : index
    %c0_20 = arith.constant 0 : index
    %c0_21 = arith.constant 0 : index
    %19 = vector.load %arg7[%c2, %c0_20, %c0_21] : memref<27x4x8xf32, #tpu.memory_space<vmem>>, vector<1x4x8xf32>
    %20 = vector.shape_cast %19 : vector<1x4x8xf32> to vector<4x8xf32>
    %c0_22 = arith.constant 0 : index
    %c0_23 = arith.constant 0 : index
    %c0_24 = arith.constant 0 : index
    %c2_25 = arith.constant 2 : index
    %21 = vector.load %arg2[%c0_22, %c0_23, %c0_24, %c2_25] : memref<1x1x8x100xbf16, #tpu.memory_space<vmem>>, vector<1x1x8x78xbf16>
    %22 = vector.shape_cast %21 : vector<1x1x8x78xbf16> to vector<8x78xbf16>
    %23 = arith.extf %22 : vector<8x78xbf16> to vector<8x78xf32>
    %cst_26 = arith.constant dense<0.000000e+00> : vector<4x78xf32>
    %24 = tpu.matmul %20, %23, %cst_26 {dimension_numbers = #tpu.dot_dimension_numbers<[1], [0], [0], [1], [0, 0, 1, 1], [], []>} : vector<4x8xf32>, vector<8x78xf32>, vector<4x78xf32> -> vector<4x78xf32>
    %25 = arith.addf %18, %24 : vector<4x78xf32>
    %c3 = arith.constant 3 : index
    %c0_27 = arith.constant 0 : index
    %c0_28 = arith.constant 0 : index
    %26 = vector.load %arg7[%c3, %c0_27, %c0_28] : memref<27x4x8xf32, #tpu.memory_space<vmem>>, vector<1x4x8xf32>
    %27 = vector.shape_cast %26 : vector<1x4x8xf32> to vector<4x8xf32>
    %c0_29 = arith.constant 0 : index
    %c0_30 = arith.constant 0 : index
    %c0_31 = arith.constant 0 : index
    %c10 = arith.constant 10 : index
    %28 = vector.load %arg2[%c0_29, %c0_30, %c0_31, %c10] : memref<1x1x8x100xbf16, #tpu.memory_space<vmem>>, vector<1x1x8x78xbf16>
    %29 = vector.shape_cast %28 : vector<1x1x8x78xbf16> to vector<8x78xbf16>
    %30 = arith.extf %29 : vector<8x78xbf16> to vector<8x78xf32>
    %cst_32 = arith.constant dense<0.000000e+00> : vector<4x78xf32>
    %31 = tpu.matmul %27, %30, %cst_32 {dimension_numbers = #tpu.dot_dimension_numbers<[1], [0], [0], [1], [0, 0, 1, 1], [], []>} : vector<4x8xf32>, vector<8x78xf32>, vector<4x78xf32> -> vector<4x78xf32>
    %32 = arith.addf %25, %31 : vector<4x78xf32>
    %c4 = arith.constant 4 : index
    %c0_33 = arith.constant 0 : index
    %c0_34 = arith.constant 0 : index
    %33 = vector.load %arg7[%c4, %c0_33, %c0_34] : memref<27x4x8xf32, #tpu.memory_space<vmem>>, vector<1x4x8xf32>
    %34 = vector.shape_cast %33 : vector<1x4x8xf32> to vector<4x8xf32>
    %c0_35 = arith.constant 0 : index
    %c0_36 = arith.constant 0 : index
    %c0_37 = arith.constant 0 : index
    %c11 = arith.constant 11 : index
    %35 = vector.load %arg2[%c0_35, %c0_36, %c0_37, %c11] : memref<1x1x8x100xbf16, #tpu.memory_space<vmem>>, vector<1x1x8x78xbf16>
    %36 = vector.shape_cast %35 : vector<1x1x8x78xbf16> to vector<8x78xbf16>
    %37 = arith.extf %36 : vector<8x78xbf16> to vector<8x78xf32>
    %cst_38 = arith.constant dense<0.000000e+00> : vector<4x78xf32>
    %38 = tpu.matmul %34, %37, %cst_38 {dimension_numbers = #tpu.dot_dimension_numbers<[1], [0], [0], [1], [0, 0, 1, 1], [], []>} : vector<4x8xf32>, vector<8x78xf32>, vector<4x78xf32> -> vector<4x78xf32>
    %39 = arith.addf %32, %38 : vector<4x78xf32>
    %c5 = arith.constant 5 : index
    %c0_39 = arith.constant 0 : index
    %c0_40 = arith.constant 0 : index
    %40 = vector.load %arg7[%c5, %c0_39, %c0_40] : memref<27x4x8xf32, #tpu.memory_space<vmem>>, vector<1x4x8xf32>
    %41 = vector.shape_cast %40 : vector<1x4x8xf32> to vector<4x8xf32>
    %c0_41 = arith.constant 0 : index
    %c0_42 = arith.constant 0 : index
    %c0_43 = arith.constant 0 : index
    %c12 = arith.constant 12 : index
    %42 = vector.load %arg2[%c0_41, %c0_42, %c0_43, %c12] : memref<1x1x8x100xbf16, #tpu.memory_space<vmem>>, vector<1x1x8x78xbf16>
    %43 = vector.shape_cast %42 : vector<1x1x8x78xbf16> to vector<8x78xbf16>
    %44 = arith.extf %43 : vector<8x78xbf16> to vector<8x78xf32>
    %cst_44 = arith.constant dense<0.000000e+00> : vector<4x78xf32>
    %45 = tpu.matmul %41, %44, %cst_44 {dimension_numbers = #tpu.dot_dimension_numbers<[1], [0], [0], [1], [0, 0, 1, 1], [], []>} : vector<4x8xf32>, vector<8x78xf32>, vector<4x78xf32> -> vector<4x78xf32>
    %46 = arith.addf %39, %45 : vector<4x78xf32>
    %c6 = arith.constant 6 : index
    %c0_45 = arith.constant 0 : index
    %c0_46 = arith.constant 0 : index
    %47 = vector.load %arg7[%c6, %c0_45, %c0_46] : memref<27x4x8xf32, #tpu.memory_space<vmem>>, vector<1x4x8xf32>
    %48 = vector.shape_cast %47 : vector<1x4x8xf32> to vector<4x8xf32>
    %c0_47 = arith.constant 0 : index
    %c0_48 = arith.constant 0 : index
    %c0_49 = arith.constant 0 : index
    %c20 = arith.constant 20 : index
    %49 = vector.load %arg2[%c0_47, %c0_48, %c0_49, %c20] : memref<1x1x8x100xbf16, #tpu.memory_space<vmem>>, vector<1x1x8x78xbf16>
    %50 = vector.shape_cast %49 : vector<1x1x8x78xbf16> to vector<8x78xbf16>
    %51 = arith.extf %50 : vector<8x78xbf16> to vector<8x78xf32>
    %cst_50 = arith.constant dense<0.000000e+00> : vector<4x78xf32>
    %52 = tpu.matmul %48, %51, %cst_50 {dimension_numbers = #tpu.dot_dimension_numbers<[1], [0], [0], [1], [0, 0, 1, 1], [], []>} : vector<4x8xf32>, vector<8x78xf32>, vector<4x78xf32> -> vector<4x78xf32>
    %53 = arith.addf %46, %52 : vector<4x78xf32>
    %c7 = arith.constant 7 : index
    %c0_51 = arith.constant 0 : index
    %c0_52 = arith.constant 0 : index
    %54 = vector.load %arg7[%c7, %c0_51, %c0_52] : memref<27x4x8xf32, #tpu.memory_space<vmem>>, vector<1x4x8xf32>
    %55 = vector.shape_cast %54 : vector<1x4x8xf32> to vector<4x8xf32>
    %c0_53 = arith.constant 0 : index
    %c0_54 = arith.constant 0 : index
    %c0_55 = arith.constant 0 : index
    %c21 = arith.constant 21 : index
    %56 = vector.load %arg2[%c0_53, %c0_54, %c0_55, %c21] : memref<1x1x8x100xbf16, #tpu.memory_space<vmem>>, vector<1x1x8x78xbf16>
    %57 = vector.shape_cast %56 : vector<1x1x8x78xbf16> to vector<8x78xbf16>
    %58 = arith.extf %57 : vector<8x78xbf16> to vector<8x78xf32>
    %cst_56 = arith.constant dense<0.000000e+00> : vector<4x78xf32>
    %59 = tpu.matmul %55, %58, %cst_56 {dimension_numbers = #tpu.dot_dimension_numbers<[1], [0], [0], [1], [0, 0, 1, 1], [], []>} : vector<4x8xf32>, vector<8x78xf32>, vector<4x78xf32> -> vector<4x78xf32>
    %60 = arith.addf %53, %59 : vector<4x78xf32>
    %c8 = arith.constant 8 : index
    %c0_57 = arith.constant 0 : index
    %c0_58 = arith.constant 0 : index
    %61 = vector.load %arg7[%c8, %c0_57, %c0_58] : memref<27x4x8xf32, #tpu.memory_space<vmem>>, vector<1x4x8xf32>
    %62 = vector.shape_cast %61 : vector<1x4x8xf32> to vector<4x8xf32>
    %c0_59 = arith.constant 0 : index
    %c0_60 = arith.constant 0 : index
    %c0_61 = arith.constant 0 : index
    %c22 = arith.constant 22 : index
    %63 = vector.load %arg2[%c0_59, %c0_60, %c0_61, %c22] : memref<1x1x8x100xbf16, #tpu.memory_space<vmem>>, vector<1x1x8x78xbf16>
    %64 = vector.shape_cast %63 : vector<1x1x8x78xbf16> to vector<8x78xbf16>
    %65 = arith.extf %64 : vector<8x78xbf16> to vector<8x78xf32>
    %cst_62 = arith.constant dense<0.000000e+00> : vector<4x78xf32>
    %66 = tpu.matmul %62, %65, %cst_62 {dimension_numbers = #tpu.dot_dimension_numbers<[1], [0], [0], [1], [0, 0, 1, 1], [], []>} : vector<4x8xf32>, vector<8x78xf32>, vector<4x78xf32> -> vector<4x78xf32>
    %67 = arith.addf %60, %66 : vector<4x78xf32>
    %c9 = arith.constant 9 : index
    %c0_63 = arith.constant 0 : index
    %c0_64 = arith.constant 0 : index
    %68 = vector.load %arg7[%c9, %c0_63, %c0_64] : memref<27x4x8xf32, #tpu.memory_space<vmem>>, vector<1x4x8xf32>
    %69 = vector.shape_cast %68 : vector<1x4x8xf32> to vector<4x8xf32>
    %c0_65 = arith.constant 0 : index
    %c0_66 = arith.constant 0 : index
    %c0_67 = arith.constant 0 : index
    %c0_68 = arith.constant 0 : index
    %70 = vector.load %arg3[%c0_65, %c0_66, %c0_67, %c0_68] : memref<1x1x8x100xbf16, #tpu.memory_space<vmem>>, vector<1x1x8x78xbf16>
    %71 = vector.shape_cast %70 : vector<1x1x8x78xbf16> to vector<8x78xbf16>
    %72 = arith.extf %71 : vector<8x78xbf16> to vector<8x78xf32>
    %cst_69 = arith.constant dense<0.000000e+00> : vector<4x78xf32>
    %73 = tpu.matmul %69, %72, %cst_69 {dimension_numbers = #tpu.dot_dimension_numbers<[1], [0], [0], [1], [0, 0, 1, 1], [], []>} : vector<4x8xf32>, vector<8x78xf32>, vector<4x78xf32> -> vector<4x78xf32>
    %74 = arith.addf %67, %73 : vector<4x78xf32>
    %c10_70 = arith.constant 10 : index
    %c0_71 = arith.constant 0 : index
    %c0_72 = arith.constant 0 : index
    %75 = vector.load %arg7[%c10_70, %c0_71, %c0_72] : memref<27x4x8xf32, #tpu.memory_space<vmem>>, vector<1x4x8xf32>
    %76 = vector.shape_cast %75 : vector<1x4x8xf32> to vector<4x8xf32>
    %c0_73 = arith.constant 0 : index
    %c0_74 = arith.constant 0 : index
    %c0_75 = arith.constant 0 : index
    %c1_76 = arith.constant 1 : index
    %77 = vector.load %arg3[%c0_73, %c0_74, %c0_75, %c1_76] : memref<1x1x8x100xbf16, #tpu.memory_space<vmem>>, vector<1x1x8x78xbf16>
    %78 = vector.shape_cast %77 : vector<1x1x8x78xbf16> to vector<8x78xbf16>
    %79 = arith.extf %78 : vector<8x78xbf16> to vector<8x78xf32>
    %cst_77 = arith.constant dense<0.000000e+00> : vector<4x78xf32>
    %80 = tpu.matmul %76, %79, %cst_77 {dimension_numbers = #tpu.dot_dimension_numbers<[1], [0], [0], [1], [0, 0, 1, 1], [], []>} : vector<4x8xf32>, vector<8x78xf32>, vector<4x78xf32> -> vector<4x78xf32>
    %81 = arith.addf %74, %80 : vector<4x78xf32>
    %c11_78 = arith.constant 11 : index
    %c0_79 = arith.constant 0 : index
    %c0_80 = arith.constant 0 : index
    %82 = vector.load %arg7[%c11_78, %c0_79, %c0_80] : memref<27x4x8xf32, #tpu.memory_space<vmem>>, vector<1x4x8xf32>
    %83 = vector.shape_cast %82 : vector<1x4x8xf32> to vector<4x8xf32>
    %c0_81 = arith.constant 0 : index
    %c0_82 = arith.constant 0 : index
    %c0_83 = arith.constant 0 : index
    %c2_84 = arith.constant 2 : index
    %84 = vector.load %arg3[%c0_81, %c0_82, %c0_83, %c2_84] : memref<1x1x8x100xbf16, #tpu.memory_space<vmem>>, vector<1x1x8x78xbf16>
    %85 = vector.shape_cast %84 : vector<1x1x8x78xbf16> to vector<8x78xbf16>
    %86 = arith.extf %85 : vector<8x78xbf16> to vector<8x78xf32>
    %cst_85 = arith.constant dense<0.000000e+00> : vector<4x78xf32>
    %87 = tpu.matmul %83, %86, %cst_85 {dimension_numbers = #tpu.dot_dimension_numbers<[1], [0], [0], [1], [0, 0, 1, 1], [], []>} : vector<4x8xf32>, vector<8x78xf32>, vector<4x78xf32> -> vector<4x78xf32>
    %88 = arith.addf %81, %87 : vector<4x78xf32>
    %c12_86 = arith.constant 12 : index
    %c0_87 = arith.constant 0 : index
    %c0_88 = arith.constant 0 : index
    %89 = vector.load %arg7[%c12_86, %c0_87, %c0_88] : memref<27x4x8xf32, #tpu.memory_space<vmem>>, vector<1x4x8xf32>
    %90 = vector.shape_cast %89 : vector<1x4x8xf32> to vector<4x8xf32>
    %c0_89 = arith.constant 0 : index
    %c0_90 = arith.constant 0 : index
    %c0_91 = arith.constant 0 : index
    %c10_92 = arith.constant 10 : index
    %91 = vector.load %arg3[%c0_89, %c0_90, %c0_91, %c10_92] : memref<1x1x8x100xbf16, #tpu.memory_space<vmem>>, vector<1x1x8x78xbf16>
    %92 = vector.shape_cast %91 : vector<1x1x8x78xbf16> to vector<8x78xbf16>
    %93 = arith.extf %92 : vector<8x78xbf16> to vector<8x78xf32>
    %cst_93 = arith.constant dense<0.000000e+00> : vector<4x78xf32>
    %94 = tpu.matmul %90, %93, %cst_93 {dimension_numbers = #tpu.dot_dimension_numbers<[1], [0], [0], [1], [0, 0, 1, 1], [], []>} : vector<4x8xf32>, vector<8x78xf32>, vector<4x78xf32> -> vector<4x78xf32>
    %95 = arith.addf %88, %94 : vector<4x78xf32>
    %c13 = arith.constant 13 : index
    %c0_94 = arith.constant 0 : index
    %c0_95 = arith.constant 0 : index
    %96 = vector.load %arg7[%c13, %c0_94, %c0_95] : memref<27x4x8xf32, #tpu.memory_space<vmem>>, vector<1x4x8xf32>
    %97 = vector.shape_cast %96 : vector<1x4x8xf32> to vector<4x8xf32>
    %c0_96 = arith.constant 0 : index
    %c0_97 = arith.constant 0 : index
    %c0_98 = arith.constant 0 : index
    %c11_99 = arith.constant 11 : index
    %98 = vector.load %arg3[%c0_96, %c0_97, %c0_98, %c11_99] : memref<1x1x8x100xbf16, #tpu.memory_space<vmem>>, vector<1x1x8x78xbf16>
    %99 = vector.shape_cast %98 : vector<1x1x8x78xbf16> to vector<8x78xbf16>
    %100 = arith.extf %99 : vector<8x78xbf16> to vector<8x78xf32>
    %cst_100 = arith.constant dense<0.000000e+00> : vector<4x78xf32>
    %101 = tpu.matmul %97, %100, %cst_100 {dimension_numbers = #tpu.dot_dimension_numbers<[1], [0], [0], [1], [0, 0, 1, 1], [], []>} : vector<4x8xf32>, vector<8x78xf32>, vector<4x78xf32> -> vector<4x78xf32>
    %102 = arith.addf %95, %101 : vector<4x78xf32>
    %c14 = arith.constant 14 : index
    %c0_101 = arith.constant 0 : index
    %c0_102 = arith.constant 0 : index
    %103 = vector.load %arg7[%c14, %c0_101, %c0_102] : memref<27x4x8xf32, #tpu.memory_space<vmem>>, vector<1x4x8xf32>
    %104 = vector.shape_cast %103 : vector<1x4x8xf32> to vector<4x8xf32>
    %c0_103 = arith.constant 0 : index
    %c0_104 = arith.constant 0 : index
    %c0_105 = arith.constant 0 : index
    %c12_106 = arith.constant 12 : index
    %105 = vector.load %arg3[%c0_103, %c0_104, %c0_105, %c12_106] : memref<1x1x8x100xbf16, #tpu.memory_space<vmem>>, vector<1x1x8x78xbf16>
    %106 = vector.shape_cast %105 : vector<1x1x8x78xbf16> to vector<8x78xbf16>
    %107 = arith.extf %106 : vector<8x78xbf16> to vector<8x78xf32>
    %cst_107 = arith.constant dense<0.000000e+00> : vector<4x78xf32>
    %108 = tpu.matmul %104, %107, %cst_107 {dimension_numbers = #tpu.dot_dimension_numbers<[1], [0], [0], [1], [0, 0, 1, 1], [], []>} : vector<4x8xf32>, vector<8x78xf32>, vector<4x78xf32> -> vector<4x78xf32>
    %109 = arith.addf %102, %108 : vector<4x78xf32>
    %c15 = arith.constant 15 : index
    %c0_108 = arith.constant 0 : index
    %c0_109 = arith.constant 0 : index
    %110 = vector.load %arg7[%c15, %c0_108, %c0_109] : memref<27x4x8xf32, #tpu.memory_space<vmem>>, vector<1x4x8xf32>
    %111 = vector.shape_cast %110 : vector<1x4x8xf32> to vector<4x8xf32>
    %c0_110 = arith.constant 0 : index
    %c0_111 = arith.constant 0 : index
    %c0_112 = arith.constant 0 : index
    %c20_113 = arith.constant 20 : index
    %112 = vector.load %arg3[%c0_110, %c0_111, %c0_112, %c20_113] : memref<1x1x8x100xbf16, #tpu.memory_space<vmem>>, vector<1x1x8x78xbf16>
    %113 = vector.shape_cast %112 : vector<1x1x8x78xbf16> to vector<8x78xbf16>
    %114 = arith.extf %113 : vector<8x78xbf16> to vector<8x78xf32>
    %cst_114 = arith.constant dense<0.000000e+00> : vector<4x78xf32>
    %115 = tpu.matmul %111, %114, %cst_114 {dimension_numbers = #tpu.dot_dimension_numbers<[1], [0], [0], [1], [0, 0, 1, 1], [], []>} : vector<4x8xf32>, vector<8x78xf32>, vector<4x78xf32> -> vector<4x78xf32>
    %116 = arith.addf %109, %115 : vector<4x78xf32>
    %c16 = arith.constant 16 : index
    %c0_115 = arith.constant 0 : index
    %c0_116 = arith.constant 0 : index
    %117 = vector.load %arg7[%c16, %c0_115, %c0_116] : memref<27x4x8xf32, #tpu.memory_space<vmem>>, vector<1x4x8xf32>
    %118 = vector.shape_cast %117 : vector<1x4x8xf32> to vector<4x8xf32>
    %c0_117 = arith.constant 0 : index
    %c0_118 = arith.constant 0 : index
    %c0_119 = arith.constant 0 : index
    %c21_120 = arith.constant 21 : index
    %119 = vector.load %arg3[%c0_117, %c0_118, %c0_119, %c21_120] : memref<1x1x8x100xbf16, #tpu.memory_space<vmem>>, vector<1x1x8x78xbf16>
    %120 = vector.shape_cast %119 : vector<1x1x8x78xbf16> to vector<8x78xbf16>
    %121 = arith.extf %120 : vector<8x78xbf16> to vector<8x78xf32>
    %cst_121 = arith.constant dense<0.000000e+00> : vector<4x78xf32>
    %122 = tpu.matmul %118, %121, %cst_121 {dimension_numbers = #tpu.dot_dimension_numbers<[1], [0], [0], [1], [0, 0, 1, 1], [], []>} : vector<4x8xf32>, vector<8x78xf32>, vector<4x78xf32> -> vector<4x78xf32>
    %123 = arith.addf %116, %122 : vector<4x78xf32>
    %c17 = arith.constant 17 : index
    %c0_122 = arith.constant 0 : index
    %c0_123 = arith.constant 0 : index
    %124 = vector.load %arg7[%c17, %c0_122, %c0_123] : memref<27x4x8xf32, #tpu.memory_space<vmem>>, vector<1x4x8xf32>
    %125 = vector.shape_cast %124 : vector<1x4x8xf32> to vector<4x8xf32>
    %c0_124 = arith.constant 0 : index
    %c0_125 = arith.constant 0 : index
    %c0_126 = arith.constant 0 : index
    %c22_127 = arith.constant 22 : index
    %126 = vector.load %arg3[%c0_124, %c0_125, %c0_126, %c22_127] : memref<1x1x8x100xbf16, #tpu.memory_space<vmem>>, vector<1x1x8x78xbf16>
    %127 = vector.shape_cast %126 : vector<1x1x8x78xbf16> to vector<8x78xbf16>
    %128 = arith.extf %127 : vector<8x78xbf16> to vector<8x78xf32>
    %cst_128 = arith.constant dense<0.000000e+00> : vector<4x78xf32>
    %129 = tpu.matmul %125, %128, %cst_128 {dimension_numbers = #tpu.dot_dimension_numbers<[1], [0], [0], [1], [0, 0, 1, 1], [], []>} : vector<4x8xf32>, vector<8x78xf32>, vector<4x78xf32> -> vector<4x78xf32>
    %130 = arith.addf %123, %129 : vector<4x78xf32>
    %c18 = arith.constant 18 : index
    %c0_129 = arith.constant 0 : index
    %c0_130 = arith.constant 0 : index
    %131 = vector.load %arg7[%c18, %c0_129, %c0_130] : memref<27x4x8xf32, #tpu.memory_space<vmem>>, vector<1x4x8xf32>
    %132 = vector.shape_cast %131 : vector<1x4x8xf32> to vector<4x8xf32>
    %c0_131 = arith.constant 0 : index
    %c0_132 = arith.constant 0 : index
    %c0_133 = arith.constant 0 : index
    %c0_134 = arith.constant 0 : index
    %133 = vector.load %arg4[%c0_131, %c0_132, %c0_133, %c0_134] : memref<1x1x8x100xbf16, #tpu.memory_space<vmem>>, vector<1x1x8x78xbf16>
    %134 = vector.shape_cast %133 : vector<1x1x8x78xbf16> to vector<8x78xbf16>
    %135 = arith.extf %134 : vector<8x78xbf16> to vector<8x78xf32>
    %cst_135 = arith.constant dense<0.000000e+00> : vector<4x78xf32>
    %136 = tpu.matmul %132, %135, %cst_135 {dimension_numbers = #tpu.dot_dimension_numbers<[1], [0], [0], [1], [0, 0, 1, 1], [], []>} : vector<4x8xf32>, vector<8x78xf32>, vector<4x78xf32> -> vector<4x78xf32>
    %137 = arith.addf %130, %136 : vector<4x78xf32>
    %c19 = arith.constant 19 : index
    %c0_136 = arith.constant 0 : index
    %c0_137 = arith.constant 0 : index
    %138 = vector.load %arg7[%c19, %c0_136, %c0_137] : memref<27x4x8xf32, #tpu.memory_space<vmem>>, vector<1x4x8xf32>
    %139 = vector.shape_cast %138 : vector<1x4x8xf32> to vector<4x8xf32>
    %c0_138 = arith.constant 0 : index
    %c0_139 = arith.constant 0 : index
    %c0_140 = arith.constant 0 : index
    %c1_141 = arith.constant 1 : index
    %140 = vector.load %arg4[%c0_138, %c0_139, %c0_140, %c1_141] : memref<1x1x8x100xbf16, #tpu.memory_space<vmem>>, vector<1x1x8x78xbf16>
    %141 = vector.shape_cast %140 : vector<1x1x8x78xbf16> to vector<8x78xbf16>
    %142 = arith.extf %141 : vector<8x78xbf16> to vector<8x78xf32>
    %cst_142 = arith.constant dense<0.000000e+00> : vector<4x78xf32>
    %143 = tpu.matmul %139, %142, %cst_142 {dimension_numbers = #tpu.dot_dimension_numbers<[1], [0], [0], [1], [0, 0, 1, 1], [], []>} : vector<4x8xf32>, vector<8x78xf32>, vector<4x78xf32> -> vector<4x78xf32>
    %144 = arith.addf %137, %143 : vector<4x78xf32>
    %c20_143 = arith.constant 20 : index
    %c0_144 = arith.constant 0 : index
    %c0_145 = arith.constant 0 : index
    %145 = vector.load %arg7[%c20_143, %c0_144, %c0_145] : memref<27x4x8xf32, #tpu.memory_space<vmem>>, vector<1x4x8xf32>
    %146 = vector.shape_cast %145 : vector<1x4x8xf32> to vector<4x8xf32>
    %c0_146 = arith.constant 0 : index
    %c0_147 = arith.constant 0 : index
    %c0_148 = arith.constant 0 : index
    %c2_149 = arith.constant 2 : index
    %147 = vector.load %arg4[%c0_146, %c0_147, %c0_148, %c2_149] : memref<1x1x8x100xbf16, #tpu.memory_space<vmem>>, vector<1x1x8x78xbf16>
    %148 = vector.shape_cast %147 : vector<1x1x8x78xbf16> to vector<8x78xbf16>
    %149 = arith.extf %148 : vector<8x78xbf16> to vector<8x78xf32>
    %cst_150 = arith.constant dense<0.000000e+00> : vector<4x78xf32>
    %150 = tpu.matmul %146, %149, %cst_150 {dimension_numbers = #tpu.dot_dimension_numbers<[1], [0], [0], [1], [0, 0, 1, 1], [], []>} : vector<4x8xf32>, vector<8x78xf32>, vector<4x78xf32> -> vector<4x78xf32>
    %151 = arith.addf %144, %150 : vector<4x78xf32>
    %c21_151 = arith.constant 21 : index
    %c0_152 = arith.constant 0 : index
    %c0_153 = arith.constant 0 : index
    %152 = vector.load %arg7[%c21_151, %c0_152, %c0_153] : memref<27x4x8xf32, #tpu.memory_space<vmem>>, vector<1x4x8xf32>
    %153 = vector.shape_cast %152 : vector<1x4x8xf32> to vector<4x8xf32>
    %c0_154 = arith.constant 0 : index
    %c0_155 = arith.constant 0 : index
    %c0_156 = arith.constant 0 : index
    %c10_157 = arith.constant 10 : index
    %154 = vector.load %arg4[%c0_154, %c0_155, %c0_156, %c10_157] : memref<1x1x8x100xbf16, #tpu.memory_space<vmem>>, vector<1x1x8x78xbf16>
    %155 = vector.shape_cast %154 : vector<1x1x8x78xbf16> to vector<8x78xbf16>
    %156 = arith.extf %155 : vector<8x78xbf16> to vector<8x78xf32>
    %cst_158 = arith.constant dense<0.000000e+00> : vector<4x78xf32>
    %157 = tpu.matmul %153, %156, %cst_158 {dimension_numbers = #tpu.dot_dimension_numbers<[1], [0], [0], [1], [0, 0, 1, 1], [], []>} : vector<4x8xf32>, vector<8x78xf32>, vector<4x78xf32> -> vector<4x78xf32>
    %158 = arith.addf %151, %157 : vector<4x78xf32>
    %c22_159 = arith.constant 22 : index
    %c0_160 = arith.constant 0 : index
    %c0_161 = arith.constant 0 : index
    %159 = vector.load %arg7[%c22_159, %c0_160, %c0_161] : memref<27x4x8xf32, #tpu.memory_space<vmem>>, vector<1x4x8xf32>
    %160 = vector.shape_cast %159 : vector<1x4x8xf32> to vector<4x8xf32>
    %c0_162 = arith.constant 0 : index
    %c0_163 = arith.constant 0 : index
    %c0_164 = arith.constant 0 : index
    %c11_165 = arith.constant 11 : index
    %161 = vector.load %arg4[%c0_162, %c0_163, %c0_164, %c11_165] : memref<1x1x8x100xbf16, #tpu.memory_space<vmem>>, vector<1x1x8x78xbf16>
    %162 = vector.shape_cast %161 : vector<1x1x8x78xbf16> to vector<8x78xbf16>
    %163 = arith.extf %162 : vector<8x78xbf16> to vector<8x78xf32>
    %cst_166 = arith.constant dense<0.000000e+00> : vector<4x78xf32>
    %164 = tpu.matmul %160, %163, %cst_166 {dimension_numbers = #tpu.dot_dimension_numbers<[1], [0], [0], [1], [0, 0, 1, 1], [], []>} : vector<4x8xf32>, vector<8x78xf32>, vector<4x78xf32> -> vector<4x78xf32>
    %165 = arith.addf %158, %164 : vector<4x78xf32>
    %c23 = arith.constant 23 : index
    %c0_167 = arith.constant 0 : index
    %c0_168 = arith.constant 0 : index
    %166 = vector.load %arg7[%c23, %c0_167, %c0_168] : memref<27x4x8xf32, #tpu.memory_space<vmem>>, vector<1x4x8xf32>
    %167 = vector.shape_cast %166 : vector<1x4x8xf32> to vector<4x8xf32>
    %c0_169 = arith.constant 0 : index
    %c0_170 = arith.constant 0 : index
    %c0_171 = arith.constant 0 : index
    %c12_172 = arith.constant 12 : index
    %168 = vector.load %arg4[%c0_169, %c0_170, %c0_171, %c12_172] : memref<1x1x8x100xbf16, #tpu.memory_space<vmem>>, vector<1x1x8x78xbf16>
    %169 = vector.shape_cast %168 : vector<1x1x8x78xbf16> to vector<8x78xbf16>
    %170 = arith.extf %169 : vector<8x78xbf16> to vector<8x78xf32>
    %cst_173 = arith.constant dense<0.000000e+00> : vector<4x78xf32>
    %171 = tpu.matmul %167, %170, %cst_173 {dimension_numbers = #tpu.dot_dimension_numbers<[1], [0], [0], [1], [0, 0, 1, 1], [], []>} : vector<4x8xf32>, vector<8x78xf32>, vector<4x78xf32> -> vector<4x78xf32>
    %172 = arith.addf %165, %171 : vector<4x78xf32>
    %c24 = arith.constant 24 : index
    %c0_174 = arith.constant 0 : index
    %c0_175 = arith.constant 0 : index
    %173 = vector.load %arg7[%c24, %c0_174, %c0_175] : memref<27x4x8xf32, #tpu.memory_space<vmem>>, vector<1x4x8xf32>
    %174 = vector.shape_cast %173 : vector<1x4x8xf32> to vector<4x8xf32>
    %c0_176 = arith.constant 0 : index
    %c0_177 = arith.constant 0 : index
    %c0_178 = arith.constant 0 : index
    %c20_179 = arith.constant 20 : index
    %175 = vector.load %arg4[%c0_176, %c0_177, %c0_178, %c20_179] : memref<1x1x8x100xbf16, #tpu.memory_space<vmem>>, vector<1x1x8x78xbf16>
    %176 = vector.shape_cast %175 : vector<1x1x8x78xbf16> to vector<8x78xbf16>
    %177 = arith.extf %176 : vector<8x78xbf16> to vector<8x78xf32>
    %cst_180 = arith.constant dense<0.000000e+00> : vector<4x78xf32>
    %178 = tpu.matmul %174, %177, %cst_180 {dimension_numbers = #tpu.dot_dimension_numbers<[1], [0], [0], [1], [0, 0, 1, 1], [], []>} : vector<4x8xf32>, vector<8x78xf32>, vector<4x78xf32> -> vector<4x78xf32>
    %179 = arith.addf %172, %178 : vector<4x78xf32>
    %c25 = arith.constant 25 : index
    %c0_181 = arith.constant 0 : index
    %c0_182 = arith.constant 0 : index
    %180 = vector.load %arg7[%c25, %c0_181, %c0_182] : memref<27x4x8xf32, #tpu.memory_space<vmem>>, vector<1x4x8xf32>
    %181 = vector.shape_cast %180 : vector<1x4x8xf32> to vector<4x8xf32>
    %c0_183 = arith.constant 0 : index
    %c0_184 = arith.constant 0 : index
    %c0_185 = arith.constant 0 : index
    %c21_186 = arith.constant 21 : index
    %182 = vector.load %arg4[%c0_183, %c0_184, %c0_185, %c21_186] : memref<1x1x8x100xbf16, #tpu.memory_space<vmem>>, vector<1x1x8x78xbf16>
    %183 = vector.shape_cast %182 : vector<1x1x8x78xbf16> to vector<8x78xbf16>
    %184 = arith.extf %183 : vector<8x78xbf16> to vector<8x78xf32>
    %cst_187 = arith.constant dense<0.000000e+00> : vector<4x78xf32>
    %185 = tpu.matmul %181, %184, %cst_187 {dimension_numbers = #tpu.dot_dimension_numbers<[1], [0], [0], [1], [0, 0, 1, 1], [], []>} : vector<4x8xf32>, vector<8x78xf32>, vector<4x78xf32> -> vector<4x78xf32>
    %186 = arith.addf %179, %185 : vector<4x78xf32>
    %c26 = arith.constant 26 : index
    %c0_188 = arith.constant 0 : index
    %c0_189 = arith.constant 0 : index
    %187 = vector.load %arg7[%c26, %c0_188, %c0_189] : memref<27x4x8xf32, #tpu.memory_space<vmem>>, vector<1x4x8xf32>
    %188 = vector.shape_cast %187 : vector<1x4x8xf32> to vector<4x8xf32>
    %c0_190 = arith.constant 0 : index
    %c0_191 = arith.constant 0 : index
    %c0_192 = arith.constant 0 : index
    %c22_193 = arith.constant 22 : index
    %189 = vector.load %arg4[%c0_190, %c0_191, %c0_192, %c22_193] : memref<1x1x8x100xbf16, #tpu.memory_space<vmem>>, vector<1x1x8x78xbf16>
    %190 = vector.shape_cast %189 : vector<1x1x8x78xbf16> to vector<8x78xbf16>
    %191 = arith.extf %190 : vector<8x78xbf16> to vector<8x78xf32>
    %cst_194 = arith.constant dense<0.000000e+00> : vector<4x78xf32>
    %192 = tpu.matmul %188, %191, %cst_194 {dimension_numbers = #tpu.dot_dimension_numbers<[1], [0], [0], [1], [0, 0, 1, 1], [], []>} : vector<4x8xf32>, vector<8x78xf32>, vector<4x78xf32> -> vector<4x78xf32>
    %193 = arith.addf %186, %192 : vector<4x78xf32>
    %c1_i32 = arith.constant 1 : i32
    %194 = arith.subi %arg1, %c1_i32 : i32
    %c0_i32 = arith.constant 0 : i32
    %195 = arith.addi %194, %c0_i32 : i32
    %c0_i32_195 = arith.constant 0 : i32
    %196 = arith.cmpi sge, %195, %c0_i32_195 : i32
    %c1_i32_196 = arith.constant 1 : i32
    %197 = arith.subi %arg1, %c1_i32_196 : i32
    %c0_i32_197 = arith.constant 0 : i32
    %198 = arith.addi %197, %c0_i32_197 : i32
    %c7_i32 = arith.constant 7 : i32
    %199 = arith.cmpi sle, %198, %c7_i32 : i32
    %200 = arith.andi %196, %199 : i1
    %c0_198 = arith.constant 0 : index
    %c0_199 = arith.constant 0 : index
    %201 = vector.load %arg8[%c0_198, %c0_199] : memref<4x1xf32, #tpu.memory_space<vmem>>, vector<4x1xf32>
    %202 = vector.broadcast %201 : vector<4x1xf32> to vector<4x78xf32>
    %203 = arith.addf %193, %202 : vector<4x78xf32>
    %cst_200 = arith.constant 0.000000e+00 : f32
    %204 = vector.broadcast %cst_200 : f32 to vector<4x78xf32>
    %205 = arith.maximumf %203, %204 : vector<4x78xf32>
    %206 = vector.broadcast %0 : vector<1x78xf32> to vector<4x78xf32>
    %207 = arith.mulf %205, %206 : vector<4x78xf32>
    %208 = arith.extui %200 : i1 to i32
    %209 = arith.sitofp %208 : i32 to f32
    %210 = vector.broadcast %209 : f32 to vector<4x78xf32>
    %211 = arith.mulf %207, %210 : vector<4x78xf32>
    %c0_201 = arith.constant 0 : index
    %c128 = arith.constant 128 : index
    %212 = vector.load %arg13[%c0_201, %c128] : memref<4x217xf32, #tpu.memory_space<vmem>>, vector<4x78xf32>
    tpu.vector_store %arg13[%c0_201, %c128], %211 {strides = array<i32>} : memref<4x217xf32, #tpu.memory_space<vmem>>, vector<4x78xf32>,
    %c0_202 = arith.constant 0 : index
    %c0_203 = arith.constant 0 : index
    %c0_204 = arith.constant 0 : index
    %213 = vector.load %arg9[%c0_202, %c0_203, %c0_204] : memref<27x4x1xf32, #tpu.memory_space<vmem>>, vector<1x4x1xf32>
    %214 = vector.shape_cast %213 : vector<1x4x1xf32> to vector<4x1xf32>
    %c0_205 = arith.constant 0 : index
    %c117 = arith.constant 117 : index
    %215 = vector.load %arg13[%c0_205, %c117] : memref<4x217xf32, #tpu.memory_space<vmem>>, vector<4x78xf32>
    %216 = vector.broadcast %214 : vector<4x1xf32> to vector<4x78xf32>
    %217 = arith.mulf %216, %215 : vector<4x78xf32>
    %218 = arith.addf %3, %217 : vector<4x78xf32>
    %c1_206 = arith.constant 1 : index
    %c0_207 = arith.constant 0 : index
    %c0_208 = arith.constant 0 : index
    %219 = vector.load %arg9[%c1_206, %c0_207, %c0_208] : memref<27x4x1xf32, #tpu.memory_space<vmem>>, vector<1x4x1xf32>
    %220 = vector.shape_cast %219 : vector<1x4x1xf32> to vector<4x1xf32>
    %c0_209 = arith.constant 0 : index
    %c118 = arith.constant 118 : index
    %221 = vector.load %arg13[%c0_209, %c118] : memref<4x217xf32, #tpu.memory_space<vmem>>, vector<4x78xf32>
    %222 = vector.broadcast %220 : vector<4x1xf32> to vector<4x78xf32>
    %223 = arith.mulf %222, %221 : vector<4x78xf32>
    %224 = arith.addf %218, %223 : vector<4x78xf32>
    %c2_210 = arith.constant 2 : index
    %c0_211 = arith.constant 0 : index
    %c0_212 = arith.constant 0 : index
    %225 = vector.load %arg9[%c2_210, %c0_211, %c0_212] : memref<27x4x1xf32, #tpu.memory_space<vmem>>, vector<1x4x1xf32>
    %226 = vector.shape_cast %225 : vector<1x4x1xf32> to vector<4x1xf32>
    %c0_213 = arith.constant 0 : index
    %c119 = arith.constant 119 : index
    %227 = vector.load %arg13[%c0_213, %c119] : memref<4x217xf32, #tpu.memory_space<vmem>>, vector<4x78xf32>
    %228 = vector.broadcast %226 : vector<4x1xf32> to vector<4x78xf32>
    %229 = arith.mulf %228, %227 : vector<4x78xf32>
    %230 = arith.addf %224, %229 : vector<4x78xf32>
    %c3_214 = arith.constant 3 : index
    %c0_215 = arith.constant 0 : index
    %c0_216 = arith.constant 0 : index
    %231 = vector.load %arg9[%c3_214, %c0_215, %c0_216] : memref<27x4x1xf32, #tpu.memory_space<vmem>>, vector<1x4x1xf32>
    %232 = vector.shape_cast %231 : vector<1x4x1xf32> to vector<4x1xf32>
    %c0_217 = arith.constant 0 : index
    %c127 = arith.constant 127 : index
    %233 = vector.load %arg13[%c0_217, %c127] : memref<4x217xf32, #tpu.memory_space<vmem>>, vector<4x78xf32>
    %234 = vector.broadcast %232 : vector<4x1xf32> to vector<4x78xf32>
    %235 = arith.mulf %234, %233 : vector<4x78xf32>
    %236 = arith.addf %230, %235 : vector<4x78xf32>
    %c4_218 = arith.constant 4 : index
    %c0_219 = arith.constant 0 : index
    %c0_220 = arith.constant 0 : index
    %237 = vector.load %arg9[%c4_218, %c0_219, %c0_220] : memref<27x4x1xf32, #tpu.memory_space<vmem>>, vector<1x4x1xf32>
    %238 = vector.shape_cast %237 : vector<1x4x1xf32> to vector<4x1xf32>
    %c0_221 = arith.constant 0 : index
    %c128_222 = arith.constant 128 : index
    %239 = vector.load %arg13[%c0_221, %c128_222] : memref<4x217xf32, #tpu.memory_space<vmem>>, vector<4x78xf32>
    %240 = vector.broadcast %238 : vector<4x1xf32> to vector<4x78xf32>
    %241 = arith.mulf %240, %239 : vector<4x78xf32>
    %242 = arith.addf %236, %241 : vector<4x78xf32>
    %c5_223 = arith.constant 5 : index
    %c0_224 = arith.constant 0 : index
    %c0_225 = arith.constant 0 : index
    %243 = vector.load %arg9[%c5_223, %c0_224, %c0_225] : memref<27x4x1xf32, #tpu.memory_space<vmem>>, vector<1x4x1xf32>
    %244 = vector.shape_cast %243 : vector<1x4x1xf32> to vector<4x1xf32>
    %c0_226 = arith.constant 0 : index
    %c129 = arith.constant 129 : index
    %245 = vector.load %arg13[%c0_226, %c129] : memref<4x217xf32, #tpu.memory_space<vmem>>, vector<4x78xf32>
    %246 = vector.broadcast %244 : vector<4x1xf32> to vector<4x78xf32>
    %247 = arith.mulf %246, %245 : vector<4x78xf32>
    %248 = arith.addf %242, %247 : vector<4x78xf32>
    %c6_227 = arith.constant 6 : index
    %c0_228 = arith.constant 0 : index
    %c0_229 = arith.constant 0 : index
    %249 = vector.load %arg9[%c6_227, %c0_228, %c0_229] : memref<27x4x1xf32, #tpu.memory_space<vmem>>, vector<1x4x1xf32>
    %250 = vector.shape_cast %249 : vector<1x4x1xf32> to vector<4x1xf32>
    %c0_230 = arith.constant 0 : index
    %c137 = arith.constant 137 : index
    %251 = vector.load %arg13[%c0_230, %c137] : memref<4x217xf32, #tpu.memory_space<vmem>>, vector<4x78xf32>
    %252 = vector.broadcast %250 : vector<4x1xf32> to vector<4x78xf32>
    %253 = arith.mulf %252, %251 : vector<4x78xf32>
    %254 = arith.addf %248, %253 : vector<4x78xf32>
    %c7_231 = arith.constant 7 : index
    %c0_232 = arith.constant 0 : index
    %c0_233 = arith.constant 0 : index
    %255 = vector.load %arg9[%c7_231, %c0_232, %c0_233] : memref<27x4x1xf32, #tpu.memory_space<vmem>>, vector<1x4x1xf32>
    %256 = vector.shape_cast %255 : vector<1x4x1xf32> to vector<4x1xf32>
    %c0_234 = arith.constant 0 : index
    %c138 = arith.constant 138 : index
    %257 = vector.load %arg13[%c0_234, %c138] : memref<4x217xf32, #tpu.memory_space<vmem>>, vector<4x78xf32>
    %258 = vector.broadcast %256 : vector<4x1xf32> to vector<4x78xf32>
    %259 = arith.mulf %258, %257 : vector<4x78xf32>
    %260 = arith.addf %254, %259 : vector<4x78xf32>
    %c8_235 = arith.constant 8 : index
    %c0_236 = arith.constant 0 : index
    %c0_237 = arith.constant 0 : index
    %261 = vector.load %arg9[%c8_235, %c0_236, %c0_237] : memref<27x4x1xf32, #tpu.memory_space<vmem>>, vector<1x4x1xf32>
    %262 = vector.shape_cast %261 : vector<1x4x1xf32> to vector<4x1xf32>
    %c0_238 = arith.constant 0 : index
    %c139 = arith.constant 139 : index
    %263 = vector.load %arg13[%c0_238, %c139] : memref<4x217xf32, #tpu.memory_space<vmem>>, vector<4x78xf32>
    %264 = vector.broadcast %262 : vector<4x1xf32> to vector<4x78xf32>
    %265 = arith.mulf %264, %263 : vector<4x78xf32>
    %266 = arith.addf %260, %265 : vector<4x78xf32>
    %cst_239 = arith.constant 0.000000e+00 : f32
    %267 = vector.broadcast %cst_239 : f32 to vector<4x78xf32>
    %c0_240 = arith.constant 0 : index
    %c0_241 = arith.constant 0 : index
    %c0_242 = arith.constant 0 : index
    %268 = vector.load %arg7[%c0_240, %c0_241, %c0_242] : memref<27x4x8xf32, #tpu.memory_space<vmem>>, vector<1x4x8xf32>
    %269 = vector.shape_cast %268 : vector<1x4x8xf32> to vector<4x8xf32>
    %c0_243 = arith.constant 0 : index
    %c0_244 = arith.constant 0 : index
    %c0_245 = arith.constant 0 : index
    %c0_246 = arith.constant 0 : index
    %270 = vector.load %arg3[%c0_243, %c0_244, %c0_245, %c0_246] : memref<1x1x8x100xbf16, #tpu.memory_space<vmem>>, vector<1x1x8x78xbf16>
    %271 = vector.shape_cast %270 : vector<1x1x8x78xbf16> to vector<8x78xbf16>
    %272 = arith.extf %271 : vector<8x78xbf16> to vector<8x78xf32>
    %cst_247 = arith.constant dense<0.000000e+00> : vector<4x78xf32>
    %273 = tpu.matmul %269, %272, %cst_247 {dimension_numbers = #tpu.dot_dimension_numbers<[1], [0], [0], [1], [0, 0, 1, 1], [], []>} : vector<4x8xf32>, vector<8x78xf32>, vector<4x78xf32> -> vector<4x78xf32>
    %274 = arith.addf %267, %273 : vector<4x78xf32>
    %c1_248 = arith.constant 1 : index
    %c0_249 = arith.constant 0 : index
    %c0_250 = arith.constant 0 : index
    %275 = vector.load %arg7[%c1_248, %c0_249, %c0_250] : memref<27x4x8xf32, #tpu.memory_space<vmem>>, vector<1x4x8xf32>
    %276 = vector.shape_cast %275 : vector<1x4x8xf32> to vector<4x8xf32>
    %c0_251 = arith.constant 0 : index
    %c0_252 = arith.constant 0 : index
    %c0_253 = arith.constant 0 : index
    %c1_254 = arith.constant 1 : index
    %277 = vector.load %arg3[%c0_251, %c0_252, %c0_253, %c1_254] : memref<1x1x8x100xbf16, #tpu.memory_space<vmem>>, vector<1x1x8x78xbf16>
    %278 = vector.shape_cast %277 : vector<1x1x8x78xbf16> to vector<8x78xbf16>
    %279 = arith.extf %278 : vector<8x78xbf16> to vector<8x78xf32>
    %cst_255 = arith.constant dense<0.000000e+00> : vector<4x78xf32>
    %280 = tpu.matmul %276, %279, %cst_255 {dimension_numbers = #tpu.dot_dimension_numbers<[1], [0], [0], [1], [0, 0, 1, 1], [], []>} : vector<4x8xf32>, vector<8x78xf32>, vector<4x78xf32> -> vector<4x78xf32>
    %281 = arith.addf %274, %280 : vector<4x78xf32>
    %c2_256 = arith.constant 2 : index
    %c0_257 = arith.constant 0 : index
    %c0_258 = arith.constant 0 : index
    %282 = vector.load %arg7[%c2_256, %c0_257, %c0_258] : memref<27x4x8xf32, #tpu.memory_space<vmem>>, vector<1x4x8xf32>
    %283 = vector.shape_cast %282 : vector<1x4x8xf32> to vector<4x8xf32>
    %c0_259 = arith.constant 0 : index
    %c0_260 = arith.constant 0 : index
    %c0_261 = arith.constant 0 : index
    %c2_262 = arith.constant 2 : index
    %284 = vector.load %arg3[%c0_259, %c0_260, %c0_261, %c2_262] : memref<1x1x8x100xbf16, #tpu.memory_space<vmem>>, vector<1x1x8x78xbf16>
    %285 = vector.shape_cast %284 : vector<1x1x8x78xbf16> to vector<8x78xbf16>
    %286 = arith.extf %285 : vector<8x78xbf16> to vector<8x78xf32>
    %cst_263 = arith.constant dense<0.000000e+00> : vector<4x78xf32>
    %287 = tpu.matmul %283, %286, %cst_263 {dimension_numbers = #tpu.dot_dimension_numbers<[1], [0], [0], [1], [0, 0, 1, 1], [], []>} : vector<4x8xf32>, vector<8x78xf32>, vector<4x78xf32> -> vector<4x78xf32>
    %288 = arith.addf %281, %287 : vector<4x78xf32>
    %c3_264 = arith.constant 3 : index
    %c0_265 = arith.constant 0 : index
    %c0_266 = arith.constant 0 : index
    %289 = vector.load %arg7[%c3_264, %c0_265, %c0_266] : memref<27x4x8xf32, #tpu.memory_space<vmem>>, vector<1x4x8xf32>
    %290 = vector.shape_cast %289 : vector<1x4x8xf32> to vector<4x8xf32>
    %c0_267 = arith.constant 0 : index
    %c0_268 = arith.constant 0 : index
    %c0_269 = arith.constant 0 : index
    %c10_270 = arith.constant 10 : index
    %291 = vector.load %arg3[%c0_267, %c0_268, %c0_269, %c10_270] : memref<1x1x8x100xbf16, #tpu.memory_space<vmem>>, vector<1x1x8x78xbf16>
    %292 = vector.shape_cast %291 : vector<1x1x8x78xbf16> to vector<8x78xbf16>
    %293 = arith.extf %292 : vector<8x78xbf16> to vector<8x78xf32>
    %cst_271 = arith.constant dense<0.000000e+00> : vector<4x78xf32>
    %294 = tpu.matmul %290, %293, %cst_271 {dimension_numbers = #tpu.dot_dimension_numbers<[1], [0], [0], [1], [0, 0, 1, 1], [], []>} : vector<4x8xf32>, vector<8x78xf32>, vector<4x78xf32> -> vector<4x78xf32>
    %295 = arith.addf %288, %294 : vector<4x78xf32>
    %c4_272 = arith.constant 4 : index
    %c0_273 = arith.constant 0 : index
    %c0_274 = arith.constant 0 : index
    %296 = vector.load %arg7[%c4_272, %c0_273, %c0_274] : memref<27x4x8xf32, #tpu.memory_space<vmem>>, vector<1x4x8xf32>
    %297 = vector.shape_cast %296 : vector<1x4x8xf32> to vector<4x8xf32>
    %c0_275 = arith.constant 0 : index
    %c0_276 = arith.constant 0 : index
    %c0_277 = arith.constant 0 : index
    %c11_278 = arith.constant 11 : index
    %298 = vector.load %arg3[%c0_275, %c0_276, %c0_277, %c11_278] : memref<1x1x8x100xbf16, #tpu.memory_space<vmem>>, vector<1x1x8x78xbf16>
    %299 = vector.shape_cast %298 : vector<1x1x8x78xbf16> to vector<8x78xbf16>
    %300 = arith.extf %299 : vector<8x78xbf16> to vector<8x78xf32>
    %cst_279 = arith.constant dense<0.000000e+00> : vector<4x78xf32>
    %301 = tpu.matmul %297, %300, %cst_279 {dimension_numbers = #tpu.dot_dimension_numbers<[1], [0], [0], [1], [0, 0, 1, 1], [], []>} : vector<4x8xf32>, vector<8x78xf32>, vector<4x78xf32> -> vector<4x78xf32>
    %302 = arith.addf %295, %301 : vector<4x78xf32>
    %c5_280 = arith.constant 5 : index
    %c0_281 = arith.constant 0 : index
    %c0_282 = arith.constant 0 : index
    %303 = vector.load %arg7[%c5_280, %c0_281, %c0_282] : memref<27x4x8xf32, #tpu.memory_space<vmem>>, vector<1x4x8xf32>
    %304 = vector.shape_cast %303 : vector<1x4x8xf32> to vector<4x8xf32>
    %c0_283 = arith.constant 0 : index
    %c0_284 = arith.constant 0 : index
    %c0_285 = arith.constant 0 : index
    %c12_286 = arith.constant 12 : index
    %305 = vector.load %arg3[%c0_283, %c0_284, %c0_285, %c12_286] : memref<1x1x8x100xbf16, #tpu.memory_space<vmem>>, vector<1x1x8x78xbf16>
    %306 = vector.shape_cast %305 : vector<1x1x8x78xbf16> to vector<8x78xbf16>
    %307 = arith.extf %306 : vector<8x78xbf16> to vector<8x78xf32>
    %cst_287 = arith.constant dense<0.000000e+00> : vector<4x78xf32>
    %308 = tpu.matmul %304, %307, %cst_287 {dimension_numbers = #tpu.dot_dimension_numbers<[1], [0], [0], [1], [0, 0, 1, 1], [], []>} : vector<4x8xf32>, vector<8x78xf32>, vector<4x78xf32> -> vector<4x78xf32>
    %309 = arith.addf %302, %308 : vector<4x78xf32>
    %c6_288 = arith.constant 6 : index
    %c0_289 = arith.constant 0 : index
    %c0_290 = arith.constant 0 : index
    %310 = vector.load %arg7[%c6_288, %c0_289, %c0_290] : memref<27x4x8xf32, #tpu.memory_space<vmem>>, vector<1x4x8xf32>
    %311 = vector.shape_cast %310 : vector<1x4x8xf32> to vector<4x8xf32>
    %c0_291 = arith.constant 0 : index
    %c0_292 = arith.constant 0 : index
    %c0_293 = arith.constant 0 : index
    %c20_294 = arith.constant 20 : index
    %312 = vector.load %arg3[%c0_291, %c0_292, %c0_293, %c20_294] : memref<1x1x8x100xbf16, #tpu.memory_space<vmem>>, vector<1x1x8x78xbf16>
    %313 = vector.shape_cast %312 : vector<1x1x8x78xbf16> to vector<8x78xbf16>
    %314 = arith.extf %313 : vector<8x78xbf16> to vector<8x78xf32>
    %cst_295 = arith.constant dense<0.000000e+00> : vector<4x78xf32>
    %315 = tpu.matmul %311, %314, %cst_295 {dimension_numbers = #tpu.dot_dimension_numbers<[1], [0], [0], [1], [0, 0, 1, 1], [], []>} : vector<4x8xf32>, vector<8x78xf32>, vector<4x78xf32> -> vector<4x78xf32>
    %316 = arith.addf %309, %315 : vector<4x78xf32>
    %c7_296 = arith.constant 7 : index
    %c0_297 = arith.constant 0 : index
    %c0_298 = arith.constant 0 : index
    %317 = vector.load %arg7[%c7_296, %c0_297, %c0_298] : memref<27x4x8xf32, #tpu.memory_space<vmem>>, vector<1x4x8xf32>
    %318 = vector.shape_cast %317 : vector<1x4x8xf32> to vector<4x8xf32>
    %c0_299 = arith.constant 0 : index
    %c0_300 = arith.constant 0 : index
    %c0_301 = arith.constant 0 : index
    %c21_302 = arith.constant 21 : index
    %319 = vector.load %arg3[%c0_299, %c0_300, %c0_301, %c21_302] : memref<1x1x8x100xbf16, #tpu.memory_space<vmem>>, vector<1x1x8x78xbf16>
    %320 = vector.shape_cast %319 : vector<1x1x8x78xbf16> to vector<8x78xbf16>
    %321 = arith.extf %320 : vector<8x78xbf16> to vector<8x78xf32>
    %cst_303 = arith.constant dense<0.000000e+00> : vector<4x78xf32>
    %322 = tpu.matmul %318, %321, %cst_303 {dimension_numbers = #tpu.dot_dimension_numbers<[1], [0], [0], [1], [0, 0, 1, 1], [], []>} : vector<4x8xf32>, vector<8x78xf32>, vector<4x78xf32> -> vector<4x78xf32>
    %323 = arith.addf %316, %322 : vector<4x78xf32>
    %c8_304 = arith.constant 8 : index
    %c0_305 = arith.constant 0 : index
    %c0_306 = arith.constant 0 : index
    %324 = vector.load %arg7[%c8_304, %c0_305, %c0_306] : memref<27x4x8xf32, #tpu.memory_space<vmem>>, vector<1x4x8xf32>
    %325 = vector.shape_cast %324 : vector<1x4x8xf32> to vector<4x8xf32>
    %c0_307 = arith.constant 0 : index
    %c0_308 = arith.constant 0 : index
    %c0_309 = arith.constant 0 : index
    %c22_310 = arith.constant 22 : index
    %326 = vector.load %arg3[%c0_307, %c0_308, %c0_309, %c22_310] : memref<1x1x8x100xbf16, #tpu.memory_space<vmem>>, vector<1x1x8x78xbf16>
    %327 = vector.shape_cast %326 : vector<1x1x8x78xbf16> to vector<8x78xbf16>
    %328 = arith.extf %327 : vector<8x78xbf16> to vector<8x78xf32>
    %cst_311 = arith.constant dense<0.000000e+00> : vector<4x78xf32>
    %329 = tpu.matmul %325, %328, %cst_311 {dimension_numbers = #tpu.dot_dimension_numbers<[1], [0], [0], [1], [0, 0, 1, 1], [], []>} : vector<4x8xf32>, vector<8x78xf32>, vector<4x78xf32> -> vector<4x78xf32>
    %330 = arith.addf %323, %329 : vector<4x78xf32>
    %c9_312 = arith.constant 9 : index
    %c0_313 = arith.constant 0 : index
    %c0_314 = arith.constant 0 : index
    %331 = vector.load %arg7[%c9_312, %c0_313, %c0_314] : memref<27x4x8xf32, #tpu.memory_space<vmem>>, vector<1x4x8xf32>
    %332 = vector.shape_cast %331 : vector<1x4x8xf32> to vector<4x8xf32>
    %c0_315 = arith.constant 0 : index
    %c0_316 = arith.constant 0 : index
    %c0_317 = arith.constant 0 : index
    %c0_318 = arith.constant 0 : index
    %333 = vector.load %arg4[%c0_315, %c0_316, %c0_317, %c0_318] : memref<1x1x8x100xbf16, #tpu.memory_space<vmem>>, vector<1x1x8x78xbf16>
    %334 = vector.shape_cast %333 : vector<1x1x8x78xbf16> to vector<8x78xbf16>
    %335 = arith.extf %334 : vector<8x78xbf16> to vector<8x78xf32>
    %cst_319 = arith.constant dense<0.000000e+00> : vector<4x78xf32>
    %336 = tpu.matmul %332, %335, %cst_319 {dimension_numbers = #tpu.dot_dimension_numbers<[1], [0], [0], [1], [0, 0, 1, 1], [], []>} : vector<4x8xf32>, vector<8x78xf32>, vector<4x78xf32> -> vector<4x78xf32>
    %337 = arith.addf %330, %336 : vector<4x78xf32>
    %c10_320 = arith.constant 10 : index
    %c0_321 = arith.constant 0 : index
    %c0_322 = arith.constant 0 : index
    %338 = vector.load %arg7[%c10_320, %c0_321, %c0_322] : memref<27x4x8xf32, #tpu.memory_space<vmem>>, vector<1x4x8xf32>
    %339 = vector.shape_cast %338 : vector<1x4x8xf32> to vector<4x8xf32>
    %c0_323 = arith.constant 0 : index
    %c0_324 = arith.constant 0 : index
    %c0_325 = arith.constant 0 : index
    %c1_326 = arith.constant 1 : index
    %340 = vector.load %arg4[%c0_323, %c0_324, %c0_325, %c1_326] : memref<1x1x8x100xbf16, #tpu.memory_space<vmem>>, vector<1x1x8x78xbf16>
    %341 = vector.shape_cast %340 : vector<1x1x8x78xbf16> to vector<8x78xbf16>
    %342 = arith.extf %341 : vector<8x78xbf16> to vector<8x78xf32>
    %cst_327 = arith.constant dense<0.000000e+00> : vector<4x78xf32>
    %343 = tpu.matmul %339, %342, %cst_327 {dimension_numbers = #tpu.dot_dimension_numbers<[1], [0], [0], [1], [0, 0, 1, 1], [], []>} : vector<4x8xf32>, vector<8x78xf32>, vector<4x78xf32> -> vector<4x78xf32>
    %344 = arith.addf %337, %343 : vector<4x78xf32>
    %c11_328 = arith.constant 11 : index
    %c0_329 = arith.constant 0 : index
    %c0_330 = arith.constant 0 : index
    %345 = vector.load %arg7[%c11_328, %c0_329, %c0_330] : memref<27x4x8xf32, #tpu.memory_space<vmem>>, vector<1x4x8xf32>
    %346 = vector.shape_cast %345 : vector<1x4x8xf32> to vector<4x8xf32>
    %c0_331 = arith.constant 0 : index
    %c0_332 = arith.constant 0 : index
    %c0_333 = arith.constant 0 : index
    %c2_334 = arith.constant 2 : index
    %347 = vector.load %arg4[%c0_331, %c0_332, %c0_333, %c2_334] : memref<1x1x8x100xbf16, #tpu.memory_space<vmem>>, vector<1x1x8x78xbf16>
    %348 = vector.shape_cast %347 : vector<1x1x8x78xbf16> to vector<8x78xbf16>
    %349 = arith.extf %348 : vector<8x78xbf16> to vector<8x78xf32>
    %cst_335 = arith.constant dense<0.000000e+00> : vector<4x78xf32>
    %350 = tpu.matmul %346, %349, %cst_335 {dimension_numbers = #tpu.dot_dimension_numbers<[1], [0], [0], [1], [0, 0, 1, 1], [], []>} : vector<4x8xf32>, vector<8x78xf32>, vector<4x78xf32> -> vector<4x78xf32>
    %351 = arith.addf %344, %350 : vector<4x78xf32>
    %c12_336 = arith.constant 12 : index
    %c0_337 = arith.constant 0 : index
    %c0_338 = arith.constant 0 : index
    %352 = vector.load %arg7[%c12_336, %c0_337, %c0_338] : memref<27x4x8xf32, #tpu.memory_space<vmem>>, vector<1x4x8xf32>
    %353 = vector.shape_cast %352 : vector<1x4x8xf32> to vector<4x8xf32>
    %c0_339 = arith.constant 0 : index
    %c0_340 = arith.constant 0 : index
    %c0_341 = arith.constant 0 : index
    %c10_342 = arith.constant 10 : index
    %354 = vector.load %arg4[%c0_339, %c0_340, %c0_341, %c10_342] : memref<1x1x8x100xbf16, #tpu.memory_space<vmem>>, vector<1x1x8x78xbf16>
    %355 = vector.shape_cast %354 : vector<1x1x8x78xbf16> to vector<8x78xbf16>
    %356 = arith.extf %355 : vector<8x78xbf16> to vector<8x78xf32>
    %cst_343 = arith.constant dense<0.000000e+00> : vector<4x78xf32>
    %357 = tpu.matmul %353, %356, %cst_343 {dimension_numbers = #tpu.dot_dimension_numbers<[1], [0], [0], [1], [0, 0, 1, 1], [], []>} : vector<4x8xf32>, vector<8x78xf32>, vector<4x78xf32> -> vector<4x78xf32>
    %358 = arith.addf %351, %357 : vector<4x78xf32>
    %c13_344 = arith.constant 13 : index
    %c0_345 = arith.constant 0 : index
    %c0_346 = arith.constant 0 : index
    %359 = vector.load %arg7[%c13_344, %c0_345, %c0_346] : memref<27x4x8xf32, #tpu.memory_space<vmem>>, vector<1x4x8xf32>
    %360 = vector.shape_cast %359 : vector<1x4x8xf32> to vector<4x8xf32>
    %c0_347 = arith.constant 0 : index
    %c0_348 = arith.constant 0 : index
    %c0_349 = arith.constant 0 : index
    %c11_350 = arith.constant 11 : index
    %361 = vector.load %arg4[%c0_347, %c0_348, %c0_349, %c11_350] : memref<1x1x8x100xbf16, #tpu.memory_space<vmem>>, vector<1x1x8x78xbf16>
    %362 = vector.shape_cast %361 : vector<1x1x8x78xbf16> to vector<8x78xbf16>
    %363 = arith.extf %362 : vector<8x78xbf16> to vector<8x78xf32>
    %cst_351 = arith.constant dense<0.000000e+00> : vector<4x78xf32>
    %364 = tpu.matmul %360, %363, %cst_351 {dimension_numbers = #tpu.dot_dimension_numbers<[1], [0], [0], [1], [0, 0, 1, 1], [], []>} : vector<4x8xf32>, vector<8x78xf32>, vector<4x78xf32> -> vector<4x78xf32>
    %365 = arith.addf %358, %364 : vector<4x78xf32>
    %c14_352 = arith.constant 14 : index
    %c0_353 = arith.constant 0 : index
    %c0_354 = arith.constant 0 : index
    %366 = vector.load %arg7[%c14_352, %c0_353, %c0_354] : memref<27x4x8xf32, #tpu.memory_space<vmem>>, vector<1x4x8xf32>
    %367 = vector.shape_cast %366 : vector<1x4x8xf32> to vector<4x8xf32>
    %c0_355 = arith.constant 0 : index
    %c0_356 = arith.constant 0 : index
    %c0_357 = arith.constant 0 : index
    %c12_358 = arith.constant 12 : index
    %368 = vector.load %arg4[%c0_355, %c0_356, %c0_357, %c12_358] : memref<1x1x8x100xbf16, #tpu.memory_space<vmem>>, vector<1x1x8x78xbf16>
    %369 = vector.shape_cast %368 : vector<1x1x8x78xbf16> to vector<8x78xbf16>
    %370 = arith.extf %369 : vector<8x78xbf16> to vector<8x78xf32>
    %cst_359 = arith.constant dense<0.000000e+00> : vector<4x78xf32>
    %371 = tpu.matmul %367, %370, %cst_359 {dimension_numbers = #tpu.dot_dimension_numbers<[1], [0], [0], [1], [0, 0, 1, 1], [], []>} : vector<4x8xf32>, vector<8x78xf32>, vector<4x78xf32> -> vector<4x78xf32>
    %372 = arith.addf %365, %371 : vector<4x78xf32>
    %c15_360 = arith.constant 15 : index
    %c0_361 = arith.constant 0 : index
    %c0_362 = arith.constant 0 : index
    %373 = vector.load %arg7[%c15_360, %c0_361, %c0_362] : memref<27x4x8xf32, #tpu.memory_space<vmem>>, vector<1x4x8xf32>
    %374 = vector.shape_cast %373 : vector<1x4x8xf32> to vector<4x8xf32>
    %c0_363 = arith.constant 0 : index
    %c0_364 = arith.constant 0 : index
    %c0_365 = arith.constant 0 : index
    %c20_366 = arith.constant 20 : index
    %375 = vector.load %arg4[%c0_363, %c0_364, %c0_365, %c20_366] : memref<1x1x8x100xbf16, #tpu.memory_space<vmem>>, vector<1x1x8x78xbf16>
    %376 = vector.shape_cast %375 : vector<1x1x8x78xbf16> to vector<8x78xbf16>
    %377 = arith.extf %376 : vector<8x78xbf16> to vector<8x78xf32>
    %cst_367 = arith.constant dense<0.000000e+00> : vector<4x78xf32>
    %378 = tpu.matmul %374, %377, %cst_367 {dimension_numbers = #tpu.dot_dimension_numbers<[1], [0], [0], [1], [0, 0, 1, 1], [], []>} : vector<4x8xf32>, vector<8x78xf32>, vector<4x78xf32> -> vector<4x78xf32>
    %379 = arith.addf %372, %378 : vector<4x78xf32>
    %c16_368 = arith.constant 16 : index
    %c0_369 = arith.constant 0 : index
    %c0_370 = arith.constant 0 : index
    %380 = vector.load %arg7[%c16_368, %c0_369, %c0_370] : memref<27x4x8xf32, #tpu.memory_space<vmem>>, vector<1x4x8xf32>
    %381 = vector.shape_cast %380 : vector<1x4x8xf32> to vector<4x8xf32>
    %c0_371 = arith.constant 0 : index
    %c0_372 = arith.constant 0 : index
    %c0_373 = arith.constant 0 : index
    %c21_374 = arith.constant 21 : index
    %382 = vector.load %arg4[%c0_371, %c0_372, %c0_373, %c21_374] : memref<1x1x8x100xbf16, #tpu.memory_space<vmem>>, vector<1x1x8x78xbf16>
    %383 = vector.shape_cast %382 : vector<1x1x8x78xbf16> to vector<8x78xbf16>
    %384 = arith.extf %383 : vector<8x78xbf16> to vector<8x78xf32>
    %cst_375 = arith.constant dense<0.000000e+00> : vector<4x78xf32>
    %385 = tpu.matmul %381, %384, %cst_375 {dimension_numbers = #tpu.dot_dimension_numbers<[1], [0], [0], [1], [0, 0, 1, 1], [], []>} : vector<4x8xf32>, vector<8x78xf32>, vector<4x78xf32> -> vector<4x78xf32>
    %386 = arith.addf %379, %385 : vector<4x78xf32>
    %c17_376 = arith.constant 17 : index
    %c0_377 = arith.constant 0 : index
    %c0_378 = arith.constant 0 : index
    %387 = vector.load %arg7[%c17_376, %c0_377, %c0_378] : memref<27x4x8xf32, #tpu.memory_space<vmem>>, vector<1x4x8xf32>
    %388 = vector.shape_cast %387 : vector<1x4x8xf32> to vector<4x8xf32>
    %c0_379 = arith.constant 0 : index
    %c0_380 = arith.constant 0 : index
    %c0_381 = arith.constant 0 : index
    %c22_382 = arith.constant 22 : index
    %389 = vector.load %arg4[%c0_379, %c0_380, %c0_381, %c22_382] : memref<1x1x8x100xbf16, #tpu.memory_space<vmem>>, vector<1x1x8x78xbf16>
    %390 = vector.shape_cast %389 : vector<1x1x8x78xbf16> to vector<8x78xbf16>
    %391 = arith.extf %390 : vector<8x78xbf16> to vector<8x78xf32>
    %cst_383 = arith.constant dense<0.000000e+00> : vector<4x78xf32>
    %392 = tpu.matmul %388, %391, %cst_383 {dimension_numbers = #tpu.dot_dimension_numbers<[1], [0], [0], [1], [0, 0, 1, 1], [], []>} : vector<4x8xf32>, vector<8x78xf32>, vector<4x78xf32> -> vector<4x78xf32>
    %393 = arith.addf %386, %392 : vector<4x78xf32>
    %c18_384 = arith.constant 18 : index
    %c0_385 = arith.constant 0 : index
    %c0_386 = arith.constant 0 : index
    %394 = vector.load %arg7[%c18_384, %c0_385, %c0_386] : memref<27x4x8xf32, #tpu.memory_space<vmem>>, vector<1x4x8xf32>
    %395 = vector.shape_cast %394 : vector<1x4x8xf32> to vector<4x8xf32>
    %c0_387 = arith.constant 0 : index
    %c0_388 = arith.constant 0 : index
    %c0_389 = arith.constant 0 : index
    %c0_390 = arith.constant 0 : index
    %396 = vector.load %arg5[%c0_387, %c0_388, %c0_389, %c0_390] : memref<1x1x8x100xbf16, #tpu.memory_space<vmem>>, vector<1x1x8x78xbf16>
    %397 = vector.shape_cast %396 : vector<1x1x8x78xbf16> to vector<8x78xbf16>
    %398 = arith.extf %397 : vector<8x78xbf16> to vector<8x78xf32>
    %cst_391 = arith.constant dense<0.000000e+00> : vector<4x78xf32>
    %399 = tpu.matmul %395, %398, %cst_391 {dimension_numbers = #tpu.dot_dimension_numbers<[1], [0], [0], [1], [0, 0, 1, 1], [], []>} : vector<4x8xf32>, vector<8x78xf32>, vector<4x78xf32> -> vector<4x78xf32>
    %400 = arith.addf %393, %399 : vector<4x78xf32>
    %c19_392 = arith.constant 19 : index
    %c0_393 = arith.constant 0 : index
    %c0_394 = arith.constant 0 : index
    %401 = vector.load %arg7[%c19_392, %c0_393, %c0_394] : memref<27x4x8xf32, #tpu.memory_space<vmem>>, vector<1x4x8xf32>
    %402 = vector.shape_cast %401 : vector<1x4x8xf32> to vector<4x8xf32>
    %c0_395 = arith.constant 0 : index
    %c0_396 = arith.constant 0 : index
    %c0_397 = arith.constant 0 : index
    %c1_398 = arith.constant 1 : index
    %403 = vector.load %arg5[%c0_395, %c0_396, %c0_397, %c1_398] : memref<1x1x8x100xbf16, #tpu.memory_space<vmem>>, vector<1x1x8x78xbf16>
    %404 = vector.shape_cast %403 : vector<1x1x8x78xbf16> to vector<8x78xbf16>
    %405 = arith.extf %404 : vector<8x78xbf16> to vector<8x78xf32>
    %cst_399 = arith.constant dense<0.000000e+00> : vector<4x78xf32>
    %406 = tpu.matmul %402, %405, %cst_399 {dimension_numbers = #tpu.dot_dimension_numbers<[1], [0], [0], [1], [0, 0, 1, 1], [], []>} : vector<4x8xf32>, vector<8x78xf32>, vector<4x78xf32> -> vector<4x78xf32>
    %407 = arith.addf %400, %406 : vector<4x78xf32>
    %c20_400 = arith.constant 20 : index
    %c0_401 = arith.constant 0 : index
    %c0_402 = arith.constant 0 : index
    %408 = vector.load %arg7[%c20_400, %c0_401, %c0_402] : memref<27x4x8xf32, #tpu.memory_space<vmem>>, vector<1x4x8xf32>
    %409 = vector.shape_cast %408 : vector<1x4x8xf32> to vector<4x8xf32>
    %c0_403 = arith.constant 0 : index
    %c0_404 = arith.constant 0 : index
    %c0_405 = arith.constant 0 : index
    %c2_406 = arith.constant 2 : index
    %410 = vector.load %arg5[%c0_403, %c0_404, %c0_405, %c2_406] : memref<1x1x8x100xbf16, #tpu.memory_space<vmem>>, vector<1x1x8x78xbf16>
    %411 = vector.shape_cast %410 : vector<1x1x8x78xbf16> to vector<8x78xbf16>
    %412 = arith.extf %411 : vector<8x78xbf16> to vector<8x78xf32>
    %cst_407 = arith.constant dense<0.000000e+00> : vector<4x78xf32>
    %413 = tpu.matmul %409, %412, %cst_407 {dimension_numbers = #tpu.dot_dimension_numbers<[1], [0], [0], [1], [0, 0, 1, 1], [], []>} : vector<4x8xf32>, vector<8x78xf32>, vector<4x78xf32> -> vector<4x78xf32>
    %414 = arith.addf %407, %413 : vector<4x78xf32>
    %c21_408 = arith.constant 21 : index
    %c0_409 = arith.constant 0 : index
    %c0_410 = arith.constant 0 : index
    %415 = vector.load %arg7[%c21_408, %c0_409, %c0_410] : memref<27x4x8xf32, #tpu.memory_space<vmem>>, vector<1x4x8xf32>
    %416 = vector.shape_cast %415 : vector<1x4x8xf32> to vector<4x8xf32>
    %c0_411 = arith.constant 0 : index
    %c0_412 = arith.constant 0 : index
    %c0_413 = arith.constant 0 : index
    %c10_414 = arith.constant 10 : index
    %417 = vector.load %arg5[%c0_411, %c0_412, %c0_413, %c10_414] : memref<1x1x8x100xbf16, #tpu.memory_space<vmem>>, vector<1x1x8x78xbf16>
    %418 = vector.shape_cast %417 : vector<1x1x8x78xbf16> to vector<8x78xbf16>
    %419 = arith.extf %418 : vector<8x78xbf16> to vector<8x78xf32>
    %cst_415 = arith.constant dense<0.000000e+00> : vector<4x78xf32>
    %420 = tpu.matmul %416, %419, %cst_415 {dimension_numbers = #tpu.dot_dimension_numbers<[1], [0], [0], [1], [0, 0, 1, 1], [], []>} : vector<4x8xf32>, vector<8x78xf32>, vector<4x78xf32> -> vector<4x78xf32>
    %421 = arith.addf %414, %420 : vector<4x78xf32>
    %c22_416 = arith.constant 22 : index
    %c0_417 = arith.constant 0 : index
    %c0_418 = arith.constant 0 : index
    %422 = vector.load %arg7[%c22_416, %c0_417, %c0_418] : memref<27x4x8xf32, #tpu.memory_space<vmem>>, vector<1x4x8xf32>
    %423 = vector.shape_cast %422 : vector<1x4x8xf32> to vector<4x8xf32>
    %c0_419 = arith.constant 0 : index
    %c0_420 = arith.constant 0 : index
    %c0_421 = arith.constant 0 : index
    %c11_422 = arith.constant 11 : index
    %424 = vector.load %arg5[%c0_419, %c0_420, %c0_421, %c11_422] : memref<1x1x8x100xbf16, #tpu.memory_space<vmem>>, vector<1x1x8x78xbf16>
    %425 = vector.shape_cast %424 : vector<1x1x8x78xbf16> to vector<8x78xbf16>
    %426 = arith.extf %425 : vector<8x78xbf16> to vector<8x78xf32>
    %cst_423 = arith.constant dense<0.000000e+00> : vector<4x78xf32>
    %427 = tpu.matmul %423, %426, %cst_423 {dimension_numbers = #tpu.dot_dimension_numbers<[1], [0], [0], [1], [0, 0, 1, 1], [], []>} : vector<4x8xf32>, vector<8x78xf32>, vector<4x78xf32> -> vector<4x78xf32>
    %428 = arith.addf %421, %427 : vector<4x78xf32>
    %c23_424 = arith.constant 23 : index
    %c0_425 = arith.constant 0 : index
    %c0_426 = arith.constant 0 : index
    %429 = vector.load %arg7[%c23_424, %c0_425, %c0_426] : memref<27x4x8xf32, #tpu.memory_space<vmem>>, vector<1x4x8xf32>
    %430 = vector.shape_cast %429 : vector<1x4x8xf32> to vector<4x8xf32>
    %c0_427 = arith.constant 0 : index
    %c0_428 = arith.constant 0 : index
    %c0_429 = arith.constant 0 : index
    %c12_430 = arith.constant 12 : index
    %431 = vector.load %arg5[%c0_427, %c0_428, %c0_429, %c12_430] : memref<1x1x8x100xbf16, #tpu.memory_space<vmem>>, vector<1x1x8x78xbf16>
    %432 = vector.shape_cast %431 : vector<1x1x8x78xbf16> to vector<8x78xbf16>
    %433 = arith.extf %432 : vector<8x78xbf16> to vector<8x78xf32>
    %cst_431 = arith.constant dense<0.000000e+00> : vector<4x78xf32>
    %434 = tpu.matmul %430, %433, %cst_431 {dimension_numbers = #tpu.dot_dimension_numbers<[1], [0], [0], [1], [0, 0, 1, 1], [], []>} : vector<4x8xf32>, vector<8x78xf32>, vector<4x78xf32> -> vector<4x78xf32>
    %435 = arith.addf %428, %434 : vector<4x78xf32>
    %c24_432 = arith.constant 24 : index
    %c0_433 = arith.constant 0 : index
    %c0_434 = arith.constant 0 : index
    %436 = vector.load %arg7[%c24_432, %c0_433, %c0_434] : memref<27x4x8xf32, #tpu.memory_space<vmem>>, vector<1x4x8xf32>
    %437 = vector.shape_cast %436 : vector<1x4x8xf32> to vector<4x8xf32>
    %c0_435 = arith.constant 0 : index
    %c0_436 = arith.constant 0 : index
    %c0_437 = arith.constant 0 : index
    %c20_438 = arith.constant 20 : index
    %438 = vector.load %arg5[%c0_435, %c0_436, %c0_437, %c20_438] : memref<1x1x8x100xbf16, #tpu.memory_space<vmem>>, vector<1x1x8x78xbf16>
    %439 = vector.shape_cast %438 : vector<1x1x8x78xbf16> to vector<8x78xbf16>
    %440 = arith.extf %439 : vector<8x78xbf16> to vector<8x78xf32>
    %cst_439 = arith.constant dense<0.000000e+00> : vector<4x78xf32>
    %441 = tpu.matmul %437, %440, %cst_439 {dimension_numbers = #tpu.dot_dimension_numbers<[1], [0], [0], [1], [0, 0, 1, 1], [], []>} : vector<4x8xf32>, vector<8x78xf32>, vector<4x78xf32> -> vector<4x78xf32>
    %442 = arith.addf %435, %441 : vector<4x78xf32>
    %c25_440 = arith.constant 25 : index
    %c0_441 = arith.constant 0 : index
    %c0_442 = arith.constant 0 : index
    %443 = vector.load %arg7[%c25_440, %c0_441, %c0_442] : memref<27x4x8xf32, #tpu.memory_space<vmem>>, vector<1x4x8xf32>
    %444 = vector.shape_cast %443 : vector<1x4x8xf32> to vector<4x8xf32>
    %c0_443 = arith.constant 0 : index
    %c0_444 = arith.constant 0 : index
    %c0_445 = arith.constant 0 : index
    %c21_446 = arith.constant 21 : index
    %445 = vector.load %arg5[%c0_443, %c0_444, %c0_445, %c21_446] : memref<1x1x8x100xbf16, #tpu.memory_space<vmem>>, vector<1x1x8x78xbf16>
    %446 = vector.shape_cast %445 : vector<1x1x8x78xbf16> to vector<8x78xbf16>
    %447 = arith.extf %446 : vector<8x78xbf16> to vector<8x78xf32>
    %cst_447 = arith.constant dense<0.000000e+00> : vector<4x78xf32>
    %448 = tpu.matmul %444, %447, %cst_447 {dimension_numbers = #tpu.dot_dimension_numbers<[1], [0], [0], [1], [0, 0, 1, 1], [], []>} : vector<4x8xf32>, vector<8x78xf32>, vector<4x78xf32> -> vector<4x78xf32>
    %449 = arith.addf %442, %448 : vector<4x78xf32>
    %c26_448 = arith.constant 26 : index
    %c0_449 = arith.constant 0 : index
    %c0_450 = arith.constant 0 : index
    %450 = vector.load %arg7[%c26_448, %c0_449, %c0_450] : memref<27x4x8xf32, #tpu.memory_space<vmem>>, vector<1x4x8xf32>
    %451 = vector.shape_cast %450 : vector<1x4x8xf32> to vector<4x8xf32>
    %c0_451 = arith.constant 0 : index
    %c0_452 = arith.constant 0 : index
    %c0_453 = arith.constant 0 : index
    %c22_454 = arith.constant 22 : index
    %452 = vector.load %arg5[%c0_451, %c0_452, %c0_453, %c22_454] : memref<1x1x8x100xbf16, #tpu.memory_space<vmem>>, vector<1x1x8x78xbf16>
    %453 = vector.shape_cast %452 : vector<1x1x8x78xbf16> to vector<8x78xbf16>
    %454 = arith.extf %453 : vector<8x78xbf16> to vector<8x78xf32>
    %cst_455 = arith.constant dense<0.000000e+00> : vector<4x78xf32>
    %455 = tpu.matmul %451, %454, %cst_455 {dimension_numbers = #tpu.dot_dimension_numbers<[1], [0], [0], [1], [0, 0, 1, 1], [], []>} : vector<4x8xf32>, vector<8x78xf32>, vector<4x78xf32> -> vector<4x78xf32>
    %456 = arith.addf %449, %455 : vector<4x78xf32>
    %c1_i32_456 = arith.constant 1 : i32
    %457 = arith.subi %arg1, %c1_i32_456 : i32
    %c1_i32_457 = arith.constant 1 : i32
    %458 = arith.addi %457, %c1_i32_457 : i32
    %c0_i32_458 = arith.constant 0 : i32
    %459 = arith.cmpi sge, %458, %c0_i32_458 : i32
    %c1_i32_459 = arith.constant 1 : i32
    %460 = arith.subi %arg1, %c1_i32_459 : i32
    %c1_i32_460 = arith.constant 1 : i32
    %461 = arith.addi %460, %c1_i32_460 : i32
    %c7_i32_461 = arith.constant 7 : i32
    %462 = arith.cmpi sle, %461, %c7_i32_461 : i32
    %463 = arith.andi %459, %462 : i1
    %c0_462 = arith.constant 0 : index
    %c0_463 = arith.constant 0 : index
    %464 = vector.load %arg8[%c0_462, %c0_463] : memref<4x1xf32, #tpu.memory_space<vmem>>, vector<4x1xf32>
    %465 = vector.broadcast %464 : vector<4x1xf32> to vector<4x78xf32>
    %466 = arith.addf %456, %465 : vector<4x78xf32>
    %cst_464 = arith.constant 0.000000e+00 : f32
    %467 = vector.broadcast %cst_464 : f32 to vector<4x78xf32>
    %468 = arith.maximumf %466, %467 : vector<4x78xf32>
    %469 = vector.broadcast %0 : vector<1x78xf32> to vector<4x78xf32>
    %470 = arith.mulf %468, %469 : vector<4x78xf32>
    %471 = arith.extui %463 : i1 to i32
    %472 = arith.sitofp %471 : i32 to f32
    %473 = vector.broadcast %472 : f32 to vector<4x78xf32>
    %474 = arith.mulf %470, %473 : vector<4x78xf32>
    %c0_465 = arith.constant 0 : index
    %c128_466 = arith.constant 128 : index
    %475 = vector.load %arg13[%c0_465, %c128_466] : memref<4x217xf32, #tpu.memory_space<vmem>>, vector<4x78xf32>
    tpu.vector_store %arg13[%c0_465, %c128_466], %474 {strides = array<i32>} : memref<4x217xf32, #tpu.memory_space<vmem>>, vector<4x78xf32>,
    %c9_467 = arith.constant 9 : index
    %c0_468 = arith.constant 0 : index
    %c0_469 = arith.constant 0 : index
    %476 = vector.load %arg9[%c9_467, %c0_468, %c0_469] : memref<27x4x1xf32, #tpu.memory_space<vmem>>, vector<1x4x1xf32>
    %477 = vector.shape_cast %476 : vector<1x4x1xf32> to vector<4x1xf32>
    %c0_470 = arith.constant 0 : index
    %c117_471 = arith.constant 117 : index
    %478 = vector.load %arg13[%c0_470, %c117_471] : memref<4x217xf32, #tpu.memory_space<vmem>>, vector<4x78xf32>
    %479 = vector.broadcast %477 : vector<4x1xf32> to vector<4x78xf32>
    %480 = arith.mulf %479, %478 : vector<4x78xf32>
    %481 = arith.addf %266, %480 : vector<4x78xf32>
    %c10_472 = arith.constant 10 : index
    %c0_473 = arith.constant 0 : index
    %c0_474 = arith.constant 0 : index
    %482 = vector.load %arg9[%c10_472, %c0_473, %c0_474] : memref<27x4x1xf32, #tpu.memory_space<vmem>>, vector<1x4x1xf32>
    %483 = vector.shape_cast %482 : vector<1x4x1xf32> to vector<4x1xf32>
    %c0_475 = arith.constant 0 : index
    %c118_476 = arith.constant 118 : index
    %484 = vector.load %arg13[%c0_475, %c118_476] : memref<4x217xf32, #tpu.memory_space<vmem>>, vector<4x78xf32>
    %485 = vector.broadcast %483 : vector<4x1xf32> to vector<4x78xf32>
    %486 = arith.mulf %485, %484 : vector<4x78xf32>
    %487 = arith.addf %481, %486 : vector<4x78xf32>
    %c11_477 = arith.constant 11 : index
    %c0_478 = arith.constant 0 : index
    %c0_479 = arith.constant 0 : index
    %488 = vector.load %arg9[%c11_477, %c0_478, %c0_479] : memref<27x4x1xf32, #tpu.memory_space<vmem>>, vector<1x4x1xf32>
    %489 = vector.shape_cast %488 : vector<1x4x1xf32> to vector<4x1xf32>
    %c0_480 = arith.constant 0 : index
    %c119_481 = arith.constant 119 : index
    %490 = vector.load %arg13[%c0_480, %c119_481] : memref<4x217xf32, #tpu.memory_space<vmem>>, vector<4x78xf32>
    %491 = vector.broadcast %489 : vector<4x1xf32> to vector<4x78xf32>
    %492 = arith.mulf %491, %490 : vector<4x78xf32>
    %493 = arith.addf %487, %492 : vector<4x78xf32>
    %c12_482 = arith.constant 12 : index
    %c0_483 = arith.constant 0 : index
    %c0_484 = arith.constant 0 : index
    %494 = vector.load %arg9[%c12_482, %c0_483, %c0_484] : memref<27x4x1xf32, #tpu.memory_space<vmem>>, vector<1x4x1xf32>
    %495 = vector.shape_cast %494 : vector<1x4x1xf32> to vector<4x1xf32>
    %c0_485 = arith.constant 0 : index
    %c127_486 = arith.constant 127 : index
    %496 = vector.load %arg13[%c0_485, %c127_486] : memref<4x217xf32, #tpu.memory_space<vmem>>, vector<4x78xf32>
    %497 = vector.broadcast %495 : vector<4x1xf32> to vector<4x78xf32>
    %498 = arith.mulf %497, %496 : vector<4x78xf32>
    %499 = arith.addf %493, %498 : vector<4x78xf32>
    %c13_487 = arith.constant 13 : index
    %c0_488 = arith.constant 0 : index
    %c0_489 = arith.constant 0 : index
    %500 = vector.load %arg9[%c13_487, %c0_488, %c0_489] : memref<27x4x1xf32, #tpu.memory_space<vmem>>, vector<1x4x1xf32>
    %501 = vector.shape_cast %500 : vector<1x4x1xf32> to vector<4x1xf32>
    %c0_490 = arith.constant 0 : index
    %c128_491 = arith.constant 128 : index
    %502 = vector.load %arg13[%c0_490, %c128_491] : memref<4x217xf32, #tpu.memory_space<vmem>>, vector<4x78xf32>
    %503 = vector.broadcast %501 : vector<4x1xf32> to vector<4x78xf32>
    %504 = arith.mulf %503, %502 : vector<4x78xf32>
    %505 = arith.addf %499, %504 : vector<4x78xf32>
    %c14_492 = arith.constant 14 : index
    %c0_493 = arith.constant 0 : index
    %c0_494 = arith.constant 0 : index
    %506 = vector.load %arg9[%c14_492, %c0_493, %c0_494] : memref<27x4x1xf32, #tpu.memory_space<vmem>>, vector<1x4x1xf32>
    %507 = vector.shape_cast %506 : vector<1x4x1xf32> to vector<4x1xf32>
    %c0_495 = arith.constant 0 : index
    %c129_496 = arith.constant 129 : index
    %508 = vector.load %arg13[%c0_495, %c129_496] : memref<4x217xf32, #tpu.memory_space<vmem>>, vector<4x78xf32>
    %509 = vector.broadcast %507 : vector<4x1xf32> to vector<4x78xf32>
    %510 = arith.mulf %509, %508 : vector<4x78xf32>
    %511 = arith.addf %505, %510 : vector<4x78xf32>
    %c15_497 = arith.constant 15 : index
    %c0_498 = arith.constant 0 : index
    %c0_499 = arith.constant 0 : index
    %512 = vector.load %arg9[%c15_497, %c0_498, %c0_499] : memref<27x4x1xf32, #tpu.memory_space<vmem>>, vector<1x4x1xf32>
    %513 = vector.shape_cast %512 : vector<1x4x1xf32> to vector<4x1xf32>
    %c0_500 = arith.constant 0 : index
    %c137_501 = arith.constant 137 : index
    %514 = vector.load %arg13[%c0_500, %c137_501] : memref<4x217xf32, #tpu.memory_space<vmem>>, vector<4x78xf32>
    %515 = vector.broadcast %513 : vector<4x1xf32> to vector<4x78xf32>
    %516 = arith.mulf %515, %514 : vector<4x78xf32>
    %517 = arith.addf %511, %516 : vector<4x78xf32>
    %c16_502 = arith.constant 16 : index
    %c0_503 = arith.constant 0 : index
    %c0_504 = arith.constant 0 : index
    %518 = vector.load %arg9[%c16_502, %c0_503, %c0_504] : memref<27x4x1xf32, #tpu.memory_space<vmem>>, vector<1x4x1xf32>
    %519 = vector.shape_cast %518 : vector<1x4x1xf32> to vector<4x1xf32>
    %c0_505 = arith.constant 0 : index
    %c138_506 = arith.constant 138 : index
    %520 = vector.load %arg13[%c0_505, %c138_506] : memref<4x217xf32, #tpu.memory_space<vmem>>, vector<4x78xf32>
    %521 = vector.broadcast %519 : vector<4x1xf32> to vector<4x78xf32>
    %522 = arith.mulf %521, %520 : vector<4x78xf32>
    %523 = arith.addf %517, %522 : vector<4x78xf32>
    %c17_507 = arith.constant 17 : index
    %c0_508 = arith.constant 0 : index
    %c0_509 = arith.constant 0 : index
    %524 = vector.load %arg9[%c17_507, %c0_508, %c0_509] : memref<27x4x1xf32, #tpu.memory_space<vmem>>, vector<1x4x1xf32>
    %525 = vector.shape_cast %524 : vector<1x4x1xf32> to vector<4x1xf32>
    %c0_510 = arith.constant 0 : index
    %c139_511 = arith.constant 139 : index
    %526 = vector.load %arg13[%c0_510, %c139_511] : memref<4x217xf32, #tpu.memory_space<vmem>>, vector<4x78xf32>
    %527 = vector.broadcast %525 : vector<4x1xf32> to vector<4x78xf32>
    %528 = arith.mulf %527, %526 : vector<4x78xf32>
    %529 = arith.addf %523, %528 : vector<4x78xf32>
    %cst_512 = arith.constant 0.000000e+00 : f32
    %530 = vector.broadcast %cst_512 : f32 to vector<4x78xf32>
    %c0_513 = arith.constant 0 : index
    %c0_514 = arith.constant 0 : index
    %c0_515 = arith.constant 0 : index
    %531 = vector.load %arg7[%c0_513, %c0_514, %c0_515] : memref<27x4x8xf32, #tpu.memory_space<vmem>>, vector<1x4x8xf32>
    %532 = vector.shape_cast %531 : vector<1x4x8xf32> to vector<4x8xf32>
    %c0_516 = arith.constant 0 : index
    %c0_517 = arith.constant 0 : index
    %c0_518 = arith.constant 0 : index
    %c0_519 = arith.constant 0 : index
    %533 = vector.load %arg4[%c0_516, %c0_517, %c0_518, %c0_519] : memref<1x1x8x100xbf16, #tpu.memory_space<vmem>>, vector<1x1x8x78xbf16>
    %534 = vector.shape_cast %533 : vector<1x1x8x78xbf16> to vector<8x78xbf16>
    %535 = arith.extf %534 : vector<8x78xbf16> to vector<8x78xf32>
    %cst_520 = arith.constant dense<0.000000e+00> : vector<4x78xf32>
    %536 = tpu.matmul %532, %535, %cst_520 {dimension_numbers = #tpu.dot_dimension_numbers<[1], [0], [0], [1], [0, 0, 1, 1], [], []>} : vector<4x8xf32>, vector<8x78xf32>, vector<4x78xf32> -> vector<4x78xf32>
    %537 = arith.addf %530, %536 : vector<4x78xf32>
    %c1_521 = arith.constant 1 : index
    %c0_522 = arith.constant 0 : index
    %c0_523 = arith.constant 0 : index
    %538 = vector.load %arg7[%c1_521, %c0_522, %c0_523] : memref<27x4x8xf32, #tpu.memory_space<vmem>>, vector<1x4x8xf32>
    %539 = vector.shape_cast %538 : vector<1x4x8xf32> to vector<4x8xf32>
    %c0_524 = arith.constant 0 : index
    %c0_525 = arith.constant 0 : index
    %c0_526 = arith.constant 0 : index
    %c1_527 = arith.constant 1 : index
    %540 = vector.load %arg4[%c0_524, %c0_525, %c0_526, %c1_527] : memref<1x1x8x100xbf16, #tpu.memory_space<vmem>>, vector<1x1x8x78xbf16>
    %541 = vector.shape_cast %540 : vector<1x1x8x78xbf16> to vector<8x78xbf16>
    %542 = arith.extf %541 : vector<8x78xbf16> to vector<8x78xf32>
    %cst_528 = arith.constant dense<0.000000e+00> : vector<4x78xf32>
    %543 = tpu.matmul %539, %542, %cst_528 {dimension_numbers = #tpu.dot_dimension_numbers<[1], [0], [0], [1], [0, 0, 1, 1], [], []>} : vector<4x8xf32>, vector<8x78xf32>, vector<4x78xf32> -> vector<4x78xf32>
    %544 = arith.addf %537, %543 : vector<4x78xf32>
    %c2_529 = arith.constant 2 : index
    %c0_530 = arith.constant 0 : index
    %c0_531 = arith.constant 0 : index
    %545 = vector.load %arg7[%c2_529, %c0_530, %c0_531] : memref<27x4x8xf32, #tpu.memory_space<vmem>>, vector<1x4x8xf32>
    %546 = vector.shape_cast %545 : vector<1x4x8xf32> to vector<4x8xf32>
    %c0_532 = arith.constant 0 : index
    %c0_533 = arith.constant 0 : index
    %c0_534 = arith.constant 0 : index
    %c2_535 = arith.constant 2 : index
    %547 = vector.load %arg4[%c0_532, %c0_533, %c0_534, %c2_535] : memref<1x1x8x100xbf16, #tpu.memory_space<vmem>>, vector<1x1x8x78xbf16>
    %548 = vector.shape_cast %547 : vector<1x1x8x78xbf16> to vector<8x78xbf16>
    %549 = arith.extf %548 : vector<8x78xbf16> to vector<8x78xf32>
    %cst_536 = arith.constant dense<0.000000e+00> : vector<4x78xf32>
    %550 = tpu.matmul %546, %549, %cst_536 {dimension_numbers = #tpu.dot_dimension_numbers<[1], [0], [0], [1], [0, 0, 1, 1], [], []>} : vector<4x8xf32>, vector<8x78xf32>, vector<4x78xf32> -> vector<4x78xf32>
    %551 = arith.addf %544, %550 : vector<4x78xf32>
    %c3_537 = arith.constant 3 : index
    %c0_538 = arith.constant 0 : index
    %c0_539 = arith.constant 0 : index
    %552 = vector.load %arg7[%c3_537, %c0_538, %c0_539] : memref<27x4x8xf32, #tpu.memory_space<vmem>>, vector<1x4x8xf32>
    %553 = vector.shape_cast %552 : vector<1x4x8xf32> to vector<4x8xf32>
    %c0_540 = arith.constant 0 : index
    %c0_541 = arith.constant 0 : index
    %c0_542 = arith.constant 0 : index
    %c10_543 = arith.constant 10 : index
    %554 = vector.load %arg4[%c0_540, %c0_541, %c0_542, %c10_543] : memref<1x1x8x100xbf16, #tpu.memory_space<vmem>>, vector<1x1x8x78xbf16>
    %555 = vector.shape_cast %554 : vector<1x1x8x78xbf16> to vector<8x78xbf16>
    %556 = arith.extf %555 : vector<8x78xbf16> to vector<8x78xf32>
    %cst_544 = arith.constant dense<0.000000e+00> : vector<4x78xf32>
    %557 = tpu.matmul %553, %556, %cst_544 {dimension_numbers = #tpu.dot_dimension_numbers<[1], [0], [0], [1], [0, 0, 1, 1], [], []>} : vector<4x8xf32>, vector<8x78xf32>, vector<4x78xf32> -> vector<4x78xf32>
    %558 = arith.addf %551, %557 : vector<4x78xf32>
    %c4_545 = arith.constant 4 : index
    %c0_546 = arith.constant 0 : index
    %c0_547 = arith.constant 0 : index
    %559 = vector.load %arg7[%c4_545, %c0_546, %c0_547] : memref<27x4x8xf32, #tpu.memory_space<vmem>>, vector<1x4x8xf32>
    %560 = vector.shape_cast %559 : vector<1x4x8xf32> to vector<4x8xf32>
    %c0_548 = arith.constant 0 : index
    %c0_549 = arith.constant 0 : index
    %c0_550 = arith.constant 0 : index
    %c11_551 = arith.constant 11 : index
    %561 = vector.load %arg4[%c0_548, %c0_549, %c0_550, %c11_551] : memref<1x1x8x100xbf16, #tpu.memory_space<vmem>>, vector<1x1x8x78xbf16>
    %562 = vector.shape_cast %561 : vector<1x1x8x78xbf16> to vector<8x78xbf16>
    %563 = arith.extf %562 : vector<8x78xbf16> to vector<8x78xf32>
    %cst_552 = arith.constant dense<0.000000e+00> : vector<4x78xf32>
    %564 = tpu.matmul %560, %563, %cst_552 {dimension_numbers = #tpu.dot_dimension_numbers<[1], [0], [0], [1], [0, 0, 1, 1], [], []>} : vector<4x8xf32>, vector<8x78xf32>, vector<4x78xf32> -> vector<4x78xf32>
    %565 = arith.addf %558, %564 : vector<4x78xf32>
    %c5_553 = arith.constant 5 : index
    %c0_554 = arith.constant 0 : index
    %c0_555 = arith.constant 0 : index
    %566 = vector.load %arg7[%c5_553, %c0_554, %c0_555] : memref<27x4x8xf32, #tpu.memory_space<vmem>>, vector<1x4x8xf32>
    %567 = vector.shape_cast %566 : vector<1x4x8xf32> to vector<4x8xf32>
    %c0_556 = arith.constant 0 : index
    %c0_557 = arith.constant 0 : index
    %c0_558 = arith.constant 0 : index
    %c12_559 = arith.constant 12 : index
    %568 = vector.load %arg4[%c0_556, %c0_557, %c0_558, %c12_559] : memref<1x1x8x100xbf16, #tpu.memory_space<vmem>>, vector<1x1x8x78xbf16>
    %569 = vector.shape_cast %568 : vector<1x1x8x78xbf16> to vector<8x78xbf16>
    %570 = arith.extf %569 : vector<8x78xbf16> to vector<8x78xf32>
    %cst_560 = arith.constant dense<0.000000e+00> : vector<4x78xf32>
    %571 = tpu.matmul %567, %570, %cst_560 {dimension_numbers = #tpu.dot_dimension_numbers<[1], [0], [0], [1], [0, 0, 1, 1], [], []>} : vector<4x8xf32>, vector<8x78xf32>, vector<4x78xf32> -> vector<4x78xf32>
    %572 = arith.addf %565, %571 : vector<4x78xf32>
    %c6_561 = arith.constant 6 : index
    %c0_562 = arith.constant 0 : index
    %c0_563 = arith.constant 0 : index
    %573 = vector.load %arg7[%c6_561, %c0_562, %c0_563] : memref<27x4x8xf32, #tpu.memory_space<vmem>>, vector<1x4x8xf32>
    %574 = vector.shape_cast %573 : vector<1x4x8xf32> to vector<4x8xf32>
    %c0_564 = arith.constant 0 : index
    %c0_565 = arith.constant 0 : index
    %c0_566 = arith.constant 0 : index
    %c20_567 = arith.constant 20 : index
    %575 = vector.load %arg4[%c0_564, %c0_565, %c0_566, %c20_567] : memref<1x1x8x100xbf16, #tpu.memory_space<vmem>>, vector<1x1x8x78xbf16>
    %576 = vector.shape_cast %575 : vector<1x1x8x78xbf16> to vector<8x78xbf16>
    %577 = arith.extf %576 : vector<8x78xbf16> to vector<8x78xf32>
    %cst_568 = arith.constant dense<0.000000e+00> : vector<4x78xf32>
    %578 = tpu.matmul %574, %577, %cst_568 {dimension_numbers = #tpu.dot_dimension_numbers<[1], [0], [0], [1], [0, 0, 1, 1], [], []>} : vector<4x8xf32>, vector<8x78xf32>, vector<4x78xf32> -> vector<4x78xf32>
    %579 = arith.addf %572, %578 : vector<4x78xf32>
    %c7_569 = arith.constant 7 : index
    %c0_570 = arith.constant 0 : index
    %c0_571 = arith.constant 0 : index
    %580 = vector.load %arg7[%c7_569, %c0_570, %c0_571] : memref<27x4x8xf32, #tpu.memory_space<vmem>>, vector<1x4x8xf32>
    %581 = vector.shape_cast %580 : vector<1x4x8xf32> to vector<4x8xf32>
    %c0_572 = arith.constant 0 : index
    %c0_573 = arith.constant 0 : index
    %c0_574 = arith.constant 0 : index
    %c21_575 = arith.constant 21 : index
    %582 = vector.load %arg4[%c0_572, %c0_573, %c0_574, %c21_575] : memref<1x1x8x100xbf16, #tpu.memory_space<vmem>>, vector<1x1x8x78xbf16>
    %583 = vector.shape_cast %582 : vector<1x1x8x78xbf16> to vector<8x78xbf16>
    %584 = arith.extf %583 : vector<8x78xbf16> to vector<8x78xf32>
    %cst_576 = arith.constant dense<0.000000e+00> : vector<4x78xf32>
    %585 = tpu.matmul %581, %584, %cst_576 {dimension_numbers = #tpu.dot_dimension_numbers<[1], [0], [0], [1], [0, 0, 1, 1], [], []>} : vector<4x8xf32>, vector<8x78xf32>, vector<4x78xf32> -> vector<4x78xf32>
    %586 = arith.addf %579, %585 : vector<4x78xf32>
    %c8_577 = arith.constant 8 : index
    %c0_578 = arith.constant 0 : index
    %c0_579 = arith.constant 0 : index
    %587 = vector.load %arg7[%c8_577, %c0_578, %c0_579] : memref<27x4x8xf32, #tpu.memory_space<vmem>>, vector<1x4x8xf32>
    %588 = vector.shape_cast %587 : vector<1x4x8xf32> to vector<4x8xf32>
    %c0_580 = arith.constant 0 : index
    %c0_581 = arith.constant 0 : index
    %c0_582 = arith.constant 0 : index
    %c22_583 = arith.constant 22 : index
    %589 = vector.load %arg4[%c0_580, %c0_581, %c0_582, %c22_583] : memref<1x1x8x100xbf16, #tpu.memory_space<vmem>>, vector<1x1x8x78xbf16>
    %590 = vector.shape_cast %589 : vector<1x1x8x78xbf16> to vector<8x78xbf16>
    %591 = arith.extf %590 : vector<8x78xbf16> to vector<8x78xf32>
    %cst_584 = arith.constant dense<0.000000e+00> : vector<4x78xf32>
    %592 = tpu.matmul %588, %591, %cst_584 {dimension_numbers = #tpu.dot_dimension_numbers<[1], [0], [0], [1], [0, 0, 1, 1], [], []>} : vector<4x8xf32>, vector<8x78xf32>, vector<4x78xf32> -> vector<4x78xf32>
    %593 = arith.addf %586, %592 : vector<4x78xf32>
    %c9_585 = arith.constant 9 : index
    %c0_586 = arith.constant 0 : index
    %c0_587 = arith.constant 0 : index
    %594 = vector.load %arg7[%c9_585, %c0_586, %c0_587] : memref<27x4x8xf32, #tpu.memory_space<vmem>>, vector<1x4x8xf32>
    %595 = vector.shape_cast %594 : vector<1x4x8xf32> to vector<4x8xf32>
    %c0_588 = arith.constant 0 : index
    %c0_589 = arith.constant 0 : index
    %c0_590 = arith.constant 0 : index
    %c0_591 = arith.constant 0 : index
    %596 = vector.load %arg5[%c0_588, %c0_589, %c0_590, %c0_591] : memref<1x1x8x100xbf16, #tpu.memory_space<vmem>>, vector<1x1x8x78xbf16>
    %597 = vector.shape_cast %596 : vector<1x1x8x78xbf16> to vector<8x78xbf16>
    %598 = arith.extf %597 : vector<8x78xbf16> to vector<8x78xf32>
    %cst_592 = arith.constant dense<0.000000e+00> : vector<4x78xf32>
    %599 = tpu.matmul %595, %598, %cst_592 {dimension_numbers = #tpu.dot_dimension_numbers<[1], [0], [0], [1], [0, 0, 1, 1], [], []>} : vector<4x8xf32>, vector<8x78xf32>, vector<4x78xf32> -> vector<4x78xf32>
    %600 = arith.addf %593, %599 : vector<4x78xf32>
    %c10_593 = arith.constant 10 : index
    %c0_594 = arith.constant 0 : index
    %c0_595 = arith.constant 0 : index
    %601 = vector.load %arg7[%c10_593, %c0_594, %c0_595] : memref<27x4x8xf32, #tpu.memory_space<vmem>>, vector<1x4x8xf32>
    %602 = vector.shape_cast %601 : vector<1x4x8xf32> to vector<4x8xf32>
    %c0_596 = arith.constant 0 : index
    %c0_597 = arith.constant 0 : index
    %c0_598 = arith.constant 0 : index
    %c1_599 = arith.constant 1 : index
    %603 = vector.load %arg5[%c0_596, %c0_597, %c0_598, %c1_599] : memref<1x1x8x100xbf16, #tpu.memory_space<vmem>>, vector<1x1x8x78xbf16>
    %604 = vector.shape_cast %603 : vector<1x1x8x78xbf16> to vector<8x78xbf16>
    %605 = arith.extf %604 : vector<8x78xbf16> to vector<8x78xf32>
    %cst_600 = arith.constant dense<0.000000e+00> : vector<4x78xf32>
    %606 = tpu.matmul %602, %605, %cst_600 {dimension_numbers = #tpu.dot_dimension_numbers<[1], [0], [0], [1], [0, 0, 1, 1], [], []>} : vector<4x8xf32>, vector<8x78xf32>, vector<4x78xf32> -> vector<4x78xf32>
    %607 = arith.addf %600, %606 : vector<4x78xf32>
    %c11_601 = arith.constant 11 : index
    %c0_602 = arith.constant 0 : index
    %c0_603 = arith.constant 0 : index
    %608 = vector.load %arg7[%c11_601, %c0_602, %c0_603] : memref<27x4x8xf32, #tpu.memory_space<vmem>>, vector<1x4x8xf32>
    %609 = vector.shape_cast %608 : vector<1x4x8xf32> to vector<4x8xf32>
    %c0_604 = arith.constant 0 : index
    %c0_605 = arith.constant 0 : index
    %c0_606 = arith.constant 0 : index
    %c2_607 = arith.constant 2 : index
    %610 = vector.load %arg5[%c0_604, %c0_605, %c0_606, %c2_607] : memref<1x1x8x100xbf16, #tpu.memory_space<vmem>>, vector<1x1x8x78xbf16>
    %611 = vector.shape_cast %610 : vector<1x1x8x78xbf16> to vector<8x78xbf16>
    %612 = arith.extf %611 : vector<8x78xbf16> to vector<8x78xf32>
    %cst_608 = arith.constant dense<0.000000e+00> : vector<4x78xf32>
    %613 = tpu.matmul %609, %612, %cst_608 {dimension_numbers = #tpu.dot_dimension_numbers<[1], [0], [0], [1], [0, 0, 1, 1], [], []>} : vector<4x8xf32>, vector<8x78xf32>, vector<4x78xf32> -> vector<4x78xf32>
    %614 = arith.addf %607, %613 : vector<4x78xf32>
    %c12_609 = arith.constant 12 : index
    %c0_610 = arith.constant 0 : index
    %c0_611 = arith.constant 0 : index
    %615 = vector.load %arg7[%c12_609, %c0_610, %c0_611] : memref<27x4x8xf32, #tpu.memory_space<vmem>>, vector<1x4x8xf32>
    %616 = vector.shape_cast %615 : vector<1x4x8xf32> to vector<4x8xf32>
    %c0_612 = arith.constant 0 : index
    %c0_613 = arith.constant 0 : index
    %c0_614 = arith.constant 0 : index
    %c10_615 = arith.constant 10 : index
    %617 = vector.load %arg5[%c0_612, %c0_613, %c0_614, %c10_615] : memref<1x1x8x100xbf16, #tpu.memory_space<vmem>>, vector<1x1x8x78xbf16>
    %618 = vector.shape_cast %617 : vector<1x1x8x78xbf16> to vector<8x78xbf16>
    %619 = arith.extf %618 : vector<8x78xbf16> to vector<8x78xf32>
    %cst_616 = arith.constant dense<0.000000e+00> : vector<4x78xf32>
    %620 = tpu.matmul %616, %619, %cst_616 {dimension_numbers = #tpu.dot_dimension_numbers<[1], [0], [0], [1], [0, 0, 1, 1], [], []>} : vector<4x8xf32>, vector<8x78xf32>, vector<4x78xf32> -> vector<4x78xf32>
    %621 = arith.addf %614, %620 : vector<4x78xf32>
    %c13_617 = arith.constant 13 : index
    %c0_618 = arith.constant 0 : index
    %c0_619 = arith.constant 0 : index
    %622 = vector.load %arg7[%c13_617, %c0_618, %c0_619] : memref<27x4x8xf32, #tpu.memory_space<vmem>>, vector<1x4x8xf32>
    %623 = vector.shape_cast %622 : vector<1x4x8xf32> to vector<4x8xf32>
    %c0_620 = arith.constant 0 : index
    %c0_621 = arith.constant 0 : index
    %c0_622 = arith.constant 0 : index
    %c11_623 = arith.constant 11 : index
    %624 = vector.load %arg5[%c0_620, %c0_621, %c0_622, %c11_623] : memref<1x1x8x100xbf16, #tpu.memory_space<vmem>>, vector<1x1x8x78xbf16>
    %625 = vector.shape_cast %624 : vector<1x1x8x78xbf16> to vector<8x78xbf16>
    %626 = arith.extf %625 : vector<8x78xbf16> to vector<8x78xf32>
    %cst_624 = arith.constant dense<0.000000e+00> : vector<4x78xf32>
    %627 = tpu.matmul %623, %626, %cst_624 {dimension_numbers = #tpu.dot_dimension_numbers<[1], [0], [0], [1], [0, 0, 1, 1], [], []>} : vector<4x8xf32>, vector<8x78xf32>, vector<4x78xf32> -> vector<4x78xf32>
    %628 = arith.addf %621, %627 : vector<4x78xf32>
    %c14_625 = arith.constant 14 : index
    %c0_626 = arith.constant 0 : index
    %c0_627 = arith.constant 0 : index
    %629 = vector.load %arg7[%c14_625, %c0_626, %c0_627] : memref<27x4x8xf32, #tpu.memory_space<vmem>>, vector<1x4x8xf32>
    %630 = vector.shape_cast %629 : vector<1x4x8xf32> to vector<4x8xf32>
    %c0_628 = arith.constant 0 : index
    %c0_629 = arith.constant 0 : index
    %c0_630 = arith.constant 0 : index
    %c12_631 = arith.constant 12 : index
    %631 = vector.load %arg5[%c0_628, %c0_629, %c0_630, %c12_631] : memref<1x1x8x100xbf16, #tpu.memory_space<vmem>>, vector<1x1x8x78xbf16>
    %632 = vector.shape_cast %631 : vector<1x1x8x78xbf16> to vector<8x78xbf16>
    %633 = arith.extf %632 : vector<8x78xbf16> to vector<8x78xf32>
    %cst_632 = arith.constant dense<0.000000e+00> : vector<4x78xf32>
    %634 = tpu.matmul %630, %633, %cst_632 {dimension_numbers = #tpu.dot_dimension_numbers<[1], [0], [0], [1], [0, 0, 1, 1], [], []>} : vector<4x8xf32>, vector<8x78xf32>, vector<4x78xf32> -> vector<4x78xf32>
    %635 = arith.addf %628, %634 : vector<4x78xf32>
    %c15_633 = arith.constant 15 : index
    %c0_634 = arith.constant 0 : index
    %c0_635 = arith.constant 0 : index
    %636 = vector.load %arg7[%c15_633, %c0_634, %c0_635] : memref<27x4x8xf32, #tpu.memory_space<vmem>>, vector<1x4x8xf32>
    %637 = vector.shape_cast %636 : vector<1x4x8xf32> to vector<4x8xf32>
    %c0_636 = arith.constant 0 : index
    %c0_637 = arith.constant 0 : index
    %c0_638 = arith.constant 0 : index
    %c20_639 = arith.constant 20 : index
    %638 = vector.load %arg5[%c0_636, %c0_637, %c0_638, %c20_639] : memref<1x1x8x100xbf16, #tpu.memory_space<vmem>>, vector<1x1x8x78xbf16>
    %639 = vector.shape_cast %638 : vector<1x1x8x78xbf16> to vector<8x78xbf16>
    %640 = arith.extf %639 : vector<8x78xbf16> to vector<8x78xf32>
    %cst_640 = arith.constant dense<0.000000e+00> : vector<4x78xf32>
    %641 = tpu.matmul %637, %640, %cst_640 {dimension_numbers = #tpu.dot_dimension_numbers<[1], [0], [0], [1], [0, 0, 1, 1], [], []>} : vector<4x8xf32>, vector<8x78xf32>, vector<4x78xf32> -> vector<4x78xf32>
    %642 = arith.addf %635, %641 : vector<4x78xf32>
    %c16_641 = arith.constant 16 : index
    %c0_642 = arith.constant 0 : index
    %c0_643 = arith.constant 0 : index
    %643 = vector.load %arg7[%c16_641, %c0_642, %c0_643] : memref<27x4x8xf32, #tpu.memory_space<vmem>>, vector<1x4x8xf32>
    %644 = vector.shape_cast %643 : vector<1x4x8xf32> to vector<4x8xf32>
    %c0_644 = arith.constant 0 : index
    %c0_645 = arith.constant 0 : index
    %c0_646 = arith.constant 0 : index
    %c21_647 = arith.constant 21 : index
    %645 = vector.load %arg5[%c0_644, %c0_645, %c0_646, %c21_647] : memref<1x1x8x100xbf16, #tpu.memory_space<vmem>>, vector<1x1x8x78xbf16>
    %646 = vector.shape_cast %645 : vector<1x1x8x78xbf16> to vector<8x78xbf16>
    %647 = arith.extf %646 : vector<8x78xbf16> to vector<8x78xf32>
    %cst_648 = arith.constant dense<0.000000e+00> : vector<4x78xf32>
    %648 = tpu.matmul %644, %647, %cst_648 {dimension_numbers = #tpu.dot_dimension_numbers<[1], [0], [0], [1], [0, 0, 1, 1], [], []>} : vector<4x8xf32>, vector<8x78xf32>, vector<4x78xf32> -> vector<4x78xf32>
    %649 = arith.addf %642, %648 : vector<4x78xf32>
    %c17_649 = arith.constant 17 : index
    %c0_650 = arith.constant 0 : index
    %c0_651 = arith.constant 0 : index
    %650 = vector.load %arg7[%c17_649, %c0_650, %c0_651] : memref<27x4x8xf32, #tpu.memory_space<vmem>>, vector<1x4x8xf32>
    %651 = vector.shape_cast %650 : vector<1x4x8xf32> to vector<4x8xf32>
    %c0_652 = arith.constant 0 : index
    %c0_653 = arith.constant 0 : index
    %c0_654 = arith.constant 0 : index
    %c22_655 = arith.constant 22 : index
    %652 = vector.load %arg5[%c0_652, %c0_653, %c0_654, %c22_655] : memref<1x1x8x100xbf16, #tpu.memory_space<vmem>>, vector<1x1x8x78xbf16>
    %653 = vector.shape_cast %652 : vector<1x1x8x78xbf16> to vector<8x78xbf16>
    %654 = arith.extf %653 : vector<8x78xbf16> to vector<8x78xf32>
    %cst_656 = arith.constant dense<0.000000e+00> : vector<4x78xf32>
    %655 = tpu.matmul %651, %654, %cst_656 {dimension_numbers = #tpu.dot_dimension_numbers<[1], [0], [0], [1], [0, 0, 1, 1], [], []>} : vector<4x8xf32>, vector<8x78xf32>, vector<4x78xf32> -> vector<4x78xf32>
    %656 = arith.addf %649, %655 : vector<4x78xf32>
    %c18_657 = arith.constant 18 : index
    %c0_658 = arith.constant 0 : index
    %c0_659 = arith.constant 0 : index
    %657 = vector.load %arg7[%c18_657, %c0_658, %c0_659] : memref<27x4x8xf32, #tpu.memory_space<vmem>>, vector<1x4x8xf32>
    %658 = vector.shape_cast %657 : vector<1x4x8xf32> to vector<4x8xf32>
    %c0_660 = arith.constant 0 : index
    %c0_661 = arith.constant 0 : index
    %c0_662 = arith.constant 0 : index
    %c0_663 = arith.constant 0 : index
    %659 = vector.load %arg6[%c0_660, %c0_661, %c0_662, %c0_663] : memref<1x1x8x100xbf16, #tpu.memory_space<vmem>>, vector<1x1x8x78xbf16>
    %660 = vector.shape_cast %659 : vector<1x1x8x78xbf16> to vector<8x78xbf16>
    %661 = arith.extf %660 : vector<8x78xbf16> to vector<8x78xf32>
    %cst_664 = arith.constant dense<0.000000e+00> : vector<4x78xf32>
    %662 = tpu.matmul %658, %661, %cst_664 {dimension_numbers = #tpu.dot_dimension_numbers<[1], [0], [0], [1], [0, 0, 1, 1], [], []>} : vector<4x8xf32>, vector<8x78xf32>, vector<4x78xf32> -> vector<4x78xf32>
    %663 = arith.addf %656, %662 : vector<4x78xf32>
    %c19_665 = arith.constant 19 : index
    %c0_666 = arith.constant 0 : index
    %c0_667 = arith.constant 0 : index
    %664 = vector.load %arg7[%c19_665, %c0_666, %c0_667] : memref<27x4x8xf32, #tpu.memory_space<vmem>>, vector<1x4x8xf32>
    %665 = vector.shape_cast %664 : vector<1x4x8xf32> to vector<4x8xf32>
    %c0_668 = arith.constant 0 : index
    %c0_669 = arith.constant 0 : index
    %c0_670 = arith.constant 0 : index
    %c1_671 = arith.constant 1 : index
    %666 = vector.load %arg6[%c0_668, %c0_669, %c0_670, %c1_671] : memref<1x1x8x100xbf16, #tpu.memory_space<vmem>>, vector<1x1x8x78xbf16>
    %667 = vector.shape_cast %666 : vector<1x1x8x78xbf16> to vector<8x78xbf16>
    %668 = arith.extf %667 : vector<8x78xbf16> to vector<8x78xf32>
    %cst_672 = arith.constant dense<0.000000e+00> : vector<4x78xf32>
    %669 = tpu.matmul %665, %668, %cst_672 {dimension_numbers = #tpu.dot_dimension_numbers<[1], [0], [0], [1], [0, 0, 1, 1], [], []>} : vector<4x8xf32>, vector<8x78xf32>, vector<4x78xf32> -> vector<4x78xf32>
    %670 = arith.addf %663, %669 : vector<4x78xf32>
    %c20_673 = arith.constant 20 : index
    %c0_674 = arith.constant 0 : index
    %c0_675 = arith.constant 0 : index
    %671 = vector.load %arg7[%c20_673, %c0_674, %c0_675] : memref<27x4x8xf32, #tpu.memory_space<vmem>>, vector<1x4x8xf32>
    %672 = vector.shape_cast %671 : vector<1x4x8xf32> to vector<4x8xf32>
    %c0_676 = arith.constant 0 : index
    %c0_677 = arith.constant 0 : index
    %c0_678 = arith.constant 0 : index
    %c2_679 = arith.constant 2 : index
    %673 = vector.load %arg6[%c0_676, %c0_677, %c0_678, %c2_679] : memref<1x1x8x100xbf16, #tpu.memory_space<vmem>>, vector<1x1x8x78xbf16>
    %674 = vector.shape_cast %673 : vector<1x1x8x78xbf16> to vector<8x78xbf16>
    %675 = arith.extf %674 : vector<8x78xbf16> to vector<8x78xf32>
    %cst_680 = arith.constant dense<0.000000e+00> : vector<4x78xf32>
    %676 = tpu.matmul %672, %675, %cst_680 {dimension_numbers = #tpu.dot_dimension_numbers<[1], [0], [0], [1], [0, 0, 1, 1], [], []>} : vector<4x8xf32>, vector<8x78xf32>, vector<4x78xf32> -> vector<4x78xf32>
    %677 = arith.addf %670, %676 : vector<4x78xf32>
    %c21_681 = arith.constant 21 : index
    %c0_682 = arith.constant 0 : index
    %c0_683 = arith.constant 0 : index
    %678 = vector.load %arg7[%c21_681, %c0_682, %c0_683] : memref<27x4x8xf32, #tpu.memory_space<vmem>>, vector<1x4x8xf32>
    %679 = vector.shape_cast %678 : vector<1x4x8xf32> to vector<4x8xf32>
    %c0_684 = arith.constant 0 : index
    %c0_685 = arith.constant 0 : index
    %c0_686 = arith.constant 0 : index
    %c10_687 = arith.constant 10 : index
    %680 = vector.load %arg6[%c0_684, %c0_685, %c0_686, %c10_687] : memref<1x1x8x100xbf16, #tpu.memory_space<vmem>>, vector<1x1x8x78xbf16>
    %681 = vector.shape_cast %680 : vector<1x1x8x78xbf16> to vector<8x78xbf16>
    %682 = arith.extf %681 : vector<8x78xbf16> to vector<8x78xf32>
    %cst_688 = arith.constant dense<0.000000e+00> : vector<4x78xf32>
    %683 = tpu.matmul %679, %682, %cst_688 {dimension_numbers = #tpu.dot_dimension_numbers<[1], [0], [0], [1], [0, 0, 1, 1], [], []>} : vector<4x8xf32>, vector<8x78xf32>, vector<4x78xf32> -> vector<4x78xf32>
    %684 = arith.addf %677, %683 : vector<4x78xf32>
    %c22_689 = arith.constant 22 : index
    %c0_690 = arith.constant 0 : index
    %c0_691 = arith.constant 0 : index
    %685 = vector.load %arg7[%c22_689, %c0_690, %c0_691] : memref<27x4x8xf32, #tpu.memory_space<vmem>>, vector<1x4x8xf32>
    %686 = vector.shape_cast %685 : vector<1x4x8xf32> to vector<4x8xf32>
    %c0_692 = arith.constant 0 : index
    %c0_693 = arith.constant 0 : index
    %c0_694 = arith.constant 0 : index
    %c11_695 = arith.constant 11 : index
    %687 = vector.load %arg6[%c0_692, %c0_693, %c0_694, %c11_695] : memref<1x1x8x100xbf16, #tpu.memory_space<vmem>>, vector<1x1x8x78xbf16>
    %688 = vector.shape_cast %687 : vector<1x1x8x78xbf16> to vector<8x78xbf16>
    %689 = arith.extf %688 : vector<8x78xbf16> to vector<8x78xf32>
    %cst_696 = arith.constant dense<0.000000e+00> : vector<4x78xf32>
    %690 = tpu.matmul %686, %689, %cst_696 {dimension_numbers = #tpu.dot_dimension_numbers<[1], [0], [0], [1], [0, 0, 1, 1], [], []>} : vector<4x8xf32>, vector<8x78xf32>, vector<4x78xf32> -> vector<4x78xf32>
    %691 = arith.addf %684, %690 : vector<4x78xf32>
    %c23_697 = arith.constant 23 : index
    %c0_698 = arith.constant 0 : index
    %c0_699 = arith.constant 0 : index
    %692 = vector.load %arg7[%c23_697, %c0_698, %c0_699] : memref<27x4x8xf32, #tpu.memory_space<vmem>>, vector<1x4x8xf32>
    %693 = vector.shape_cast %692 : vector<1x4x8xf32> to vector<4x8xf32>
    %c0_700 = arith.constant 0 : index
    %c0_701 = arith.constant 0 : index
    %c0_702 = arith.constant 0 : index
    %c12_703 = arith.constant 12 : index
    %694 = vector.load %arg6[%c0_700, %c0_701, %c0_702, %c12_703] : memref<1x1x8x100xbf16, #tpu.memory_space<vmem>>, vector<1x1x8x78xbf16>
    %695 = vector.shape_cast %694 : vector<1x1x8x78xbf16> to vector<8x78xbf16>
    %696 = arith.extf %695 : vector<8x78xbf16> to vector<8x78xf32>
    %cst_704 = arith.constant dense<0.000000e+00> : vector<4x78xf32>
    %697 = tpu.matmul %693, %696, %cst_704 {dimension_numbers = #tpu.dot_dimension_numbers<[1], [0], [0], [1], [0, 0, 1, 1], [], []>} : vector<4x8xf32>, vector<8x78xf32>, vector<4x78xf32> -> vector<4x78xf32>
    %698 = arith.addf %691, %697 : vector<4x78xf32>
    %c24_705 = arith.constant 24 : index
    %c0_706 = arith.constant 0 : index
    %c0_707 = arith.constant 0 : index
    %699 = vector.load %arg7[%c24_705, %c0_706, %c0_707] : memref<27x4x8xf32, #tpu.memory_space<vmem>>, vector<1x4x8xf32>
    %700 = vector.shape_cast %699 : vector<1x4x8xf32> to vector<4x8xf32>
    %c0_708 = arith.constant 0 : index
    %c0_709 = arith.constant 0 : index
    %c0_710 = arith.constant 0 : index
    %c20_711 = arith.constant 20 : index
    %701 = vector.load %arg6[%c0_708, %c0_709, %c0_710, %c20_711] : memref<1x1x8x100xbf16, #tpu.memory_space<vmem>>, vector<1x1x8x78xbf16>
    %702 = vector.shape_cast %701 : vector<1x1x8x78xbf16> to vector<8x78xbf16>
    %703 = arith.extf %702 : vector<8x78xbf16> to vector<8x78xf32>
    %cst_712 = arith.constant dense<0.000000e+00> : vector<4x78xf32>
    %704 = tpu.matmul %700, %703, %cst_712 {dimension_numbers = #tpu.dot_dimension_numbers<[1], [0], [0], [1], [0, 0, 1, 1], [], []>} : vector<4x8xf32>, vector<8x78xf32>, vector<4x78xf32> -> vector<4x78xf32>
    %705 = arith.addf %698, %704 : vector<4x78xf32>
    %c25_713 = arith.constant 25 : index
    %c0_714 = arith.constant 0 : index
    %c0_715 = arith.constant 0 : index
    %706 = vector.load %arg7[%c25_713, %c0_714, %c0_715] : memref<27x4x8xf32, #tpu.memory_space<vmem>>, vector<1x4x8xf32>
    %707 = vector.shape_cast %706 : vector<1x4x8xf32> to vector<4x8xf32>
    %c0_716 = arith.constant 0 : index
    %c0_717 = arith.constant 0 : index
    %c0_718 = arith.constant 0 : index
    %c21_719 = arith.constant 21 : index
    %708 = vector.load %arg6[%c0_716, %c0_717, %c0_718, %c21_719] : memref<1x1x8x100xbf16, #tpu.memory_space<vmem>>, vector<1x1x8x78xbf16>
    %709 = vector.shape_cast %708 : vector<1x1x8x78xbf16> to vector<8x78xbf16>
    %710 = arith.extf %709 : vector<8x78xbf16> to vector<8x78xf32>
    %cst_720 = arith.constant dense<0.000000e+00> : vector<4x78xf32>
    %711 = tpu.matmul %707, %710, %cst_720 {dimension_numbers = #tpu.dot_dimension_numbers<[1], [0], [0], [1], [0, 0, 1, 1], [], []>} : vector<4x8xf32>, vector<8x78xf32>, vector<4x78xf32> -> vector<4x78xf32>
    %712 = arith.addf %705, %711 : vector<4x78xf32>
    %c26_721 = arith.constant 26 : index
    %c0_722 = arith.constant 0 : index
    %c0_723 = arith.constant 0 : index
    %713 = vector.load %arg7[%c26_721, %c0_722, %c0_723] : memref<27x4x8xf32, #tpu.memory_space<vmem>>, vector<1x4x8xf32>
    %714 = vector.shape_cast %713 : vector<1x4x8xf32> to vector<4x8xf32>
    %c0_724 = arith.constant 0 : index
    %c0_725 = arith.constant 0 : index
    %c0_726 = arith.constant 0 : index
    %c22_727 = arith.constant 22 : index
    %715 = vector.load %arg6[%c0_724, %c0_725, %c0_726, %c22_727] : memref<1x1x8x100xbf16, #tpu.memory_space<vmem>>, vector<1x1x8x78xbf16>
    %716 = vector.shape_cast %715 : vector<1x1x8x78xbf16> to vector<8x78xbf16>
    %717 = arith.extf %716 : vector<8x78xbf16> to vector<8x78xf32>
    %cst_728 = arith.constant dense<0.000000e+00> : vector<4x78xf32>
    %718 = tpu.matmul %714, %717, %cst_728 {dimension_numbers = #tpu.dot_dimension_numbers<[1], [0], [0], [1], [0, 0, 1, 1], [], []>} : vector<4x8xf32>, vector<8x78xf32>, vector<4x78xf32> -> vector<4x78xf32>
    %719 = arith.addf %712, %718 : vector<4x78xf32>
    %c1_i32_729 = arith.constant 1 : i32
    %720 = arith.subi %arg1, %c1_i32_729 : i32
    %c2_i32 = arith.constant 2 : i32
    %721 = arith.addi %720, %c2_i32 : i32
    %c0_i32_730 = arith.constant 0 : i32
    %722 = arith.cmpi sge, %721, %c0_i32_730 : i32
    %c1_i32_731 = arith.constant 1 : i32
    %723 = arith.subi %arg1, %c1_i32_731 : i32
    %c2_i32_732 = arith.constant 2 : i32
    %724 = arith.addi %723, %c2_i32_732 : i32
    %c7_i32_733 = arith.constant 7 : i32
    %725 = arith.cmpi sle, %724, %c7_i32_733 : i32
    %726 = arith.andi %722, %725 : i1
    %c0_734 = arith.constant 0 : index
    %c0_735 = arith.constant 0 : index
    %727 = vector.load %arg8[%c0_734, %c0_735] : memref<4x1xf32, #tpu.memory_space<vmem>>, vector<4x1xf32>
    %728 = vector.broadcast %727 : vector<4x1xf32> to vector<4x78xf32>
    %729 = arith.addf %719, %728 : vector<4x78xf32>
    %cst_736 = arith.constant 0.000000e+00 : f32
    %730 = vector.broadcast %cst_736 : f32 to vector<4x78xf32>
    %731 = arith.maximumf %729, %730 : vector<4x78xf32>
    %732 = vector.broadcast %0 : vector<1x78xf32> to vector<4x78xf32>
    %733 = arith.mulf %731, %732 : vector<4x78xf32>
    %734 = arith.extui %726 : i1 to i32
    %735 = arith.sitofp %734 : i32 to f32
    %736 = vector.broadcast %735 : f32 to vector<4x78xf32>
    %737 = arith.mulf %733, %736 : vector<4x78xf32>
    %c0_737 = arith.constant 0 : index
    %c128_738 = arith.constant 128 : index
    %738 = vector.load %arg13[%c0_737, %c128_738] : memref<4x217xf32, #tpu.memory_space<vmem>>, vector<4x78xf32>
    tpu.vector_store %arg13[%c0_737, %c128_738], %737 {strides = array<i32>} : memref<4x217xf32, #tpu.memory_space<vmem>>, vector<4x78xf32>,
    %c18_739 = arith.constant 18 : index
    %c0_740 = arith.constant 0 : index
    %c0_741 = arith.constant 0 : index
    %739 = vector.load %arg9[%c18_739, %c0_740, %c0_741] : memref<27x4x1xf32, #tpu.memory_space<vmem>>, vector<1x4x1xf32>
    %740 = vector.shape_cast %739 : vector<1x4x1xf32> to vector<4x1xf32>
    %c0_742 = arith.constant 0 : index
    %c117_743 = arith.constant 117 : index
    %741 = vector.load %arg13[%c0_742, %c117_743] : memref<4x217xf32, #tpu.memory_space<vmem>>, vector<4x78xf32>
    %742 = vector.broadcast %740 : vector<4x1xf32> to vector<4x78xf32>
    %743 = arith.mulf %742, %741 : vector<4x78xf32>
    %744 = arith.addf %529, %743 : vector<4x78xf32>
    %c19_744 = arith.constant 19 : index
    %c0_745 = arith.constant 0 : index
    %c0_746 = arith.constant 0 : index
    %745 = vector.load %arg9[%c19_744, %c0_745, %c0_746] : memref<27x4x1xf32, #tpu.memory_space<vmem>>, vector<1x4x1xf32>
    %746 = vector.shape_cast %745 : vector<1x4x1xf32> to vector<4x1xf32>
    %c0_747 = arith.constant 0 : index
    %c118_748 = arith.constant 118 : index
    %747 = vector.load %arg13[%c0_747, %c118_748] : memref<4x217xf32, #tpu.memory_space<vmem>>, vector<4x78xf32>
    %748 = vector.broadcast %746 : vector<4x1xf32> to vector<4x78xf32>
    %749 = arith.mulf %748, %747 : vector<4x78xf32>
    %750 = arith.addf %744, %749 : vector<4x78xf32>
    %c20_749 = arith.constant 20 : index
    %c0_750 = arith.constant 0 : index
    %c0_751 = arith.constant 0 : index
    %751 = vector.load %arg9[%c20_749, %c0_750, %c0_751] : memref<27x4x1xf32, #tpu.memory_space<vmem>>, vector<1x4x1xf32>
    %752 = vector.shape_cast %751 : vector<1x4x1xf32> to vector<4x1xf32>
    %c0_752 = arith.constant 0 : index
    %c119_753 = arith.constant 119 : index
    %753 = vector.load %arg13[%c0_752, %c119_753] : memref<4x217xf32, #tpu.memory_space<vmem>>, vector<4x78xf32>
    %754 = vector.broadcast %752 : vector<4x1xf32> to vector<4x78xf32>
    %755 = arith.mulf %754, %753 : vector<4x78xf32>
    %756 = arith.addf %750, %755 : vector<4x78xf32>
    %c21_754 = arith.constant 21 : index
    %c0_755 = arith.constant 0 : index
    %c0_756 = arith.constant 0 : index
    %757 = vector.load %arg9[%c21_754, %c0_755, %c0_756] : memref<27x4x1xf32, #tpu.memory_space<vmem>>, vector<1x4x1xf32>
    %758 = vector.shape_cast %757 : vector<1x4x1xf32> to vector<4x1xf32>
    %c0_757 = arith.constant 0 : index
    %c127_758 = arith.constant 127 : index
    %759 = vector.load %arg13[%c0_757, %c127_758] : memref<4x217xf32, #tpu.memory_space<vmem>>, vector<4x78xf32>
    %760 = vector.broadcast %758 : vector<4x1xf32> to vector<4x78xf32>
    %761 = arith.mulf %760, %759 : vector<4x78xf32>
    %762 = arith.addf %756, %761 : vector<4x78xf32>
    %c22_759 = arith.constant 22 : index
    %c0_760 = arith.constant 0 : index
    %c0_761 = arith.constant 0 : index
    %763 = vector.load %arg9[%c22_759, %c0_760, %c0_761] : memref<27x4x1xf32, #tpu.memory_space<vmem>>, vector<1x4x1xf32>
    %764 = vector.shape_cast %763 : vector<1x4x1xf32> to vector<4x1xf32>
    %c0_762 = arith.constant 0 : index
    %c128_763 = arith.constant 128 : index
    %765 = vector.load %arg13[%c0_762, %c128_763] : memref<4x217xf32, #tpu.memory_space<vmem>>, vector<4x78xf32>
    %766 = vector.broadcast %764 : vector<4x1xf32> to vector<4x78xf32>
    %767 = arith.mulf %766, %765 : vector<4x78xf32>
    %768 = arith.addf %762, %767 : vector<4x78xf32>
    %c23_764 = arith.constant 23 : index
    %c0_765 = arith.constant 0 : index
    %c0_766 = arith.constant 0 : index
    %769 = vector.load %arg9[%c23_764, %c0_765, %c0_766] : memref<27x4x1xf32, #tpu.memory_space<vmem>>, vector<1x4x1xf32>
    %770 = vector.shape_cast %769 : vector<1x4x1xf32> to vector<4x1xf32>
    %c0_767 = arith.constant 0 : index
    %c129_768 = arith.constant 129 : index
    %771 = vector.load %arg13[%c0_767, %c129_768] : memref<4x217xf32, #tpu.memory_space<vmem>>, vector<4x78xf32>
    %772 = vector.broadcast %770 : vector<4x1xf32> to vector<4x78xf32>
    %773 = arith.mulf %772, %771 : vector<4x78xf32>
    %774 = arith.addf %768, %773 : vector<4x78xf32>
    %c24_769 = arith.constant 24 : index
    %c0_770 = arith.constant 0 : index
    %c0_771 = arith.constant 0 : index
    %775 = vector.load %arg9[%c24_769, %c0_770, %c0_771] : memref<27x4x1xf32, #tpu.memory_space<vmem>>, vector<1x4x1xf32>
    %776 = vector.shape_cast %775 : vector<1x4x1xf32> to vector<4x1xf32>
    %c0_772 = arith.constant 0 : index
    %c137_773 = arith.constant 137 : index
    %777 = vector.load %arg13[%c0_772, %c137_773] : memref<4x217xf32, #tpu.memory_space<vmem>>, vector<4x78xf32>
    %778 = vector.broadcast %776 : vector<4x1xf32> to vector<4x78xf32>
    %779 = arith.mulf %778, %777 : vector<4x78xf32>
    %780 = arith.addf %774, %779 : vector<4x78xf32>
    %c25_774 = arith.constant 25 : index
    %c0_775 = arith.constant 0 : index
    %c0_776 = arith.constant 0 : index
    %781 = vector.load %arg9[%c25_774, %c0_775, %c0_776] : memref<27x4x1xf32, #tpu.memory_space<vmem>>, vector<1x4x1xf32>
    %782 = vector.shape_cast %781 : vector<1x4x1xf32> to vector<4x1xf32>
    %c0_777 = arith.constant 0 : index
    %c138_778 = arith.constant 138 : index
    %783 = vector.load %arg13[%c0_777, %c138_778] : memref<4x217xf32, #tpu.memory_space<vmem>>, vector<4x78xf32>
    %784 = vector.broadcast %782 : vector<4x1xf32> to vector<4x78xf32>
    %785 = arith.mulf %784, %783 : vector<4x78xf32>
    %786 = arith.addf %780, %785 : vector<4x78xf32>
    %c26_779 = arith.constant 26 : index
    %c0_780 = arith.constant 0 : index
    %c0_781 = arith.constant 0 : index
    %787 = vector.load %arg9[%c26_779, %c0_780, %c0_781] : memref<27x4x1xf32, #tpu.memory_space<vmem>>, vector<1x4x1xf32>
    %788 = vector.shape_cast %787 : vector<1x4x1xf32> to vector<4x1xf32>
    %c0_782 = arith.constant 0 : index
    %c139_783 = arith.constant 139 : index
    %789 = vector.load %arg13[%c0_782, %c139_783] : memref<4x217xf32, #tpu.memory_space<vmem>>, vector<4x78xf32>
    %790 = vector.broadcast %788 : vector<4x1xf32> to vector<4x78xf32>
    %791 = arith.mulf %790, %789 : vector<4x78xf32>
    %792 = arith.addf %786, %791 : vector<4x78xf32>
    %cst_784 = arith.constant dense<0.000000e+00> : vector<78xf32>
    %793 = vector.multi_reduction <add>, %792, %cst_784 [0] : vector<4x78xf32> to vector<78xf32>
    %794 = vector.shape_cast %793 : vector<78xf32> to vector<1x78xf32>
    %c0_785 = arith.constant 0 : index
    %c0_786 = arith.constant 0 : index
    %795 = vector.load %arg10[%c0_785, %c0_786] : memref<1x1xf32, #tpu.memory_space<vmem>>, vector<1x1xf32>
    %796 = vector.broadcast %795 : vector<1x1xf32> to vector<1x78xf32>
    %797 = arith.addf %794, %796 : vector<1x78xf32>
    %798 = arith.negf %797 : vector<1x78xf32>
    %799 = math.exp %798 : vector<1x78xf32>
    %cst_787 = arith.constant 1.000000e+00 : f32
    %800 = vector.broadcast %cst_787 : f32 to vector<1x78xf32>
    %801 = arith.addf %800, %799 : vector<1x78xf32>
    %802 = arith.divf %800, %801 : vector<1x78xf32>
    %c0_788 = arith.constant 0 : index
    %c0_789 = arith.constant 0 : index
    %c0_790 = arith.constant 0 : index
    %c0_791 = arith.constant 0 : index
    %803 = vector.load %arg12[%c0_788, %c0_789, %c0_790, %c0_791] : memref<1x1x1x78xf32, #tpu.memory_space<vmem>>, vector<1x1x1x78xf32>
    %804 = vector.shape_cast %803 : vector<1x1x1x78xf32> to vector<1x78xf32>
    %805 = vector.shape_cast %802 : vector<1x78xf32> to vector<1x1x1x78xf32>
    tpu.vector_store %arg12[%c0_788, %c0_789, %c0_790, %c0_791], %805 {strides = array<i32>} : memref<1x1x1x78xf32, #tpu.memory_space<vmem>>, vector<1x1x1x78xf32>,
    return
  }
  func.func @transform_0(%arg0: i32, %arg1: i32) -> (i32, i32, i32, i32) {
    %c0_i32 = arith.constant 0 : i32
    %0 = arith.addi %arg1, %c0_i32 : i32
    %c0_i32_0 = arith.constant 0 : i32
    %c0_i32_1 = arith.constant 0 : i32
    %c0_i32_2 = arith.constant 0 : i32
    return %arg0, %0, %c0_i32_0, %c0_i32_1 : i32, i32, i32, i32
  }
  func.func @transform_1(%arg0: i32, %arg1: i32) -> (i32, i32, i32, i32) {
    %c1_i32 = arith.constant 1 : i32
    %0 = arith.addi %arg1, %c1_i32 : i32
    %c0_i32 = arith.constant 0 : i32
    %c0_i32_0 = arith.constant 0 : i32
    %c0_i32_1 = arith.constant 0 : i32
    return %arg0, %0, %c0_i32, %c0_i32_0 : i32, i32, i32, i32
  }
  func.func @transform_2(%arg0: i32, %arg1: i32) -> (i32, i32, i32, i32) {
    %c2_i32 = arith.constant 2 : i32
    %0 = arith.addi %arg1, %c2_i32 : i32
    %c0_i32 = arith.constant 0 : i32
    %c0_i32_0 = arith.constant 0 : i32
    %c0_i32_1 = arith.constant 0 : i32
    return %arg0, %0, %c0_i32, %c0_i32_0 : i32, i32, i32, i32
  }
  func.func @transform_3(%arg0: i32, %arg1: i32) -> (i32, i32, i32, i32) {
    %c3_i32 = arith.constant 3 : i32
    %0 = arith.addi %arg1, %c3_i32 : i32
    %c0_i32 = arith.constant 0 : i32
    %c0_i32_0 = arith.constant 0 : i32
    %c0_i32_1 = arith.constant 0 : i32
    return %arg0, %0, %c0_i32, %c0_i32_0 : i32, i32, i32, i32
  }
  func.func @transform_4(%arg0: i32, %arg1: i32) -> (i32, i32, i32, i32) {
    %c4_i32 = arith.constant 4 : i32
    %0 = arith.addi %arg1, %c4_i32 : i32
    %c0_i32 = arith.constant 0 : i32
    %c0_i32_0 = arith.constant 0 : i32
    %c0_i32_1 = arith.constant 0 : i32
    return %arg0, %0, %c0_i32, %c0_i32_0 : i32, i32, i32, i32
  }
  func.func @transform_5(%arg0: i32, %arg1: i32) -> (i32, i32, i32) {
    %c0_i32 = arith.constant 0 : i32
    %c0_i32_0 = arith.constant 0 : i32
    %c0_i32_1 = arith.constant 0 : i32
    %c0_i32_2 = arith.constant 0 : i32
    return %c0_i32, %c0_i32_0, %c0_i32_1 : i32, i32, i32
  }
  func.func @transform_6(%arg0: i32, %arg1: i32) -> (i32, i32) {
    %c0_i32 = arith.constant 0 : i32
    %c0_i32_0 = arith.constant 0 : i32
    %c0_i32_1 = arith.constant 0 : i32
    return %c0_i32, %c0_i32_0 : i32, i32
  }
  func.func @transform_7(%arg0: i32, %arg1: i32) -> (i32, i32, i32) {
    %c0_i32 = arith.constant 0 : i32
    %c0_i32_0 = arith.constant 0 : i32
    %c0_i32_1 = arith.constant 0 : i32
    %c0_i32_2 = arith.constant 0 : i32
    return %c0_i32, %c0_i32_0, %c0_i32_1 : i32, i32, i32
  }
  func.func @transform_8(%arg0: i32, %arg1: i32) -> (i32, i32) {
    %c0_i32 = arith.constant 0 : i32
    %c0_i32_0 = arith.constant 0 : i32
    %c0_i32_1 = arith.constant 0 : i32
    return %c0_i32, %c0_i32_0 : i32, i32
  }
  func.func @transform_9(%arg0: i32, %arg1: i32) -> (i32, i32) {
    %c0_i32 = arith.constant 0 : i32
    %c0_i32_0 = arith.constant 0 : i32
    %c0_i32_1 = arith.constant 0 : i32
    return %c0_i32, %c0_i32_0 : i32, i32
  }
  func.func @transform_10(%arg0: i32, %arg1: i32) -> (i32, i32, i32, i32) {
    %c0_i32 = arith.constant 0 : i32
    %c0_i32_0 = arith.constant 0 : i32
    %c0_i32_1 = arith.constant 0 : i32
    return %arg0, %arg1, %c0_i32, %c0_i32_0 : i32, i32, i32, i32
  }
}

module attributes {stable_mosaic.version = 11 : i64} {
  func.func @attn_out_kernel(%arg0: i32, %arg1: i32, %arg2: memref<1x24x512xf32, #tpu.memory_space<vmem>>, %arg3: memref<1x1x512xf32, #tpu.memory_space<vmem>>, %arg4: memref<8x8xf32, #tpu.memory_space<vmem>>, %arg5: memref<8x1xf32, #tpu.memory_space<vmem>>, %arg6: memref<1x8x512xf32, #tpu.memory_space<vmem>>, %arg7: memref<64x8xf32, #tpu.memory_space<vmem>>, %arg8: memref<1x512xf32, #tpu.memory_space<vmem>>) attributes {dimension_semantics = [#tpu.dimension_semantics<parallel>, #tpu.dimension_semantics<parallel>], iteration_bounds = array<i64: 2, 1>, scalar_prefetch = 0 : i64, scratch_operands = 2 : i64, tpu.core_type = #tpu.core_type<tc>, window_params = [{transform_indices = @transform_0, window_bounds = array<i64: 1, 24, 512>}, {transform_indices = @transform_1, window_bounds = array<i64: 1, 1, 512>}, {pipeline_mode = #tpu.pipeline_mode<synchronous>, transform_indices = @transform_2, window_bounds = array<i64: 8, 8>}, {pipeline_mode = #tpu.pipeline_mode<synchronous>, transform_indices = @transform_3, window_bounds = array<i64: 8, 1>}, {transform_indices = @transform_4, window_bounds = array<i64: 1, 8, 512>}]} {
    %c0 = arith.constant 0 : index
    %c0_0 = arith.constant 0 : index
    %c0_1 = arith.constant 0 : index
    %0 = vector.load %arg3[%c0, %c0_0, %c0_1] : memref<1x1x512xf32, #tpu.memory_space<vmem>>, vector<1x1x512xf32>
    %1 = vector.shape_cast %0 : vector<1x1x512xf32> to vector<1x512xf32>
    %c0_2 = arith.constant 0 : index
    %c0_3 = arith.constant 0 : index
    %c0_4 = arith.constant 0 : index
    %2 = vector.load %arg2[%c0_2, %c0_3, %c0_4] : memref<1x24x512xf32, #tpu.memory_space<vmem>>, vector<1x24x512xf32>
    %3 = vector.shape_cast %2 : vector<1x24x512xf32> to vector<24x512xf32>
    %4 = vector.extract_strided_slice %3 {offsets = [0, 0], sizes = [8, 512], strides = [1, 1]} : vector<24x512xf32> to vector<8x512xf32>
    %5 = vector.extract_strided_slice %3 {offsets = [8, 0], sizes = [8, 512], strides = [1, 1]} : vector<24x512xf32> to vector<8x512xf32>
    %6 = vector.extract_strided_slice %3 {offsets = [16, 0], sizes = [8, 512], strides = [1, 1]} : vector<24x512xf32> to vector<8x512xf32>
    %7 = arith.mulf %4, %5 : vector<8x512xf32>
    %cst = arith.constant dense<0.000000e+00> : vector<512xf32>
    %8 = vector.multi_reduction <add>, %7, %cst [0] : vector<8x512xf32> to vector<512xf32>
    %9 = vector.shape_cast %8 : vector<512xf32> to vector<1x512xf32>
    %10 = arith.mulf %1, %1 : vector<1x512xf32>
    %11 = arith.mulf %9, %10 : vector<1x512xf32>
    %cst_5 = arith.constant 0.353553385 : f32
    %12 = vector.broadcast %cst_5 : f32 to vector<1x512xf32>
    %13 = arith.mulf %11, %12 : vector<1x512xf32>
    %14 = vector.extract_strided_slice %13 {offsets = [0, 0], sizes = [1, 8], strides = [1, 1]} : vector<1x512xf32> to vector<1x8xf32>
    %c0_6 = arith.constant 0 : index
    %c0_7 = arith.constant 0 : index
    %15 = vector.load %arg7[%c0_6, %c0_7] : memref<64x8xf32, #tpu.memory_space<vmem>>, vector<1x8xf32>
    tpu.vector_store %arg7[%c0_6, %c0_7], %14 {strides = array<i32>} : memref<64x8xf32, #tpu.memory_space<vmem>>, vector<1x8xf32>,
    %16 = vector.extract_strided_slice %13 {offsets = [0, 8], sizes = [1, 8], strides = [1, 1]} : vector<1x512xf32> to vector<1x8xf32>
    %c1 = arith.constant 1 : index
    %c0_8 = arith.constant 0 : index
    %17 = vector.load %arg7[%c1, %c0_8] : memref<64x8xf32, #tpu.memory_space<vmem>>, vector<1x8xf32>
    tpu.vector_store %arg7[%c1, %c0_8], %16 {strides = array<i32>} : memref<64x8xf32, #tpu.memory_space<vmem>>, vector<1x8xf32>,
    %18 = vector.extract_strided_slice %13 {offsets = [0, 16], sizes = [1, 8], strides = [1, 1]} : vector<1x512xf32> to vector<1x8xf32>
    %c2 = arith.constant 2 : index
    %c0_9 = arith.constant 0 : index
    %19 = vector.load %arg7[%c2, %c0_9] : memref<64x8xf32, #tpu.memory_space<vmem>>, vector<1x8xf32>
    tpu.vector_store %arg7[%c2, %c0_9], %18 {strides = array<i32>} : memref<64x8xf32, #tpu.memory_space<vmem>>, vector<1x8xf32>,
    %20 = vector.extract_strided_slice %13 {offsets = [0, 24], sizes = [1, 8], strides = [1, 1]} : vector<1x512xf32> to vector<1x8xf32>
    %c3 = arith.constant 3 : index
    %c0_10 = arith.constant 0 : index
    %21 = vector.load %arg7[%c3, %c0_10] : memref<64x8xf32, #tpu.memory_space<vmem>>, vector<1x8xf32>
    tpu.vector_store %arg7[%c3, %c0_10], %20 {strides = array<i32>} : memref<64x8xf32, #tpu.memory_space<vmem>>, vector<1x8xf32>,
    %22 = vector.extract_strided_slice %13 {offsets = [0, 32], sizes = [1, 8], strides = [1, 1]} : vector<1x512xf32> to vector<1x8xf32>
    %c4 = arith.constant 4 : index
    %c0_11 = arith.constant 0 : index
    %23 = vector.load %arg7[%c4, %c0_11] : memref<64x8xf32, #tpu.memory_space<vmem>>, vector<1x8xf32>
    tpu.vector_store %arg7[%c4, %c0_11], %22 {strides = array<i32>} : memref<64x8xf32, #tpu.memory_space<vmem>>, vector<1x8xf32>,
    %24 = vector.extract_strided_slice %13 {offsets = [0, 40], sizes = [1, 8], strides = [1, 1]} : vector<1x512xf32> to vector<1x8xf32>
    %c5 = arith.constant 5 : index
    %c0_12 = arith.constant 0 : index
    %25 = vector.load %arg7[%c5, %c0_12] : memref<64x8xf32, #tpu.memory_space<vmem>>, vector<1x8xf32>
    tpu.vector_store %arg7[%c5, %c0_12], %24 {strides = array<i32>} : memref<64x8xf32, #tpu.memory_space<vmem>>, vector<1x8xf32>,
    %26 = vector.extract_strided_slice %13 {offsets = [0, 48], sizes = [1, 8], strides = [1, 1]} : vector<1x512xf32> to vector<1x8xf32>
    %c6 = arith.constant 6 : index
    %c0_13 = arith.constant 0 : index
    %27 = vector.load %arg7[%c6, %c0_13] : memref<64x8xf32, #tpu.memory_space<vmem>>, vector<1x8xf32>
    tpu.vector_store %arg7[%c6, %c0_13], %26 {strides = array<i32>} : memref<64x8xf32, #tpu.memory_space<vmem>>, vector<1x8xf32>,
    %28 = vector.extract_strided_slice %13 {offsets = [0, 56], sizes = [1, 8], strides = [1, 1]} : vector<1x512xf32> to vector<1x8xf32>
    %c7 = arith.constant 7 : index
    %c0_14 = arith.constant 0 : index
    %29 = vector.load %arg7[%c7, %c0_14] : memref<64x8xf32, #tpu.memory_space<vmem>>, vector<1x8xf32>
    tpu.vector_store %arg7[%c7, %c0_14], %28 {strides = array<i32>} : memref<64x8xf32, #tpu.memory_space<vmem>>, vector<1x8xf32>,
    %30 = vector.extract_strided_slice %13 {offsets = [0, 64], sizes = [1, 8], strides = [1, 1]} : vector<1x512xf32> to vector<1x8xf32>
    %c8 = arith.constant 8 : index
    %c0_15 = arith.constant 0 : index
    %31 = vector.load %arg7[%c8, %c0_15] : memref<64x8xf32, #tpu.memory_space<vmem>>, vector<1x8xf32>
    tpu.vector_store %arg7[%c8, %c0_15], %30 {strides = array<i32>} : memref<64x8xf32, #tpu.memory_space<vmem>>, vector<1x8xf32>,
    %32 = vector.extract_strided_slice %13 {offsets = [0, 72], sizes = [1, 8], strides = [1, 1]} : vector<1x512xf32> to vector<1x8xf32>
    %c9 = arith.constant 9 : index
    %c0_16 = arith.constant 0 : index
    %33 = vector.load %arg7[%c9, %c0_16] : memref<64x8xf32, #tpu.memory_space<vmem>>, vector<1x8xf32>
    tpu.vector_store %arg7[%c9, %c0_16], %32 {strides = array<i32>} : memref<64x8xf32, #tpu.memory_space<vmem>>, vector<1x8xf32>,
    %34 = vector.extract_strided_slice %13 {offsets = [0, 80], sizes = [1, 8], strides = [1, 1]} : vector<1x512xf32> to vector<1x8xf32>
    %c10 = arith.constant 10 : index
    %c0_17 = arith.constant 0 : index
    %35 = vector.load %arg7[%c10, %c0_17] : memref<64x8xf32, #tpu.memory_space<vmem>>, vector<1x8xf32>
    tpu.vector_store %arg7[%c10, %c0_17], %34 {strides = array<i32>} : memref<64x8xf32, #tpu.memory_space<vmem>>, vector<1x8xf32>,
    %36 = vector.extract_strided_slice %13 {offsets = [0, 88], sizes = [1, 8], strides = [1, 1]} : vector<1x512xf32> to vector<1x8xf32>
    %c11 = arith.constant 11 : index
    %c0_18 = arith.constant 0 : index
    %37 = vector.load %arg7[%c11, %c0_18] : memref<64x8xf32, #tpu.memory_space<vmem>>, vector<1x8xf32>
    tpu.vector_store %arg7[%c11, %c0_18], %36 {strides = array<i32>} : memref<64x8xf32, #tpu.memory_space<vmem>>, vector<1x8xf32>,
    %38 = vector.extract_strided_slice %13 {offsets = [0, 96], sizes = [1, 8], strides = [1, 1]} : vector<1x512xf32> to vector<1x8xf32>
    %c12 = arith.constant 12 : index
    %c0_19 = arith.constant 0 : index
    %39 = vector.load %arg7[%c12, %c0_19] : memref<64x8xf32, #tpu.memory_space<vmem>>, vector<1x8xf32>
    tpu.vector_store %arg7[%c12, %c0_19], %38 {strides = array<i32>} : memref<64x8xf32, #tpu.memory_space<vmem>>, vector<1x8xf32>,
    %40 = vector.extract_strided_slice %13 {offsets = [0, 104], sizes = [1, 8], strides = [1, 1]} : vector<1x512xf32> to vector<1x8xf32>
    %c13 = arith.constant 13 : index
    %c0_20 = arith.constant 0 : index
    %41 = vector.load %arg7[%c13, %c0_20] : memref<64x8xf32, #tpu.memory_space<vmem>>, vector<1x8xf32>
    tpu.vector_store %arg7[%c13, %c0_20], %40 {strides = array<i32>} : memref<64x8xf32, #tpu.memory_space<vmem>>, vector<1x8xf32>,
    %42 = vector.extract_strided_slice %13 {offsets = [0, 112], sizes = [1, 8], strides = [1, 1]} : vector<1x512xf32> to vector<1x8xf32>
    %c14 = arith.constant 14 : index
    %c0_21 = arith.constant 0 : index
    %43 = vector.load %arg7[%c14, %c0_21] : memref<64x8xf32, #tpu.memory_space<vmem>>, vector<1x8xf32>
    tpu.vector_store %arg7[%c14, %c0_21], %42 {strides = array<i32>} : memref<64x8xf32, #tpu.memory_space<vmem>>, vector<1x8xf32>,
    %44 = vector.extract_strided_slice %13 {offsets = [0, 120], sizes = [1, 8], strides = [1, 1]} : vector<1x512xf32> to vector<1x8xf32>
    %c15 = arith.constant 15 : index
    %c0_22 = arith.constant 0 : index
    %45 = vector.load %arg7[%c15, %c0_22] : memref<64x8xf32, #tpu.memory_space<vmem>>, vector<1x8xf32>
    tpu.vector_store %arg7[%c15, %c0_22], %44 {strides = array<i32>} : memref<64x8xf32, #tpu.memory_space<vmem>>, vector<1x8xf32>,
    %46 = vector.extract_strided_slice %13 {offsets = [0, 128], sizes = [1, 8], strides = [1, 1]} : vector<1x512xf32> to vector<1x8xf32>
    %c16 = arith.constant 16 : index
    %c0_23 = arith.constant 0 : index
    %47 = vector.load %arg7[%c16, %c0_23] : memref<64x8xf32, #tpu.memory_space<vmem>>, vector<1x8xf32>
    tpu.vector_store %arg7[%c16, %c0_23], %46 {strides = array<i32>} : memref<64x8xf32, #tpu.memory_space<vmem>>, vector<1x8xf32>,
    %48 = vector.extract_strided_slice %13 {offsets = [0, 136], sizes = [1, 8], strides = [1, 1]} : vector<1x512xf32> to vector<1x8xf32>
    %c17 = arith.constant 17 : index
    %c0_24 = arith.constant 0 : index
    %49 = vector.load %arg7[%c17, %c0_24] : memref<64x8xf32, #tpu.memory_space<vmem>>, vector<1x8xf32>
    tpu.vector_store %arg7[%c17, %c0_24], %48 {strides = array<i32>} : memref<64x8xf32, #tpu.memory_space<vmem>>, vector<1x8xf32>,
    %50 = vector.extract_strided_slice %13 {offsets = [0, 144], sizes = [1, 8], strides = [1, 1]} : vector<1x512xf32> to vector<1x8xf32>
    %c18 = arith.constant 18 : index
    %c0_25 = arith.constant 0 : index
    %51 = vector.load %arg7[%c18, %c0_25] : memref<64x8xf32, #tpu.memory_space<vmem>>, vector<1x8xf32>
    tpu.vector_store %arg7[%c18, %c0_25], %50 {strides = array<i32>} : memref<64x8xf32, #tpu.memory_space<vmem>>, vector<1x8xf32>,
    %52 = vector.extract_strided_slice %13 {offsets = [0, 152], sizes = [1, 8], strides = [1, 1]} : vector<1x512xf32> to vector<1x8xf32>
    %c19 = arith.constant 19 : index
    %c0_26 = arith.constant 0 : index
    %53 = vector.load %arg7[%c19, %c0_26] : memref<64x8xf32, #tpu.memory_space<vmem>>, vector<1x8xf32>
    tpu.vector_store %arg7[%c19, %c0_26], %52 {strides = array<i32>} : memref<64x8xf32, #tpu.memory_space<vmem>>, vector<1x8xf32>,
    %54 = vector.extract_strided_slice %13 {offsets = [0, 160], sizes = [1, 8], strides = [1, 1]} : vector<1x512xf32> to vector<1x8xf32>
    %c20 = arith.constant 20 : index
    %c0_27 = arith.constant 0 : index
    %55 = vector.load %arg7[%c20, %c0_27] : memref<64x8xf32, #tpu.memory_space<vmem>>, vector<1x8xf32>
    tpu.vector_store %arg7[%c20, %c0_27], %54 {strides = array<i32>} : memref<64x8xf32, #tpu.memory_space<vmem>>, vector<1x8xf32>,
    %56 = vector.extract_strided_slice %13 {offsets = [0, 168], sizes = [1, 8], strides = [1, 1]} : vector<1x512xf32> to vector<1x8xf32>
    %c21 = arith.constant 21 : index
    %c0_28 = arith.constant 0 : index
    %57 = vector.load %arg7[%c21, %c0_28] : memref<64x8xf32, #tpu.memory_space<vmem>>, vector<1x8xf32>
    tpu.vector_store %arg7[%c21, %c0_28], %56 {strides = array<i32>} : memref<64x8xf32, #tpu.memory_space<vmem>>, vector<1x8xf32>,
    %58 = vector.extract_strided_slice %13 {offsets = [0, 176], sizes = [1, 8], strides = [1, 1]} : vector<1x512xf32> to vector<1x8xf32>
    %c22 = arith.constant 22 : index
    %c0_29 = arith.constant 0 : index
    %59 = vector.load %arg7[%c22, %c0_29] : memref<64x8xf32, #tpu.memory_space<vmem>>, vector<1x8xf32>
    tpu.vector_store %arg7[%c22, %c0_29], %58 {strides = array<i32>} : memref<64x8xf32, #tpu.memory_space<vmem>>, vector<1x8xf32>,
    %60 = vector.extract_strided_slice %13 {offsets = [0, 184], sizes = [1, 8], strides = [1, 1]} : vector<1x512xf32> to vector<1x8xf32>
    %c23 = arith.constant 23 : index
    %c0_30 = arith.constant 0 : index
    %61 = vector.load %arg7[%c23, %c0_30] : memref<64x8xf32, #tpu.memory_space<vmem>>, vector<1x8xf32>
    tpu.vector_store %arg7[%c23, %c0_30], %60 {strides = array<i32>} : memref<64x8xf32, #tpu.memory_space<vmem>>, vector<1x8xf32>,
    %62 = vector.extract_strided_slice %13 {offsets = [0, 192], sizes = [1, 8], strides = [1, 1]} : vector<1x512xf32> to vector<1x8xf32>
    %c24 = arith.constant 24 : index
    %c0_31 = arith.constant 0 : index
    %63 = vector.load %arg7[%c24, %c0_31] : memref<64x8xf32, #tpu.memory_space<vmem>>, vector<1x8xf32>
    tpu.vector_store %arg7[%c24, %c0_31], %62 {strides = array<i32>} : memref<64x8xf32, #tpu.memory_space<vmem>>, vector<1x8xf32>,
    %64 = vector.extract_strided_slice %13 {offsets = [0, 200], sizes = [1, 8], strides = [1, 1]} : vector<1x512xf32> to vector<1x8xf32>
    %c25 = arith.constant 25 : index
    %c0_32 = arith.constant 0 : index
    %65 = vector.load %arg7[%c25, %c0_32] : memref<64x8xf32, #tpu.memory_space<vmem>>, vector<1x8xf32>
    tpu.vector_store %arg7[%c25, %c0_32], %64 {strides = array<i32>} : memref<64x8xf32, #tpu.memory_space<vmem>>, vector<1x8xf32>,
    %66 = vector.extract_strided_slice %13 {offsets = [0, 208], sizes = [1, 8], strides = [1, 1]} : vector<1x512xf32> to vector<1x8xf32>
    %c26 = arith.constant 26 : index
    %c0_33 = arith.constant 0 : index
    %67 = vector.load %arg7[%c26, %c0_33] : memref<64x8xf32, #tpu.memory_space<vmem>>, vector<1x8xf32>
    tpu.vector_store %arg7[%c26, %c0_33], %66 {strides = array<i32>} : memref<64x8xf32, #tpu.memory_space<vmem>>, vector<1x8xf32>,
    %68 = vector.extract_strided_slice %13 {offsets = [0, 216], sizes = [1, 8], strides = [1, 1]} : vector<1x512xf32> to vector<1x8xf32>
    %c27 = arith.constant 27 : index
    %c0_34 = arith.constant 0 : index
    %69 = vector.load %arg7[%c27, %c0_34] : memref<64x8xf32, #tpu.memory_space<vmem>>, vector<1x8xf32>
    tpu.vector_store %arg7[%c27, %c0_34], %68 {strides = array<i32>} : memref<64x8xf32, #tpu.memory_space<vmem>>, vector<1x8xf32>,
    %70 = vector.extract_strided_slice %13 {offsets = [0, 224], sizes = [1, 8], strides = [1, 1]} : vector<1x512xf32> to vector<1x8xf32>
    %c28 = arith.constant 28 : index
    %c0_35 = arith.constant 0 : index
    %71 = vector.load %arg7[%c28, %c0_35] : memref<64x8xf32, #tpu.memory_space<vmem>>, vector<1x8xf32>
    tpu.vector_store %arg7[%c28, %c0_35], %70 {strides = array<i32>} : memref<64x8xf32, #tpu.memory_space<vmem>>, vector<1x8xf32>,
    %72 = vector.extract_strided_slice %13 {offsets = [0, 232], sizes = [1, 8], strides = [1, 1]} : vector<1x512xf32> to vector<1x8xf32>
    %c29 = arith.constant 29 : index
    %c0_36 = arith.constant 0 : index
    %73 = vector.load %arg7[%c29, %c0_36] : memref<64x8xf32, #tpu.memory_space<vmem>>, vector<1x8xf32>
    tpu.vector_store %arg7[%c29, %c0_36], %72 {strides = array<i32>} : memref<64x8xf32, #tpu.memory_space<vmem>>, vector<1x8xf32>,
    %74 = vector.extract_strided_slice %13 {offsets = [0, 240], sizes = [1, 8], strides = [1, 1]} : vector<1x512xf32> to vector<1x8xf32>
    %c30 = arith.constant 30 : index
    %c0_37 = arith.constant 0 : index
    %75 = vector.load %arg7[%c30, %c0_37] : memref<64x8xf32, #tpu.memory_space<vmem>>, vector<1x8xf32>
    tpu.vector_store %arg7[%c30, %c0_37], %74 {strides = array<i32>} : memref<64x8xf32, #tpu.memory_space<vmem>>, vector<1x8xf32>,
    %76 = vector.extract_strided_slice %13 {offsets = [0, 248], sizes = [1, 8], strides = [1, 1]} : vector<1x512xf32> to vector<1x8xf32>
    %c31 = arith.constant 31 : index
    %c0_38 = arith.constant 0 : index
    %77 = vector.load %arg7[%c31, %c0_38] : memref<64x8xf32, #tpu.memory_space<vmem>>, vector<1x8xf32>
    tpu.vector_store %arg7[%c31, %c0_38], %76 {strides = array<i32>} : memref<64x8xf32, #tpu.memory_space<vmem>>, vector<1x8xf32>,
    %78 = vector.extract_strided_slice %13 {offsets = [0, 256], sizes = [1, 8], strides = [1, 1]} : vector<1x512xf32> to vector<1x8xf32>
    %c32 = arith.constant 32 : index
    %c0_39 = arith.constant 0 : index
    %79 = vector.load %arg7[%c32, %c0_39] : memref<64x8xf32, #tpu.memory_space<vmem>>, vector<1x8xf32>
    tpu.vector_store %arg7[%c32, %c0_39], %78 {strides = array<i32>} : memref<64x8xf32, #tpu.memory_space<vmem>>, vector<1x8xf32>,
    %80 = vector.extract_strided_slice %13 {offsets = [0, 264], sizes = [1, 8], strides = [1, 1]} : vector<1x512xf32> to vector<1x8xf32>
    %c33 = arith.constant 33 : index
    %c0_40 = arith.constant 0 : index
    %81 = vector.load %arg7[%c33, %c0_40] : memref<64x8xf32, #tpu.memory_space<vmem>>, vector<1x8xf32>
    tpu.vector_store %arg7[%c33, %c0_40], %80 {strides = array<i32>} : memref<64x8xf32, #tpu.memory_space<vmem>>, vector<1x8xf32>,
    %82 = vector.extract_strided_slice %13 {offsets = [0, 272], sizes = [1, 8], strides = [1, 1]} : vector<1x512xf32> to vector<1x8xf32>
    %c34 = arith.constant 34 : index
    %c0_41 = arith.constant 0 : index
    %83 = vector.load %arg7[%c34, %c0_41] : memref<64x8xf32, #tpu.memory_space<vmem>>, vector<1x8xf32>
    tpu.vector_store %arg7[%c34, %c0_41], %82 {strides = array<i32>} : memref<64x8xf32, #tpu.memory_space<vmem>>, vector<1x8xf32>,
    %84 = vector.extract_strided_slice %13 {offsets = [0, 280], sizes = [1, 8], strides = [1, 1]} : vector<1x512xf32> to vector<1x8xf32>
    %c35 = arith.constant 35 : index
    %c0_42 = arith.constant 0 : index
    %85 = vector.load %arg7[%c35, %c0_42] : memref<64x8xf32, #tpu.memory_space<vmem>>, vector<1x8xf32>
    tpu.vector_store %arg7[%c35, %c0_42], %84 {strides = array<i32>} : memref<64x8xf32, #tpu.memory_space<vmem>>, vector<1x8xf32>,
    %86 = vector.extract_strided_slice %13 {offsets = [0, 288], sizes = [1, 8], strides = [1, 1]} : vector<1x512xf32> to vector<1x8xf32>
    %c36 = arith.constant 36 : index
    %c0_43 = arith.constant 0 : index
    %87 = vector.load %arg7[%c36, %c0_43] : memref<64x8xf32, #tpu.memory_space<vmem>>, vector<1x8xf32>
    tpu.vector_store %arg7[%c36, %c0_43], %86 {strides = array<i32>} : memref<64x8xf32, #tpu.memory_space<vmem>>, vector<1x8xf32>,
    %88 = vector.extract_strided_slice %13 {offsets = [0, 296], sizes = [1, 8], strides = [1, 1]} : vector<1x512xf32> to vector<1x8xf32>
    %c37 = arith.constant 37 : index
    %c0_44 = arith.constant 0 : index
    %89 = vector.load %arg7[%c37, %c0_44] : memref<64x8xf32, #tpu.memory_space<vmem>>, vector<1x8xf32>
    tpu.vector_store %arg7[%c37, %c0_44], %88 {strides = array<i32>} : memref<64x8xf32, #tpu.memory_space<vmem>>, vector<1x8xf32>,
    %90 = vector.extract_strided_slice %13 {offsets = [0, 304], sizes = [1, 8], strides = [1, 1]} : vector<1x512xf32> to vector<1x8xf32>
    %c38 = arith.constant 38 : index
    %c0_45 = arith.constant 0 : index
    %91 = vector.load %arg7[%c38, %c0_45] : memref<64x8xf32, #tpu.memory_space<vmem>>, vector<1x8xf32>
    tpu.vector_store %arg7[%c38, %c0_45], %90 {strides = array<i32>} : memref<64x8xf32, #tpu.memory_space<vmem>>, vector<1x8xf32>,
    %92 = vector.extract_strided_slice %13 {offsets = [0, 312], sizes = [1, 8], strides = [1, 1]} : vector<1x512xf32> to vector<1x8xf32>
    %c39 = arith.constant 39 : index
    %c0_46 = arith.constant 0 : index
    %93 = vector.load %arg7[%c39, %c0_46] : memref<64x8xf32, #tpu.memory_space<vmem>>, vector<1x8xf32>
    tpu.vector_store %arg7[%c39, %c0_46], %92 {strides = array<i32>} : memref<64x8xf32, #tpu.memory_space<vmem>>, vector<1x8xf32>,
    %94 = vector.extract_strided_slice %13 {offsets = [0, 320], sizes = [1, 8], strides = [1, 1]} : vector<1x512xf32> to vector<1x8xf32>
    %c40 = arith.constant 40 : index
    %c0_47 = arith.constant 0 : index
    %95 = vector.load %arg7[%c40, %c0_47] : memref<64x8xf32, #tpu.memory_space<vmem>>, vector<1x8xf32>
    tpu.vector_store %arg7[%c40, %c0_47], %94 {strides = array<i32>} : memref<64x8xf32, #tpu.memory_space<vmem>>, vector<1x8xf32>,
    %96 = vector.extract_strided_slice %13 {offsets = [0, 328], sizes = [1, 8], strides = [1, 1]} : vector<1x512xf32> to vector<1x8xf32>
    %c41 = arith.constant 41 : index
    %c0_48 = arith.constant 0 : index
    %97 = vector.load %arg7[%c41, %c0_48] : memref<64x8xf32, #tpu.memory_space<vmem>>, vector<1x8xf32>
    tpu.vector_store %arg7[%c41, %c0_48], %96 {strides = array<i32>} : memref<64x8xf32, #tpu.memory_space<vmem>>, vector<1x8xf32>,
    %98 = vector.extract_strided_slice %13 {offsets = [0, 336], sizes = [1, 8], strides = [1, 1]} : vector<1x512xf32> to vector<1x8xf32>
    %c42 = arith.constant 42 : index
    %c0_49 = arith.constant 0 : index
    %99 = vector.load %arg7[%c42, %c0_49] : memref<64x8xf32, #tpu.memory_space<vmem>>, vector<1x8xf32>
    tpu.vector_store %arg7[%c42, %c0_49], %98 {strides = array<i32>} : memref<64x8xf32, #tpu.memory_space<vmem>>, vector<1x8xf32>,
    %100 = vector.extract_strided_slice %13 {offsets = [0, 344], sizes = [1, 8], strides = [1, 1]} : vector<1x512xf32> to vector<1x8xf32>
    %c43 = arith.constant 43 : index
    %c0_50 = arith.constant 0 : index
    %101 = vector.load %arg7[%c43, %c0_50] : memref<64x8xf32, #tpu.memory_space<vmem>>, vector<1x8xf32>
    tpu.vector_store %arg7[%c43, %c0_50], %100 {strides = array<i32>} : memref<64x8xf32, #tpu.memory_space<vmem>>, vector<1x8xf32>,
    %102 = vector.extract_strided_slice %13 {offsets = [0, 352], sizes = [1, 8], strides = [1, 1]} : vector<1x512xf32> to vector<1x8xf32>
    %c44 = arith.constant 44 : index
    %c0_51 = arith.constant 0 : index
    %103 = vector.load %arg7[%c44, %c0_51] : memref<64x8xf32, #tpu.memory_space<vmem>>, vector<1x8xf32>
    tpu.vector_store %arg7[%c44, %c0_51], %102 {strides = array<i32>} : memref<64x8xf32, #tpu.memory_space<vmem>>, vector<1x8xf32>,
    %104 = vector.extract_strided_slice %13 {offsets = [0, 360], sizes = [1, 8], strides = [1, 1]} : vector<1x512xf32> to vector<1x8xf32>
    %c45 = arith.constant 45 : index
    %c0_52 = arith.constant 0 : index
    %105 = vector.load %arg7[%c45, %c0_52] : memref<64x8xf32, #tpu.memory_space<vmem>>, vector<1x8xf32>
    tpu.vector_store %arg7[%c45, %c0_52], %104 {strides = array<i32>} : memref<64x8xf32, #tpu.memory_space<vmem>>, vector<1x8xf32>,
    %106 = vector.extract_strided_slice %13 {offsets = [0, 368], sizes = [1, 8], strides = [1, 1]} : vector<1x512xf32> to vector<1x8xf32>
    %c46 = arith.constant 46 : index
    %c0_53 = arith.constant 0 : index
    %107 = vector.load %arg7[%c46, %c0_53] : memref<64x8xf32, #tpu.memory_space<vmem>>, vector<1x8xf32>
    tpu.vector_store %arg7[%c46, %c0_53], %106 {strides = array<i32>} : memref<64x8xf32, #tpu.memory_space<vmem>>, vector<1x8xf32>,
    %108 = vector.extract_strided_slice %13 {offsets = [0, 376], sizes = [1, 8], strides = [1, 1]} : vector<1x512xf32> to vector<1x8xf32>
    %c47 = arith.constant 47 : index
    %c0_54 = arith.constant 0 : index
    %109 = vector.load %arg7[%c47, %c0_54] : memref<64x8xf32, #tpu.memory_space<vmem>>, vector<1x8xf32>
    tpu.vector_store %arg7[%c47, %c0_54], %108 {strides = array<i32>} : memref<64x8xf32, #tpu.memory_space<vmem>>, vector<1x8xf32>,
    %110 = vector.extract_strided_slice %13 {offsets = [0, 384], sizes = [1, 8], strides = [1, 1]} : vector<1x512xf32> to vector<1x8xf32>
    %c48 = arith.constant 48 : index
    %c0_55 = arith.constant 0 : index
    %111 = vector.load %arg7[%c48, %c0_55] : memref<64x8xf32, #tpu.memory_space<vmem>>, vector<1x8xf32>
    tpu.vector_store %arg7[%c48, %c0_55], %110 {strides = array<i32>} : memref<64x8xf32, #tpu.memory_space<vmem>>, vector<1x8xf32>,
    %112 = vector.extract_strided_slice %13 {offsets = [0, 392], sizes = [1, 8], strides = [1, 1]} : vector<1x512xf32> to vector<1x8xf32>
    %c49 = arith.constant 49 : index
    %c0_56 = arith.constant 0 : index
    %113 = vector.load %arg7[%c49, %c0_56] : memref<64x8xf32, #tpu.memory_space<vmem>>, vector<1x8xf32>
    tpu.vector_store %arg7[%c49, %c0_56], %112 {strides = array<i32>} : memref<64x8xf32, #tpu.memory_space<vmem>>, vector<1x8xf32>,
    %114 = vector.extract_strided_slice %13 {offsets = [0, 400], sizes = [1, 8], strides = [1, 1]} : vector<1x512xf32> to vector<1x8xf32>
    %c50 = arith.constant 50 : index
    %c0_57 = arith.constant 0 : index
    %115 = vector.load %arg7[%c50, %c0_57] : memref<64x8xf32, #tpu.memory_space<vmem>>, vector<1x8xf32>
    tpu.vector_store %arg7[%c50, %c0_57], %114 {strides = array<i32>} : memref<64x8xf32, #tpu.memory_space<vmem>>, vector<1x8xf32>,
    %116 = vector.extract_strided_slice %13 {offsets = [0, 408], sizes = [1, 8], strides = [1, 1]} : vector<1x512xf32> to vector<1x8xf32>
    %c51 = arith.constant 51 : index
    %c0_58 = arith.constant 0 : index
    %117 = vector.load %arg7[%c51, %c0_58] : memref<64x8xf32, #tpu.memory_space<vmem>>, vector<1x8xf32>
    tpu.vector_store %arg7[%c51, %c0_58], %116 {strides = array<i32>} : memref<64x8xf32, #tpu.memory_space<vmem>>, vector<1x8xf32>,
    %118 = vector.extract_strided_slice %13 {offsets = [0, 416], sizes = [1, 8], strides = [1, 1]} : vector<1x512xf32> to vector<1x8xf32>
    %c52 = arith.constant 52 : index
    %c0_59 = arith.constant 0 : index
    %119 = vector.load %arg7[%c52, %c0_59] : memref<64x8xf32, #tpu.memory_space<vmem>>, vector<1x8xf32>
    tpu.vector_store %arg7[%c52, %c0_59], %118 {strides = array<i32>} : memref<64x8xf32, #tpu.memory_space<vmem>>, vector<1x8xf32>,
    %120 = vector.extract_strided_slice %13 {offsets = [0, 424], sizes = [1, 8], strides = [1, 1]} : vector<1x512xf32> to vector<1x8xf32>
    %c53 = arith.constant 53 : index
    %c0_60 = arith.constant 0 : index
    %121 = vector.load %arg7[%c53, %c0_60] : memref<64x8xf32, #tpu.memory_space<vmem>>, vector<1x8xf32>
    tpu.vector_store %arg7[%c53, %c0_60], %120 {strides = array<i32>} : memref<64x8xf32, #tpu.memory_space<vmem>>, vector<1x8xf32>,
    %122 = vector.extract_strided_slice %13 {offsets = [0, 432], sizes = [1, 8], strides = [1, 1]} : vector<1x512xf32> to vector<1x8xf32>
    %c54 = arith.constant 54 : index
    %c0_61 = arith.constant 0 : index
    %123 = vector.load %arg7[%c54, %c0_61] : memref<64x8xf32, #tpu.memory_space<vmem>>, vector<1x8xf32>
    tpu.vector_store %arg7[%c54, %c0_61], %122 {strides = array<i32>} : memref<64x8xf32, #tpu.memory_space<vmem>>, vector<1x8xf32>,
    %124 = vector.extract_strided_slice %13 {offsets = [0, 440], sizes = [1, 8], strides = [1, 1]} : vector<1x512xf32> to vector<1x8xf32>
    %c55 = arith.constant 55 : index
    %c0_62 = arith.constant 0 : index
    %125 = vector.load %arg7[%c55, %c0_62] : memref<64x8xf32, #tpu.memory_space<vmem>>, vector<1x8xf32>
    tpu.vector_store %arg7[%c55, %c0_62], %124 {strides = array<i32>} : memref<64x8xf32, #tpu.memory_space<vmem>>, vector<1x8xf32>,
    %126 = vector.extract_strided_slice %13 {offsets = [0, 448], sizes = [1, 8], strides = [1, 1]} : vector<1x512xf32> to vector<1x8xf32>
    %c56 = arith.constant 56 : index
    %c0_63 = arith.constant 0 : index
    %127 = vector.load %arg7[%c56, %c0_63] : memref<64x8xf32, #tpu.memory_space<vmem>>, vector<1x8xf32>
    tpu.vector_store %arg7[%c56, %c0_63], %126 {strides = array<i32>} : memref<64x8xf32, #tpu.memory_space<vmem>>, vector<1x8xf32>,
    %128 = vector.extract_strided_slice %13 {offsets = [0, 456], sizes = [1, 8], strides = [1, 1]} : vector<1x512xf32> to vector<1x8xf32>
    %c57 = arith.constant 57 : index
    %c0_64 = arith.constant 0 : index
    %129 = vector.load %arg7[%c57, %c0_64] : memref<64x8xf32, #tpu.memory_space<vmem>>, vector<1x8xf32>
    tpu.vector_store %arg7[%c57, %c0_64], %128 {strides = array<i32>} : memref<64x8xf32, #tpu.memory_space<vmem>>, vector<1x8xf32>,
    %130 = vector.extract_strided_slice %13 {offsets = [0, 464], sizes = [1, 8], strides = [1, 1]} : vector<1x512xf32> to vector<1x8xf32>
    %c58 = arith.constant 58 : index
    %c0_65 = arith.constant 0 : index
    %131 = vector.load %arg7[%c58, %c0_65] : memref<64x8xf32, #tpu.memory_space<vmem>>, vector<1x8xf32>
    tpu.vector_store %arg7[%c58, %c0_65], %130 {strides = array<i32>} : memref<64x8xf32, #tpu.memory_space<vmem>>, vector<1x8xf32>,
    %132 = vector.extract_strided_slice %13 {offsets = [0, 472], sizes = [1, 8], strides = [1, 1]} : vector<1x512xf32> to vector<1x8xf32>
    %c59 = arith.constant 59 : index
    %c0_66 = arith.constant 0 : index
    %133 = vector.load %arg7[%c59, %c0_66] : memref<64x8xf32, #tpu.memory_space<vmem>>, vector<1x8xf32>
    tpu.vector_store %arg7[%c59, %c0_66], %132 {strides = array<i32>} : memref<64x8xf32, #tpu.memory_space<vmem>>, vector<1x8xf32>,
    %134 = vector.extract_strided_slice %13 {offsets = [0, 480], sizes = [1, 8], strides = [1, 1]} : vector<1x512xf32> to vector<1x8xf32>
    %c60 = arith.constant 60 : index
    %c0_67 = arith.constant 0 : index
    %135 = vector.load %arg7[%c60, %c0_67] : memref<64x8xf32, #tpu.memory_space<vmem>>, vector<1x8xf32>
    tpu.vector_store %arg7[%c60, %c0_67], %134 {strides = array<i32>} : memref<64x8xf32, #tpu.memory_space<vmem>>, vector<1x8xf32>,
    %136 = vector.extract_strided_slice %13 {offsets = [0, 488], sizes = [1, 8], strides = [1, 1]} : vector<1x512xf32> to vector<1x8xf32>
    %c61 = arith.constant 61 : index
    %c0_68 = arith.constant 0 : index
    %137 = vector.load %arg7[%c61, %c0_68] : memref<64x8xf32, #tpu.memory_space<vmem>>, vector<1x8xf32>
    tpu.vector_store %arg7[%c61, %c0_68], %136 {strides = array<i32>} : memref<64x8xf32, #tpu.memory_space<vmem>>, vector<1x8xf32>,
    %138 = vector.extract_strided_slice %13 {offsets = [0, 496], sizes = [1, 8], strides = [1, 1]} : vector<1x512xf32> to vector<1x8xf32>
    %c62 = arith.constant 62 : index
    %c0_69 = arith.constant 0 : index
    %139 = vector.load %arg7[%c62, %c0_69] : memref<64x8xf32, #tpu.memory_space<vmem>>, vector<1x8xf32>
    tpu.vector_store %arg7[%c62, %c0_69], %138 {strides = array<i32>} : memref<64x8xf32, #tpu.memory_space<vmem>>, vector<1x8xf32>,
    %140 = vector.extract_strided_slice %13 {offsets = [0, 504], sizes = [1, 8], strides = [1, 1]} : vector<1x512xf32> to vector<1x8xf32>
    %c63 = arith.constant 63 : index
    %c0_70 = arith.constant 0 : index
    %141 = vector.load %arg7[%c63, %c0_70] : memref<64x8xf32, #tpu.memory_space<vmem>>, vector<1x8xf32>
    tpu.vector_store %arg7[%c63, %c0_70], %140 {strides = array<i32>} : memref<64x8xf32, #tpu.memory_space<vmem>>, vector<1x8xf32>,
    %c0_71 = arith.constant 0 : index
    %c0_72 = arith.constant 0 : index
    %142 = vector.load %arg7[%c0_71, %c0_72] : memref<64x8xf32, #tpu.memory_space<vmem>>, vector<64x8xf32>
    %cst_73 = arith.constant dense<0xFF800000> : vector<64xf32>
    %143 = vector.multi_reduction <maximumf>, %142, %cst_73 [1] : vector<64x8xf32> to vector<64xf32>
    %144 = vector.shape_cast %143 : vector<64xf32> to vector<64x1xf32>
    %145 = vector.broadcast %144 : vector<64x1xf32> to vector<64x8xf32>
    %146 = arith.subf %142, %145 : vector<64x8xf32>
    %147 = math.exp %146 : vector<64x8xf32>
    %cst_74 = arith.constant dense<0.000000e+00> : vector<64xf32>
    %148 = vector.multi_reduction <add>, %147, %cst_74 [1] : vector<64x8xf32> to vector<64xf32>
    %149 = vector.shape_cast %148 : vector<64xf32> to vector<64x1xf32>
    %150 = vector.broadcast %149 : vector<64x1xf32> to vector<64x8xf32>
    %151 = arith.divf %147, %150 : vector<64x8xf32>
    %152 = vector.extract_strided_slice %151 {offsets = [0, 0], sizes = [1, 8], strides = [1, 1]} : vector<64x8xf32> to vector<1x8xf32>
    %c0_75 = arith.constant 0 : index
    %c0_76 = arith.constant 0 : index
    %153 = vector.load %arg8[%c0_75, %c0_76] : memref<1x512xf32, #tpu.memory_space<vmem>>, vector<1x8xf32>
    tpu.vector_store %arg8[%c0_75, %c0_76], %152 {strides = array<i32>} : memref<1x512xf32, #tpu.memory_space<vmem>>, vector<1x8xf32>,
    %154 = vector.extract_strided_slice %151 {offsets = [1, 0], sizes = [1, 8], strides = [1, 1]} : vector<64x8xf32> to vector<1x8xf32>
    %c0_77 = arith.constant 0 : index
    %c8_78 = arith.constant 8 : index
    %155 = vector.load %arg8[%c0_77, %c8_78] : memref<1x512xf32, #tpu.memory_space<vmem>>, vector<1x8xf32>
    tpu.vector_store %arg8[%c0_77, %c8_78], %154 {strides = array<i32>} : memref<1x512xf32, #tpu.memory_space<vmem>>, vector<1x8xf32>,
    %156 = vector.extract_strided_slice %151 {offsets = [2, 0], sizes = [1, 8], strides = [1, 1]} : vector<64x8xf32> to vector<1x8xf32>
    %c0_79 = arith.constant 0 : index
    %c16_80 = arith.constant 16 : index
    %157 = vector.load %arg8[%c0_79, %c16_80] : memref<1x512xf32, #tpu.memory_space<vmem>>, vector<1x8xf32>
    tpu.vector_store %arg8[%c0_79, %c16_80], %156 {strides = array<i32>} : memref<1x512xf32, #tpu.memory_space<vmem>>, vector<1x8xf32>,
    %158 = vector.extract_strided_slice %151 {offsets = [3, 0], sizes = [1, 8], strides = [1, 1]} : vector<64x8xf32> to vector<1x8xf32>
    %c0_81 = arith.constant 0 : index
    %c24_82 = arith.constant 24 : index
    %159 = vector.load %arg8[%c0_81, %c24_82] : memref<1x512xf32, #tpu.memory_space<vmem>>, vector<1x8xf32>
    tpu.vector_store %arg8[%c0_81, %c24_82], %158 {strides = array<i32>} : memref<1x512xf32, #tpu.memory_space<vmem>>, vector<1x8xf32>,
    %160 = vector.extract_strided_slice %151 {offsets = [4, 0], sizes = [1, 8], strides = [1, 1]} : vector<64x8xf32> to vector<1x8xf32>
    %c0_83 = arith.constant 0 : index
    %c32_84 = arith.constant 32 : index
    %161 = vector.load %arg8[%c0_83, %c32_84] : memref<1x512xf32, #tpu.memory_space<vmem>>, vector<1x8xf32>
    tpu.vector_store %arg8[%c0_83, %c32_84], %160 {strides = array<i32>} : memref<1x512xf32, #tpu.memory_space<vmem>>, vector<1x8xf32>,
    %162 = vector.extract_strided_slice %151 {offsets = [5, 0], sizes = [1, 8], strides = [1, 1]} : vector<64x8xf32> to vector<1x8xf32>
    %c0_85 = arith.constant 0 : index
    %c40_86 = arith.constant 40 : index
    %163 = vector.load %arg8[%c0_85, %c40_86] : memref<1x512xf32, #tpu.memory_space<vmem>>, vector<1x8xf32>
    tpu.vector_store %arg8[%c0_85, %c40_86], %162 {strides = array<i32>} : memref<1x512xf32, #tpu.memory_space<vmem>>, vector<1x8xf32>,
    %164 = vector.extract_strided_slice %151 {offsets = [6, 0], sizes = [1, 8], strides = [1, 1]} : vector<64x8xf32> to vector<1x8xf32>
    %c0_87 = arith.constant 0 : index
    %c48_88 = arith.constant 48 : index
    %165 = vector.load %arg8[%c0_87, %c48_88] : memref<1x512xf32, #tpu.memory_space<vmem>>, vector<1x8xf32>
    tpu.vector_store %arg8[%c0_87, %c48_88], %164 {strides = array<i32>} : memref<1x512xf32, #tpu.memory_space<vmem>>, vector<1x8xf32>,
    %166 = vector.extract_strided_slice %151 {offsets = [7, 0], sizes = [1, 8], strides = [1, 1]} : vector<64x8xf32> to vector<1x8xf32>
    %c0_89 = arith.constant 0 : index
    %c56_90 = arith.constant 56 : index
    %167 = vector.load %arg8[%c0_89, %c56_90] : memref<1x512xf32, #tpu.memory_space<vmem>>, vector<1x8xf32>
    tpu.vector_store %arg8[%c0_89, %c56_90], %166 {strides = array<i32>} : memref<1x512xf32, #tpu.memory_space<vmem>>, vector<1x8xf32>,
    %168 = vector.extract_strided_slice %151 {offsets = [8, 0], sizes = [1, 8], strides = [1, 1]} : vector<64x8xf32> to vector<1x8xf32>
    %c0_91 = arith.constant 0 : index
    %c64 = arith.constant 64 : index
    %169 = vector.load %arg8[%c0_91, %c64] : memref<1x512xf32, #tpu.memory_space<vmem>>, vector<1x8xf32>
    tpu.vector_store %arg8[%c0_91, %c64], %168 {strides = array<i32>} : memref<1x512xf32, #tpu.memory_space<vmem>>, vector<1x8xf32>,
    %170 = vector.extract_strided_slice %151 {offsets = [9, 0], sizes = [1, 8], strides = [1, 1]} : vector<64x8xf32> to vector<1x8xf32>
    %c0_92 = arith.constant 0 : index
    %c72 = arith.constant 72 : index
    %171 = vector.load %arg8[%c0_92, %c72] : memref<1x512xf32, #tpu.memory_space<vmem>>, vector<1x8xf32>
    tpu.vector_store %arg8[%c0_92, %c72], %170 {strides = array<i32>} : memref<1x512xf32, #tpu.memory_space<vmem>>, vector<1x8xf32>,
    %172 = vector.extract_strided_slice %151 {offsets = [10, 0], sizes = [1, 8], strides = [1, 1]} : vector<64x8xf32> to vector<1x8xf32>
    %c0_93 = arith.constant 0 : index
    %c80 = arith.constant 80 : index
    %173 = vector.load %arg8[%c0_93, %c80] : memref<1x512xf32, #tpu.memory_space<vmem>>, vector<1x8xf32>
    tpu.vector_store %arg8[%c0_93, %c80], %172 {strides = array<i32>} : memref<1x512xf32, #tpu.memory_space<vmem>>, vector<1x8xf32>,
    %174 = vector.extract_strided_slice %151 {offsets = [11, 0], sizes = [1, 8], strides = [1, 1]} : vector<64x8xf32> to vector<1x8xf32>
    %c0_94 = arith.constant 0 : index
    %c88 = arith.constant 88 : index
    %175 = vector.load %arg8[%c0_94, %c88] : memref<1x512xf32, #tpu.memory_space<vmem>>, vector<1x8xf32>
    tpu.vector_store %arg8[%c0_94, %c88], %174 {strides = array<i32>} : memref<1x512xf32, #tpu.memory_space<vmem>>, vector<1x8xf32>,
    %176 = vector.extract_strided_slice %151 {offsets = [12, 0], sizes = [1, 8], strides = [1, 1]} : vector<64x8xf32> to vector<1x8xf32>
    %c0_95 = arith.constant 0 : index
    %c96 = arith.constant 96 : index
    %177 = vector.load %arg8[%c0_95, %c96] : memref<1x512xf32, #tpu.memory_space<vmem>>, vector<1x8xf32>
    tpu.vector_store %arg8[%c0_95, %c96], %176 {strides = array<i32>} : memref<1x512xf32, #tpu.memory_space<vmem>>, vector<1x8xf32>,
    %178 = vector.extract_strided_slice %151 {offsets = [13, 0], sizes = [1, 8], strides = [1, 1]} : vector<64x8xf32> to vector<1x8xf32>
    %c0_96 = arith.constant 0 : index
    %c104 = arith.constant 104 : index
    %179 = vector.load %arg8[%c0_96, %c104] : memref<1x512xf32, #tpu.memory_space<vmem>>, vector<1x8xf32>
    tpu.vector_store %arg8[%c0_96, %c104], %178 {strides = array<i32>} : memref<1x512xf32, #tpu.memory_space<vmem>>, vector<1x8xf32>,
    %180 = vector.extract_strided_slice %151 {offsets = [14, 0], sizes = [1, 8], strides = [1, 1]} : vector<64x8xf32> to vector<1x8xf32>
    %c0_97 = arith.constant 0 : index
    %c112 = arith.constant 112 : index
    %181 = vector.load %arg8[%c0_97, %c112] : memref<1x512xf32, #tpu.memory_space<vmem>>, vector<1x8xf32>
    tpu.vector_store %arg8[%c0_97, %c112], %180 {strides = array<i32>} : memref<1x512xf32, #tpu.memory_space<vmem>>, vector<1x8xf32>,
    %182 = vector.extract_strided_slice %151 {offsets = [15, 0], sizes = [1, 8], strides = [1, 1]} : vector<64x8xf32> to vector<1x8xf32>
    %c0_98 = arith.constant 0 : index
    %c120 = arith.constant 120 : index
    %183 = vector.load %arg8[%c0_98, %c120] : memref<1x512xf32, #tpu.memory_space<vmem>>, vector<1x8xf32>
    tpu.vector_store %arg8[%c0_98, %c120], %182 {strides = array<i32>} : memref<1x512xf32, #tpu.memory_space<vmem>>, vector<1x8xf32>,
    %184 = vector.extract_strided_slice %151 {offsets = [16, 0], sizes = [1, 8], strides = [1, 1]} : vector<64x8xf32> to vector<1x8xf32>
    %c0_99 = arith.constant 0 : index
    %c128 = arith.constant 128 : index
    %185 = vector.load %arg8[%c0_99, %c128] : memref<1x512xf32, #tpu.memory_space<vmem>>, vector<1x8xf32>
    tpu.vector_store %arg8[%c0_99, %c128], %184 {strides = array<i32>} : memref<1x512xf32, #tpu.memory_space<vmem>>, vector<1x8xf32>,
    %186 = vector.extract_strided_slice %151 {offsets = [17, 0], sizes = [1, 8], strides = [1, 1]} : vector<64x8xf32> to vector<1x8xf32>
    %c0_100 = arith.constant 0 : index
    %c136 = arith.constant 136 : index
    %187 = vector.load %arg8[%c0_100, %c136] : memref<1x512xf32, #tpu.memory_space<vmem>>, vector<1x8xf32>
    tpu.vector_store %arg8[%c0_100, %c136], %186 {strides = array<i32>} : memref<1x512xf32, #tpu.memory_space<vmem>>, vector<1x8xf32>,
    %188 = vector.extract_strided_slice %151 {offsets = [18, 0], sizes = [1, 8], strides = [1, 1]} : vector<64x8xf32> to vector<1x8xf32>
    %c0_101 = arith.constant 0 : index
    %c144 = arith.constant 144 : index
    %189 = vector.load %arg8[%c0_101, %c144] : memref<1x512xf32, #tpu.memory_space<vmem>>, vector<1x8xf32>
    tpu.vector_store %arg8[%c0_101, %c144], %188 {strides = array<i32>} : memref<1x512xf32, #tpu.memory_space<vmem>>, vector<1x8xf32>,
    %190 = vector.extract_strided_slice %151 {offsets = [19, 0], sizes = [1, 8], strides = [1, 1]} : vector<64x8xf32> to vector<1x8xf32>
    %c0_102 = arith.constant 0 : index
    %c152 = arith.constant 152 : index
    %191 = vector.load %arg8[%c0_102, %c152] : memref<1x512xf32, #tpu.memory_space<vmem>>, vector<1x8xf32>
    tpu.vector_store %arg8[%c0_102, %c152], %190 {strides = array<i32>} : memref<1x512xf32, #tpu.memory_space<vmem>>, vector<1x8xf32>,
    %192 = vector.extract_strided_slice %151 {offsets = [20, 0], sizes = [1, 8], strides = [1, 1]} : vector<64x8xf32> to vector<1x8xf32>
    %c0_103 = arith.constant 0 : index
    %c160 = arith.constant 160 : index
    %193 = vector.load %arg8[%c0_103, %c160] : memref<1x512xf32, #tpu.memory_space<vmem>>, vector<1x8xf32>
    tpu.vector_store %arg8[%c0_103, %c160], %192 {strides = array<i32>} : memref<1x512xf32, #tpu.memory_space<vmem>>, vector<1x8xf32>,
    %194 = vector.extract_strided_slice %151 {offsets = [21, 0], sizes = [1, 8], strides = [1, 1]} : vector<64x8xf32> to vector<1x8xf32>
    %c0_104 = arith.constant 0 : index
    %c168 = arith.constant 168 : index
    %195 = vector.load %arg8[%c0_104, %c168] : memref<1x512xf32, #tpu.memory_space<vmem>>, vector<1x8xf32>
    tpu.vector_store %arg8[%c0_104, %c168], %194 {strides = array<i32>} : memref<1x512xf32, #tpu.memory_space<vmem>>, vector<1x8xf32>,
    %196 = vector.extract_strided_slice %151 {offsets = [22, 0], sizes = [1, 8], strides = [1, 1]} : vector<64x8xf32> to vector<1x8xf32>
    %c0_105 = arith.constant 0 : index
    %c176 = arith.constant 176 : index
    %197 = vector.load %arg8[%c0_105, %c176] : memref<1x512xf32, #tpu.memory_space<vmem>>, vector<1x8xf32>
    tpu.vector_store %arg8[%c0_105, %c176], %196 {strides = array<i32>} : memref<1x512xf32, #tpu.memory_space<vmem>>, vector<1x8xf32>,
    %198 = vector.extract_strided_slice %151 {offsets = [23, 0], sizes = [1, 8], strides = [1, 1]} : vector<64x8xf32> to vector<1x8xf32>
    %c0_106 = arith.constant 0 : index
    %c184 = arith.constant 184 : index
    %199 = vector.load %arg8[%c0_106, %c184] : memref<1x512xf32, #tpu.memory_space<vmem>>, vector<1x8xf32>
    tpu.vector_store %arg8[%c0_106, %c184], %198 {strides = array<i32>} : memref<1x512xf32, #tpu.memory_space<vmem>>, vector<1x8xf32>,
    %200 = vector.extract_strided_slice %151 {offsets = [24, 0], sizes = [1, 8], strides = [1, 1]} : vector<64x8xf32> to vector<1x8xf32>
    %c0_107 = arith.constant 0 : index
    %c192 = arith.constant 192 : index
    %201 = vector.load %arg8[%c0_107, %c192] : memref<1x512xf32, #tpu.memory_space<vmem>>, vector<1x8xf32>
    tpu.vector_store %arg8[%c0_107, %c192], %200 {strides = array<i32>} : memref<1x512xf32, #tpu.memory_space<vmem>>, vector<1x8xf32>,
    %202 = vector.extract_strided_slice %151 {offsets = [25, 0], sizes = [1, 8], strides = [1, 1]} : vector<64x8xf32> to vector<1x8xf32>
    %c0_108 = arith.constant 0 : index
    %c200 = arith.constant 200 : index
    %203 = vector.load %arg8[%c0_108, %c200] : memref<1x512xf32, #tpu.memory_space<vmem>>, vector<1x8xf32>
    tpu.vector_store %arg8[%c0_108, %c200], %202 {strides = array<i32>} : memref<1x512xf32, #tpu.memory_space<vmem>>, vector<1x8xf32>,
    %204 = vector.extract_strided_slice %151 {offsets = [26, 0], sizes = [1, 8], strides = [1, 1]} : vector<64x8xf32> to vector<1x8xf32>
    %c0_109 = arith.constant 0 : index
    %c208 = arith.constant 208 : index
    %205 = vector.load %arg8[%c0_109, %c208] : memref<1x512xf32, #tpu.memory_space<vmem>>, vector<1x8xf32>
    tpu.vector_store %arg8[%c0_109, %c208], %204 {strides = array<i32>} : memref<1x512xf32, #tpu.memory_space<vmem>>, vector<1x8xf32>,
    %206 = vector.extract_strided_slice %151 {offsets = [27, 0], sizes = [1, 8], strides = [1, 1]} : vector<64x8xf32> to vector<1x8xf32>
    %c0_110 = arith.constant 0 : index
    %c216 = arith.constant 216 : index
    %207 = vector.load %arg8[%c0_110, %c216] : memref<1x512xf32, #tpu.memory_space<vmem>>, vector<1x8xf32>
    tpu.vector_store %arg8[%c0_110, %c216], %206 {strides = array<i32>} : memref<1x512xf32, #tpu.memory_space<vmem>>, vector<1x8xf32>,
    %208 = vector.extract_strided_slice %151 {offsets = [28, 0], sizes = [1, 8], strides = [1, 1]} : vector<64x8xf32> to vector<1x8xf32>
    %c0_111 = arith.constant 0 : index
    %c224 = arith.constant 224 : index
    %209 = vector.load %arg8[%c0_111, %c224] : memref<1x512xf32, #tpu.memory_space<vmem>>, vector<1x8xf32>
    tpu.vector_store %arg8[%c0_111, %c224], %208 {strides = array<i32>} : memref<1x512xf32, #tpu.memory_space<vmem>>, vector<1x8xf32>,
    %210 = vector.extract_strided_slice %151 {offsets = [29, 0], sizes = [1, 8], strides = [1, 1]} : vector<64x8xf32> to vector<1x8xf32>
    %c0_112 = arith.constant 0 : index
    %c232 = arith.constant 232 : index
    %211 = vector.load %arg8[%c0_112, %c232] : memref<1x512xf32, #tpu.memory_space<vmem>>, vector<1x8xf32>
    tpu.vector_store %arg8[%c0_112, %c232], %210 {strides = array<i32>} : memref<1x512xf32, #tpu.memory_space<vmem>>, vector<1x8xf32>,
    %212 = vector.extract_strided_slice %151 {offsets = [30, 0], sizes = [1, 8], strides = [1, 1]} : vector<64x8xf32> to vector<1x8xf32>
    %c0_113 = arith.constant 0 : index
    %c240 = arith.constant 240 : index
    %213 = vector.load %arg8[%c0_113, %c240] : memref<1x512xf32, #tpu.memory_space<vmem>>, vector<1x8xf32>
    tpu.vector_store %arg8[%c0_113, %c240], %212 {strides = array<i32>} : memref<1x512xf32, #tpu.memory_space<vmem>>, vector<1x8xf32>,
    %214 = vector.extract_strided_slice %151 {offsets = [31, 0], sizes = [1, 8], strides = [1, 1]} : vector<64x8xf32> to vector<1x8xf32>
    %c0_114 = arith.constant 0 : index
    %c248 = arith.constant 248 : index
    %215 = vector.load %arg8[%c0_114, %c248] : memref<1x512xf32, #tpu.memory_space<vmem>>, vector<1x8xf32>
    tpu.vector_store %arg8[%c0_114, %c248], %214 {strides = array<i32>} : memref<1x512xf32, #tpu.memory_space<vmem>>, vector<1x8xf32>,
    %216 = vector.extract_strided_slice %151 {offsets = [32, 0], sizes = [1, 8], strides = [1, 1]} : vector<64x8xf32> to vector<1x8xf32>
    %c0_115 = arith.constant 0 : index
    %c256 = arith.constant 256 : index
    %217 = vector.load %arg8[%c0_115, %c256] : memref<1x512xf32, #tpu.memory_space<vmem>>, vector<1x8xf32>
    tpu.vector_store %arg8[%c0_115, %c256], %216 {strides = array<i32>} : memref<1x512xf32, #tpu.memory_space<vmem>>, vector<1x8xf32>,
    %218 = vector.extract_strided_slice %151 {offsets = [33, 0], sizes = [1, 8], strides = [1, 1]} : vector<64x8xf32> to vector<1x8xf32>
    %c0_116 = arith.constant 0 : index
    %c264 = arith.constant 264 : index
    %219 = vector.load %arg8[%c0_116, %c264] : memref<1x512xf32, #tpu.memory_space<vmem>>, vector<1x8xf32>
    tpu.vector_store %arg8[%c0_116, %c264], %218 {strides = array<i32>} : memref<1x512xf32, #tpu.memory_space<vmem>>, vector<1x8xf32>,
    %220 = vector.extract_strided_slice %151 {offsets = [34, 0], sizes = [1, 8], strides = [1, 1]} : vector<64x8xf32> to vector<1x8xf32>
    %c0_117 = arith.constant 0 : index
    %c272 = arith.constant 272 : index
    %221 = vector.load %arg8[%c0_117, %c272] : memref<1x512xf32, #tpu.memory_space<vmem>>, vector<1x8xf32>
    tpu.vector_store %arg8[%c0_117, %c272], %220 {strides = array<i32>} : memref<1x512xf32, #tpu.memory_space<vmem>>, vector<1x8xf32>,
    %222 = vector.extract_strided_slice %151 {offsets = [35, 0], sizes = [1, 8], strides = [1, 1]} : vector<64x8xf32> to vector<1x8xf32>
    %c0_118 = arith.constant 0 : index
    %c280 = arith.constant 280 : index
    %223 = vector.load %arg8[%c0_118, %c280] : memref<1x512xf32, #tpu.memory_space<vmem>>, vector<1x8xf32>
    tpu.vector_store %arg8[%c0_118, %c280], %222 {strides = array<i32>} : memref<1x512xf32, #tpu.memory_space<vmem>>, vector<1x8xf32>,
    %224 = vector.extract_strided_slice %151 {offsets = [36, 0], sizes = [1, 8], strides = [1, 1]} : vector<64x8xf32> to vector<1x8xf32>
    %c0_119 = arith.constant 0 : index
    %c288 = arith.constant 288 : index
    %225 = vector.load %arg8[%c0_119, %c288] : memref<1x512xf32, #tpu.memory_space<vmem>>, vector<1x8xf32>
    tpu.vector_store %arg8[%c0_119, %c288], %224 {strides = array<i32>} : memref<1x512xf32, #tpu.memory_space<vmem>>, vector<1x8xf32>,
    %226 = vector.extract_strided_slice %151 {offsets = [37, 0], sizes = [1, 8], strides = [1, 1]} : vector<64x8xf32> to vector<1x8xf32>
    %c0_120 = arith.constant 0 : index
    %c296 = arith.constant 296 : index
    %227 = vector.load %arg8[%c0_120, %c296] : memref<1x512xf32, #tpu.memory_space<vmem>>, vector<1x8xf32>
    tpu.vector_store %arg8[%c0_120, %c296], %226 {strides = array<i32>} : memref<1x512xf32, #tpu.memory_space<vmem>>, vector<1x8xf32>,
    %228 = vector.extract_strided_slice %151 {offsets = [38, 0], sizes = [1, 8], strides = [1, 1]} : vector<64x8xf32> to vector<1x8xf32>
    %c0_121 = arith.constant 0 : index
    %c304 = arith.constant 304 : index
    %229 = vector.load %arg8[%c0_121, %c304] : memref<1x512xf32, #tpu.memory_space<vmem>>, vector<1x8xf32>
    tpu.vector_store %arg8[%c0_121, %c304], %228 {strides = array<i32>} : memref<1x512xf32, #tpu.memory_space<vmem>>, vector<1x8xf32>,
    %230 = vector.extract_strided_slice %151 {offsets = [39, 0], sizes = [1, 8], strides = [1, 1]} : vector<64x8xf32> to vector<1x8xf32>
    %c0_122 = arith.constant 0 : index
    %c312 = arith.constant 312 : index
    %231 = vector.load %arg8[%c0_122, %c312] : memref<1x512xf32, #tpu.memory_space<vmem>>, vector<1x8xf32>
    tpu.vector_store %arg8[%c0_122, %c312], %230 {strides = array<i32>} : memref<1x512xf32, #tpu.memory_space<vmem>>, vector<1x8xf32>,
    %232 = vector.extract_strided_slice %151 {offsets = [40, 0], sizes = [1, 8], strides = [1, 1]} : vector<64x8xf32> to vector<1x8xf32>
    %c0_123 = arith.constant 0 : index
    %c320 = arith.constant 320 : index
    %233 = vector.load %arg8[%c0_123, %c320] : memref<1x512xf32, #tpu.memory_space<vmem>>, vector<1x8xf32>
    tpu.vector_store %arg8[%c0_123, %c320], %232 {strides = array<i32>} : memref<1x512xf32, #tpu.memory_space<vmem>>, vector<1x8xf32>,
    %234 = vector.extract_strided_slice %151 {offsets = [41, 0], sizes = [1, 8], strides = [1, 1]} : vector<64x8xf32> to vector<1x8xf32>
    %c0_124 = arith.constant 0 : index
    %c328 = arith.constant 328 : index
    %235 = vector.load %arg8[%c0_124, %c328] : memref<1x512xf32, #tpu.memory_space<vmem>>, vector<1x8xf32>
    tpu.vector_store %arg8[%c0_124, %c328], %234 {strides = array<i32>} : memref<1x512xf32, #tpu.memory_space<vmem>>, vector<1x8xf32>,
    %236 = vector.extract_strided_slice %151 {offsets = [42, 0], sizes = [1, 8], strides = [1, 1]} : vector<64x8xf32> to vector<1x8xf32>
    %c0_125 = arith.constant 0 : index
    %c336 = arith.constant 336 : index
    %237 = vector.load %arg8[%c0_125, %c336] : memref<1x512xf32, #tpu.memory_space<vmem>>, vector<1x8xf32>
    tpu.vector_store %arg8[%c0_125, %c336], %236 {strides = array<i32>} : memref<1x512xf32, #tpu.memory_space<vmem>>, vector<1x8xf32>,
    %238 = vector.extract_strided_slice %151 {offsets = [43, 0], sizes = [1, 8], strides = [1, 1]} : vector<64x8xf32> to vector<1x8xf32>
    %c0_126 = arith.constant 0 : index
    %c344 = arith.constant 344 : index
    %239 = vector.load %arg8[%c0_126, %c344] : memref<1x512xf32, #tpu.memory_space<vmem>>, vector<1x8xf32>
    tpu.vector_store %arg8[%c0_126, %c344], %238 {strides = array<i32>} : memref<1x512xf32, #tpu.memory_space<vmem>>, vector<1x8xf32>,
    %240 = vector.extract_strided_slice %151 {offsets = [44, 0], sizes = [1, 8], strides = [1, 1]} : vector<64x8xf32> to vector<1x8xf32>
    %c0_127 = arith.constant 0 : index
    %c352 = arith.constant 352 : index
    %241 = vector.load %arg8[%c0_127, %c352] : memref<1x512xf32, #tpu.memory_space<vmem>>, vector<1x8xf32>
    tpu.vector_store %arg8[%c0_127, %c352], %240 {strides = array<i32>} : memref<1x512xf32, #tpu.memory_space<vmem>>, vector<1x8xf32>,
    %242 = vector.extract_strided_slice %151 {offsets = [45, 0], sizes = [1, 8], strides = [1, 1]} : vector<64x8xf32> to vector<1x8xf32>
    %c0_128 = arith.constant 0 : index
    %c360 = arith.constant 360 : index
    %243 = vector.load %arg8[%c0_128, %c360] : memref<1x512xf32, #tpu.memory_space<vmem>>, vector<1x8xf32>
    tpu.vector_store %arg8[%c0_128, %c360], %242 {strides = array<i32>} : memref<1x512xf32, #tpu.memory_space<vmem>>, vector<1x8xf32>,
    %244 = vector.extract_strided_slice %151 {offsets = [46, 0], sizes = [1, 8], strides = [1, 1]} : vector<64x8xf32> to vector<1x8xf32>
    %c0_129 = arith.constant 0 : index
    %c368 = arith.constant 368 : index
    %245 = vector.load %arg8[%c0_129, %c368] : memref<1x512xf32, #tpu.memory_space<vmem>>, vector<1x8xf32>
    tpu.vector_store %arg8[%c0_129, %c368], %244 {strides = array<i32>} : memref<1x512xf32, #tpu.memory_space<vmem>>, vector<1x8xf32>,
    %246 = vector.extract_strided_slice %151 {offsets = [47, 0], sizes = [1, 8], strides = [1, 1]} : vector<64x8xf32> to vector<1x8xf32>
    %c0_130 = arith.constant 0 : index
    %c376 = arith.constant 376 : index
    %247 = vector.load %arg8[%c0_130, %c376] : memref<1x512xf32, #tpu.memory_space<vmem>>, vector<1x8xf32>
    tpu.vector_store %arg8[%c0_130, %c376], %246 {strides = array<i32>} : memref<1x512xf32, #tpu.memory_space<vmem>>, vector<1x8xf32>,
    %248 = vector.extract_strided_slice %151 {offsets = [48, 0], sizes = [1, 8], strides = [1, 1]} : vector<64x8xf32> to vector<1x8xf32>
    %c0_131 = arith.constant 0 : index
    %c384 = arith.constant 384 : index
    %249 = vector.load %arg8[%c0_131, %c384] : memref<1x512xf32, #tpu.memory_space<vmem>>, vector<1x8xf32>
    tpu.vector_store %arg8[%c0_131, %c384], %248 {strides = array<i32>} : memref<1x512xf32, #tpu.memory_space<vmem>>, vector<1x8xf32>,
    %250 = vector.extract_strided_slice %151 {offsets = [49, 0], sizes = [1, 8], strides = [1, 1]} : vector<64x8xf32> to vector<1x8xf32>
    %c0_132 = arith.constant 0 : index
    %c392 = arith.constant 392 : index
    %251 = vector.load %arg8[%c0_132, %c392] : memref<1x512xf32, #tpu.memory_space<vmem>>, vector<1x8xf32>
    tpu.vector_store %arg8[%c0_132, %c392], %250 {strides = array<i32>} : memref<1x512xf32, #tpu.memory_space<vmem>>, vector<1x8xf32>,
    %252 = vector.extract_strided_slice %151 {offsets = [50, 0], sizes = [1, 8], strides = [1, 1]} : vector<64x8xf32> to vector<1x8xf32>
    %c0_133 = arith.constant 0 : index
    %c400 = arith.constant 400 : index
    %253 = vector.load %arg8[%c0_133, %c400] : memref<1x512xf32, #tpu.memory_space<vmem>>, vector<1x8xf32>
    tpu.vector_store %arg8[%c0_133, %c400], %252 {strides = array<i32>} : memref<1x512xf32, #tpu.memory_space<vmem>>, vector<1x8xf32>,
    %254 = vector.extract_strided_slice %151 {offsets = [51, 0], sizes = [1, 8], strides = [1, 1]} : vector<64x8xf32> to vector<1x8xf32>
    %c0_134 = arith.constant 0 : index
    %c408 = arith.constant 408 : index
    %255 = vector.load %arg8[%c0_134, %c408] : memref<1x512xf32, #tpu.memory_space<vmem>>, vector<1x8xf32>
    tpu.vector_store %arg8[%c0_134, %c408], %254 {strides = array<i32>} : memref<1x512xf32, #tpu.memory_space<vmem>>, vector<1x8xf32>,
    %256 = vector.extract_strided_slice %151 {offsets = [52, 0], sizes = [1, 8], strides = [1, 1]} : vector<64x8xf32> to vector<1x8xf32>
    %c0_135 = arith.constant 0 : index
    %c416 = arith.constant 416 : index
    %257 = vector.load %arg8[%c0_135, %c416] : memref<1x512xf32, #tpu.memory_space<vmem>>, vector<1x8xf32>
    tpu.vector_store %arg8[%c0_135, %c416], %256 {strides = array<i32>} : memref<1x512xf32, #tpu.memory_space<vmem>>, vector<1x8xf32>,
    %258 = vector.extract_strided_slice %151 {offsets = [53, 0], sizes = [1, 8], strides = [1, 1]} : vector<64x8xf32> to vector<1x8xf32>
    %c0_136 = arith.constant 0 : index
    %c424 = arith.constant 424 : index
    %259 = vector.load %arg8[%c0_136, %c424] : memref<1x512xf32, #tpu.memory_space<vmem>>, vector<1x8xf32>
    tpu.vector_store %arg8[%c0_136, %c424], %258 {strides = array<i32>} : memref<1x512xf32, #tpu.memory_space<vmem>>, vector<1x8xf32>,
    %260 = vector.extract_strided_slice %151 {offsets = [54, 0], sizes = [1, 8], strides = [1, 1]} : vector<64x8xf32> to vector<1x8xf32>
    %c0_137 = arith.constant 0 : index
    %c432 = arith.constant 432 : index
    %261 = vector.load %arg8[%c0_137, %c432] : memref<1x512xf32, #tpu.memory_space<vmem>>, vector<1x8xf32>
    tpu.vector_store %arg8[%c0_137, %c432], %260 {strides = array<i32>} : memref<1x512xf32, #tpu.memory_space<vmem>>, vector<1x8xf32>,
    %262 = vector.extract_strided_slice %151 {offsets = [55, 0], sizes = [1, 8], strides = [1, 1]} : vector<64x8xf32> to vector<1x8xf32>
    %c0_138 = arith.constant 0 : index
    %c440 = arith.constant 440 : index
    %263 = vector.load %arg8[%c0_138, %c440] : memref<1x512xf32, #tpu.memory_space<vmem>>, vector<1x8xf32>
    tpu.vector_store %arg8[%c0_138, %c440], %262 {strides = array<i32>} : memref<1x512xf32, #tpu.memory_space<vmem>>, vector<1x8xf32>,
    %264 = vector.extract_strided_slice %151 {offsets = [56, 0], sizes = [1, 8], strides = [1, 1]} : vector<64x8xf32> to vector<1x8xf32>
    %c0_139 = arith.constant 0 : index
    %c448 = arith.constant 448 : index
    %265 = vector.load %arg8[%c0_139, %c448] : memref<1x512xf32, #tpu.memory_space<vmem>>, vector<1x8xf32>
    tpu.vector_store %arg8[%c0_139, %c448], %264 {strides = array<i32>} : memref<1x512xf32, #tpu.memory_space<vmem>>, vector<1x8xf32>,
    %266 = vector.extract_strided_slice %151 {offsets = [57, 0], sizes = [1, 8], strides = [1, 1]} : vector<64x8xf32> to vector<1x8xf32>
    %c0_140 = arith.constant 0 : index
    %c456 = arith.constant 456 : index
    %267 = vector.load %arg8[%c0_140, %c456] : memref<1x512xf32, #tpu.memory_space<vmem>>, vector<1x8xf32>
    tpu.vector_store %arg8[%c0_140, %c456], %266 {strides = array<i32>} : memref<1x512xf32, #tpu.memory_space<vmem>>, vector<1x8xf32>,
    %268 = vector.extract_strided_slice %151 {offsets = [58, 0], sizes = [1, 8], strides = [1, 1]} : vector<64x8xf32> to vector<1x8xf32>
    %c0_141 = arith.constant 0 : index
    %c464 = arith.constant 464 : index
    %269 = vector.load %arg8[%c0_141, %c464] : memref<1x512xf32, #tpu.memory_space<vmem>>, vector<1x8xf32>
    tpu.vector_store %arg8[%c0_141, %c464], %268 {strides = array<i32>} : memref<1x512xf32, #tpu.memory_space<vmem>>, vector<1x8xf32>,
    %270 = vector.extract_strided_slice %151 {offsets = [59, 0], sizes = [1, 8], strides = [1, 1]} : vector<64x8xf32> to vector<1x8xf32>
    %c0_142 = arith.constant 0 : index
    %c472 = arith.constant 472 : index
    %271 = vector.load %arg8[%c0_142, %c472] : memref<1x512xf32, #tpu.memory_space<vmem>>, vector<1x8xf32>
    tpu.vector_store %arg8[%c0_142, %c472], %270 {strides = array<i32>} : memref<1x512xf32, #tpu.memory_space<vmem>>, vector<1x8xf32>,
    %272 = vector.extract_strided_slice %151 {offsets = [60, 0], sizes = [1, 8], strides = [1, 1]} : vector<64x8xf32> to vector<1x8xf32>
    %c0_143 = arith.constant 0 : index
    %c480 = arith.constant 480 : index
    %273 = vector.load %arg8[%c0_143, %c480] : memref<1x512xf32, #tpu.memory_space<vmem>>, vector<1x8xf32>
    tpu.vector_store %arg8[%c0_143, %c480], %272 {strides = array<i32>} : memref<1x512xf32, #tpu.memory_space<vmem>>, vector<1x8xf32>,
    %274 = vector.extract_strided_slice %151 {offsets = [61, 0], sizes = [1, 8], strides = [1, 1]} : vector<64x8xf32> to vector<1x8xf32>
    %c0_144 = arith.constant 0 : index
    %c488 = arith.constant 488 : index
    %275 = vector.load %arg8[%c0_144, %c488] : memref<1x512xf32, #tpu.memory_space<vmem>>, vector<1x8xf32>
    tpu.vector_store %arg8[%c0_144, %c488], %274 {strides = array<i32>} : memref<1x512xf32, #tpu.memory_space<vmem>>, vector<1x8xf32>,
    %276 = vector.extract_strided_slice %151 {offsets = [62, 0], sizes = [1, 8], strides = [1, 1]} : vector<64x8xf32> to vector<1x8xf32>
    %c0_145 = arith.constant 0 : index
    %c496 = arith.constant 496 : index
    %277 = vector.load %arg8[%c0_145, %c496] : memref<1x512xf32, #tpu.memory_space<vmem>>, vector<1x8xf32>
    tpu.vector_store %arg8[%c0_145, %c496], %276 {strides = array<i32>} : memref<1x512xf32, #tpu.memory_space<vmem>>, vector<1x8xf32>,
    %278 = vector.extract_strided_slice %151 {offsets = [63, 0], sizes = [1, 8], strides = [1, 1]} : vector<64x8xf32> to vector<1x8xf32>
    %c0_146 = arith.constant 0 : index
    %c504 = arith.constant 504 : index
    %279 = vector.load %arg8[%c0_146, %c504] : memref<1x512xf32, #tpu.memory_space<vmem>>, vector<1x8xf32>
    tpu.vector_store %arg8[%c0_146, %c504], %278 {strides = array<i32>} : memref<1x512xf32, #tpu.memory_space<vmem>>, vector<1x8xf32>,
    %c0_147 = arith.constant 0 : index
    %c0_148 = arith.constant 0 : index
    %280 = vector.load %arg8[%c0_147, %c0_148] : memref<1x512xf32, #tpu.memory_space<vmem>>, vector<1x512xf32>
    %281 = vector.broadcast %1 : vector<1x512xf32> to vector<8x512xf32>
    %282 = arith.mulf %6, %281 : vector<8x512xf32>
    %283 = vector.broadcast %280 : vector<1x512xf32> to vector<8x512xf32>
    %284 = arith.mulf %283, %282 : vector<8x512xf32>
    %c0_149 = arith.constant 0 : index
    %c0_150 = arith.constant 0 : index
    %285 = vector.load %arg4[%c0_149, %c0_150] : memref<8x8xf32, #tpu.memory_space<vmem>>, vector<8x8xf32>
    %cst_151 = arith.constant dense<0.000000e+00> : vector<8x512xf32>
    %286 = tpu.matmul %285, %284, %cst_151 {dimension_numbers = #tpu.dot_dimension_numbers<[1], [0], [0], [1], [0, 0, 1, 1], [], []>} : vector<8x8xf32>, vector<8x512xf32>, vector<8x512xf32> -> vector<8x512xf32>
    %c0_152 = arith.constant 0 : index
    %c0_153 = arith.constant 0 : index
    %287 = vector.load %arg5[%c0_152, %c0_153] : memref<8x1xf32, #tpu.memory_space<vmem>>, vector<8x1xf32>
    %288 = vector.broadcast %287 : vector<8x1xf32> to vector<8x512xf32>
    %289 = arith.addf %286, %288 : vector<8x512xf32>
    %c0_154 = arith.constant 0 : index
    %c0_155 = arith.constant 0 : index
    %c0_156 = arith.constant 0 : index
    %290 = vector.load %arg6[%c0_154, %c0_155, %c0_156] : memref<1x8x512xf32, #tpu.memory_space<vmem>>, vector<1x8x512xf32>
    %291 = vector.shape_cast %290 : vector<1x8x512xf32> to vector<8x512xf32>
    %292 = vector.shape_cast %289 : vector<8x512xf32> to vector<1x8x512xf32>
    tpu.vector_store %arg6[%c0_154, %c0_155, %c0_156], %292 {strides = array<i32>} : memref<1x8x512xf32, #tpu.memory_space<vmem>>, vector<1x8x512xf32>,
    return
  }
  func.func @transform_0(%arg0: i32, %arg1: i32) -> (i32, i32, i32) {
    %c0_i32 = arith.constant 0 : i32
    %c0_i32_0 = arith.constant 0 : i32
    return %arg0, %c0_i32, %arg1 : i32, i32, i32
  }
  func.func @transform_1(%arg0: i32, %arg1: i32) -> (i32, i32, i32) {
    %c0_i32 = arith.constant 0 : i32
    %c0_i32_0 = arith.constant 0 : i32
    return %arg0, %c0_i32, %arg1 : i32, i32, i32
  }
  func.func @transform_2(%arg0: i32, %arg1: i32) -> (i32, i32) {
    %c0_i32 = arith.constant 0 : i32
    %c0_i32_0 = arith.constant 0 : i32
    %c0_i32_1 = arith.constant 0 : i32
    return %c0_i32, %c0_i32_0 : i32, i32
  }
  func.func @transform_3(%arg0: i32, %arg1: i32) -> (i32, i32) {
    %c0_i32 = arith.constant 0 : i32
    %c0_i32_0 = arith.constant 0 : i32
    %c0_i32_1 = arith.constant 0 : i32
    return %c0_i32, %c0_i32_0 : i32, i32
  }
  func.func @transform_4(%arg0: i32, %arg1: i32) -> (i32, i32, i32) {
    %c0_i32 = arith.constant 0 : i32
    %c0_i32_0 = arith.constant 0 : i32
    return %arg0, %c0_i32, %arg1 : i32, i32, i32
  }
}

</mosaic_0001>

<bundles_post_ra>
// kernel: edge_attention_forward.3
= control target key start
LH: loop header
LB: loop body
LE: loop exit
PB: predicated region body
PF: predicated region fallthrough
CT: control target
= control target key end

     0   :  { %s889_s21 = smov 0   ;;  %s891_s22 = smov 0   ;;  %s985_s0 = inlined_call_operand.vmem [shape: f32[2,8,512], index: 0, kind: input, shape index: {}]   ;;  %s986_s1 = inlined_call_operand.vmem [shape: f32[24,8], index: 1, kind: input, shape index: {}]   ;;  %s987_s2 = inlined_call_operand.vmem [shape: f32[24,1], index: 2, kind: input, shape index: {}]   ;;  %s988_s3 = inlined_call_operand.vmem [shape: f32[2,8,1], index: 3, kind: input, shape index: {}]   ;;  %s989_s4 = inlined_call_operand.vmem [shape: f32[2,8,1], index: 4, kind: input, shape index: {}]   ;;  %s990_s5 = inlined_call_operand.vmem [shape: f32[2,24,512], index: 5, kind: output, shape index: {0}]   ;;  %s991_s6 = inlined_call_operand.vmem [shape: bf16[2,8,512], index: 6, kind: output, shape index: {1}]  }
   0x1   :  { %s893_s23 = smov 0  }
   0x2 LB: > { %s29_s24 = sadd.s32 1, %s846_s22  ;;  %p773_p0 = scmp.ge.s32.totalorder %s850_s23, 1  ;;  %s850_s23 = sphi %s893_s23, %s17_s23   ;;  %s846_s22 = sphi %s891_s22, %s993_s22   ;;  %s842_s21 = sphi %s889_s21, %s992_s21  }
   0x3   : > { %p31_p1 = scmp.ge.s32.totalorder %s29_s24, 2  ;;  %p256_p2 = scmp.lt.s32.totalorder %s850_s23, 3 }
   0x5   : > { %s995_s24 = smov (%p31_p1, %s29_s24), 0  ;;  %p257_p3 = pnand %p773_p0, %p256_p2 }
   0x6   : > { %p312_p4 = scmp.lt.s32.totalorder (!%p257_p3), %s842_s21, 1  ;;  %v852_v0 = vmov (!%p257_p3), 0.0   ;;  %v356_v1 = vld [vmem:[%s987_s2] sm:$0xff] (!%p257_p3)  ;;  %v853_v2 = vmov (!%p257_p3), 0   ;;  %vm374_vm0 = vcmask (!%p257_p3), 64512   ;;  %v354_v10 = vld [vmem:[%s986_s1 + $0x8] sm:$0xff] (!%p257_p3) }
   0x7   : > { %260 = sbr.rel (%p257_p3) target bundleno = 244 (0xf4), region = 40  ;;  %448 = vmatprep.mubr.f32.mxu0 (!%p257_p3), %v852_v0  ;;  %531 = vmatprep.mubr.f32.mxu1 (!%p257_p3), %v852_v0  ;;  %v353_v3 = vld [vmem:[%s986_s1] sm:$0xff] (!%p257_p3)  ;;  %v358_v11 = vld [vmem:[%s987_s2 + $0x10] sm:$0xff] (!%p257_p3)  ;;  %v357_v12 = vld [vmem:[%s987_s2 + $0x8] sm:$0xff] (!%p257_p3) }
   0x8   : > { %826 = vset.pattern.permute.xlu0 (!%p257_p3), %v853_v2  ;;  %827 = vset.pattern.permute.xlu1 (!%p257_p3), %v853_v2  ;;  %v355_v13 = vld [vmem:[%s986_s1 + $0x10] sm:$0xff] (!%p257_p3) }
   0x9   : > { %361 = vperm.xlu0 (!%p257_p3), %826, %v356_v1  }
   0xe   : > { %s997_s21 = smov (!%p312_p4, %s842_s21), 1 }
   0xf   : > { %s795_s27 = sshll.u32 %s997_s21, 5  ;;  %s776_s9 = sshll.u32 %s997_s21, 3 }
  0x10   : > { %s319_s30 = scalar_lea.vmem %s985_s0, %s795_s27  ;;  %s324_s12 = scalar_lea.vmem %s988_s3, %s776_s9 }
  0x11   : > { %v350_v4 = vld [vmem:[%s319_s30 + $0x8] sm:$0xff]  ;;  %v352_v5 = vld [vmem:[%s319_s30 + $0x18] sm:$0xff]  ;;  %v349_v6 = vld [vmem:[%s319_s30] sm:$0xff]  ;;  %s328_s15 = scalar_lea.vmem %s989_s4, %s776_s9  ;;  %s799_s28 = smul.u32 96, %s997_s21 }
  0x12   : > { %384 = vmatprep.subr.mxu0 %v350_v4  ;;  %467 = vmatprep.subr.mxu1 %v352_v5  ;;  %v351_v7 = vld [vmem:[%s319_s30 + $0x10] sm:$0xff]  ;;  %v550_v8 = vld [vmem:[%s324_s12] sm:$0xff]  ;;  %s796_s8 = sshll.u32 %s997_s21, 4 }
  0x13   : > { %385 = vmatpush1.msra.mxu0 %v349_v6  ;;  %468 = vmatpush1.msra.mxu1 %v351_v7  ;;  %v560_v9 = vld [vmem:[%s328_s15] sm:$0xff]  ;;  %s954_s7 = scalar_lea.vmem %s990_s5, %s799_s28  ;;  %s347_s10 = scalar_lea.vmem %s991_s6, %s796_s8 }
  0x14   : > { %781 = vmatmul.mubr.msk.f32.vlgmr.msra.gmra.mrb[0].mxu0 %vm374_vm0, %v353_v3  ;;  %784 = vmatmul.mubr.msk.f32.vlgmr.msra.gmra.mrb[0].mxu1 %vm374_vm0, %v353_v3 }
  0x15   : > { %454 = vmatprep.mubr.f32.mxu0 %v852_v0  ;;  %537 = vmatprep.mubr.f32.mxu1 %v852_v0 }
  0x16   : > { %553 = vperm.xlu0 %826, %v550_v8   ;;  %563 = vperm.xlu1 %827, %v560_v9  }
  0x18   : > { %782 = vmatmul.mubr.msk.f32.gmra.mrb[2].mxu0 %vm374_vm0, %v354_v10  ;;  %785 = vmatmul.mubr.msk.f32.gmra.mrb[2].mxu1 %vm374_vm0, %v354_v10 }
  0x19   : > { %460 = vmatprep.mubr.f32.mxu0 %v852_v0  ;;  %543 = vmatprep.mubr.f32.mxu1 %v852_v0 }
  0x1a   : > { %371 = vperm.xlu0 %826, %v358_v11   ;;  %366 = vperm.xlu1 %827, %v357_v12  }
  0x1c   : > { %783 = vmatmul.mubr.msk.f32.gmra.mrb[4].mxu0 %vm374_vm0, %v355_v13  ;;  %786 = vmatmul.mubr.msk.f32.gmra.mrb[4].mxu1 %vm374_vm0, %v355_v13 }
  0x88   : > { %v362_v14 = vpop.permute.xlu0 %361 }
  0x95   : > { %v564_v15 = vpop.permute.xlu1 %563  ;;  %v554_v16 = vpop.permute.xlu0 %553 }
  0x99   : > { %v367_v25 = vpop.permute.xlu1 %366  ;;  %v372_v38 = vpop.permute.xlu0 %371 }
  0xe7   : > { %v450_v17 = vpop.f32.mrb[0].mxu0  ;;  %v533_v18 = vpop.f32.mrb[0].mxu1 }
  0xe8   : > { %v451_v19 = vadd.f32 %v450_v17, %v362_v14  ;;  %v534_v20 = vadd.f32 %v533_v18, %v362_v14  ;;  %v452_v21 = vpop.f32.mrb[1].mxu0  ;;  %v535_v22 = vpop.f32.mrb[1].mxu1 }
  0xe9   : > { %v453_v23 = vadd.f32 %v452_v21, %v362_v14  ;;  %v536_v24 = vadd.f32 %v535_v22, %v362_v14 }
  0xea   : > { %v556_v26 = vmul.f32 %v554_v16, %v451_v19  ;;  %596 = vst [vmem:[%s954_s7] sm:$0xff] %v451_v19  ;;  %v558_v27 = vmul.f32 %v554_v16, %v534_v20  ;;  %598 = vst [vmem:[%s954_s7 + $0x10] sm:$0xff] %v534_v20 }
  0xeb   : > { %v557_v28 = vmul.f32 %v554_v16, %v453_v23  ;;  %597 = vst [vmem:[%s954_s7 + $0x8] sm:$0xff] %v453_v23  ;;  %v559_v29 = vmul.f32 %v554_v16, %v536_v24  ;;  %599 = vst [vmem:[%s954_s7 + $0x18] sm:$0xff] %v536_v24  ;;  %v456_v30 = vpop.f32.mrb[2].mxu0  ;;  %v539_v31 = vpop.f32.mrb[2].mxu1 }
  0xec   : > { %vm566_vm1 = vcmp.ge.f32.partialorder %v556_v26, %v564_v15  ;;  %vm568_vm2 = vcmp.ge.f32.partialorder %v558_v27, %v564_v15  ;;  %v457_v32 = vadd.f32 %v456_v30, %v367_v25  ;;  %v540_v33 = vadd.f32 %v539_v31, %v367_v25  ;;  %v458_v34 = vpop.f32.mrb[3].mxu0  ;;  %v541_v35 = vpop.f32.mrb[3].mxu1 }
  0xed   : > { %v787_v36 = vsel %vm566_vm1, 1.0, %v852_v0  ;;  %v789_v37 = vsel %vm568_vm2, 1.0, %v852_v0  ;;  %vm567_vm3 = vcmp.ge.f32.partialorder %v557_v28, %v564_v15  ;;  %vm569_vm4 = vcmp.ge.f32.partialorder %v559_v29, %v564_v15 }
  0xee   : > { %v788_v39 = vsel %vm567_vm3, 1.0, %v852_v0  ;;  %v790_v40 = vsel %vm569_vm4, 1.0, %v852_v0  ;;  %600 = vst [vmem:[%s954_s7 + $0x20] sm:$0xff] %v457_v32  ;;  %602 = vst [vmem:[%s954_s7 + $0x30] sm:$0xff] %v540_v33  ;;  %v459_v41 = vadd.f32 %v458_v34, %v367_v25  ;;  %v542_v42 = vadd.f32 %v541_v35, %v367_v25 }
  0xef   : > { %v797_v43 = vpack.c.bf16 %v788_v39, %v787_v36  ;;  %v798_v44 = vpack.c.bf16 %v790_v40, %v789_v37  ;;  %v462_v45 = vpop.f32.mrb[4].mxu0  ;;  %v545_v46 = vpop.f32.mrb[4].mxu1 }
  0xf0   : > { %601 = vst [vmem:[%s954_s7 + $0x28] sm:$0xff] %v459_v41  ;;  %603 = vst [vmem:[%s954_s7 + $0x38] sm:$0xff] %v542_v42  ;;  %v463_v47 = vadd.f32 %v462_v45, %v372_v38  ;;  %v546_v48 = vadd.f32 %v545_v46, %v372_v38  ;;  %v464_v49 = vpop.f32.mrb[5].mxu0  ;;  %v547_v50 = vpop.f32.mrb[5].mxu1 }
  0xf1   : > { %594 = vst [vmem:[%s347_s10] sm:$0xff] %v797_v43  ;;  %595 = vst [vmem:[%s347_s10 + $0x8] sm:$0xff] %v798_v44  ;;  %v465_v51 = vadd.f32 %v464_v49, %v372_v38  ;;  %v548_v52 = vadd.f32 %v547_v50, %v372_v38 }
  0xf2   : > { %604 = vst [vmem:[%s954_s7 + $0x40] sm:$0xff] %v463_v47  ;;  %606 = vst [vmem:[%s954_s7 + $0x50] sm:$0xff] %v546_v48 }
  0xf3   : > { %605 = vst [vmem:[%s954_s7 + $0x48] sm:$0xff] %v465_v51  ;;  %607 = vst [vmem:[%s954_s7 + $0x58] sm:$0xff] %v548_v52 }
  0xf4 PF: > { %s17_s23 = sadd.s32 1, %s850_s23   ;;  %s992_s21 = smov %s846_s22 }
  0xf5   : > { %p14_p5 = scmp.ge.s32.totalorder %s17_s23, 4   ;;  %s993_s22 = smov %s995_s24 }
  0xf7   :  { %16 = sbr.rel (!%p14_p5) target bundleno = 2 (0x2), region = 88 }

// kernel: edge_attention_forward.5
= control target key start
LH: loop header
LB: loop body
LE: loop exit
PB: predicated region body
PF: predicated region fallthrough
CT: control target
= control target key end

     0   :  { %s1847_s15 = smov 0   ;;  %s1849_s16 = smov 0   ;;  %s2640_s0 = inlined_call_operand.vmem [shape: f32[2,24,512], index: 0, kind: input, shape index: {}]   ;;  %s2641_s1 = inlined_call_operand.vmem [shape: f32[2,1,512], index: 1, kind: input, shape index: {}]   ;;  %s2642_s2 = inlined_call_operand.vmem [shape: f32[8,8], index: 2, kind: input, shape index: {}]   ;;  %s2643_s3 = inlined_call_operand.vmem [shape: f32[8,1], index: 3, kind: input, shape index: {}]   ;;  %s2644_s4 = inlined_call_operand.vmem [shape: f32[2,8,512], index: 4, kind: output, shape index: {}]  }
   0x1   :  { %s1851_s17 = smov 0  }
   0x2 LB: > { %s26_s18 = sadd.s32 1, %s1798_s16  ;;  %p1693_p0 = scmp.ge.s32.totalorder %s1802_s17, 1  ;;  %s1802_s17 = sphi %s1851_s17, %s14_s17   ;;  %s1798_s16 = sphi %s1849_s16, %s2679_s16   ;;  %s1794_s15 = sphi %s1847_s15, %s2678_s15  }
   0x3   : > { %p28_p1 = scmp.ge.s32.totalorder %s26_s18, 2  ;;  %p199_p2 = scmp.lt.s32.totalorder %s1802_s17, 3 }
   0x5   : > { %s2681_s18 = smov (%p28_p1, %s26_s18), 0  ;;  %p200_p3 = pnand %p1693_p0, %p199_p2 }
   0x6   : > { %p242_p4 = scmp.lt.s32.totalorder (!%p200_p3), %s1794_s15, 1  ;;  %v313_v0 = vlaneseq (!%p200_p3)  ;;  %vm341_vm0 = vcmask (!%p200_p3), 57344   ;;  %s1804_s27 = smov (!%p200_p3), 104   ;;  %vm2645_vm1 = vcmask (!%p200_p3), 64512  }
   0x7   : > { %203 = sbr.rel (%p200_p3) target bundleno = 1061 (0x425), region = 36  ;;  %s1805_s28 = smov (!%p200_p3), 120  }
   0x8   : > { %v1888_v13 = vshrl.u32 (!%p200_p3), %v313_v0, 7  ;;  %s1806_s29 = smov (!%p200_p3), 96   ;;  %s1807_s30 = smov (!%p200_p3), 112   ;;  %vm689_vm2 = vcmp.lt.s32.totalorder (!%p200_p3), %v313_v0, 8  ;;  %vm718_vm3 = vcmp.ge.s32.totalorder (!%p200_p3), %v313_v0, 8  ;;  %vm719_vm4 = vcmp.lt.s32.totalorder (!%p200_p3), %v313_v0, 16 }
   0x9   : > { %s1808_s5 = smov (!%p200_p3), 80   ;;  %s1809_s6 = smov (!%p200_p3), 88   ;;  %vm2350_vm5 = vmand (!%p200_p3), %vm718_vm3, %vm719_vm4  ;;  %vm726_vm6 = vcmp.ge.s32.totalorder (!%p200_p3), %v313_v0, 16  ;;  %vm727_vm7 = vcmp.lt.s32.totalorder (!%p200_p3), %v313_v0, 24  ;;  %vm734_vm9 = vcmp.ge.s32.totalorder (!%p200_p3), %v313_v0, 24  ;;  %vm735_vm10 = vcmp.lt.s32.totalorder (!%p200_p3), %v313_v0, 32 }
   0xa   : > { %v1892_v24 = vsub.s32 (!%p200_p3), 0, %v1888_v13  ;;  %v1895_v27 = vsub.s32 (!%p200_p3), 1, %v1888_v13  ;;  %v1898_v29 = vsub.s32 (!%p200_p3), 2, %v1888_v13  ;;  %v1901_v32 = vsub.s32 (!%p200_p3), 3, %v1888_v13  ;;  %s1810_s7 = smov (!%p200_p3), 72   ;;  %s1811_s8 = smov (!%p200_p3), 56   ;;  %vm2366_vm8 = vmand (!%p200_p3), %vm726_vm6, %vm727_vm7 }
   0xb   : > { %s1812_s9 = smov (!%p200_p3), 64   ;;  %s1813_s10 = smov (!%p200_p3), 40   ;;  %vm756_vm11 = vcmp.ge.s32.totalorder (!%p200_p3), %v313_v0, 32  ;;  %vm757_vm12 = vcmp.lt.s32.totalorder (!%p200_p3), %v313_v0, 40  ;;  %vm2403_vm13 = vmand (!%p200_p3), %vm734_vm9, %vm735_vm10  ;;  %vm771_vm15 = vcmp.ge.s32.totalorder (!%p200_p3), %v313_v0, 40  ;;  %vm779_vm3 = vcmp.ge.s32.totalorder (!%p200_p3), %v313_v0, 48 }
   0xc   : > { %s1814_s11 = smov (!%p200_p3), 48   ;;  %s1815_s12 = smov (!%p200_p3), 24   ;;  %vm2407_vm14 = vmand (!%p200_p3), %vm756_vm11, %vm757_vm12  ;;  %vm780_vm4 = vcmp.lt.s32.totalorder (!%p200_p3), %v313_v0, 56  ;;  %vm787_vm6 = vcmp.ge.s32.totalorder (!%p200_p3), %v313_v0, 56  ;;  %vm788_vm7 = vcmp.lt.s32.totalorder (!%p200_p3), %v313_v0, 64  ;;  %vm810_vm9 = vcmp.lt.s32.totalorder (!%p200_p3), %v313_v0, 72 }
   0xd   : > { %s1816_s13 = smov (!%p200_p3), 32   ;;  %s1817_s14 = smov (!%p200_p3), 8   ;;  %vm824_vm10 = vcmp.ge.s32.totalorder (!%p200_p3), %v313_v0, 72  ;;  %vm825_vm11 = vcmp.lt.s32.totalorder (!%p200_p3), %v313_v0, 80  ;;  %vm2473_vm12 = vmand (!%p200_p3), %vm787_vm6, %vm788_vm7  ;;  %vm877_vm7 = vcmp.ge.s32.totalorder (!%p200_p3), %v313_v0, 104 }
   0xe   : > { %s2683_s15 = smov (!%p242_p4, %s1794_s15), 1 }
   0xf   : > { %s1703_s19 = smul.u32 96, %s2683_s15  ;;  %s1695_s20 = sshll.u32 %s2683_s15, 2 }
  0x10   : > { %s1880_s26 = scalar_lea.vmem %s2641_s1, %s1695_s20  ;;  %s1702_s24 = sshll.u32 %s2683_s15, 5 }
  0x11   : > { %s1872_s23 = scalar_lea.vmem %s2640_s0, %s1703_s19  ;;  %v270_v15 = vld [vmem:[%s1880_s26] sm:$0xf]  ;;  %s1818_s19 = smov 16  }
  0x12   : > { %v271_v1 = vld [vmem:[%s1872_s23] sm:$0xff]  ;;  %v272_v3 = vld [vmem:[%s1872_s23 + $0x8] sm:$0xff]  ;;  %v273_v6 = vld [vmem:[%s1872_s23 + $0x10] sm:$0xff]  ;;  %v311_v23 = vmul.f32 %v270_v15, %v270_v15 }
  0x13   : > { %v275_v2 = vld [vmem:[%s1872_s23 + $0x20] sm:$0xff]  ;;  %v276_v5 = vld [vmem:[%s1872_s23 + $0x28] sm:$0xff]  ;;  %v277_v7 = vld [vmem:[%s1872_s23 + $0x30] sm:$0xff] }
  0x14   : > { %v283_v4 = vmul.f32 %v275_v2, %v271_v1  ;;  %v284_v8 = vmul.f32 %v276_v5, %v272_v3  ;;  %v285_v9 = vmul.f32 %v277_v7, %v273_v6  ;;  %v274_v10 = vld [vmem:[%s1872_s23 + $0x18] sm:$0xff]  ;;  %v316_v36 = vrot.slane %v311_v23, %v1892_v24 }
  0x15   : > { %v278_v11 = vld [vmem:[%s1872_s23 + $0x38] sm:$0xff]  ;;  %v320_v39 = vrot.slane %v311_v23, %v1895_v27  ;;  %v324_v41 = vrot.slane %v311_v23, %v1898_v29  ;;  %v328_v44 = vrot.slane %v311_v23, %v1901_v32 }
  0x16   : > { %v287_v12 = vrot.slane %v283_v4, 4  ;;  %v286_v14 = vmul.f32 %v278_v11, %v274_v10  ;;  %v293_v16 = vrot.slane %v284_v8, 4  ;;  %v299_v17 = vrot.slane %v285_v9, 4 }
  0x18   : > { %v288_v18 = vadd.f32 %v287_v12, %v283_v4  ;;  %v305_v19 = vrot.slane %v286_v14, 4  ;;  %v294_v20 = vadd.f32 %v293_v16, %v284_v8  ;;  %v300_v21 = vadd.f32 %v299_v17, %v285_v9 }
  0x1a   : > { %v289_v22 = vrot.slane %v288_v18, 2  ;;  %v306_v25 = vadd.f32 %v305_v19, %v286_v14  ;;  %v295_v26 = vrot.slane %v294_v20, 2  ;;  %v301_v28 = vrot.slane %v300_v21, 2 }
  0x1c   : > { %v290_v30 = vadd.f32 %v289_v22, %v288_v18  ;;  %v307_v31 = vrot.slane %v306_v25, 2  ;;  %v296_v33 = vadd.f32 %v295_v26, %v294_v20  ;;  %v302_v34 = vadd.f32 %v301_v28, %v300_v21 }
  0x1e   : > { %v291_v35 = vrot.slane %v290_v30, 1  ;;  %v308_v37 = vadd.f32 %v307_v31, %v306_v25  ;;  %v297_v38 = vrot.slane %v296_v33, 1  ;;  %v303_v40 = vrot.slane %v302_v34, 1 }
  0x20   : > { %v292_v42 = vadd.f32 %v291_v35, %v290_v30  ;;  %v309_v43 = vrot.slane %v308_v37, 1  ;;  %v298_v45 = vadd.f32 %v297_v38, %v296_v33  ;;  %v304_v46 = vadd.f32 %v303_v40, %v302_v34 }
  0x22   : > { %v333_v47 = vmul.f32 %v316_v36, %v292_v42  ;;  %v310_v48 = vadd.f32 %v309_v43, %v308_v37  ;;  %v334_v49 = vmul.f32 %v320_v39, %v298_v45  ;;  %v335_v50 = vmul.f32 %v324_v41, %v304_v46 }
  0x24   : > { %v337_v51 = vmul.f32 0.35355338, %v333_v47  ;;  %v336_v52 = vmul.f32 %v328_v44, %v310_v48  ;;  %v1907_v53 = vmul.f32 0.35355338, %v334_v49  ;;  %v1909_v54 = vmul.f32 0.35355338, %v335_v50 }
  0x26   : > { %352 = vrot.lane.b32.xlu1 %v337_v51, %s1804_s27  ;;  %344 = vrot.lane.b32.xlu0 %v337_v51, %s1805_s28  ;;  %v1913_v55 = vmul.f32 0.35355338, %v336_v52  ;;  %342 = vst.msk [vmem:[#allocation2] sm:$0x1] %vm341_vm0, %v337_v51  ;;  %404 = vst.msk [vmem:[#allocation2 + $0x10] sm:$0x1] %vm341_vm0, %v1907_v53 }
  0x27   : > { %466 = vst.msk [vmem:[#allocation2 + $0x20] sm:$0x1] %vm341_vm0, %v1909_v54 }
  0x28   : > { %528 = vst.msk [vmem:[#allocation2 + $0x30] sm:$0x1] %vm341_vm0, %v1913_v55 }
  0x2a   : > { %356 = vrot.lane.b32.xlu1 %v337_v51, %s1806_s29  ;;  %348 = vrot.lane.b32.xlu0 %v337_v51, %s1807_s30 }
  0x2e   : > { %364 = vrot.lane.b32.xlu1 %v337_v51, %s1808_s5  ;;  %360 = vrot.lane.b32.xlu0 %v337_v51, %s1809_s6 }
  0x32   : > { %406 = vrot.lane.b32.xlu1 %v1907_v53, %s1805_s28  ;;  %368 = vrot.lane.b32.xlu0 %v337_v51, %s1810_s7 }
  0x36   : > { %414 = vrot.lane.b32.xlu1 %v1907_v53, %s1804_s27  ;;  %410 = vrot.lane.b32.xlu0 %v1907_v53, %s1807_s30 }
  0x3a   : > { %422 = vrot.lane.b32.xlu1 %v1907_v53, %s1809_s6  ;;  %418 = vrot.lane.b32.xlu0 %v1907_v53, %s1806_s29 }
  0x3e   : > { %430 = vrot.lane.b32.xlu1 %v1907_v53, %s1810_s7  ;;  %426 = vrot.lane.b32.xlu0 %v1907_v53, %s1808_s5 }
  0x42   : > { %472 = vrot.lane.b32.xlu1 %v1909_v54, %s1807_s30  ;;  %468 = vrot.lane.b32.xlu0 %v1909_v54, %s1805_s28 }
  0x46   : > { %480 = vrot.lane.b32.xlu1 %v1909_v54, %s1806_s29  ;;  %476 = vrot.lane.b32.xlu0 %v1909_v54, %s1804_s27 }
  0x4a   : > { %488 = vrot.lane.b32.xlu1 %v1909_v54, %s1808_s5  ;;  %484 = vrot.lane.b32.xlu0 %v1909_v54, %s1809_s6 }
  0x4e   : > { %530 = vrot.lane.b32.xlu1 %v1913_v55, %s1805_s28  ;;  %492 = vrot.lane.b32.xlu0 %v1909_v54, %s1810_s7 }
  0x52   : > { %538 = vrot.lane.b32.xlu1 %v1913_v55, %s1804_s27  ;;  %534 = vrot.lane.b32.xlu0 %v1913_v55, %s1807_s30 }
  0x56   : > { %546 = vrot.lane.b32.xlu1 %v1913_v55, %s1809_s6  ;;  %542 = vrot.lane.b32.xlu0 %v1913_v55, %s1806_s29 }
  0x5a   : > { %554 = vrot.lane.b32.xlu1 %v1913_v55, %s1810_s7  ;;  %550 = vrot.lane.b32.xlu0 %v1913_v55, %s1808_s5 }
  0x5e   : > { %376 = vrot.lane.b32.xlu1 %v337_v51, %s1811_s8  ;;  %372 = vrot.lane.b32.xlu0 %v337_v51, %s1812_s9 }
  0x62   : > { %384 = vrot.lane.b32.xlu1 %v337_v51, %s1813_s10  ;;  %380 = vrot.lane.b32.xlu0 %v337_v51, %s1814_s11 }
  0x66   : > { %392 = vrot.lane.b32.xlu1 %v337_v51, %s1815_s12  ;;  %388 = vrot.lane.b32.xlu0 %v337_v51, %s1816_s13 }
  0x6a   : > { %400 = vrot.lane.b32.xlu1 %v337_v51, %s1817_s14  ;;  %396 = vrot.lane.b32.xlu0 %v337_v51, %s1818_s19 }
  0x6e   : > { %438 = vrot.lane.b32.xlu1 %v1907_v53, %s1811_s8  ;;  %434 = vrot.lane.b32.xlu0 %v1907_v53, %s1812_s9 }
  0x72   : > { %446 = vrot.lane.b32.xlu1 %v1907_v53, %s1813_s10  ;;  %442 = vrot.lane.b32.xlu0 %v1907_v53, %s1814_s11 }
  0x76   : > { %454 = vrot.lane.b32.xlu1 %v1907_v53, %s1815_s12  ;;  %450 = vrot.lane.b32.xlu0 %v1907_v53, %s1816_s13 }
  0x7a   : > { %462 = vrot.lane.b32.xlu1 %v1907_v53, %s1817_s14  ;;  %458 = vrot.lane.b32.xlu0 %v1907_v53, %s1818_s19 }
  0x7e   : > { %500 = vrot.lane.b32.xlu1 %v1909_v54, %s1811_s8  ;;  %496 = vrot.lane.b32.xlu0 %v1909_v54, %s1812_s9 }
  0x82   : > { %508 = vrot.lane.b32.xlu1 %v1909_v54, %s1813_s10  ;;  %504 = vrot.lane.b32.xlu0 %v1909_v54, %s1814_s11 }
  0x86   : > { %516 = vrot.lane.b32.xlu1 %v1909_v54, %s1815_s12  ;;  %512 = vrot.lane.b32.xlu0 %v1909_v54, %s1816_s13 }
  0x8a   : > { %524 = vrot.lane.b32.xlu1 %v1909_v54, %s1817_s14  ;;  %520 = vrot.lane.b32.xlu0 %v1909_v54, %s1818_s19 }
  0x8e   : > { %562 = vrot.lane.b32.xlu1 %v1913_v55, %s1811_s8  ;;  %558 = vrot.lane.b32.xlu0 %v1913_v55, %s1812_s9 }
  0x92   : > { %570 = vrot.lane.b32.xlu1 %v1913_v55, %s1813_s10  ;;  %566 = vrot.lane.b32.xlu0 %v1913_v55, %s1814_s11 }
  0x96   : > { %578 = vrot.lane.b32.xlu1 %v1913_v55, %s1815_s12  ;;  %574 = vrot.lane.b32.xlu0 %v1913_v55, %s1816_s13 }
  0x98   : > { %v353_v56 = vpop.permute.xlu1 %352  ;;  %v345_v57 = vpop.permute.xlu0 %344 }
  0x99   : > { %355 = vst.msk [vmem:[#allocation2 + $0x3] sm:$0x1] %vm341_vm0, %v353_v56  ;;  %347 = vst.msk [vmem:[#allocation2 + $0x1] sm:$0x1] %vm341_vm0, %v345_v57 }
  0x9a   : > { %586 = vrot.lane.b32.xlu1 %v1913_v55, %s1817_s14  ;;  %582 = vrot.lane.b32.xlu0 %v1913_v55, %s1818_s19 }
  0x9c   : > { %v357_v58 = vpop.permute.xlu1 %356  ;;  %v349_v59 = vpop.permute.xlu0 %348 }
  0x9d   : > { %359 = vst.msk [vmem:[#allocation2 + $0x4] sm:$0x1] %vm341_vm0, %v357_v58  ;;  %351 = vst.msk [vmem:[#allocation2 + $0x2] sm:$0x1] %vm341_vm0, %v349_v59 }
  0xa0   : > { %v365_v60 = vpop.permute.xlu1 %364  ;;  %v361_v61 = vpop.permute.xlu0 %360 }
  0xa1   : > { %367 = vst.msk [vmem:[#allocation2 + $0x6] sm:$0x1] %vm341_vm0, %v365_v60  ;;  %363 = vst.msk [vmem:[#allocation2 + $0x5] sm:$0x1] %vm341_vm0, %v361_v61 }
  0xa4   : > { %v407_v62 = vpop.permute.xlu1 %406  ;;  %v369_v63 = vpop.permute.xlu0 %368 }
  0xa5   : > { %409 = vst.msk [vmem:[#allocation2 + $0x11] sm:$0x1] %vm341_vm0, %v407_v62  ;;  %371 = vst.msk [vmem:[#allocation2 + $0x7] sm:$0x1] %vm341_vm0, %v369_v63 }
  0xa8   : > { %v415_v1 = vpop.permute.xlu1 %414  ;;  %v411_v2 = vpop.permute.xlu0 %410 }
  0xa9   : > { %417 = vst.msk [vmem:[#allocation2 + $0x13] sm:$0x1] %vm341_vm0, %v415_v1  ;;  %413 = vst.msk [vmem:[#allocation2 + $0x12] sm:$0x1] %vm341_vm0, %v411_v2 }
  0xac   : > { %v423_v3 = vpop.permute.xlu1 %422  ;;  %v419_v4 = vpop.permute.xlu0 %418  ;;  %v2041_v9 = vld [vmem:[#allocation2] sm:$0xff] }
  0xad   : > { %425 = vst.msk [vmem:[#allocation2 + $0x15] sm:$0x1] %vm341_vm0, %v423_v3  ;;  %421 = vst.msk [vmem:[#allocation2 + $0x14] sm:$0x1] %vm341_vm0, %v419_v4  ;;  %v599_v12 = vsel %vm2645_vm1, %v2041_v9, -inf }
  0xb0   : > { %v431_v5 = vpop.permute.xlu1 %430  ;;  %v427_v6 = vpop.permute.xlu0 %426 }
  0xb1   : > { %433 = vst.msk [vmem:[#allocation2 + $0x17] sm:$0x1] %vm341_vm0, %v431_v5  ;;  %429 = vst.msk [vmem:[#allocation2 + $0x16] sm:$0x1] %vm341_vm0, %v427_v6 }
  0xb4   : > { %v473_v7 = vpop.permute.xlu1 %472  ;;  %v469_v8 = vpop.permute.xlu0 %468 }
  0xb5   : > { %475 = vst.msk [vmem:[#allocation2 + $0x22] sm:$0x1] %vm341_vm0, %v473_v7  ;;  %471 = vst.msk [vmem:[#allocation2 + $0x21] sm:$0x1] %vm341_vm0, %v469_v8 }
  0xb8   : > { %v481_v10 = vpop.permute.xlu1 %480  ;;  %v477_v11 = vpop.permute.xlu0 %476  ;;  %v2047_v14 = vld [vmem:[#allocation2 + $0x10] sm:$0xff] }
  0xb9   : > { %483 = vst.msk [vmem:[#allocation2 + $0x24] sm:$0x1] %vm341_vm0, %v481_v10  ;;  %479 = vst.msk [vmem:[#allocation2 + $0x23] sm:$0x1] %vm341_vm0, %v477_v11  ;;  %600 = vmax.xlane.f32.xlu0 %v599_v12  ;;  %v605_v17 = vsel %vm2645_vm1, %v2047_v14, -inf }
  0xbc   : > { %v489_v15 = vpop.permute.xlu1 %488  ;;  %v485_v16 = vpop.permute.xlu0 %484 }
  0xbd   : > { %491 = vst.msk [vmem:[#allocation2 + $0x26] sm:$0x1] %vm341_vm0, %v489_v15  ;;  %487 = vst.msk [vmem:[#allocation2 + $0x25] sm:$0x1] %vm341_vm0, %v485_v16 }
  0xbe   : > { %606 = vmax.xlane.f32.xlu1 %v605_v17 }
  0xc0   : > { %v531_v18 = vpop.permute.xlu1 %530  ;;  %v493_v19 = vpop.permute.xlu0 %492 }
  0xc1   : > { %533 = vst.msk [vmem:[#allocation2 + $0x31] sm:$0x1] %vm341_vm0, %v531_v18  ;;  %495 = vst.msk [vmem:[#allocation2 + $0x27] sm:$0x1] %vm341_vm0, %v493_v19 }
  0xc4   : > { %v539_v20 = vpop.permute.xlu1 %538  ;;  %v535_v21 = vpop.permute.xlu0 %534 }
  0xc5   : > { %541 = vst.msk [vmem:[#allocation2 + $0x33] sm:$0x1] %vm341_vm0, %v539_v20  ;;  %537 = vst.msk [vmem:[#allocation2 + $0x32] sm:$0x1] %vm341_vm0, %v535_v21 }
  0xc8   : > { %v547_v22 = vpop.permute.xlu1 %546  ;;  %v543_v23 = vpop.permute.xlu0 %542  ;;  %v2057_v25 = vld [vmem:[#allocation2 + $0x20] sm:$0xff] }
  0xc9   : > { %549 = vst.msk [vmem:[#allocation2 + $0x35] sm:$0x1] %vm341_vm0, %v547_v22  ;;  %545 = vst.msk [vmem:[#allocation2 + $0x34] sm:$0x1] %vm341_vm0, %v543_v23  ;;  %v611_v26 = vsel %vm2645_vm1, %v2057_v25, -inf }
  0xca   : > { %612 = vmax.xlane.f32.xlu0 %v611_v26 }
  0xcc   : > { %v555_v28 = vpop.permute.xlu1 %554  ;;  %v551_v30 = vpop.permute.xlu0 %550 }
  0xcd   : > { %557 = vst.msk [vmem:[#allocation2 + $0x37] sm:$0x1] %vm341_vm0, %v555_v28  ;;  %553 = vst.msk [vmem:[#allocation2 + $0x36] sm:$0x1] %vm341_vm0, %v551_v30 }
  0xd0   : > { %v377_v31 = vpop.permute.xlu1 %376  ;;  %v373_v33 = vpop.permute.xlu0 %372 }
  0xd1   : > { %379 = vst.msk [vmem:[#allocation2 + $0x9] sm:$0x1] %vm341_vm0, %v377_v31  ;;  %375 = vst.msk [vmem:[#allocation2 + $0x8] sm:$0x1] %vm341_vm0, %v373_v33 }
  0xd4   : > { %v385_v34 = vpop.permute.xlu1 %384  ;;  %v381_v35 = vpop.permute.xlu0 %380  ;;  %v2067_v36 = vld [vmem:[#allocation2 + $0x30] sm:$0xff] }
  0xd5   : > { %387 = vst.msk [vmem:[#allocation2 + $0xb] sm:$0x1] %vm341_vm0, %v385_v34  ;;  %383 = vst.msk [vmem:[#allocation2 + $0xa] sm:$0x1] %vm341_vm0, %v381_v35  ;;  %v617_v37 = vsel %vm2645_vm1, %v2067_v36, -inf }
  0xd6   : > { %618 = vmax.xlane.f32.xlu0 %v617_v37 }
  0xd8   : > { %v393_v38 = vpop.permute.xlu1 %392  ;;  %v389_v39 = vpop.permute.xlu0 %388 }
  0xd9   : > { %395 = vst.msk [vmem:[#allocation2 + $0xd] sm:$0x1] %vm341_vm0, %v393_v38  ;;  %391 = vst.msk [vmem:[#allocation2 + $0xc] sm:$0x1] %vm341_vm0, %v389_v39 }
  0xdc   : > { %v401_v40 = vpop.permute.xlu1 %400  ;;  %v397_v41 = vpop.permute.xlu0 %396 }
  0xdd   : > { %403 = vst.msk [vmem:[#allocation2 + $0xf] sm:$0x1] %vm341_vm0, %v401_v40  ;;  %399 = vst.msk [vmem:[#allocation2 + $0xe] sm:$0x1] %vm341_vm0, %v397_v41 }
  0xe0   : > { %v439_v42 = vpop.permute.xlu1 %438  ;;  %v435_v43 = vpop.permute.xlu0 %434 }
  0xe1   : > { %441 = vst.msk [vmem:[#allocation2 + $0x19] sm:$0x1] %vm341_vm0, %v439_v42  ;;  %437 = vst.msk [vmem:[#allocation2 + $0x18] sm:$0x1] %vm341_vm0, %v435_v43 }
  0xe4   : > { %v447_v44 = vpop.permute.xlu1 %446  ;;  %v443_v45 = vpop.permute.xlu0 %442  ;;  %v2079_v46 = vld [vmem:[#allocation2 + $0x8] sm:$0xff] }
  0xe5   : > { %449 = vst.msk [vmem:[#allocation2 + $0x1b] sm:$0x1] %vm341_vm0, %v447_v44  ;;  %445 = vst.msk [vmem:[#allocation2 + $0x1a] sm:$0x1] %vm341_vm0, %v443_v45  ;;  %v602_v47 = vsel %vm2645_vm1, %v2079_v46, -inf }
  0xe6   : > { %603 = vmax.xlane.f32.xlu1 %v602_v47 }
  0xe8   : > { %v455_v48 = vpop.permute.xlu1 %454  ;;  %v451_v49 = vpop.permute.xlu0 %450 }
  0xe9   : > { %457 = vst.msk [vmem:[#allocation2 + $0x1d] sm:$0x1] %vm341_vm0, %v455_v48  ;;  %453 = vst.msk [vmem:[#allocation2 + $0x1c] sm:$0x1] %vm341_vm0, %v451_v49 }
  0xec   : > { %v463_v50 = vpop.permute.xlu1 %462  ;;  %v459_v51 = vpop.permute.xlu0 %458 }
  0xed   : > { %465 = vst.msk [vmem:[#allocation2 + $0x1f] sm:$0x1] %vm341_vm0, %v463_v50  ;;  %461 = vst.msk [vmem:[#allocation2 + $0x1e] sm:$0x1] %vm341_vm0, %v459_v51 }
  0xf0   : > { %v501_v52 = vpop.permute.xlu1 %500  ;;  %v497_v53 = vpop.permute.xlu0 %496 }
  0xf1   : > { %503 = vst.msk [vmem:[#allocation2 + $0x29] sm:$0x1] %vm341_vm0, %v501_v52  ;;  %499 = vst.msk [vmem:[#allocation2 + $0x28] sm:$0x1] %vm341_vm0, %v497_v53 }
  0xf4   : > { %v509_v54 = vpop.permute.xlu1 %508  ;;  %v505_v55 = vpop.permute.xlu0 %504  ;;  %v2091_v56 = vld [vmem:[#allocation2 + $0x18] sm:$0xff] }
  0xf5   : > { %511 = vst.msk [vmem:[#allocation2 + $0x2b] sm:$0x1] %vm341_vm0, %v509_v54  ;;  %507 = vst.msk [vmem:[#allocation2 + $0x2a] sm:$0x1] %vm341_vm0, %v505_v55  ;;  %v608_v57 = vsel %vm2645_vm1, %v2091_v56, -inf }
  0xf6   : > { %609 = vmax.xlane.f32.xlu0 %v608_v57 }
  0xf8   : > { %v517_v58 = vpop.permute.xlu1 %516  ;;  %v513_v59 = vpop.permute.xlu0 %512 }
  0xf9   : > { %519 = vst.msk [vmem:[#allocation2 + $0x2d] sm:$0x1] %vm341_vm0, %v517_v58  ;;  %515 = vst.msk [vmem:[#allocation2 + $0x2c] sm:$0x1] %vm341_vm0, %v513_v59 }
  0xfc   : > { %v525_v60 = vpop.permute.xlu1 %524  ;;  %v521_v61 = vpop.permute.xlu0 %520 }
  0xfd   : > { %527 = vst.msk [vmem:[#allocation2 + $0x2f] sm:$0x1] %vm341_vm0, %v525_v60  ;;  %523 = vst.msk [vmem:[#allocation2 + $0x2e] sm:$0x1] %vm341_vm0, %v521_v61 }
 0x100   : > { %v563_v62 = vpop.permute.xlu1 %562  ;;  %v559_v63 = vpop.permute.xlu0 %558 }
 0x101   : > { %565 = vst.msk [vmem:[#allocation2 + $0x39] sm:$0x1] %vm341_vm0, %v563_v62  ;;  %561 = vst.msk [vmem:[#allocation2 + $0x38] sm:$0x1] %vm341_vm0, %v559_v63 }
 0x104   : > { %v571_v1 = vpop.permute.xlu1 %570  ;;  %v567_v2 = vpop.permute.xlu0 %566  ;;  %v595_v3 = vld [vmem:[#allocation2 + $0x28] sm:$0xff] }
 0x105   : > { %573 = vst.msk [vmem:[#allocation2 + $0x3b] sm:$0x1] %vm341_vm0, %v571_v1  ;;  %569 = vst.msk [vmem:[#allocation2 + $0x3a] sm:$0x1] %vm341_vm0, %v567_v2  ;;  %v614_v4 = vsel %vm2645_vm1, %v595_v3, -inf }
 0x106   : > { %615 = vmax.xlane.f32.xlu1 %v614_v4 }
 0x108   : > { %v579_v5 = vpop.permute.xlu1 %578  ;;  %v575_v6 = vpop.permute.xlu0 %574 }
 0x109   : > { %581 = vst.msk [vmem:[#allocation2 + $0x3d] sm:$0x1] %vm341_vm0, %v579_v5  ;;  %577 = vst.msk [vmem:[#allocation2 + $0x3c] sm:$0x1] %vm341_vm0, %v575_v6  ;;  %v1819_v6 = vmov 1966171168  }
 0x10c   : > { %v587_v7 = vpop.permute.xlu1 %586  ;;  %v583_v8 = vpop.permute.xlu0 %582 }
 0x10d   : > { %589 = vst.msk [vmem:[#allocation2 + $0x3f] sm:$0x1] %vm341_vm0, %v587_v7  ;;  %585 = vst.msk [vmem:[#allocation2 + $0x3e] sm:$0x1] %vm341_vm0, %v583_v8  ;;  %v694_v7 = vunpack.c.l.s4 %v1819_v6  ;;  %vm772_vm0 = vcmp.lt.s32.totalorder %v313_v0, 48 }
 0x10f   : > { %v695_v8 = vunpack.c.0.s8 %v694_v7 }
 0x114   : > { %v597_v10 = vld [vmem:[#allocation2 + $0x38] sm:$0xff] }
 0x115   : > { %v620_v11 = vsel %vm2645_vm1, %v597_v10, -inf }
 0x116   : > { %621 = vmax.xlane.f32.xlu0 %v620_v11  ;;  %v2136_v11 = vsub.s32 %v695_v8, %v1888_v13 }
 0x146   : > { %v601_v12 = vpop.xlane.xlu0 %600 }
 0x147   : > { %v623_v15 = vsub.f32 %v2041_v9, %v601_v12 }
 0x149   : > { %v631_v16 = vmul.f32 1.442695, %v623_v15 }
 0x14b   : > { %1747 = vpow2.f32 %v631_v16  ;;  %v607_v17 = vpop.xlane.xlu1 %606 }
 0x14c   : > { %v625_v18 = vsub.f32 %v2047_v14, %v607_v17 }
 0x14e   : > { %v635_v19 = vmul.f32 1.442695, %v625_v18 }
 0x150   : > { %1749 = vpow2.f32 %v635_v19 }
 0x155   : > { %v1748_v20 = vpop.eup %1747 }
 0x156   : > { %v647_v21 = vsel %vm2645_vm1, %v1748_v20, 0.0 }
 0x157   : > { %648 = vadd.xlane.f32.xlu1 %v647_v21  ;;  %v613_v22 = vpop.xlane.xlu0 %612 }
 0x158   : > { %v627_v23 = vsub.f32 %v2057_v25, %v613_v22 }
 0x15a   : > { %v1750_v26 = vpop.eup %1749  ;;  %v639_v28 = vmul.f32 1.442695, %v627_v23 }
 0x15b   : > { %v653_v30 = vsel %vm2645_vm1, %v1750_v26, 0.0 }
 0x15c   : > { %1751 = vpow2.f32 %v639_v28  ;;  %654 = vadd.xlane.f32.xlu0 %v653_v30 }
 0x163   : > { %v619_v9 = vpop.xlane.xlu0 %618 }
 0x164   : > { %v629_v31 = vsub.f32 %v2067_v36, %v619_v9 }
 0x166   : > { %v1752_v33 = vpop.eup %1751  ;;  %v643_v14 = vmul.f32 1.442695, %v629_v31 }
 0x167   : > { %v659_v34 = vsel %vm2645_vm1, %v1752_v33, 0.0 }
 0x168   : > { %1753 = vpow2.f32 %v643_v14  ;;  %660 = vadd.xlane.f32.xlu1 %v659_v34 }
 0x172   : > { %v1754_v35 = vpop.eup %1753 }
 0x173   : > { %v604_v37 = vpop.xlane.xlu1 %603  ;;  %v665_v38 = vsel %vm2645_vm1, %v1754_v35, 0.0 }
 0x174   : > { %v624_v25 = vsub.f32 %v2079_v46, %v604_v37  ;;  %666 = vadd.xlane.f32.xlu0 %v665_v38 }
 0x176   : > { %v633_v39 = vmul.f32 1.442695, %v624_v25 }
 0x178   : > { %1755 = vpow2.f32 %v633_v39 }
 0x182   : > { %v1756_v40 = vpop.eup %1755 }
 0x183   : > { %v610_v41 = vpop.xlane.xlu0 %609  ;;  %v650_v42 = vsel %vm2645_vm1, %v1756_v40, 0.0 }
 0x184   : > { %v626_v36 = vsub.f32 %v2091_v56, %v610_v41  ;;  %651 = vadd.xlane.f32.xlu1 %v650_v42 }
 0x186   : > { %v637_v43 = vmul.f32 1.442695, %v626_v36 }
 0x188   : > { %1757 = vpow2.f32 %v637_v43 }
 0x192   : > { %v1758_v44 = vpop.eup %1757 }
 0x193   : > { %v616_v45 = vpop.xlane.xlu1 %615  ;;  %v656_v47 = vsel %vm2645_vm1, %v1758_v44, 0.0 }
 0x194   : > { %v628_v48 = vsub.f32 %v595_v3, %v616_v45  ;;  %657 = vadd.xlane.f32.xlu0 %v656_v47 }
 0x196   : > { %v641_v49 = vmul.f32 1.442695, %v628_v48 }
 0x198   : > { %1759 = vpow2.f32 %v641_v49 }
 0x1a2   : > { %v1760_v46 = vpop.eup %1759 }
 0x1a3   : > { %v622_v50 = vpop.xlane.xlu0 %621  ;;  %v662_v51 = vsel %vm2645_vm1, %v1760_v46, 0.0 }
 0x1a4   : > { %v630_v52 = vsub.f32 %v597_v10, %v622_v50  ;;  %663 = vadd.xlane.f32.xlu1 %v662_v51 }
 0x1a6   : > { %v645_v53 = vmul.f32 1.442695, %v630_v52 }
 0x1a8   : > { %1761 = vpow2.f32 %v645_v53 }
 0x1b2   : > { %v2124_v54 = vpop.eup %1761 }
 0x1b3   : > { %v668_v55 = vsel %vm2645_vm1, %v2124_v54, 0.0  ;;  %vm894_vm1 = vcmp.lt.s32.totalorder %v313_v0, 128 }
 0x1b4   : > { %669 = vadd.xlane.f32.xlu0 %v668_v55 }
 0x1e4   : > { %v649_v56 = vpop.xlane.xlu1 %648 }
 0x1e5   : > { %1763 = vrcp.f32 %v649_v56 }
 0x1e9   : > { %v655_v57 = vpop.xlane.xlu0 %654 }
 0x1ea   : > { %1765 = vrcp.f32 %v655_v57 }
 0x1ef   : > { %v1764_v58 = vpop.eup %1763 }
 0x1f0   : > { %v672_v59 = vmul.f32 %v1764_v58, %v1748_v20 }
 0x1f2   : > { %691 = vst.msk [vmem:[#allocation3] sm:$0x1] %vm689_vm2, %v672_v59  ;;  %v738_v25 = vcombine.high %v672_v59, %v672_v59 }
 0x1f4   : > { %v1766_v60 = vpop.eup %1765  ;;  %v2178_v41 = vrot.slane %v738_v25, %v2136_v11 }
 0x1f5   : > { %v2129_v61 = vmul.f32 %v1766_v60, %v1750_v26  ;;  %v661_v62 = vpop.xlane.xlu1 %660 }
 0x1f6   : > { %1767 = vrcp.f32 %v661_v62  ;;  %v2188_v45 = vrot.slane %v2178_v41, %v2136_v11 }
 0x1f7   : > { %897 = vst.msk [vmem:[#allocation3 + $0x1] sm:$0x1] %vm689_vm2, %v2129_v61  ;;  %v905_v26 = vrot.slane %v2129_v61, %v2136_v11  ;;  %v935_v60 = vcombine.high %v2129_v61, %v2129_v61 }
 0x1f9   : > { %v906_v31 = vcombine.high %v905_v26, %v905_v26 }
 0x1fb   : > { %v2169_v14 = vrot.slane %v906_v31, %v2136_v11 }
 0x200   : > { %v1768_v63 = vpop.eup %1767 }
 0x201   : > { %v667_v1 = vpop.xlane.xlu0 %666  ;;  %v680_v2 = vmul.f32 %v1768_v63, %v1752_v33  ;;  %v699_v33 = vrot.slane %v672_v59, %v2136_v11  ;;  %v913_v59 = vrot.slane %v905_v26, %v2136_v11  ;;  %v760_v26 = vcombine.high %v2178_v41, %v2178_v41 }
 0x202   : > { %1769 = vrcp.f32 %v667_v1  ;;  %v930_v41 = vcombine.high %v2169_v14, %v2169_v14 }
 0x203   : > { %1058 = vst.msk [vmem:[#allocation3 + $0x2] sm:$0x1] %vm689_vm2, %v680_v2  ;;  %v707_v34 = vrot.slane %v699_v33, %v2136_v11  ;;  %v1096_v36 = vcombine.high %v680_v2, %v680_v2  ;;  %v925_v1 = vcombine.high %v913_v59, %v913_v59  ;;  %v767_v31 = vrot.slane %v760_v26, %v2136_v11  ;;  %v1432_v26 = vld [vmem:[%s2643_s3] sm:$0xff] }
 0x205   : > { %v722_v37 = vcombine.high %v707_v34, %v707_v34  ;;  %v2194_v48 = vrot.slane %v1096_v36, %v2136_v11 }
 0x20c   : > { %v1770_v3 = vpop.eup %1769 }
 0x20d   : > { %v2132_v4 = vmul.f32 %v1770_v3, %v1754_v35  ;;  %v1066_v35 = vrot.slane %v680_v2, %v2136_v11  ;;  %v2238_v3 = vrot.slane %v935_v60, %v2136_v11 }
 0x20f   : > { %1219 = vst.msk [vmem:[#allocation3 + $0x3] sm:$0x1] %vm689_vm2, %v2132_v4  ;;  %v1074_v38 = vrot.slane %v1066_v35, %v2136_v11  ;;  %v1067_v51 = vcombine.high %v1066_v35, %v1066_v35  ;;  %v1227_v52 = vrot.slane %v2132_v4, %v2136_v11  ;;  %vm2423_vm2 = vmand %vm771_vm15, %vm772_vm0  ;;  %vm840_vm0 = vcmp.ge.s32.totalorder %v313_v0, 88 }
 0x211   : > { %v652_v5 = vpop.xlane.xlu1 %651  ;;  %v1228_v56 = vcombine.high %v1227_v52, %v1227_v52  ;;  %v1235_v2 = vrot.slane %v1227_v52, %v2136_v11 }
 0x212   : > { %1771 = vrcp.f32 %v652_v5  ;;  %v1257_v5 = vcombine.high %v2132_v4, %v2132_v4 }
 0x213   : > { %v2221_v58 = vrot.slane %v1228_v56, %v2136_v11  ;;  %v1247_v7 = vcombine.high %v1235_v2, %v1235_v2  ;;  %v783_v56 = vcombine.high %v767_v31, %v767_v31 }
 0x21c   : > { %v1772_v10 = vpop.eup %1771 }
 0x21d   : > { %v2138_v12 = vmul.f32 %v1772_v10, %v1756_v40  ;;  %v1086_v40 = vcombine.high %v1074_v38, %v1074_v38 }
 0x21f   : > { %v798_v15 = vrot.slane %v2138_v12, %v2136_v11  ;;  %v844_v62 = vcombine.high %v2138_v12, %v2138_v12  ;;  %v2252_v12 = vrot.slane %v2238_v3, %v2136_v11 }
 0x221   : > { %v658_v16 = vpop.xlane.xlu0 %657  ;;  %v2143_v17 = vrot.slane %v798_v15, %v2136_v11  ;;  %v813_v50 = vcombine.high %v798_v15, %v798_v15  ;;  %v851_v8 = vrot.slane %v844_v62, %v2136_v11  ;;  %v1264_v15 = vrot.slane %v1257_v5, %v2136_v11 }
 0x222   : > { %1773 = vrcp.f32 %v658_v16 }
 0x223   : > { %806 = vrot.lane.b32.xlu0 %v2143_v17, %s1812_s9  ;;  %v2211_v53 = vrot.slane %v813_v50, %v2136_v11  ;;  %v828_v63 = vcombine.high %v2143_v17, %v2143_v17  ;;  %v2248_v10 = vrot.slane %v851_v8, %v2136_v11  ;;  %v1271_v17 = vrot.slane %v1264_v15, %v2136_v11 }
 0x225   : > { %v881_v52 = vcombine.high %v2248_v10, %v2248_v10 }
 0x22c   : > { %v1774_v18 = vpop.eup %1773 }
 0x22d   : > { %v2147_v19 = vmul.f32 %v1774_v18, %v1758_v44  ;;  %v700_v44 = vcombine.high %v699_v33, %v699_v33 }
 0x22f   : > { %v2151_v13 = vrot.slane %v2147_v19, %v2136_v11  ;;  %v714_v49 = vrot.slane %v700_v44, %v2136_v11  ;;  %v954_v44 = vcombine.high %v2238_v3, %v2238_v3 }
 0x231   : > { %v664_v20 = vpop.xlane.xlu1 %663  ;;  %v2155_v21 = vrot.slane %v2151_v13, %v2136_v11  ;;  %v995_v18 = vcombine.high %v2151_v13, %v2151_v13  ;;  %v1017_v13 = vcombine.high %v2147_v19, %v2147_v19 }
 0x232   : > { %1775 = vrcp.f32 %v664_v20  ;;  %v730_v20 = vcombine.high %v714_v49, %v714_v49 }
 0x233   : > { %991 = vrot.lane.b32.xlu1 %v2155_v21, %s1812_s9  ;;  %v1007_v33 = vcombine.high %v2155_v21, %v2155_v21  ;;  %v775_v21 = vcombine.high %v2188_v45, %v2188_v45 }
 0x23c   : > { %v1776_v22 = vpop.eup %1775 }
 0x23d   : > { %v2159_v23 = vmul.f32 %v1776_v22, %v1760_v46  ;;  %v2203_v46 = vrot.slane %v2194_v48, %v2136_v11  ;;  %v1002_v22 = vrot.slane %v995_v18, %v2136_v11 }
 0x23f   : > { %v1144_v28 = vrot.slane %v2159_v23, %v2136_v11  ;;  %v1178_v6 = vcombine.high %v2159_v23, %v2159_v23 }
 0x241   : > { %v670_v30 = vpop.xlane.xlu0 %669  ;;  %v1151_v9 = vrot.slane %v1144_v28, %v2136_v11  ;;  %v1156_v55 = vcombine.high %v1144_v28, %v1144_v28  ;;  %v1185_v4 = vrot.slane %v1178_v6, %v2136_v11 }
 0x242   : > { %1777 = vrcp.f32 %v670_v30 }
 0x243   : > { %1152 = vrot.lane.b32.xlu0 %v1151_v9, %s1812_s9  ;;  %v2218_v57 = vrot.slane %v1156_v55, %v2136_v11  ;;  %v1168_v61 = vcombine.high %v1151_v9, %v1151_v9  ;;  %v1192_v16 = vrot.slane %v1185_v4, %v2136_v11  ;;  %v1115_v9 = vcombine.high %v2194_v48, %v2194_v48 }
 0x244   : > { %v961_v48 = vrot.slane %v954_v44, %v2136_v11  ;;  %v1012_v55 = vcombine.high %v1002_v22, %v1002_v22 }
 0x245   : > { %v1122_v19 = vrot.slane %v1115_v9, %v2136_v11  ;;  %v1173_v36 = vcombine.high %v2218_v57, %v2218_v57 }
 0x247   : > { %921 = vrot.lane.b32.xlu0 %v2169_v14, %s1817_s14  ;;  %v1276_v14 = vcombine.high %v1264_v15, %v1264_v15 }
 0x249   : > { %v1283_v50 = vrot.slane %v1276_v14, %v2136_v11 }
 0x24b   : > { %723 = vrot.lane.b32.xlu0 %v722_v37, %s1818_s19  ;;  %v1024_v37 = vrot.slane %v1017_v13, %v2136_v11  ;;  %v1821_v13 = vmov 0  }
 0x24c   : > { %v1778_v39 = vpop.eup %1777  ;;  %1746 = vset.pattern.permute.xlu0 %v1821_v13 }
 0x24d   : > { %v2181_v42 = vmul.f32 %v1778_v39, %v2124_v54  ;;  %v1081_v54 = vrot.slane %v1067_v51, %v2136_v11  ;;  %v1031_v38 = vrot.slane %v1024_v37, %v2136_v11  ;;  %v1127_v39 = vcombine.high %v2203_v46, %v2203_v46 }
 0x24e   : > { %v966_v51 = vcombine.high %v2252_v12, %v2252_v12  ;;  %v1036_v59 = vcombine.high %v1024_v37, %v1024_v37 }
 0x24f   : > { %1087 = vrot.lane.b32.xlu0 %v1086_v40, %s1818_s19  ;;  %v1305_v43 = vrot.slane %v2181_v42, %v2136_v11  ;;  %v1091_v28 = vcombine.high %v1081_v54, %v1081_v54  ;;  %v1339_v34 = vcombine.high %v2181_v42, %v2181_v42  ;;  %v836_v42 = vcombine.high %v2211_v53, %v2211_v53 }
 0x250   : > { %v1043_v62 = vrot.slane %v1036_v59, %v2136_v11  ;;  %v1048_v5 = vcombine.high %v1031_v38, %v1031_v38 }
 0x251   : > { %v2191_v47 = vrot.slane %v1305_v43, %v2136_v11  ;;  %v1317_v23 = vcombine.high %v1305_v43, %v1305_v43  ;;  %v1346_v25 = vrot.slane %v1339_v34, %v2136_v11  ;;  %v1252_v43 = vcombine.high %v2221_v58, %v2221_v58 }
 0x253   : > { %753 = vrot.lane.b32.xlu0 %v2188_v45, %s1816_s13  ;;  %1313 = vrot.lane.b32.xlu1 %v2191_v47, %s1812_s9  ;;  %v1324_v30 = vrot.slane %v1317_v23, %v2136_v11  ;;  %v1329_v35 = vcombine.high %v2191_v47, %v2191_v47  ;;  %v1353_v40 = vrot.slane %v1346_v25, %v2136_v11  ;;  %v1820_v23 = vmov 0.0  }
 0x254   : > { %v866_v45 = vcombine.high %v851_v8, %v851_v8  ;;  %v971_v8 = vcombine.high %v961_v48, %v961_v48  ;;  %1505 = vmatprep.mubr.f32.mxu0 %v1820_v23  ;;  %1576 = vmatprep.mubr.f32.mxu1 %v1820_v23 }
 0x255   : > { %v1370_v6 = vcombine.high %v1353_v40, %v1353_v40 }
 0x256   : > { %v873_v47 = vrot.slane %v866_v45, %v2136_v11 }
 0x257   : > { %1111 = vrot.lane.b32.xlu0 %v2203_v46, %s1816_s13  ;;  %715 = vrot.lane.b32.xlu1 %v714_v49, %s1817_s14  ;;  %v1197_v49 = vcombine.high %v1185_v4, %v1185_v4 }
 0x258   : > { %v889_v60 = vcombine.high %v873_v47, %v873_v47 }
 0x259   : > { %v1204_v46 = vrot.slane %v1197_v49, %v2136_v11 }
 0x25b   : > { %821 = vrot.lane.b32.xlu0 %v2211_v53, %s1810_s7  ;;  %1082 = vrot.lane.b32.xlu1 %v1081_v54, %s1817_s14  ;;  %v1288_v53 = vcombine.high %v1271_v17, %v1271_v17  ;;  %v1209_v54 = vcombine.high %v1192_v16, %v1192_v16 }
 0x25f   : > { %1164 = vrot.lane.b32.xlu0 %v2218_v57, %s1810_s7  ;;  %1243 = vrot.lane.b32.xlu1 %v2221_v58, %s1817_s14  ;;  %v1334_v57 = vcombine.high %v1324_v30, %v1324_v30  ;;  %v1132_v58 = vcombine.high %v1122_v19, %v1122_v19 }
 0x263   : > { %829 = vrot.lane.b32.xlu0 %v828_v63, %s1808_s5  ;;  %926 = vrot.lane.b32.xlu1 %v925_v1, %s1818_s19  ;;  %v1358_v63 = vcombine.high %v1346_v25, %v1346_v25  ;;  %v1214_v1 = vcombine.high %v1204_v46, %v1204_v46 }
 0x265   : > { %v1365_v2 = vrot.slane %v1358_v63, %v2136_v11 }
 0x267   : > { %1169 = vrot.lane.b32.xlu0 %v1168_v61, %s1808_s5  ;;  %1248 = vrot.lane.b32.xlu1 %v1247_v7, %s1818_s19 }
 0x26b   : > { %859 = vrot.lane.b32.xlu0 %v2248_v10, %s1806_s29  ;;  %950 = vrot.lane.b32.xlu1 %v2252_v12, %s1816_s13  ;;  %v1293_v12 = vcombine.high %v1283_v50, %v1283_v50 }
 0x26f   : > { %1193 = vrot.lane.b32.xlu0 %v1192_v16, %s1806_s29  ;;  %1272 = vrot.lane.b32.xlu1 %v1271_v17, %s1816_s13  ;;  %v1053_v16 = vcombine.high %v1043_v62, %v1043_v62 }
 0x273   : > { %731 = vrot.lane.b32.xlu0 %v730_v20, %s1815_s12  ;;  %1003 = vrot.lane.b32.xlu1 %v1002_v22, %s1810_s7  ;;  %v1375_v20 = vcombine.high %v1365_v2, %v1365_v2 }
 0x277   : > { %1092 = vrot.lane.b32.xlu0 %v1091_v28, %s1815_s12  ;;  %1325 = vrot.lane.b32.xlu1 %v1324_v30, %s1810_s7 }
 0x27b   : > { %768 = vrot.lane.b32.xlu0 %v767_v31, %s1813_s10  ;;  %1008 = vrot.lane.b32.xlu1 %v1007_v33, %s1808_s5 }
 0x27f   : > { %1123 = vrot.lane.b32.xlu0 %v1122_v19, %s1813_s10  ;;  %1330 = vrot.lane.b32.xlu1 %v1329_v35, %s1808_s5 }
 0x283   : > { %776 = vrot.lane.b32.xlu0 %v775_v21, %s1814_s11  ;;  %1032 = vrot.lane.b32.xlu1 %v1031_v38, %s1806_s29 }
 0x287   : > { %1128 = vrot.lane.b32.xlu0 %v1127_v39, %s1814_s11  ;;  %1354 = vrot.lane.b32.xlu1 %v1353_v40, %s1806_s29 }
 0x28b   : > { %837 = vrot.lane.b32.xlu0 %v836_v42, %s1809_s6  ;;  %931 = vrot.lane.b32.xlu1 %v930_v41, %s1815_s12 }
 0x28f   : > { %1174 = vrot.lane.b32.xlu0 %v1173_v36, %s1809_s6  ;;  %1253 = vrot.lane.b32.xlu1 %v1252_v43, %s1815_s12 }
 0x293   : > { %874 = vrot.lane.b32.xlu0 %v873_v47, %s1804_s27  ;;  %962 = vrot.lane.b32.xlu1 %v961_v48, %s1813_s10 }
 0x295   : > { %v2342_v3 = vpop.permute.xlu0 %806 }
 0x297   : > { %1205 = vrot.lane.b32.xlu0 %v1204_v46, %s1804_s27  ;;  %1284 = vrot.lane.b32.xlu1 %v1283_v50, %s1813_s10 }
 0x29b   : > { %882 = vrot.lane.b32.xlu0 %v881_v52, %s1807_s30  ;;  %967 = vrot.lane.b32.xlu1 %v966_v51, %s1814_s11 }
 0x29f   : > { %1210 = vrot.lane.b32.xlu0 %v1209_v54, %s1807_s30  ;;  %1289 = vrot.lane.b32.xlu1 %v1288_v53, %s1814_s11 }
 0x2a3   : > { %784 = vrot.lane.b32.xlu0 %v783_v56, %s1811_s8  ;;  %1013 = vrot.lane.b32.xlu1 %v1012_v55, %s1809_s6 }
 0x2a5   : > { %v2358_v4 = vpop.permute.xlu1 %991 }
 0x2a7   : > { %1133 = vrot.lane.b32.xlu0 %v1132_v58, %s1811_s8  ;;  %1335 = vrot.lane.b32.xlu1 %v1334_v57, %s1809_s6 }
 0x2ab   : > { %890 = vrot.lane.b32.xlu0 %v889_v60, %s1805_s28  ;;  %1044 = vrot.lane.b32.xlu1 %v1043_v62, %s1804_s27 }
 0x2af   : > { %1215 = vrot.lane.b32.xlu0 %v1214_v1, %s1805_s28  ;;  %1366 = vrot.lane.b32.xlu1 %v1365_v2, %s1804_s27  ;;  %s268_s27 = scalar_lea.vmem %s2644_s4, %s1702_s24 }
 0x2b3   : > { %1049 = vrot.lane.b32.xlu1 %v1048_v5, %s1807_s30  ;;  %1435 = vperm.xlu0 %1746, %v1432_v26  }
 0x2b5   : > { %v2347_v61 = vpop.permute.xlu0 %1152 }
 0x2b7   : > { %1371 = vrot.lane.b32.xlu1 %v1370_v6, %s1807_s30 }
 0x2b9   : > { %v922_v7 = vpop.permute.xlu0 %921 }
 0x2ba   : > { %924 = vst.msk [vmem:[#allocation3 + $0x1] sm:$0x1] %vm2350_vm5, %v922_v7 }
 0x2bb   : > { %972 = vrot.lane.b32.xlu1 %v971_v8, %s1811_s8 }
 0x2bd   : > { %v724_v10 = vpop.permute.xlu0 %723 }
 0x2bf   : > { %1294 = vrot.lane.b32.xlu1 %v1293_v12, %s1811_s8 }
 0x2c1   : > { %v1088_v15 = vpop.permute.xlu0 %1087 }
 0x2c3   : > { %1054 = vrot.lane.b32.xlu1 %v1053_v16, %s1805_s28 }
 0x2c5   : > { %v2361_v17 = vpop.permute.xlu1 %1313  ;;  %v754_v18 = vpop.permute.xlu0 %753 }
 0x2c7   : > { %1376 = vrot.lane.b32.xlu1 %v1375_v20, %s1805_s28 }
 0x2c9   : > { %v716_v28 = vpop.permute.xlu1 %715  ;;  %v1112_v30 = vpop.permute.xlu0 %1111 }
 0x2ca   : > { %721 = vst.msk [vmem:[#allocation3] sm:$0x1] %vm2350_vm5, %v716_v28 }
 0x2cb   : > { %729 = vst.msk [vmem:[#allocation3] sm:$0x1] %vm2366_vm8, %v724_v10 }
 0x2cd   : > { %v1083_v9 = vpop.permute.xlu1 %1082  ;;  %v2377_v31 = vpop.permute.xlu0 %821 }
 0x2ce   : > { %1085 = vst.msk [vmem:[#allocation3 + $0x2] sm:$0x1] %vm2350_vm5, %v1083_v9 }
 0x2cf   : > { %1090 = vst.msk [vmem:[#allocation3 + $0x2] sm:$0x1] %vm2366_vm8, %v1088_v15 }
 0x2d1   : > { %v1244_v33 = vpop.permute.xlu1 %1243  ;;  %v2383_v34 = vpop.permute.xlu0 %1164 }
 0x2d2   : > { %1246 = vst.msk [vmem:[#allocation3 + $0x3] sm:$0x1] %vm2350_vm5, %v1244_v33  ;;  %vm2439_vm5 = vmand %vm779_vm3, %vm780_vm4  ;;  %vm862_vm4 = vcmp.ge.s32.totalorder %v313_v0, 96 }
 0x2d3   : > { %vm2485_vm3 = vmand %vm824_vm10, %vm825_vm11  ;;  %vm885_vm10 = vcmp.ge.s32.totalorder %v313_v0, 112  ;;  %vm886_vm11 = vcmp.lt.s32.totalorder %v313_v0, 120 }
 0x2d5   : > { %v927_v35 = vpop.permute.xlu1 %926  ;;  %v2387_v19 = vpop.permute.xlu0 %829 }
 0x2d6   : > { %929 = vst.msk [vmem:[#allocation3 + $0x1] sm:$0x1] %vm2366_vm8, %v927_v35  ;;  %v1779_v35 = vld [vmem:[%s1880_s26] sm:$0xf] }
 0x2d9   : > { %v1249_v37 = vpop.permute.xlu1 %1248  ;;  %v2391_v21 = vpop.permute.xlu0 %1169 }
 0x2da   : > { %1251 = vst.msk [vmem:[#allocation3 + $0x3] sm:$0x1] %vm2366_vm8, %v1249_v37  ;;  %vm809_vm8 = vcmp.ge.s32.totalorder %v313_v0, 64  ;;  %v1397_v37 = vrot.slane %v1779_v35, %v1901_v32 }
 0x2db   : > { %vm2479_vm15 = vmand %vm809_vm8, %vm810_vm9  ;;  %vm878_vm8 = vcmp.lt.s32.totalorder %v313_v0, 112 }
 0x2dd   : > { %v951_v38 = vpop.permute.xlu1 %950  ;;  %v2395_v25 = vpop.permute.xlu0 %859 }
 0x2e1   : > { %v1273_v39 = vpop.permute.xlu1 %1272  ;;  %v2399_v40 = vpop.permute.xlu0 %1193 }
 0x2e5   : > { %v2411_v36 = vpop.permute.xlu1 %1003  ;;  %v732_v43 = vpop.permute.xlu0 %731 }
 0x2e6   : > { %737 = vst.msk [vmem:[#allocation3] sm:$0x1] %vm2403_vm13, %v732_v43 }
 0x2e7   : > { %759 = vst.msk [vmem:[#allocation3] sm:$0x1] %vm2407_vm14, %v754_v18 }
 0x2e9   : > { %v2419_v44 = vpop.permute.xlu1 %1325  ;;  %v1093_v45 = vpop.permute.xlu0 %1092 }
 0x2ea   : > { %1095 = vst.msk [vmem:[#allocation3 + $0x2] sm:$0x1] %vm2403_vm13, %v1093_v45 }
 0x2eb   : > { %1114 = vst.msk [vmem:[#allocation3 + $0x2] sm:$0x1] %vm2407_vm14, %v1112_v30 }
 0x2ed   : > { %v2429_v47 = vpop.permute.xlu1 %1008  ;;  %v769_v48 = vpop.permute.xlu0 %768 }
 0x2ee   : > { %774 = vst.msk [vmem:[#allocation3] sm:$0x1] %vm2423_vm2, %v769_v48 }
 0x2f1   : > { %v2435_v49 = vpop.permute.xlu1 %1330  ;;  %v1124_v46 = vpop.permute.xlu0 %1123 }
 0x2f2   : > { %1126 = vst.msk [vmem:[#allocation3 + $0x2] sm:$0x1] %vm2423_vm2, %v1124_v46 }
 0x2f5   : > { %v2443_v51 = vpop.permute.xlu1 %1032  ;;  %v777_v52 = vpop.permute.xlu0 %776 }
 0x2f6   : > { %782 = vst.msk [vmem:[#allocation3] sm:$0x1] %vm2439_vm5, %v777_v52  ;;  %v1431_v52 = vld [vmem:[%s2642_s2] sm:$0xff] }
 0x2f9   : > { %v2447_v53 = vpop.permute.xlu1 %1354  ;;  %v1129_v54 = vpop.permute.xlu0 %1128 }
 0x2fa   : > { %1131 = vst.msk [vmem:[#allocation3 + $0x2] sm:$0x1] %vm2439_vm5, %v1129_v54 }
 0x2fd   : > { %v932_v55 = vpop.permute.xlu1 %931  ;;  %v838_v56 = vpop.permute.xlu0 %837 }
 0x2fe   : > { %934 = vst.msk [vmem:[#allocation3 + $0x1] sm:$0x1] %vm2403_vm13, %v932_v55 }
 0x2ff   : > { %953 = vst.msk [vmem:[#allocation3 + $0x1] sm:$0x1] %vm2407_vm14, %v951_v38  ;;  %v1393_v38 = vrot.slane %v1779_v35, %v1898_v29 }
 0x301   : > { %v1254_v57 = vpop.permute.xlu1 %1253  ;;  %v1175_v58 = vpop.permute.xlu0 %1174 }
 0x302   : > { %1256 = vst.msk [vmem:[#allocation3 + $0x3] sm:$0x1] %vm2403_vm13, %v1254_v57  ;;  %vm832_vm13 = vcmp.ge.s32.totalorder %v313_v0, 80 }
 0x303   : > { %1275 = vst.msk [vmem:[#allocation3 + $0x3] sm:$0x1] %vm2407_vm14, %v1273_v39  ;;  %vm833_vm14 = vcmp.lt.s32.totalorder %v313_v0, 88  ;;  %v279_v39 = vld [vmem:[%s1872_s23 + $0x40] sm:$0xff] }
 0x304   : > { %vm2491_vm6 = vmand %vm832_vm13, %vm833_vm14  ;;  %vm893_vm14 = vcmp.ge.s32.totalorder %v313_v0, 120 }
 0x305   : > { %v963_v59 = vpop.permute.xlu1 %962  ;;  %v875_v60 = vpop.permute.xlu0 %874 }
 0x306   : > { %965 = vst.msk [vmem:[#allocation3 + $0x1] sm:$0x1] %vm2423_vm2, %v963_v59 }
 0x309   : > { %v1285_v62 = vpop.permute.xlu1 %1284  ;;  %v1206_v63 = vpop.permute.xlu0 %1205 }
 0x30a   : > { %1287 = vst.msk [vmem:[#allocation3 + $0x3] sm:$0x1] %vm2423_vm2, %v1285_v62  ;;  %vm841_vm2 = vcmp.lt.s32.totalorder %v313_v0, 96 }
 0x30b   : > { %vm2502_vm9 = vmand %vm840_vm0, %vm841_vm2 }
 0x30c   : > { %vm2520_vm0 = vmand %vm877_vm7, %vm878_vm8 }
 0x30d   : > { %v968_v1 = vpop.permute.xlu1 %967  ;;  %v883_v2 = vpop.permute.xlu0 %882  ;;  %vm2528_vm2 = vmand %vm885_vm10, %vm886_vm11 }
 0x30e   : > { %970 = vst.msk [vmem:[#allocation3 + $0x1] sm:$0x1] %vm2439_vm5, %v968_v1 }
 0x311   : > { %v1290_v5 = vpop.permute.xlu1 %1289  ;;  %v1211_v6 = vpop.permute.xlu0 %1210 }
 0x312   : > { %1292 = vst.msk [vmem:[#allocation3 + $0x3] sm:$0x1] %vm2439_vm5, %v1290_v5  ;;  %vm863_vm5 = vcmp.lt.s32.totalorder %v313_v0, 104 }
 0x313   : > { %vm2511_vm13 = vmand %vm862_vm4, %vm863_vm5 }
 0x314   : > { %vm2538_vm4 = vmand %vm893_vm14, %vm894_vm1  ;;  %vm2676_vm1 = vcmask 64512  }
 0x315   : > { %v1014_v8 = vpop.permute.xlu1 %1013  ;;  %v785_v12 = vpop.permute.xlu0 %784 }
 0x316   : > { %790 = vst.msk [vmem:[#allocation3] sm:$0x1] %vm2473_vm12, %v785_v12 }
 0x317   : > { %812 = vst.msk [vmem:[#allocation3] sm:$0x1] %vm2479_vm15, %v2342_v3 }
 0x318   : > { %827 = vst.msk [vmem:[#allocation3] sm:$0x1] %vm2485_vm3, %v2377_v31 }
 0x319   : > { %835 = vst.msk [vmem:[#allocation3] sm:$0x1] %vm2491_vm6, %v2387_v19  ;;  %v1336_v3 = vpop.permute.xlu1 %1335  ;;  %v1134_v20 = vpop.permute.xlu0 %1133  ;;  %v1389_v19 = vrot.slane %v1779_v35, %v1895_v27 }
 0x31a   : > { %1136 = vst.msk [vmem:[#allocation3 + $0x2] sm:$0x1] %vm2473_vm12, %v1134_v20 }
 0x31b   : > { %843 = vst.msk [vmem:[#allocation3] sm:$0x1] %vm2502_vm9, %v838_v56 }
 0x31c   : > { %1155 = vst.msk [vmem:[#allocation3 + $0x2] sm:$0x1] %vm2479_vm15, %v2347_v61 }
 0x31d   : > { %865 = vst.msk [vmem:[#allocation3] sm:$0x1] %vm2511_vm13, %v2395_v25  ;;  %v1045_v61 = vpop.permute.xlu1 %1044  ;;  %v891_v26 = vpop.permute.xlu0 %890  ;;  %v282_v25 = vld [vmem:[%s1872_s23 + $0x58] sm:$0xff] }
 0x31e   : > { %1167 = vst.msk [vmem:[#allocation3 + $0x2] sm:$0x1] %vm2485_vm3, %v2383_v34  ;;  %v280_v34 = vld [vmem:[%s1872_s23 + $0x48] sm:$0xff]  ;;  %v1405_v42 = vmul.f32 %v1397_v37, %v282_v25 }
 0x31f   : > { %880 = vst.msk [vmem:[#allocation3] sm:$0x1] %vm2520_vm0, %v875_v60  ;;  %v1403_v41 = vmul.f32 %v1389_v19, %v280_v34 }
 0x320   : > { %1172 = vst.msk [vmem:[#allocation3 + $0x2] sm:$0x1] %vm2491_vm6, %v2391_v21  ;;  %v1385_v21 = vrot.slane %v1779_v35, %v1892_v24 }
 0x321   : > { %888 = vst.msk [vmem:[#allocation3] sm:$0x1] %vm2528_vm2, %v883_v2  ;;  %v1367_v28 = vpop.permute.xlu1 %1366  ;;  %v1216_v30 = vpop.permute.xlu0 %1215 }
 0x322   : > { %896 = vst.msk [vmem:[#allocation3] sm:$0x1] %vm2538_vm4, %v891_v26 }
 0x323   : > { %1177 = vst.msk [vmem:[#allocation3 + $0x2] sm:$0x1] %vm2502_vm9, %v1175_v58 }
 0x324   : > { %1196 = vst.msk [vmem:[#allocation3 + $0x2] sm:$0x1] %vm2511_vm13, %v2399_v40  ;;  %v281_v40 = vld [vmem:[%s1872_s23 + $0x50] sm:$0xff] }
 0x325   : > { %1208 = vst.msk [vmem:[#allocation3 + $0x2] sm:$0x1] %vm2520_vm0, %v1206_v63  ;;  %v1050_v13 = vpop.permute.xlu1 %1049  ;;  %v1404_v43 = vmul.f32 %v1393_v38, %v281_v40 }
 0x326   : > { %1213 = vst.msk [vmem:[#allocation3 + $0x2] sm:$0x1] %vm2528_vm2, %v1211_v6 }
 0x327   : > { %1218 = vst.msk [vmem:[#allocation3 + $0x2] sm:$0x1] %vm2538_vm4, %v1216_v30 }
 0x329   : > { %v1372_v9 = vpop.permute.xlu1 %1371 }
 0x32d   : > { %v973_v31 = vpop.permute.xlu1 %972 }
 0x32e   : > { %975 = vst.msk [vmem:[#allocation3 + $0x1] sm:$0x1] %vm2473_vm12, %v973_v31 }
 0x32f   : > { %994 = vst.msk [vmem:[#allocation3 + $0x1] sm:$0x1] %vm2479_vm15, %v2358_v4 }
 0x330   : > { %1006 = vst.msk [vmem:[#allocation3 + $0x1] sm:$0x1] %vm2485_vm3, %v2411_v36  ;;  %v1402_v36 = vmul.f32 %v1385_v21, %v279_v39 }
 0x331   : > { %1011 = vst.msk [vmem:[#allocation3 + $0x1] sm:$0x1] %vm2491_vm6, %v2429_v47  ;;  %v1295_v33 = vpop.permute.xlu1 %1294 }
 0x332   : > { %1016 = vst.msk [vmem:[#allocation3 + $0x1] sm:$0x1] %vm2502_vm9, %v1014_v8 }
 0x333   : > { %1297 = vst.msk [vmem:[#allocation3 + $0x3] sm:$0x1] %vm2473_vm12, %v1295_v33  ;;  %vm2677_vm12 = vmmov %vm2676_vm1 }
 0x334   : > { %1316 = vst.msk [vmem:[#allocation3 + $0x3] sm:$0x1] %vm2479_vm15, %v2361_v17 }
 0x335   : > { %1035 = vst.msk [vmem:[#allocation3 + $0x1] sm:$0x1] %vm2511_vm13, %v2443_v51  ;;  %v1055_v4 = vpop.permute.xlu1 %1054 }
 0x336   : > { %1328 = vst.msk [vmem:[#allocation3 + $0x3] sm:$0x1] %vm2485_vm3, %v2419_v44 }
 0x337   : > { %1047 = vst.msk [vmem:[#allocation3 + $0x1] sm:$0x1] %vm2520_vm0, %v1045_v61 }
 0x338   : > { %1333 = vst.msk [vmem:[#allocation3 + $0x3] sm:$0x1] %vm2491_vm6, %v2435_v49 }
 0x339   : > { %1052 = vst.msk [vmem:[#allocation3 + $0x1] sm:$0x1] %vm2528_vm2, %v1050_v13  ;;  %v1377_v17 = vpop.permute.xlu1 %1376 }
 0x33a   : > { %1338 = vst.msk [vmem:[#allocation3 + $0x3] sm:$0x1] %vm2502_vm9, %v1336_v3 }
 0x33b   : > { %1057 = vst.msk [vmem:[#allocation3 + $0x1] sm:$0x1] %vm2538_vm4, %v1055_v4 }
 0x33c   : > { %1357 = vst.msk [vmem:[#allocation3 + $0x3] sm:$0x1] %vm2511_vm13, %v2447_v53 }
 0x33d   : > { %1369 = vst.msk [vmem:[#allocation3 + $0x3] sm:$0x1] %vm2520_vm0, %v1367_v28 }
 0x33e   : > { %1374 = vst.msk [vmem:[#allocation3 + $0x3] sm:$0x1] %vm2528_vm2, %v1372_v9 }
 0x33f   : > { %1379 = vst.msk [vmem:[#allocation3 + $0x3] sm:$0x1] %vm2538_vm4, %v1377_v17 }
 0x346   : > { %v1380_v44 = vld [vmem:[#allocation3] sm:$0xf] }
 0x347   : > { %v1414_v45 = vrot.slane %v1380_v44, %v1895_v27  ;;  %v1422_v14 = vrot.slane %v1380_v44, %v1901_v32  ;;  %v1410_v47 = vrot.slane %v1380_v44, %v1892_v24  ;;  %v1418_v48 = vrot.slane %v1380_v44, %v1898_v29  ;;  %v1436_v24 = vpop.permute.xlu0 %1435 }
 0x349   : > { %v1428_v49 = vmul.f32 %v1414_v45, %v1403_v41  ;;  %v1430_v46 = vmul.f32 %v1422_v14, %v1405_v42  ;;  %v1427_v50 = vmul.f32 %v1410_v47, %v1402_v36  ;;  %v1429_v51 = vmul.f32 %v1418_v48, %v1404_v43 }
 0x34b   : > { %1441 = vmatprep.subr.mxu0 %v1428_v49  ;;  %1512 = vmatprep.subr.mxu1 %v1430_v46 }
 0x34c   : > { %1442 = vmatpush1.msra.mxu0 %v1427_v50  ;;  %1513 = vmatpush1.msra.mxu1 %v1429_v51 }
 0x34d   : > { %1698 = vmatmul.mubr.msk.f32.vlgmr.msra.gmra.mrb[0].mxu0 %vm2676_vm1, %v1431_v52  ;;  %1699 = vmatmul.mubr.msk.f32.vlgmr.msra.gmra.mrb[0].mxu1 %vm2677_vm12, %v1431_v52 }
 0x420   : > { %v1507_v27 = vpop.f32.mrb[0].mxu0  ;;  %v1578_v29 = vpop.f32.mrb[0].mxu1 }
 0x421   : > { %v1508_v32 = vadd.f32 %v1507_v27, %v1436_v24  ;;  %v1579_v53 = vadd.f32 %v1578_v29, %v1436_v24  ;;  %v1509_v54 = vpop.f32.mrb[1].mxu0  ;;  %v1580_v55 = vpop.f32.mrb[1].mxu1 }
 0x422   : > { %v1510_v56 = vadd.f32 %v1509_v54, %v1436_v24  ;;  %v1581_v57 = vadd.f32 %v1580_v55, %v1436_v24 }
 0x423   : > { %1583 = vst [vmem:[%s268_s27] sm:$0xff] %v1508_v32  ;;  %1585 = vst [vmem:[%s268_s27 + $0x10] sm:$0xff] %v1579_v53 }
 0x424   : > { %1584 = vst [vmem:[%s268_s27 + $0x8] sm:$0xff] %v1510_v56  ;;  %1586 = vst [vmem:[%s268_s27 + $0x18] sm:$0xff] %v1581_v57 }
 0x425 PF: > { %s14_s17 = sadd.s32 1, %s1802_s17   ;;  %s2678_s15 = smov %s1798_s16 }
 0x426   : > { %p11_p5 = scmp.ge.s32.totalorder %s14_s17, 4   ;;  %s2679_s16 = smov %s2681_s18 }
 0x428   :  { %13 = sbr.rel (!%p11_p5) target bundleno = 2 (0x2), region = 69 }

// kernel: edge_attention_forward.4
= control target key start
LH: loop header
LB: loop body
LE: loop exit
PB: predicated region body
PF: predicated region fallthrough
CT: control target
= control target key end

     0   :  { %s8493_s15 = smov 0   ;;  %s8495_s16 = smov 0   ;;  %s9570_s0 = inlined_call_operand.vmem [shape: bf16[2,12,8,100], index: 0, kind: input, shape index: {}, may-alias: {0,1,2,3,4}]   ;;  %s9571_s1 = inlined_call_operand.vmem [shape: bf16[2,12,8,100], index: 1, kind: input, shape index: {}, may-alias: {0,1,2,3,4}]   ;;  %s9572_s2 = inlined_call_operand.vmem [shape: bf16[2,12,8,100], index: 2, kind: input, shape index: {}, may-alias: {0,1,2,3,4}]   ;;  %s9573_s3 = inlined_call_operand.vmem [shape: bf16[2,12,8,100], index: 3, kind: input, shape index: {}, may-alias: {0,1,2,3,4}]   ;;  %s9574_s4 = inlined_call_operand.vmem [shape: bf16[2,12,8,100], index: 4, kind: input, shape index: {}, may-alias: {0,1,2,3,4}]   ;;  %s9575_s5 = inlined_call_operand.vmem [shape: f32[27,4,8], index: 5, kind: input, shape index: {}]   ;;  %s9576_s6 = inlined_call_operand.vmem [shape: f32[4,1], index: 6, kind: input, shape index: {}]   ;;  %s9577_s7 = inlined_call_operand.vmem [shape: f32[27,4,1], index: 7, kind: input, shape index: {}]   ;;  %s9578_s8 = inlined_call_operand.<no memory space> [shape: f32[1,1], index: 8, kind: input, shape index: {}]   ;;  %s9579_s9 = inlined_call_operand.vmem [shape: f32[1,78], index: 9, kind: input, shape index: {}]   ;;  %s9580_s10 = inlined_call_operand.vmem [shape: f32[2,8,1,78], index: 10, kind: output, shape index: {}]  }
   0x1   :  { %9593 = sst [smem:[#allocation4_spill]] %s9570_s0  ;;  %v15_v0 = vstv %s9578_s8  ;;  %s8497_s17 = smov 0  }
   0x2   :  { %9594 = sst [smem:[#allocation5_spill]] %s9571_s1  ;;  %16 = vst [vmem:[#allocation3] sm:$0x1] %v15_v0  ;;  %s8499_s18 = smov 0  }
   0x3   :  { %9595 = sst [smem:[#allocation6_spill]] %s9572_s2  ;;  %s8501_s19 = smov 0  }
   0x4 LB: > { %s31_s8 = sadd.s32 1, %s8409_s17  ;;  %s34_s20 = sadd.s32 1, %s8413_s18  ;;  %s8417_s19 = sphi %s8501_s19, %s22_s19   ;;  %s8413_s18 = sphi %s8499_s18, %s9611_s18   ;;  %s8409_s17 = sphi %s8497_s17, %s9610_s17   ;;  %s8405_s16 = sphi %s8495_s16, %s9609_s16   ;;  %s8401_s15 = sphi %s8493_s15, %s9608_s15  }
   0x5   : > { %p32_p0 = scmp.ge.s32.totalorder %s31_s8, 8  ;;  %p7546_p1 = scmp.ge.s32.totalorder %s8417_s19, 1 }
   0x6   : > { %p409_p2 = scmp.lt.s32.totalorder %s8417_s19, 17 }
   0x7   : > { %s9613_s8 = smov (%p32_p0, %s31_s8), 0  ;;  %s9615_s20 = smov (!%p32_p0, %s34_s20), %s8413_s18 }
   0x8   : > { %p410_p3 = pnand %p7546_p1, %p409_p2  ;;  %p36_p4 = scmp.ge.s32.totalorder %s9615_s20, 2 }
   0x9   : > { %p488_p5 = scmp.lt.s32.totalorder (!%p410_p3), %s8405_s16, 1  ;;  %p490_p6 = scmp.lt.s32.totalorder (!%p410_p3), %s8401_s15, 11  ;;  %v8419_v1 = vmov (!%p410_p3), 0.0   ;;  %vm8420_vm0 = vmmov (!%p410_p3), 0   ;;  %vm557_vm1 = vcmask (!%p410_p3), 64512   ;;  %vm544_vm2 = vcmask (!%p410_p3), 1043456  }
   0xa   : > { %s9617_s20 = smov (%p36_p4, %s9615_s20), 0  ;;  %413 = sbr.rel (%p410_p3) target bundleno = 742 (0x2e6), region = 60 }
   0xb   : > { %7908 = vmatprep.subr.mxu0 (!%p410_p3), %v8419_v1  ;;  %7910 = vmatprep.mubr.msk.f32.mxu0 (!%p410_p3), %vm8420_vm0, %v8419_v1  ;;  %s9596_s0 = sld [smem:[#allocation4_spill]] (!%p410_p3)  ;;  %s8543_s28 = sadd.s32 (!%p410_p3), 1, %s8401_s15  ;;  %v548_v4 = vld [vmem:[%s9575_s5] sm:$0xf] (!%p410_p3)  ;;  %v7553_v19 = vld [vmem:[%s9575_s5 + $0x4] sm:$0xf] (!%p410_p3) }
   0xc   : > { %7913 = vmatprep.subr.mxu1 (!%p410_p3), %v8419_v1  ;;  %7915 = vmatprep.mubr.msk.f32.mxu1 (!%p410_p3), %vm8420_vm0, %v8419_v1  ;;  %p499_p7 = scmp.lt.s32.totalorder (!%p410_p3), %s8543_s28, 11  ;;  %s9589_s11 = smov (!%p410_p3), 127   ;;  %v7558_v22 = vld [vmem:[%s9575_s5 + $0xc] sm:$0xf] (!%p410_p3)  ;;  %v7556_v23 = vld [vmem:[%s9575_s5 + $0x8] sm:$0xf] (!%p410_p3) }
   0xd   : > { %s8422_s12 = smov (!%p410_p3), 118   ;;  %s506_s25 = sadd.s32 (!%p410_p3), 2, %s8401_s15  ;;  %v7560_v26 = vld [vmem:[%s9575_s5 + $0x10] sm:$0xf] (!%p410_p3)  ;;  %v7562_v27 = vld [vmem:[%s9575_s5 + $0x14] sm:$0xf] (!%p410_p3) }
   0xe   : > { %s9597_s1 = sld [smem:[#allocation5_spill]] (!%p410_p3)  ;;  %s9591_s30 = smov (!%p410_p3), 116   ;;  %v7564_v30 = vld [vmem:[%s9575_s5 + $0x18] sm:$0xf] (!%p410_p3)  ;;  %v7566_v31 = vld [vmem:[%s9575_s5 + $0x1c] sm:$0xf] (!%p410_p3) }
   0xf   : > { %p509_p8 = scmp.lt.s32.totalorder (!%p410_p3), %s506_s25, 11  ;;  %s9599_s2 = sld [smem:[#allocation6_spill]] (!%p410_p3)  ;;  %v7568_v34 = vld [vmem:[%s9575_s5 + $0x20] sm:$0xf] (!%p410_p3)  ;;  %v7570_v35 = vld [vmem:[%s9575_s5 + $0x24] sm:$0xf] (!%p410_p3) }
  0x10   : > { %v7572_v38 = vld [vmem:[%s9575_s5 + $0x28] sm:$0xf] (!%p410_p3)  ;;  %v7574_v40 = vld [vmem:[%s9575_s5 + $0x2c] sm:$0xf] (!%p410_p3)  ;;  %v7576_v42 = vld [vmem:[%s9575_s5 + $0x30] sm:$0xf] (!%p410_p3) }
  0x11   : > { %s9619_s16 = smov (!%p488_p5, %s8405_s16), 1  ;;  %s9621_s25 = smov (!%p509_p8, %s506_s25), 11  ;;  %v7578_v46 = vld [vmem:[%s9575_s5 + $0x34] sm:$0xf]  ;;  %v7580_v47 = vld [vmem:[%s9575_s5 + $0x38] sm:$0xf] }
  0x12   : > { %s491_s21 = scalar_select %p490_p6, %s8401_s15, 11  ;;  %v7582_v51 = vld [vmem:[%s9575_s5 + $0x3c] sm:$0xf]  ;;  %v7584_v52 = vld [vmem:[%s9575_s5 + $0x40] sm:$0xf]  ;;  %vm545_vm3 = vcmask 728068  }
  0x13   : > { %s8536_s22 = smul.u32 12, %s9619_s16  ;;  %v7586_v55 = vld [vmem:[%s9575_s5 + $0x44] sm:$0xf]  ;;  %v7588_v56 = vld [vmem:[%s9575_s5 + $0x48] sm:$0xf]  ;;  %vm546_vm4 = vmor %vm545_vm3, %vm544_vm2  ;;  %vm2703_vm5 = vcmask 633856  }
  0x14   : > { %s500_s13 = scalar_select %p499_p7, %s8543_s28, 11  ;;  %v7590_v59 = vld [vmem:[%s9575_s5 + $0x4c] sm:$0xf]  ;;  %v7592_v62 = vld [vmem:[%s9575_s5 + $0x50] sm:$0xf]  ;;  %547 = vst.msk [vmem:[#allocation2] sm:$0xff] %vm546_vm4, %v8419_v1 }
  0x15   : > { %s493_s23 = sadd.s32 %s8536_s22, %s491_s21  ;;  %v7594_v63 = vld [vmem:[%s9575_s5 + $0x54] sm:$0xf]  ;;  %p4949_p0 = scmp.ge.s32.totalorder %s8401_s15, 0  ;;  %vm2737_vm6 = vcmask 80896   ;;  %vm2718_vm7 = vcmask 89088   ;;  %vm2756_vm8 = vcmask 72704  }
  0x16   : > { %s7547_s24 = sshll.u32 %s493_s23, 2  ;;  %s502_s14 = sadd.s32 %s8536_s22, %s500_s13  ;;  %vm2775_vm9 = vcmask 7168   ;;  %vm7388_vm10 = vcmask 630784  }
  0x17   : > { %s495_s27 = scalar_lea.vmem %s9596_s0, %s7547_s24  ;;  %s7548_s21 = sshll.u32 %s502_s14, 2 }
  0x18   : > { %v549_v2 = vld [vmem:[%s495_s27] sm:$0xf]  ;;  %s8423_s23 = smov 126   ;;  %s9581_s24 = smov 117  }
  0x19   : > { %v550_v3 = vunpack.c.l.bf16 %v549_v2  ;;  %s8563_s29 = scalar_lea.vmem %s9597_s1, %s7548_s21  ;;  %s9587_s13 = smov 108  }
  0x1a   : > { %v1259_v5 = vld [vmem:[%s8563_s29] sm:$0xf]  ;;  %s9583_s14 = smov 107   ;;  %s512_s21 = sadd.s32 %s8536_s22, %s9621_s25 }
  0x1b   : > { %554 = vrot.lane.b32.xlu0 %v550_v3, %s9589_s11  ;;  %785 = vrot.lane.b32.xlu1 %v550_v3, %s8422_s12  ;;  %v8570_v6 = vunpack.c.l.bf16 %v1259_v5  ;;  %s7549_s26 = sshll.u32 %s512_s21, 2  ;;  %s9598_s27 = smov 117   ;;  %v2846_v9 = vld [vmem:[%s8563_s29] sm:$0xf] }
  0x1c   : > { %7914 = vmatpush3.msra.mxu1 %v550_v3  ;;  %s9601_s25 = smov 107   ;;  %s9602_s21 = smov 106   ;;  %v8614_v10 = vunpack.c.l.bf16 %v2846_v9 }
  0x1d   : > { %7916 = vmatmul.mubr.msk.f32.vlgmr.msra.gmra.mrb[0].mxu1 %vm557_vm1, %v548_v4  ;;  %7923 = vmatprep.subr.mxu1 %v8419_v1  ;;  %s516_s29 = sadd.s32 3, %s8401_s15  ;;  %p4950_p1 = scmp.le.s32.totalorder %s8401_s15, 7 }
  0x1e   : > { %7925 = vmatprep.mubr.msk.f32.mxu1 %vm8420_vm0, %v8419_v1  ;;  %p519_p9 = scmp.lt.s32.totalorder %s516_s29, 11  ;;  %p7209_p3 = scmp.ge.s32.totalorder %s8543_s28, 0 }
  0x1f   : > { %706 = vrot.lane.b32.xlu0 %v550_v3, %s8423_s23  ;;  %864 = vrot.lane.b32.xlu1 %v550_v3, %s9581_s24  ;;  %s9585_s24 = smov 106   ;;  %p9411_p2 = pnand %p4950_p1, %p4949_p0 }
  0x20   : > { %s9623_s29 = smov (!%p519_p9, %s516_s29), 11  ;;  %p7210_p4 = scmp.le.s32.totalorder %s8543_s28, 7 }
  0x21   : > { %p538_p6 = scmp.lt.s32.totalorder %s8401_s15, 7 }
  0x22   : > { %p9467_p5 = pnand %p7210_p4, %p7209_p3 }
  0x23   : > { %943 = vrot.lane.b32.xlu0 %v550_v3, %s9591_s30  ;;  %1022 = vrot.lane.b32.xlu1 %v550_v3, %s9587_s13  ;;  %s8584_s13 = scalar_lea.vmem %s9599_s2, %s7549_s26  ;;  %s9604_s2 = smov 116  }
  0x24   : > { %v1970_v7 = vld [vmem:[%s8584_s13] sm:$0xf]  ;;  %s7733_s28 = scalar_select %p9467_p5, 0, 1 }
  0x25   : > { %v8595_v8 = vunpack.c.l.bf16 %v1970_v7  ;;  %v3546_v11 = vld [vmem:[%s8584_s13] sm:$0xf] }
  0x26   : > { %v8634_v12 = vunpack.c.l.bf16 %v3546_v11  ;;  %v5105_v15 = vld [vmem:[%s8584_s13] sm:$0xf]  ;;  %v7602_v11 = vld [vmem:[%s9575_s5 + $0x64] sm:$0xf] }
  0x27   : > { %1101 = vrot.lane.b32.xlu0 %v550_v3, %s9583_s14  ;;  %1180 = vrot.lane.b32.xlu1 %v550_v3, %s9585_s24  ;;  %s9603_s24 = smov 127   ;;  %s522_s14 = sadd.s32 %s8536_s22, %s9623_s29  ;;  %v8675_v16 = vunpack.c.l.bf16 %v5105_v15  ;;  %v7596_v3 = vld [vmem:[%s9575_s5 + $0x58] sm:$0xf]  ;;  %v7600_v7 = vld [vmem:[%s9575_s5 + $0x60] sm:$0xf] }
  0x28   : > { %s7550_s26 = sshll.u32 %s522_s14, 2  ;;  %s8431_s14 = smov 11  }
  0x29   : > { %s524_s1 = scalar_lea.vmem %s9573_s3, %s7550_s26  ;;  %s526_s26 = sadd.s32 4, %s8401_s15 }
  0x2a   : > { %v4248_v13 = vld [vmem:[%s524_s1] sm:$0xf]  ;;  %p529_p10 = scmp.lt.s32.totalorder %s526_s26, 11 }
  0x2b   : > { %1338 = vrot.lane.b32.xlu0 %v8570_v6, %s9589_s11  ;;  %1417 = vrot.lane.b32.xlu1 %v8570_v6, %s8423_s23  ;;  %s9600_s11 = smov 108   ;;  %v8656_v14 = vunpack.c.l.bf16 %v4248_v13  ;;  %v5805_v17 = vld [vmem:[%s524_s1] sm:$0xf]  ;;  %v7604_v13 = vld [vmem:[%s9575_s5 + $0x68] sm:$0xf]  ;;  %s7606_s1 = sadd.s32 4294967295, %s8401_s15 }
  0x2c   : > { %v8693_v18 = vunpack.c.l.bf16 %v5805_v17  ;;  %s9625_s26 = smov (!%p529_p10, %s526_s26), 11  ;;  %p9379_p11 = scmp.ge.s32.totalorder %s7606_s1, 0 }
  0x2d   : > { %s532_s0 = sadd.s32 %s8536_s22, %s9625_s26  ;;  %p2681_p12 = scmp.le.s32.totalorder %s7606_s1, 7 }
  0x2e   : > { %s8433_s22 = smov 9   ;;  %s8434_s26 = smov 119  }
  0x2f   : > { %1496 = vrot.lane.b32.xlu0 %v8570_v6, %s8422_s12  ;;  %1575 = vrot.lane.b32.xlu1 %v8570_v6, %s9598_s27  ;;  %p2682_p13 = pnand %p2681_p12, %p9379_p11  ;;  %s9627_s15 = smov (!%p538_p6, %s8401_s15), 7 }
  0x33   : > { %1654 = vrot.lane.b32.xlu0 %v8570_v6, %s9591_s30  ;;  %1733 = vrot.lane.b32.xlu1 %v8570_v6, %s9600_s11 }
  0x37   : > { %1812 = vrot.lane.b32.xlu0 %v8570_v6, %s9601_s25  ;;  %1891 = vrot.lane.b32.xlu1 %v8570_v6, %s9602_s21 }
  0x3b   : > { %2049 = vrot.lane.b32.xlu0 %v8595_v8, %s9603_s24  ;;  %2128 = vrot.lane.b32.xlu1 %v8595_v8, %s8423_s23 }
  0x3f   : > { %2207 = vrot.lane.b32.xlu0 %v8595_v8, %s8422_s12  ;;  %2286 = vrot.lane.b32.xlu1 %v8595_v8, %s9598_s27 }
  0x43   : > { %2365 = vrot.lane.b32.xlu0 %v8595_v8, %s9591_s30  ;;  %2444 = vrot.lane.b32.xlu1 %v8595_v8, %s9600_s11 }
  0x47   : > { %2523 = vrot.lane.b32.xlu0 %v8595_v8, %s9601_s25  ;;  %2602 = vrot.lane.b32.xlu1 %v8595_v8, %s9602_s21 }
  0x4b   : > { %2850 = vrot.lane.b32.xlu0 %v8614_v10, %s9603_s24  ;;  %3000 = vrot.lane.b32.xlu1 %v8614_v10, %s8423_s23 }
  0x4f   : > { %3078 = vrot.lane.b32.xlu0 %v8614_v10, %s8422_s12  ;;  %3156 = vrot.lane.b32.xlu1 %v8614_v10, %s9598_s27 }
  0x53   : > { %3234 = vrot.lane.b32.xlu0 %v8614_v10, %s9591_s30  ;;  %3312 = vrot.lane.b32.xlu1 %v8614_v10, %s9600_s11  ;;  %s7551_s30 = sshll.u32 %s532_s0, 2 }
  0x54   : > { %s534_s0 = scalar_lea.vmem %s9574_s4, %s7551_s30  ;;  %s7223_s30 = scvt.s32.f32 %s7733_s28 }
  0x55   : > { %v6507_v45 = vld [vmem:[%s534_s0] sm:$0xf]  ;;  %s8432_s0 = smov 1  }
  0x56   : > { %v8805_v48 = vunpack.c.l.bf16 %v6507_v45 }
  0x57   : > { %3390 = vrot.lane.b32.xlu0 %v8614_v10, %s9601_s25  ;;  %3468 = vrot.lane.b32.xlu1 %v8614_v10, %s9602_s21 }
  0x5b   : > { %3624 = vrot.lane.b32.xlu0 %v8634_v12, %s9603_s24  ;;  %3702 = vrot.lane.b32.xlu1 %v8634_v12, %s8423_s23 }
  0x5f   : > { %3780 = vrot.lane.b32.xlu0 %v8634_v12, %s8422_s12  ;;  %3858 = vrot.lane.b32.xlu1 %v8634_v12, %s9598_s27 }
  0x63   : > { %3936 = vrot.lane.b32.xlu0 %v8634_v12, %s9604_s2  ;;  %4014 = vrot.lane.b32.xlu1 %v8634_v12, %s9600_s11 }
  0x67   : > { %4092 = vrot.lane.b32.xlu0 %v8634_v12, %s9601_s25  ;;  %4170 = vrot.lane.b32.xlu1 %v8634_v12, %s9602_s21 }
  0x6b   : > { %4326 = vrot.lane.b32.xlu0 %v8656_v14, %s9603_s24  ;;  %4404 = vrot.lane.b32.xlu1 %v8656_v14, %s8423_s23 }
  0x6f   : > { %4482 = vrot.lane.b32.xlu0 %v8656_v14, %s8422_s12  ;;  %4560 = vrot.lane.b32.xlu1 %v8656_v14, %s9598_s27 }
  0x73   : > { %4638 = vrot.lane.b32.xlu0 %v8656_v14, %s9604_s2  ;;  %4716 = vrot.lane.b32.xlu1 %v8656_v14, %s9600_s11 }
  0x77   : > { %4794 = vrot.lane.b32.xlu0 %v8656_v14, %s9601_s25  ;;  %4872 = vrot.lane.b32.xlu1 %v8656_v14, %s9602_s21 }
  0x7b   : > { %5109 = vrot.lane.b32.xlu0 %v8675_v16, %s9603_s24  ;;  %5259 = vrot.lane.b32.xlu1 %v8675_v16, %s8423_s23 }
  0x7f   : > { %5337 = vrot.lane.b32.xlu0 %v8675_v16, %s8422_s12  ;;  %5415 = vrot.lane.b32.xlu1 %v8675_v16, %s9598_s27 }
  0x83   : > { %5493 = vrot.lane.b32.xlu0 %v8675_v16, %s9604_s2  ;;  %5571 = vrot.lane.b32.xlu1 %v8675_v16, %s9600_s11 }
  0x87   : > { %5649 = vrot.lane.b32.xlu0 %v8675_v16, %s9601_s25  ;;  %5727 = vrot.lane.b32.xlu1 %v8675_v16, %s9602_s21 }
  0x8b   : > { %5883 = vrot.lane.b32.xlu0 %v8693_v18, %s9603_s24  ;;  %5961 = vrot.lane.b32.xlu1 %v8693_v18, %s8423_s23 }
  0x8d   : > { %v555_v20 = vpop.permute.xlu0 %554  ;;  %v786_v21 = vpop.permute.xlu1 %785 }
  0x8e   : > { %7909 = vmatpush3.msra.mxu0 %v555_v20  ;;  %7924 = vmatpush3.msra.mxu1 %v786_v21  ;;  %v2845_v20 = vld [vmem:[%s9575_s5] sm:$0xf] }
  0x8f   : > { %7911 = vmatmul.mubr.msk.f32.vlgmr.msra.gmra.mrb[0].mxu0 %vm557_vm1, %v7553_v19  ;;  %7918 = vmatprep.subr.mxu0 %v8419_v1  ;;  %v7617_v19 = vld [vmem:[%s9575_s5 + $0x4] sm:$0xf] }
  0x90   : > { %7920 = vmatprep.mubr.msk.f32.mxu0 %vm8420_vm0, %v8419_v1  ;;  %7926 = vmatmul.mubr.msk.f32.vlgmr.msra.gmra.mrb[2].mxu1 %vm557_vm1, %v7558_v22 }
  0x91   : > { %v707_v24 = vpop.permute.xlu0 %706  ;;  %v865_v25 = vpop.permute.xlu1 %864  ;;  %7933 = vmatprep.subr.mxu1 %v8419_v1  ;;  %7935 = vmatprep.mubr.msk.f32.mxu1 %vm8420_vm0, %v8419_v1 }
  0x92   : > { %7919 = vmatpush3.msra.mxu0 %v707_v24  ;;  %6039 = vrot.lane.b32.xlu0 %v8693_v18, %s8422_s12 }
  0x93   : > { %7921 = vmatmul.mubr.msk.f32.vlgmr.msra.gmra.mrb[2].mxu0 %vm557_vm1, %v7556_v23  ;;  %7928 = vmatprep.subr.mxu0 %v8419_v1  ;;  %v7620_v23 = vld [vmem:[%s9575_s5 + $0x8] sm:$0xf] }
  0x94   : > { %7929 = vmatpush3.msra.mxu0 %v865_v25  ;;  %7930 = vmatprep.mubr.msk.f32.mxu0 %vm8420_vm0, %v8419_v1 }
  0x95   : > { %v944_v28 = vpop.permute.xlu0 %943  ;;  %v1023_v29 = vpop.permute.xlu1 %1022  ;;  %7938 = vmatprep.subr.mxu0 %v8419_v1  ;;  %6117 = vrot.lane.b32.xlu1 %v8693_v18, %s9598_s27 }
  0x96   : > { %7934 = vmatpush3.msra.mxu1 %v944_v28  ;;  %6195 = vrot.lane.b32.xlu0 %v8693_v18, %s9604_s2 }
  0x97   : > { %7931 = vmatmul.mubr.msk.f32.vlgmr.msra.gmra.mrb[4].mxu0 %vm557_vm1, %v7560_v26  ;;  %7936 = vmatmul.mubr.msk.f32.vlgmr.msra.gmra.mrb[4].mxu1 %vm557_vm1, %v7562_v27  ;;  %v7624_v26 = vld [vmem:[%s9575_s5 + $0x10] sm:$0xf]  ;;  %v7626_v27 = vld [vmem:[%s9575_s5 + $0x14] sm:$0xf] }
  0x98   : > { %7939 = vmatpush3.msra.mxu0 %v1023_v29  ;;  %7940 = vmatprep.mubr.msk.f32.mxu0 %vm8420_vm0, %v8419_v1 }
  0x99   : > { %v1102_v32 = vpop.permute.xlu0 %1101  ;;  %7943 = vmatprep.subr.mxu1 %v8419_v1  ;;  %7945 = vmatprep.mubr.msk.f32.mxu1 %vm8420_vm0, %v8419_v1  ;;  %v1181_v33 = vpop.permute.xlu1 %1180 }
  0x9a   : > { %7944 = vmatpush3.msra.mxu1 %v1102_v32  ;;  %7948 = vmatprep.subr.mxu0 %v8419_v1 }
  0x9b   : > { %7941 = vmatmul.mubr.msk.f32.vlgmr.msra.gmra.mrb[6].mxu0 %vm557_vm1, %v7564_v30  ;;  %7946 = vmatmul.mubr.msk.f32.vlgmr.msra.gmra.mrb[6].mxu1 %vm557_vm1, %v7566_v31  ;;  %v7628_v30 = vld [vmem:[%s9575_s5 + $0x18] sm:$0xf]  ;;  %v7630_v31 = vld [vmem:[%s9575_s5 + $0x1c] sm:$0xf] }
  0x9c   : > { %7949 = vmatpush3.msra.mxu0 %v1181_v33  ;;  %7950 = vmatprep.mubr.msk.f32.mxu0 %vm8420_vm0, %v8419_v1 }
  0x9d   : > { %7953 = vmatprep.subr.mxu1 %v8419_v1  ;;  %7955 = vmatprep.mubr.msk.f32.mxu1 %vm8420_vm0, %v8419_v1  ;;  %v1339_v36 = vpop.permute.xlu0 %1338  ;;  %v1418_v37 = vpop.permute.xlu1 %1417 }
  0x9e   : > { %7954 = vmatpush3.msra.mxu1 %v8570_v6  ;;  %7958 = vmatprep.subr.mxu0 %v8419_v1  ;;  %v7598_v6 = vld [vmem:[%s9575_s5 + $0x5c] sm:$0xf] }
  0x9f   : > { %7951 = vmatmul.mubr.msk.f32.vlgmr.msra.gmra.mrb[8].mxu0 %vm557_vm1, %v7568_v34  ;;  %7956 = vmatmul.mubr.msk.f32.vlgmr.msra.gmra.mrb[8].mxu1 %vm557_vm1, %v7570_v35  ;;  %v7632_v34 = vld [vmem:[%s9575_s5 + $0x20] sm:$0xf]  ;;  %v7634_v35 = vld [vmem:[%s9575_s5 + $0x24] sm:$0xf] }
  0xa0   : > { %7959 = vmatpush3.msra.mxu0 %v1339_v36  ;;  %7960 = vmatprep.mubr.msk.f32.mxu0 %vm8420_vm0, %v8419_v1 }
  0xa1   : > { %7963 = vmatprep.subr.mxu1 %v8419_v1  ;;  %7965 = vmatprep.mubr.msk.f32.mxu1 %vm8420_vm0, %v8419_v1  ;;  %v1497_v39 = vpop.permute.xlu0 %1496  ;;  %v1576_v41 = vpop.permute.xlu1 %1575 }
  0xa2   : > { %7964 = vmatpush3.msra.mxu1 %v1418_v37  ;;  %6273 = vrot.lane.b32.xlu1 %v8693_v18, %s9600_s11 }
  0xa3   : > { %7961 = vmatmul.mubr.msk.f32.vlgmr.msra.gmra.mrb[10].mxu0 %vm557_vm1, %v7572_v38  ;;  %7968 = vmatprep.subr.mxu0 %v8419_v1  ;;  %v7636_v38 = vld [vmem:[%s9575_s5 + $0x28] sm:$0xf] }
  0xa4   : > { %7966 = vmatmul.mubr.msk.f32.vlgmr.msra.gmra.mrb[10].mxu1 %vm557_vm1, %v7574_v40  ;;  %7969 = vmatpush3.msra.mxu0 %v1497_v39 }
  0xa5   : > { %7970 = vmatprep.mubr.msk.f32.mxu0 %vm8420_vm0, %v8419_v1  ;;  %6351 = vrot.lane.b32.xlu0 %v8693_v18, %s9601_s25  ;;  %v1655_v43 = vpop.permute.xlu0 %1654  ;;  %v1734_v44 = vpop.permute.xlu1 %1733 }
  0xa6   : > { %7973 = vmatprep.subr.mxu1 %v8419_v1  ;;  %7975 = vmatprep.mubr.msk.f32.mxu1 %vm8420_vm0, %v8419_v1 }
  0xa7   : > { %7971 = vmatmul.mubr.msk.f32.vlgmr.msra.gmra.mrb[12].mxu0 %vm557_vm1, %v7576_v42  ;;  %7974 = vmatpush3.msra.mxu1 %v1576_v41  ;;  %v7640_v41 = vld [vmem:[%s9575_s5 + $0x30] sm:$0xf]  ;;  %v7642_v42 = vld [vmem:[%s9575_s5 + $0x34] sm:$0xf] }
  0xa8   : > { %6429 = vrot.lane.b32.xlu1 %v8693_v18, %s9602_s21  ;;  %7978 = vmatprep.subr.mxu0 %v8419_v1 }
  0xa9   : > { %7976 = vmatmul.mubr.msk.f32.vlgmr.msra.gmra.mrb[12].mxu1 %vm557_vm1, %v7578_v46  ;;  %7979 = vmatpush3.msra.mxu0 %v1655_v43  ;;  %v1813_v49 = vpop.permute.xlu0 %1812  ;;  %v1892_v50 = vpop.permute.xlu1 %1891  ;;  %v7646_v46 = vld [vmem:[%s9575_s5 + $0x3c] sm:$0xf] }
  0xaa   : > { %7980 = vmatprep.mubr.msk.f32.mxu0 %vm8420_vm0, %v8419_v1  ;;  %7983 = vmatprep.subr.mxu1 %v8419_v1 }
  0xab   : > { %7981 = vmatmul.mubr.msk.f32.vlgmr.msra.gmra.mrb[14].mxu0 %vm557_vm1, %v7580_v47  ;;  %7984 = vmatpush3.msra.mxu1 %v1734_v44  ;;  %v7644_v44 = vld [vmem:[%s9575_s5 + $0x38] sm:$0xf] }
  0xac   : > { %7985 = vmatprep.mubr.msk.f32.mxu1 %vm8420_vm0, %v8419_v1  ;;  %6585 = vrot.lane.b32.xlu0 %v8805_v48, %s9603_s24 }
  0xad   : > { %7988 = vmatprep.subr.mxu0 %v8419_v1  ;;  %7986 = vmatmul.mubr.msk.f32.vlgmr.msra.gmra.mrb[14].mxu1 %vm557_vm1, %v7582_v51  ;;  %v2050_v53 = vpop.permute.xlu0 %2049  ;;  %v2129_v54 = vpop.permute.xlu1 %2128 }
  0xae   : > { %7989 = vmatpush3.msra.mxu0 %v1813_v49  ;;  %7990 = vmatprep.mubr.msk.f32.mxu0 %vm8420_vm0, %v8419_v1  ;;  %v7648_v49 = vld [vmem:[%s9575_s5 + $0x40] sm:$0xf] }
  0xaf   : > { %6663 = vrot.lane.b32.xlu1 %v8805_v48, %s8423_s23  ;;  %7991 = vmatmul.mubr.msk.f32.vlgmr.msra.gmra.mrb[16].mxu0 %vm557_vm1, %v7584_v52  ;;  %v7652_v52 = vld [vmem:[%s9575_s5 + $0x48] sm:$0xf]  ;;  %s8430_s23 = smov 10  }
  0xb0   : > { %7993 = vmatprep.subr.mxu1 %v8419_v1  ;;  %7995 = vmatprep.mubr.msk.f32.mxu1 %vm8420_vm0, %v8419_v1 }
  0xb1   : > { %7994 = vmatpush3.msra.mxu1 %v1892_v50  ;;  %6741 = vrot.lane.b32.xlu0 %v8805_v48, %s8422_s12  ;;  %v2208_v57 = vpop.permute.xlu0 %2207  ;;  %v2287_v58 = vpop.permute.xlu1 %2286  ;;  %v7650_v50 = vld [vmem:[%s9575_s5 + $0x44] sm:$0xf] }
  0xb2   : > { %7996 = vmatmul.mubr.msk.f32.vlgmr.msra.gmra.mrb[16].mxu1 %vm557_vm1, %v7586_v55  ;;  %7998 = vmatprep.subr.mxu0 %v8419_v1 }
  0xb3   : > { %7999 = vmatpush3.msra.mxu0 %v8595_v8  ;;  %8000 = vmatprep.mubr.msk.f32.mxu0 %vm8420_vm0, %v8419_v1 }
  0xb4   : > { %6819 = vrot.lane.b32.xlu1 %v8805_v48, %s9598_s27  ;;  %8001 = vmatmul.mubr.msk.f32.vlgmr.msra.gmra.mrb[18].mxu0 %vm557_vm1, %v7588_v56  ;;  %v7658_v56 = vld [vmem:[%s9575_s5 + $0x54] sm:$0xf] }
  0xb5   : > { %8003 = vmatprep.subr.mxu1 %v8419_v1  ;;  %8005 = vmatprep.mubr.msk.f32.mxu1 %vm8420_vm0, %v8419_v1  ;;  %v2366_v60 = vpop.permute.xlu0 %2365  ;;  %v2445_v61 = vpop.permute.xlu1 %2444 }
  0xb6   : > { %8004 = vmatpush3.msra.mxu1 %v2050_v53  ;;  %6897 = vrot.lane.b32.xlu0 %v8805_v48, %s9604_s2  ;;  %s7670_s2 = scalar_select %p9411_p2, 0, 1 }
  0xb7   : > { %8006 = vmatmul.mubr.msk.f32.vlgmr.msra.gmra.mrb[18].mxu1 %vm557_vm1, %v7590_v59  ;;  %8008 = vmatprep.subr.mxu0 %v8419_v1  ;;  %v7660_v59 = vld [vmem:[%s9575_s5 + $0x58] sm:$0xf] }
  0xb8   : > { %8009 = vmatpush3.msra.mxu0 %v2129_v54  ;;  %8010 = vmatprep.mubr.msk.f32.mxu0 %vm8420_vm0, %v8419_v1  ;;  %v7654_v54 = vld [vmem:[%s9575_s5 + $0x4c] sm:$0xf]  ;;  %s4963_s1 = scvt.s32.f32 %s7670_s2 }
  0xb9   : > { %6975 = vrot.lane.b32.xlu1 %v8805_v48, %s9600_s11  ;;  %8011 = vmatmul.mubr.msk.f32.vlgmr.msra.gmra.mrb[20].mxu0 %vm557_vm1, %v7592_v62  ;;  %v2524_v0 = vpop.permute.xlu0 %2523  ;;  %v2603_v2 = vpop.permute.xlu1 %2602  ;;  %v7662_v62 = vld [vmem:[%s9575_s5 + $0x5c] sm:$0xf] }
  0xba   : > { %8013 = vmatprep.subr.mxu1 %v8419_v1  ;;  %8015 = vmatprep.mubr.msk.f32.mxu1 %vm8420_vm0, %v8419_v1 }
  0xbb   : > { %8014 = vmatpush3.msra.mxu1 %v2208_v57  ;;  %7053 = vrot.lane.b32.xlu0 %v8805_v48, %s9601_s25  ;;  %s7608_s25 = scalar_select %p2682_p13, 0, 1 }
  0xbc   : > { %8016 = vmatmul.mubr.msk.f32.vlgmr.msra.gmra.mrb[20].mxu1 %vm557_vm1, %v7594_v63  ;;  %8018 = vmatprep.subr.mxu0 %v8419_v1  ;;  %v7664_v63 = vld [vmem:[%s9575_s5 + $0x60] sm:$0xf] }
  0xbd   : > { %8019 = vmatpush3.msra.mxu0 %v2287_v58  ;;  %8020 = vmatprep.mubr.msk.f32.mxu0 %vm8420_vm0, %v8419_v1  ;;  %v2851_v4 = vpop.permute.xlu0 %2850  ;;  %v3001_v5 = vpop.permute.xlu1 %3000  ;;  %s2700_s13 = scvt.s32.f32 %s7608_s25 }
  0xbe   : > { %7131 = vrot.lane.b32.xlu1 %v8805_v48, %s9602_s21  ;;  %8021 = vmatmul.mubr.msk.f32.vlgmr.msra.gmra.mrb[22].mxu0 %vm557_vm1, %v7596_v3 }
  0xbf   : > { %8023 = vmatprep.subr.mxu1 %v8419_v1  ;;  %8025 = vmatprep.mubr.msk.f32.mxu1 %vm8420_vm0, %v8419_v1 }
  0xc0   : > { %8024 = vmatpush3.msra.mxu1 %v2366_v60  ;;  %8028 = vmatprep.subr.mxu0 %v8419_v1 }
  0xc1   : > { %8026 = vmatmul.mubr.msk.f32.vlgmr.msra.gmra.mrb[22].mxu1 %vm557_vm1, %v7598_v6  ;;  %8029 = vmatpush3.msra.mxu0 %v2445_v61  ;;  %v3079_v8 = vpop.permute.xlu0 %3078  ;;  %v3157_v9 = vpop.permute.xlu1 %3156 }
  0xc2   : > { %8030 = vmatprep.mubr.msk.f32.mxu0 %vm8420_vm0, %v8419_v1  ;;  %8033 = vmatprep.subr.mxu1 %v8419_v1 }
  0xc3   : > { %8031 = vmatmul.mubr.msk.f32.vlgmr.msra.gmra.mrb[24].mxu0 %vm557_vm1, %v7600_v7  ;;  %8034 = vmatpush3.msra.mxu1 %v2524_v0  ;;  %v5104_v7 = vld [vmem:[%s9575_s5] sm:$0xf] }
  0xc4   : > { %8035 = vmatprep.mubr.msk.f32.mxu1 %vm8420_vm0, %v8419_v1  ;;  %8038 = vmatprep.subr.mxu0 %v8419_v1 }
  0xc5   : > { %8036 = vmatmul.mubr.msk.f32.vlgmr.msra.gmra.mrb[24].mxu1 %vm557_vm1, %v7602_v11  ;;  %8039 = vmatpush3.msra.mxu0 %v2603_v2  ;;  %v3235_v15 = vpop.permute.xlu0 %3234  ;;  %v3313_v17 = vpop.permute.xlu1 %3312  ;;  %v7666_v2 = vld [vmem:[%s9575_s5 + $0x64] sm:$0xf] }
  0xc6   : > { %8040 = vmatprep.mubr.msk.f32.mxu0 %vm8420_vm0, %v8419_v1  ;;  %8043 = vmatprep.subr.mxu1 %v8419_v1 }
  0xc7   : > { %8041 = vmatmul.mubr.msk.f32.vlgmr.msra.gmra.mrb[26].mxu0 %vm557_vm1, %v7604_v13  ;;  %8044 = vmatpush3.msra.mxu1 %v2851_v4  ;;  %v7668_v4 = vld [vmem:[%s9575_s5 + $0x68] sm:$0xf]  ;;  %v7687_v13 = vld [vmem:[%s9575_s5 + $0x10] sm:$0xf] }
  0xc8   : > { %8045 = vmatprep.mubr.msk.f32.mxu1 %vm8420_vm0, %v8419_v1  ;;  %8048 = vmatprep.subr.mxu0 %v8419_v1 }
  0xc9   : > { %8046 = vmatmul.mubr.msk.f32.vlgmr.msra.gmra.mrb[26].mxu1 %vm557_vm1, %v7617_v19  ;;  %8049 = vmatpush3.msra.mxu0 %v8614_v10  ;;  %v3391_v21 = vpop.permute.xlu0 %3390  ;;  %v3469_v22 = vpop.permute.xlu1 %3468  ;;  %v7622_v10 = vld [vmem:[%s9575_s5 + $0xc] sm:$0xf] }
  0xca   : > { %8050 = vmatprep.mubr.msk.f32.mxu0 %vm8420_vm0, %v8419_v1  ;;  %8053 = vmatprep.subr.mxu1 %v8419_v1 }
  0xcb   : > { %8051 = vmatmul.mubr.msk.f32.vlgmr.msra.gmra.mrb[28].mxu0 %vm557_vm1, %v2845_v20  ;;  %8054 = vmatpush3.msra.mxu1 %v3001_v5  ;;  %v7680_v5 = vld [vmem:[%s9575_s5 + $0x4] sm:$0xf]  ;;  %v7691_v20 = vld [vmem:[%s9575_s5 + $0x18] sm:$0xf] }
  0xcc   : > { %8055 = vmatprep.mubr.msk.f32.mxu1 %vm8420_vm0, %v8419_v1  ;;  %8058 = vmatprep.subr.mxu0 %v8419_v1 }
  0xcd   : > { %8056 = vmatmul.mubr.msk.f32.vlgmr.msra.gmra.mrb[28].mxu1 %vm557_vm1, %v7620_v23  ;;  %8059 = vmatpush3.msra.mxu0 %v3079_v8  ;;  %v3625_v24 = vpop.permute.xlu0 %3624  ;;  %v3703_v25 = vpop.permute.xlu1 %3702  ;;  %v7695_v23 = vld [vmem:[%s9575_s5 + $0x20] sm:$0xf] }
  0xce   : > { %8060 = vmatprep.mubr.msk.f32.mxu0 %vm8420_vm0, %v8419_v1  ;;  %8063 = vmatprep.subr.mxu1 %v8419_v1 }
  0xcf   : > { %8061 = vmatmul.mubr.msk.f32.vlgmr.msra.gmra.mrb[30].mxu0 %vm557_vm1, %v7622_v10  ;;  %8064 = vmatpush3.msra.mxu1 %v3157_v9  ;;  %v7683_v9 = vld [vmem:[%s9575_s5 + $0x8] sm:$0xf] }
  0xd0   : > { %8065 = vmatprep.mubr.msk.f32.mxu1 %vm8420_vm0, %v8419_v1  ;;  %8068 = vmatprep.subr.mxu0 %v8419_v1 }
  0xd1   : > { %8066 = vmatmul.mubr.msk.f32.vlgmr.msra.gmra.mrb[30].mxu1 %vm557_vm1, %v7624_v26  ;;  %8069 = vmatpush3.msra.mxu0 %v3235_v15  ;;  %v3781_v28 = vpop.permute.xlu0 %3780  ;;  %v3859_v29 = vpop.permute.xlu1 %3858 }
  0xd2   : > { %8070 = vmatprep.mubr.msk.f32.mxu0 %vm8420_vm0, %v8419_v1  ;;  %8073 = vmatprep.subr.mxu1 %v8419_v1 }
  0xd3   : > { %8071 = vmatmul.mubr.msk.f32.vlgmr.msra.gmra.mrb[32].mxu0 %vm557_vm1, %v7626_v27  ;;  %8074 = vmatpush3.msra.mxu1 %v3313_v17  ;;  %v7689_v17 = vld [vmem:[%s9575_s5 + $0x14] sm:$0xf] }
  0xd4   : > { %8075 = vmatprep.mubr.msk.f32.mxu1 %vm8420_vm0, %v8419_v1  ;;  %8078 = vmatprep.subr.mxu0 %v8419_v1 }
  0xd5   : > { %8076 = vmatmul.mubr.msk.f32.vlgmr.msra.gmra.mrb[32].mxu1 %vm557_vm1, %v7628_v30  ;;  %8079 = vmatpush3.msra.mxu0 %v3391_v21  ;;  %v3937_v32 = vpop.permute.xlu0 %3936  ;;  %v4015_v33 = vpop.permute.xlu1 %4014  ;;  %v7693_v21 = vld [vmem:[%s9575_s5 + $0x1c] sm:$0xf] }
  0xd6   : > { %8080 = vmatprep.mubr.msk.f32.mxu0 %vm8420_vm0, %v8419_v1  ;;  %8083 = vmatprep.subr.mxu1 %v8419_v1 }
  0xd7   : > { %8081 = vmatmul.mubr.msk.f32.vlgmr.msra.gmra.mrb[34].mxu0 %vm557_vm1, %v7630_v31  ;;  %8084 = vmatpush3.msra.mxu1 %v3469_v22  ;;  %v7707_v31 = vld [vmem:[%s9575_s5 + $0x38] sm:$0xf] }
  0xd8   : > { %8085 = vmatprep.mubr.msk.f32.mxu1 %vm8420_vm0, %v8419_v1  ;;  %8088 = vmatprep.subr.mxu0 %v8419_v1 }
  0xd9   : > { %8086 = vmatmul.mubr.msk.f32.vlgmr.msra.gmra.mrb[34].mxu1 %vm557_vm1, %v7632_v34  ;;  %8089 = vmatpush3.msra.mxu0 %v8634_v12  ;;  %v4093_v36 = vpop.permute.xlu0 %4092  ;;  %v4171_v37 = vpop.permute.xlu1 %4170  ;;  %v7638_v12 = vld [vmem:[%s9575_s5 + $0x2c] sm:$0xf]  ;;  %v8429_v34 = vmov 0  }
  0xda   : > { %8090 = vmatprep.mubr.msk.f32.mxu0 %vm8420_vm0, %v8419_v1  ;;  %8093 = vmatprep.subr.mxu1 %v8419_v1 }
  0xdb   : > { %8091 = vmatmul.mubr.msk.f32.vlgmr.msra.gmra.mrb[36].mxu0 %vm557_vm1, %v7634_v35  ;;  %8094 = vmatpush3.msra.mxu1 %v3625_v24  ;;  %v7697_v24 = vld [vmem:[%s9575_s5 + $0x24] sm:$0xf]  ;;  %v7709_v35 = vld [vmem:[%s9575_s5 + $0x3c] sm:$0xf] }
  0xdc   : > { %8095 = vmatprep.mubr.msk.f32.mxu1 %vm8420_vm0, %v8419_v1  ;;  %8098 = vmatprep.subr.mxu0 %v8419_v1 }
  0xdd   : > { %8096 = vmatmul.mubr.msk.f32.vlgmr.msra.gmra.mrb[36].mxu1 %vm557_vm1, %v7636_v38  ;;  %8099 = vmatpush3.msra.mxu0 %v3703_v25  ;;  %v4327_v39 = vpop.permute.xlu0 %4326  ;;  %v4405_v40 = vpop.permute.xlu1 %4404  ;;  %v7699_v25 = vld [vmem:[%s9575_s5 + $0x28] sm:$0xf]  ;;  %v7711_v38 = vld [vmem:[%s9575_s5 + $0x40] sm:$0xf] }
  0xde   : > { %8100 = vmatprep.mubr.msk.f32.mxu0 %vm8420_vm0, %v8419_v1  ;;  %8103 = vmatprep.subr.mxu1 %v8419_v1 }
  0xdf   : > { %8101 = vmatmul.mubr.msk.f32.vlgmr.msra.gmra.mrb[38].mxu0 %vm557_vm1, %v7638_v12  ;;  %8104 = vmatpush3.msra.mxu1 %v3781_v28  ;;  %v7703_v28 = vld [vmem:[%s9575_s5 + $0x30] sm:$0xf] }
  0xe0   : > { %8105 = vmatprep.mubr.msk.f32.mxu1 %vm8420_vm0, %v8419_v1  ;;  %8108 = vmatprep.subr.mxu0 %v8419_v1 }
  0xe1   : > { %8106 = vmatmul.mubr.msk.f32.vlgmr.msra.gmra.mrb[38].mxu1 %vm557_vm1, %v7640_v41  ;;  %8109 = vmatpush3.msra.mxu0 %v3859_v29  ;;  %v4483_v43 = vpop.permute.xlu0 %4482  ;;  %v4561_v45 = vpop.permute.xlu1 %4560  ;;  %v7705_v29 = vld [vmem:[%s9575_s5 + $0x34] sm:$0xf] }
  0xe2   : > { %8110 = vmatprep.mubr.msk.f32.mxu0 %vm8420_vm0, %v8419_v1  ;;  %8113 = vmatprep.subr.mxu1 %v8419_v1 }
  0xe3   : > { %8111 = vmatmul.mubr.msk.f32.vlgmr.msra.gmra.mrb[40].mxu0 %vm557_vm1, %v7642_v42  ;;  %8114 = vmatpush3.msra.mxu1 %v3937_v32  ;;  %v7715_v42 = vld [vmem:[%s9575_s5 + $0x48] sm:$0xf] }
  0xe4   : > { %8115 = vmatprep.mubr.msk.f32.mxu1 %vm8420_vm0, %v8419_v1  ;;  %8118 = vmatprep.subr.mxu0 %v8419_v1 }
  0xe5   : > { %8116 = vmatmul.mubr.msk.f32.vlgmr.msra.gmra.mrb[40].mxu1 %vm557_vm1, %v7644_v44  ;;  %8119 = vmatpush3.msra.mxu0 %v4015_v33  ;;  %v4639_v47 = vpop.permute.xlu0 %4638  ;;  %v4717_v51 = vpop.permute.xlu1 %4716  ;;  %v2684_v33 = vld [vmem:[%s9576_s6] sm:$0xf]  ;;  %v7609_v44 = vld [vmem:[%s9577_s7 + $0x4] sm:$0xf] }
  0xe6   : > { %8120 = vmatprep.mubr.msk.f32.mxu0 %vm8420_vm0, %v8419_v1  ;;  %8123 = vmatprep.subr.mxu1 %v8419_v1 }
  0xe7   : > { %8121 = vmatmul.mubr.msk.f32.vlgmr.msra.gmra.mrb[42].mxu0 %vm557_vm1, %v7646_v46  ;;  %8124 = vmatpush3.msra.mxu1 %v4093_v36  ;;  %v4953_v36 = vld [vmem:[%s9576_s6] sm:$0xf] }
  0xe8   : > { %8125 = vmatprep.mubr.msk.f32.mxu1 %vm8420_vm0, %v8419_v1  ;;  %8128 = vmatprep.subr.mxu0 %v8419_v1 }
  0xe9   : > { %8126 = vmatmul.mubr.msk.f32.vlgmr.msra.gmra.mrb[42].mxu1 %vm557_vm1, %v7648_v49  ;;  %8129 = vmatpush3.msra.mxu0 %v4171_v37  ;;  %v4795_v53 = vpop.permute.xlu0 %4794  ;;  %v4873_v55 = vpop.permute.xlu1 %4872  ;;  %v7611_v49 = vld [vmem:[%s9577_s7 + $0xc] sm:$0xf] }
  0xea   : > { %8130 = vmatprep.mubr.msk.f32.mxu0 %vm8420_vm0, %v8419_v1  ;;  %8133 = vmatprep.subr.mxu1 %v8419_v1 }
  0xeb   : > { %8131 = vmatmul.mubr.msk.f32.vlgmr.msra.gmra.mrb[44].mxu0 %vm557_vm1, %v7650_v50  ;;  %8134 = vmatpush3.msra.mxu1 %v8656_v14  ;;  %v7656_v14 = vld [vmem:[%s9575_s5 + $0x50] sm:$0xf]  ;;  %v7723_v50 = vld [vmem:[%s9575_s5 + $0x58] sm:$0xf] }
  0xec   : > { %8135 = vmatprep.mubr.msk.f32.mxu1 %vm8420_vm0, %v8419_v1  ;;  %8138 = vmatprep.subr.mxu0 %v8419_v1 }
  0xed   : > { %8136 = vmatmul.mubr.msk.f32.vlgmr.msra.gmra.mrb[44].mxu1 %vm557_vm1, %v7652_v52  ;;  %8139 = vmatpush3.msra.mxu0 %v4327_v39  ;;  %v5110_v58 = vpop.permute.xlu0 %5109  ;;  %v5260_v61 = vpop.permute.xlu1 %5259  ;;  %v7713_v39 = vld [vmem:[%s9575_s5 + $0x44] sm:$0xf]  ;;  %v2705_v52 = vld [vmem:[%s9577_s7] sm:$0xf] }
  0xee   : > { %8140 = vmatprep.mubr.msk.f32.mxu0 %vm8420_vm0, %v8419_v1  ;;  %8143 = vmatprep.subr.mxu1 %v8419_v1 }
  0xef   : > { %8141 = vmatmul.mubr.msk.f32.vlgmr.msra.gmra.mrb[46].mxu0 %vm557_vm1, %v7654_v54  ;;  %8144 = vmatpush3.msra.mxu1 %v4405_v40  ;;  %v7213_v40 = vld [vmem:[%s9576_s6] sm:$0xf]  ;;  %v7725_v54 = vld [vmem:[%s9575_s5 + $0x5c] sm:$0xf] }
  0xf0   : > { %8145 = vmatprep.mubr.msk.f32.mxu1 %vm8420_vm0, %v8419_v1  ;;  %8148 = vmatprep.subr.mxu0 %v8419_v1  ;;  %v9065_v57 = vpop.f32.mrb[0].mxu1 }
  0xf1   : > { %8146 = vmatmul.mubr.msk.f32.vlgmr.msra.gmra.mrb[46].mxu1 %vm557_vm1, %v7656_v14  ;;  %8149 = vmatpush3.msra.mxu0 %v4483_v43  ;;  %v7917_v60 = vpop.f32.mrb[1].mxu1  ;;  %v5338_v0 = vpop.permute.xlu0 %5337  ;;  %v7717_v43 = vld [vmem:[%s9575_s5 + $0x4c] sm:$0xf]  ;;  %v7612_v14 = vld [vmem:[%s9577_s7 + $0x10] sm:$0xf] }
  0xf2   : > { %8150 = vmatprep.mubr.msk.f32.mxu0 %vm8420_vm0, %v8419_v1  ;;  %8153 = vmatprep.subr.mxu1 %v8419_v1  ;;  %v5416_v3 = vpop.permute.xlu1 %5415  ;;  %v7729_v60 = vld [vmem:[%s9575_s5 + $0x64] sm:$0xf] }
  0xf3   : > { %8151 = vmatmul.mubr.msk.f32.vlgmr.msra.gmra.mrb[48].mxu0 %vm557_vm1, %v7658_v56  ;;  %8154 = vmatpush3.msra.mxu1 %v4561_v45 }
  0xf4   : > { %8155 = vmatprep.mubr.msk.f32.mxu1 %vm8420_vm0, %v8419_v1  ;;  %8158 = vmatprep.subr.mxu0 %v8419_v1 }
  0xf5   : > { %8156 = vmatmul.mubr.msk.f32.vlgmr.msra.gmra.mrb[48].mxu1 %vm557_vm1, %v7660_v59  ;;  %8159 = vmatpush3.msra.mxu0 %v4639_v47  ;;  %v5494_v6 = vpop.permute.xlu0 %5493  ;;  %v7721_v47 = vld [vmem:[%s9575_s5 + $0x54] sm:$0xf] }
  0xf6   : > { %8160 = vmatprep.mubr.msk.f32.mxu0 %vm8420_vm0, %v8419_v1  ;;  %8163 = vmatprep.subr.mxu1 %v8419_v1  ;;  %v5572_v8 = vpop.permute.xlu1 %5571 }
  0xf7   : > { %8161 = vmatmul.mubr.msk.f32.vlgmr.msra.gmra.mrb[50].mxu0 %vm557_vm1, %v7662_v62  ;;  %8164 = vmatpush3.msra.mxu1 %v4717_v51  ;;  %v7731_v62 = vld [vmem:[%s9575_s5 + $0x68] sm:$0xf] }
  0xf8   : > { %8165 = vmatprep.mubr.msk.f32.mxu1 %vm8420_vm0, %v8419_v1  ;;  %8168 = vmatprep.subr.mxu0 %v8419_v1 }
  0xf9   : > { %8166 = vmatmul.mubr.msk.f32.vlgmr.msra.gmra.mrb[50].mxu1 %vm557_vm1, %v7664_v63  ;;  %8169 = vmatpush3.msra.mxu0 %v4795_v53  ;;  %v5650_v11 = vpop.permute.xlu0 %5649  ;;  %v7613_v63 = vld [vmem:[%s9577_s7 + $0x14] sm:$0xf] }
  0xfa   : > { %8170 = vmatprep.mubr.msk.f32.mxu0 %vm8420_vm0, %v8419_v1  ;;  %8173 = vmatprep.subr.mxu1 %v8419_v1  ;;  %v5728_v15 = vpop.permute.xlu1 %5727 }
  0xfb   : > { %8171 = vmatmul.mubr.msk.f32.vlgmr.msra.gmra.mrb[52].mxu0 %vm557_vm1, %v7666_v2  ;;  %8174 = vmatpush3.msra.mxu1 %v4873_v55  ;;  %v7727_v55 = vld [vmem:[%s9575_s5 + $0x60] sm:$0xf]  ;;  %v7614_v2 = vld [vmem:[%s9577_s7 + $0x18] sm:$0xf] }
  0xfc   : > { %8175 = vmatprep.mubr.msk.f32.mxu1 %vm8420_vm0, %v8419_v1  ;;  %8178 = vmatprep.subr.mxu0 %v8419_v1 }
  0xfd   : > { %8176 = vmatmul.mubr.msk.f32.vlgmr.msra.gmra.mrb[52].mxu1 %vm557_vm1, %v7668_v4  ;;  %8179 = vmatpush3.msra.mxu0 %v5110_v58  ;;  %v5884_v19 = vpop.permute.xlu0 %5883  ;;  %v7610_v58 = vld [vmem:[%s9577_s7 + $0x8] sm:$0xf]  ;;  %v7679_v4 = vld [vmem:[%s9577_s7 + $0x44] sm:$0xf] }
  0xfe   : > { %8180 = vmatprep.mubr.msk.f32.mxu0 %vm8420_vm0, %v8419_v1  ;;  %8183 = vmatprep.subr.mxu1 %v8419_v1  ;;  %v5962_v22 = vpop.permute.xlu1 %5961 }
  0xff   : > { %8181 = vmatmul.mubr.msk.f32.vlgmr.msra.gmra.mrb[54].mxu0 %vm557_vm1, %v7680_v5  ;;  %8184 = vmatpush3.msra.mxu1 %v8675_v16  ;;  %v7685_v16 = vld [vmem:[%s9575_s5 + $0xc] sm:$0xf]  ;;  %v7671_v5 = vld [vmem:[%s9577_s7 + $0x24] sm:$0xf] }
 0x100   : > { %8185 = vmatprep.mubr.msk.f32.mxu1 %vm8420_vm0, %v8419_v1  ;;  %8188 = vmatprep.subr.mxu0 %v8419_v1 }
 0x101   : > { %8186 = vmatmul.mubr.msk.f32.vlgmr.msra.gmra.mrb[54].mxu1 %vm557_vm1, %v5104_v7  ;;  %8189 = vmatpush3.msra.mxu0 %v5260_v61  ;;  %v7615_v61 = vld [vmem:[%s9577_s7 + $0x1c] sm:$0xf]  ;;  %v7672_v7 = vld [vmem:[%s9577_s7 + $0x28] sm:$0xf] }
 0x102   : > { %8190 = vmatprep.mubr.msk.f32.mxu0 %vm8420_vm0, %v8419_v1  ;;  %8193 = vmatprep.subr.mxu1 %v8419_v1 }
 0x103   : > { %8191 = vmatmul.mubr.msk.f32.vlgmr.msra.gmra.mrb[56].mxu0 %vm557_vm1, %v7683_v9  ;;  %8194 = vmatpush3.msra.mxu1 %v5338_v0  ;;  %v7675_v0 = vld [vmem:[%s9577_s7 + $0x34] sm:$0xf]  ;;  %v7673_v9 = vld [vmem:[%s9577_s7 + $0x2c] sm:$0xf] }
 0x104   : > { %8195 = vmatprep.mubr.msk.f32.mxu1 %vm8420_vm0, %v8419_v1  ;;  %8198 = vmatprep.subr.mxu0 %v8419_v1  ;;  %v6040_v10 = vpop.permute.xlu0 %6039 }
 0x105   : > { %8196 = vmatmul.mubr.msk.f32.vlgmr.msra.gmra.mrb[56].mxu1 %vm557_vm1, %v7685_v16  ;;  %8199 = vmatpush3.msra.mxu0 %v5416_v3  ;;  %v7677_v3 = vld [vmem:[%s9577_s7 + $0x3c] sm:$0xf]  ;;  %v7736_v16 = vld [vmem:[%s9577_s7 + $0x50] sm:$0xf] }
 0x106   : > { %8200 = vmatprep.mubr.msk.f32.mxu0 %vm8420_vm0, %v8419_v1  ;;  %8203 = vmatprep.subr.mxu1 %v8419_v1 }
 0x107   : > { %8201 = vmatmul.mubr.msk.f32.vlgmr.msra.gmra.mrb[58].mxu0 %vm557_vm1, %v7687_v13  ;;  %8204 = vmatpush3.msra.mxu1 %v5494_v6  ;;  %v6118_v26 = vpop.permute.xlu1 %6117  ;;  %v7734_v6 = vld [vmem:[%s9577_s7 + $0x48] sm:$0xf]  ;;  %v7737_v13 = vld [vmem:[%s9577_s7 + $0x54] sm:$0xf] }
 0x108   : > { %8205 = vmatprep.mubr.msk.f32.mxu1 %vm8420_vm0, %v8419_v1  ;;  %8208 = vmatprep.subr.mxu0 %v8419_v1  ;;  %v6196_v27 = vpop.permute.xlu0 %6195 }
 0x109   : > { %8206 = vmatmul.mubr.msk.f32.vlgmr.msra.gmra.mrb[58].mxu1 %vm557_vm1, %v7689_v17  ;;  %8209 = vmatpush3.msra.mxu0 %v5572_v8  ;;  %v7735_v8 = vld [vmem:[%s9577_s7 + $0x4c] sm:$0xf]  ;;  %v7678_v17 = vld [vmem:[%s9577_s7 + $0x40] sm:$0xf] }
 0x10a   : > { %8210 = vmatprep.mubr.msk.f32.mxu0 %vm8420_vm0, %v8419_v1  ;;  %8213 = vmatprep.subr.mxu1 %v8419_v1 }
 0x10b   : > { %8211 = vmatmul.mubr.msk.f32.vlgmr.msra.gmra.mrb[60].mxu0 %vm557_vm1, %v7691_v20  ;;  %8214 = vmatpush3.msra.mxu1 %v5650_v11  ;;  %v7674_v11 = vld [vmem:[%s9577_s7 + $0x30] sm:$0xf] }
 0x10c   : > { %8215 = vmatprep.mubr.msk.f32.mxu1 %vm8420_vm0, %v8419_v1  ;;  %8218 = vmatprep.subr.mxu0 %v8419_v1 }
 0x10d   : > { %8216 = vmatmul.mubr.msk.f32.vlgmr.msra.gmra.mrb[60].mxu1 %vm557_vm1, %v7693_v21  ;;  %8219 = vmatpush3.msra.mxu0 %v5728_v15  ;;  %v7676_v15 = vld [vmem:[%s9577_s7 + $0x38] sm:$0xf] }
 0x10e   : > { %8220 = vmatprep.mubr.msk.f32.mxu0 %vm8420_vm0, %v8419_v1  ;;  %8223 = vmatprep.subr.mxu1 %v8419_v1 }
 0x10f   : > { %8221 = vmatmul.mubr.msk.f32.vlgmr.msra.gmra.mrb[62].mxu0 %vm557_vm1, %v7695_v23  ;;  %8224 = vmatpush3.msra.mxu1 %v8693_v18  ;;  %v7701_v18 = vld [vmem:[%s9575_s5 + $0x2c] sm:$0xf] }
 0x110   : > { %8225 = vmatprep.mubr.msk.f32.mxu1 %vm8420_vm0, %v8419_v1  ;;  %8228 = vmatprep.subr.mxu0 %v8419_v1 }
 0x111   : > { %8226 = vmatmul.mubr.msk.f32.vlgmr.msra.gmra.mrb[62].mxu1 %vm557_vm1, %v7697_v24  ;;  %8229 = vmatpush3.msra.mxu0 %v5884_v19  ;;  %v7738_v19 = vld [vmem:[%s9577_s7 + $0x58] sm:$0xf] }
 0x112   : > { %8230 = vmatprep.mubr.msk.f32.mxu0 %vm8420_vm0, %v8419_v1  ;;  %8233 = vmatprep.subr.mxu1 %v8419_v1 }
 0x113   : > { %8231 = vmatmul.mubr.msk.f32.vlgmr.msra.gmra.mrb[64].mxu0 %vm557_vm1, %v7699_v25  ;;  %8234 = vmatpush3.msra.mxu1 %v5962_v22 }
 0x114   : > { %8235 = vmatprep.mubr.msk.f32.mxu1 %vm8420_vm0, %v8419_v1  ;;  %8238 = vmatprep.subr.mxu0 %v8419_v1  ;;  %v6274_v30 = vpop.permute.xlu1 %6273 }
 0x115   : > { %8236 = vmatmul.mubr.msk.f32.vlgmr.msra.gmra.mrb[64].mxu1 %vm557_vm1, %v7701_v18  ;;  %8239 = vmatpush3.msra.mxu0 %v6040_v10 }
 0x116   : > { %8240 = vmatprep.mubr.msk.f32.mxu0 %vm8420_vm0, %v8419_v1  ;;  %8243 = vmatprep.subr.mxu1 %v8419_v1 }
 0x117   : > { %8241 = vmatmul.mubr.msk.f32.vlgmr.msra.gmra.mrb[66].mxu0 %vm557_vm1, %v7703_v28  ;;  %8244 = vmatpush3.msra.mxu1 %v6118_v26  ;;  %v6352_v32 = vpop.permute.xlu0 %6351 }
 0x118   : > { %8245 = vmatprep.mubr.msk.f32.mxu1 %vm8420_vm0, %v8419_v1  ;;  %8248 = vmatprep.subr.mxu0 %v8419_v1 }
 0x119   : > { %8246 = vmatmul.mubr.msk.f32.vlgmr.msra.gmra.mrb[66].mxu1 %vm557_vm1, %v7705_v29  ;;  %8249 = vmatpush3.msra.mxu0 %v6196_v27 }
 0x11a   : > { %8250 = vmatprep.mubr.msk.f32.mxu0 %vm8420_vm0, %v8419_v1  ;;  %8253 = vmatprep.subr.mxu1 %v8419_v1  ;;  %v6430_v37 = vpop.permute.xlu1 %6429 }
 0x11b   : > { %8251 = vmatmul.mubr.msk.f32.vlgmr.msra.gmra.mrb[68].mxu0 %vm557_vm1, %v7707_v31  ;;  %8370 = vset.pattern.permute.xlu0 %v8429_v34 }
 0x11c   : > { %8254 = vmatpush3.msra.mxu1 %v6274_v30  ;;  %8255 = vmatprep.mubr.msk.f32.mxu1 %vm8420_vm0, %v8419_v1 }
 0x11d   : > { %8371 = vset.pattern.permute.xlu1 %v8429_v34  ;;  %2687 = vperm.xlu0 %8370, %v2684_v33  }
 0x11e   : > { %8258 = vmatprep.subr.mxu0 %v8419_v1  ;;  %8256 = vmatmul.mubr.msk.f32.vlgmr.msra.gmra.mrb[68].mxu1 %vm557_vm1, %v7709_v35  ;;  %v6586_v12 = vpop.permute.xlu0 %6585 }
 0x11f   : > { %4956 = vperm.xlu1 %8371, %v4953_v36   ;;  %8259 = vmatpush3.msra.mxu0 %v6352_v32 }
 0x120   : > { %8260 = vmatprep.mubr.msk.f32.mxu0 %vm8420_vm0, %v8419_v1  ;;  %8263 = vmatprep.subr.mxu1 %v8419_v1 }
 0x121   : > { %8261 = vmatmul.mubr.msk.f32.vlgmr.msra.gmra.mrb[70].mxu0 %vm557_vm1, %v7711_v38  ;;  %8264 = vmatpush3.msra.mxu1 %v6430_v37  ;;  %v6664_v41 = vpop.permute.xlu1 %6663 }
 0x122   : > { %8265 = vmatprep.mubr.msk.f32.mxu1 %vm8420_vm0, %v8419_v1  ;;  %8268 = vmatprep.subr.mxu0 %v8419_v1 }
 0x123   : > { %8266 = vmatmul.mubr.msk.f32.vlgmr.msra.gmra.mrb[70].mxu1 %vm557_vm1, %v7713_v39  ;;  %7216 = vperm.xlu1 %8371, %v7213_v40   ;;  %v6742_v45 = vpop.permute.xlu0 %6741 }
 0x124   : > { %8269 = vmatpush3.msra.mxu0 %v8805_v48  ;;  %8270 = vmatprep.mubr.msk.f32.mxu0 %vm8420_vm0, %v8419_v1  ;;  %v7719_v48 = vld [vmem:[%s9575_s5 + $0x50] sm:$0xf] }
 0x125   : > { %8271 = vmatmul.mubr.msk.f32.vlgmr.msra.gmra.mrb[72].mxu0 %vm557_vm1, %v7715_v42  ;;  %8273 = vmatprep.subr.mxu1 %v8419_v1 }
 0x126   : > { %8274 = vmatpush3.msra.mxu1 %v6586_v12  ;;  %8275 = vmatprep.mubr.msk.f32.mxu1 %vm8420_vm0, %v8419_v1  ;;  %v6820_v46 = vpop.permute.xlu1 %6819 }
 0x127   : > { %8276 = vmatmul.mubr.msk.f32.vlgmr.msra.gmra.mrb[72].mxu1 %vm557_vm1, %v7717_v43  ;;  %8278 = vmatprep.subr.mxu0 %v8419_v1 }
 0x128   : > { %2728 = vperm.xlu1 %8371, %v7609_v44   ;;  %8279 = vmatpush3.msra.mxu0 %v6664_v41  ;;  %v6898_v51 = vpop.permute.xlu0 %6897 }
 0x129   : > { %8280 = vmatprep.mubr.msk.f32.mxu0 %vm8420_vm0, %v8419_v1  ;;  %8283 = vmatprep.subr.mxu1 %v8419_v1 }
 0x12a   : > { %8281 = vmatmul.mubr.msk.f32.vlgmr.msra.gmra.mrb[74].mxu0 %vm557_vm1, %v7719_v48  ;;  %8284 = vmatpush3.msra.mxu1 %v6742_v45 }
 0x12b   : > { %8285 = vmatprep.mubr.msk.f32.mxu1 %vm8420_vm0, %v8419_v1  ;;  %8288 = vmatprep.subr.mxu0 %v8419_v1  ;;  %v6976_v53 = vpop.permute.xlu1 %6975 }
 0x12c   : > { %8286 = vmatmul.mubr.msk.f32.vlgmr.msra.gmra.mrb[74].mxu1 %vm557_vm1, %v7721_v47  ;;  %2766 = vperm.xlu1 %8371, %v7611_v49  }
 0x12d   : > { %8289 = vmatpush3.msra.mxu0 %v6820_v46  ;;  %8290 = vmatprep.mubr.msk.f32.mxu0 %vm8420_vm0, %v8419_v1  ;;  %v7054_v56 = vpop.permute.xlu0 %7053 }
 0x12e   : > { %8291 = vmatmul.mubr.msk.f32.vlgmr.msra.gmra.mrb[76].mxu0 %vm557_vm1, %v7723_v50  ;;  %8293 = vmatprep.subr.mxu1 %v8419_v1 }
 0x12f   : > { %2709 = vperm.xlu0 %8370, %v2705_v52   ;;  %8294 = vmatpush3.msra.mxu1 %v6898_v51 }
 0x130   : > { %8295 = vmatprep.mubr.msk.f32.mxu1 %vm8420_vm0, %v8419_v1  ;;  %8298 = vmatprep.subr.mxu0 %v8419_v1  ;;  %v7132_v59 = vpop.permute.xlu1 %7131 }
 0x131   : > { %8296 = vmatmul.mubr.msk.f32.vlgmr.msra.gmra.mrb[76].mxu1 %vm557_vm1, %v7725_v54  ;;  %2785 = vperm.xlu1 %8371, %v7612_v14  }
 0x132   : > { %8299 = vmatpush3.msra.mxu0 %v6976_v53  ;;  %8300 = vmatprep.mubr.msk.f32.mxu0 %vm8420_vm0, %v8419_v1 }
 0x133   : > { %8301 = vmatmul.mubr.msk.f32.vlgmr.msra.gmra.mrb[78].mxu0 %vm557_vm1, %v7727_v55  ;;  %8303 = vmatprep.subr.mxu1 %v8419_v1 }
 0x134   : > { %2747 = vperm.xlu0 %8370, %v7610_v58   ;;  %8304 = vmatpush3.msra.mxu1 %v7054_v56 }
 0x135   : > { %8305 = vmatprep.mubr.msk.f32.mxu1 %vm8420_vm0, %v8419_v1  ;;  %8308 = vmatprep.subr.mxu0 %v8419_v1 }
 0x136   : > { %8306 = vmatmul.mubr.msk.f32.vlgmr.msra.gmra.mrb[78].mxu1 %vm557_vm1, %v7729_v60  ;;  %8309 = vmatpush3.msra.mxu0 %v7132_v59 }
 0x137   : > { %8310 = vmatprep.mubr.msk.f32.mxu0 %vm8420_vm0, %v8419_v1  ;;  %2822 = vperm.xlu1 %8371, %v7615_v61   ;;  %v7616_v1 = vld [vmem:[%s9577_s7 + $0x20] sm:$0xf] }
 0x138   : > { %8311 = vmatmul.mubr.msk.f32.vlgmr.msra.gmra.mrb[80].mxu0 %vm557_vm1, %v7731_v62  ;;  %2794 = vperm.xlu0 %8370, %v7613_v63  }
 0x13b   : > { %5044 = vperm.xlu1 %8371, %v7675_v0  }
 0x13c   : > { %2808 = vperm.xlu0 %8370, %v7614_v2  }
 0x13f   : > { %5067 = vperm.xlu1 %8371, %v7677_v3  }
 0x140   : > { %2836 = vperm.xlu0 %8370, %v7616_v1  }
 0x143   : > { %5095 = vperm.xlu1 %8371, %v7679_v4  }
 0x144   : > { %4972 = vperm.xlu0 %8370, %v7671_v5  }
 0x147   : > { %7232 = vperm.xlu1 %8371, %v7734_v6  }
 0x148   : > { %4990 = vperm.xlu0 %8370, %v7672_v7  }
 0x14b   : > { %7250 = vperm.xlu1 %8371, %v7735_v8  }
 0x14c   : > { %5008 = vperm.xlu0 %8370, %v7673_v9  }
 0x14f   : > { %7268 = vperm.xlu1 %8371, %v7736_v16  }
 0x150   : > { %5026 = vperm.xlu0 %8370, %v7674_v11  }
 0x153   : > { %7286 = vperm.xlu1 %8371, %v7737_v13  }
 0x154   : > { %5053 = vperm.xlu0 %8370, %v7676_v15  }
 0x158   : > { %5081 = vperm.xlu0 %8370, %v7678_v17  }
 0x15c   : > { %7304 = vperm.xlu0 %8370, %v7738_v19  }
 0x162   : > { %v627_v20 = vpop.f32.mrb[0].mxu0 }
 0x163   : > { %v701_v21 = vadd.f32 %v9065_v57, %v627_v20  ;;  %v7912_v22 = vpop.f32.mrb[1].mxu0  ;;  %v857_v23 = vpop.f32.mrb[2].mxu1 }
 0x164   : > { %v7927_v10 = vpop.f32.mrb[3].mxu1 }
 0x166   : > { %v778_v24 = vpop.f32.mrb[2].mxu0 }
 0x167   : > { %v782_v25 = vadd.f32 %v778_v24, %v701_v21  ;;  %v7922_v26 = vpop.f32.mrb[3].mxu0 }
 0x169   : > { %v861_v18 = vadd.f32 %v857_v23, %v782_v25 }
 0x16a   : > { %v936_v27 = vpop.f32.mrb[4].mxu0  ;;  %v1015_v28 = vpop.f32.mrb[4].mxu1 }
 0x16b   : > { %v940_v29 = vadd.f32 %v936_v27, %v861_v18  ;;  %v7932_v30 = vpop.f32.mrb[5].mxu0  ;;  %v7937_v31 = vpop.f32.mrb[5].mxu1 }
 0x16d   : > { %v1019_v32 = vadd.f32 %v1015_v28, %v940_v29 }
 0x16e   : > { %v1094_v33 = vpop.f32.mrb[6].mxu0  ;;  %v1173_v34 = vpop.f32.mrb[6].mxu1 }
 0x16f   : > { %v1098_v35 = vadd.f32 %v1094_v33, %v1019_v32  ;;  %v7942_v36 = vpop.f32.mrb[7].mxu0  ;;  %v7947_v37 = vpop.f32.mrb[7].mxu1 }
 0x170   : > { %v9388_v36 = vld [vmem:[%s9579_s9] ss:$0 sm:$0xff] }
 0x171   : > { %v1177_v38 = vadd.f32 %v1173_v34, %v1098_v35 }
 0x172   : > { %v1252_v57 = vpop.f32.mrb[8].mxu0  ;;  %v1330_v12 = vpop.f32.mrb[8].mxu1 }
 0x173   : > { %v1256_v39 = vadd.f32 %v1252_v57, %v1177_v38  ;;  %v7952_v40 = vpop.f32.mrb[9].mxu0  ;;  %v7957_v41 = vpop.f32.mrb[9].mxu1 }
 0x175   : > { %v1334_v42 = vadd.f32 %v1330_v12, %v1256_v39  ;;  %v2701_v39 = vstv %s2700_s13 }
 0x176   : > { %v1410_v43 = vpop.f32.mrb[10].mxu0 }
 0x177   : > { %v1414_v44 = vadd.f32 %v1410_v43, %v1334_v42  ;;  %v1489_v45 = vpop.f32.mrb[10].mxu1  ;;  %v7962_v48 = vpop.f32.mrb[11].mxu0 }
 0x178   : > { %v7967_v46 = vpop.f32.mrb[11].mxu1 }
 0x179   : > { %v1493_v47 = vadd.f32 %v1489_v45, %v1414_v44 }
 0x17a   : > { %v1568_v49 = vpop.f32.mrb[12].mxu0 }
 0x17b   : > { %v1572_v50 = vadd.f32 %v1568_v49, %v1493_v47  ;;  %v7972_v51 = vpop.f32.mrb[13].mxu0 }
 0x17c   : > { %v1647_v52 = vpop.f32.mrb[12].mxu1 }
 0x17d   : > { %v1651_v53 = vadd.f32 %v1647_v52, %v1572_v50  ;;  %v7977_v54 = vpop.f32.mrb[13].mxu1 }
 0x17e   : > { %v1726_v14 = vpop.f32.mrb[14].mxu0 }
 0x17f   : > { %v1730_v55 = vadd.f32 %v1726_v14, %v1651_v53  ;;  %v7982_v56 = vpop.f32.mrb[15].mxu0 }
 0x180   : > { %v1805_v58 = vpop.f32.mrb[14].mxu1 }
 0x181   : > { %v1809_v59 = vadd.f32 %v1805_v58, %v1730_v55  ;;  %v7987_v60 = vpop.f32.mrb[15].mxu1 }
 0x182   : > { %v1884_v61 = vpop.f32.mrb[16].mxu0 }
 0x183   : > { %v1888_v62 = vadd.f32 %v1884_v61, %v1809_v59  ;;  %v7992_v63 = vpop.f32.mrb[17].mxu0 }
 0x185   : > { %v1963_v0 = vpop.f32.mrb[16].mxu1 }
 0x186   : > { %v1967_v2 = vadd.f32 %v1963_v0, %v1888_v62  ;;  %v7997_v3 = vpop.f32.mrb[17].mxu1 }
 0x187   : > { %v2041_v1 = vpop.f32.mrb[18].mxu0 }
 0x188   : > { %v2045_v4 = vadd.f32 %v2041_v1, %v1967_v2  ;;  %v8002_v5 = vpop.f32.mrb[19].mxu0 }
 0x18a   : > { %v2121_v6 = vpop.f32.mrb[18].mxu1 }
 0x18b   : > { %v2125_v7 = vadd.f32 %v2121_v6, %v2045_v4  ;;  %v8007_v8 = vpop.f32.mrb[19].mxu1 }
 0x18c   : > { %v2200_v9 = vpop.f32.mrb[20].mxu0 }
 0x18d   : > { %v2204_v16 = vadd.f32 %v2200_v9, %v2125_v7  ;;  %v8012_v11 = vpop.f32.mrb[21].mxu0 }
 0x18f   : > { %v2279_v13 = vpop.f32.mrb[20].mxu1 }
 0x190   : > { %v2283_v15 = vadd.f32 %v2279_v13, %v2204_v16  ;;  %v8017_v17 = vpop.f32.mrb[21].mxu1 }
 0x191   : > { %v2358_v19 = vpop.f32.mrb[22].mxu0 }
 0x192   : > { %v2362_v20 = vadd.f32 %v2358_v19, %v2283_v15  ;;  %v8022_v21 = vpop.f32.mrb[23].mxu0 }
 0x194   : > { %v2437_v22 = vpop.f32.mrb[22].mxu1 }
 0x195   : > { %v2441_v23 = vadd.f32 %v2437_v22, %v2362_v20  ;;  %v8027_v10 = vpop.f32.mrb[23].mxu1 }
 0x196   : > { %v2516_v24 = vpop.f32.mrb[24].mxu0 }
 0x197   : > { %v2520_v25 = vadd.f32 %v2516_v24, %v2441_v23  ;;  %v8032_v26 = vpop.f32.mrb[25].mxu0 }
 0x198   : > { %v2595_v18 = vpop.f32.mrb[24].mxu1 }
 0x199   : > { %v2599_v27 = vadd.f32 %v2595_v18, %v2520_v25  ;;  %v8037_v28 = vpop.f32.mrb[25].mxu1 }
 0x19a   : > { %v2674_v29 = vpop.f32.mrb[26].mxu0 }
 0x19b   : > { %v2678_v30 = vadd.f32 %v2674_v29, %v2599_v27  ;;  %v8042_v31 = vpop.f32.mrb[27].mxu0 }
 0x19c   : > { %v2688_v32 = vpop.permute.xlu0 %2687  ;;  %v2922_v33 = vpop.f32.mrb[26].mxu1 }
 0x19d   : > { %v2690_v34 = vadd.f32 %v2688_v32, %v2678_v30  ;;  %v8047_v35 = vpop.f32.mrb[27].mxu1 }
 0x19e   : > { %v2995_v37 = vpop.f32.mrb[28].mxu0 }
 0x19f   : > { %v2691_v38 = vmax.f32 %v2690_v34, 0.0  ;;  %v2996_v57 = vadd.f32 %v2995_v37, %v2922_v33  ;;  %v8052_v12 = vpop.f32.mrb[29].mxu0  ;;  %v4957_v33 = vpop.permute.xlu1 %4956 }
 0x1a0   : > { %v3072_v40 = vpop.f32.mrb[28].mxu1 }
 0x1a1   : > { %v2698_v41 = vmul.f32 %v9388_v36, %v2691_v38  ;;  %v3076_v42 = vadd.f32 %v3072_v40, %v2996_v57  ;;  %v8057_v43 = vpop.f32.mrb[29].mxu1 }
 0x1a2   : > { %v3150_v44 = vpop.f32.mrb[30].mxu0 }
 0x1a3   : > { %v2702_v45 = vmul.f32 %v2701_v39, %v2698_v41  ;;  %v3154_v48 = vadd.f32 %v3150_v44, %v3076_v42  ;;  %v8062_v46 = vpop.f32.mrb[31].mxu0  ;;  %v9406_v43 = vpop.permute.xlu1 %7216 }
 0x1a4   : > { %v3228_v47 = vpop.f32.mrb[30].mxu1 }
 0x1a5   : > { %2704 = vst.msk [vmem:[#allocation2 + $0x4] sm:$0xf] %vm2703_vm5, %v2702_v45  ;;  %v3232_v49 = vadd.f32 %v3228_v47, %v3154_v48  ;;  %v8067_v50 = vpop.f32.mrb[31].mxu1 }
 0x1a6   : > { %v3306_v51 = vpop.f32.mrb[32].mxu0 }
 0x1a7   : > { %v3310_v52 = vadd.f32 %v3306_v51, %v3232_v49  ;;  %v8072_v53 = vpop.f32.mrb[33].mxu0 }
 0x1a8   : > { %v3384_v54 = vpop.f32.mrb[32].mxu1  ;;  %v9415_v53 = vpop.permute.xlu1 %2728 }
 0x1a9   : > { %v3388_v14 = vadd.f32 %v3384_v54, %v3310_v52  ;;  %v8077_v55 = vpop.f32.mrb[33].mxu1 }
 0x1aa   : > { %v3462_v56 = vpop.f32.mrb[34].mxu0 }
 0x1ab   : > { %v3466_v58 = vadd.f32 %v3462_v56, %v3388_v14  ;;  %v8082_v59 = vpop.f32.mrb[35].mxu0 }
 0x1ac   : > { %v3540_v60 = vpop.f32.mrb[34].mxu1  ;;  %v2725_v61 = vld [vmem:[#allocation2] sm:$0xff] }
 0x1ad   : > { %v3544_v62 = vadd.f32 %v3540_v60, %v3466_v58  ;;  %2733 = vrot.lane.b32.xlu0 %v2725_v61, %s8430_s23  ;;  %2714 = vrot.lane.b32.xlu1 %v2725_v61, %s8431_s14  ;;  %v8087_v63 = vpop.f32.mrb[35].mxu1  ;;  %v2713_v9 = vcombine.high %v2725_v61, %v2725_v61  ;;  %v9396_v16 = vld [vmem:[#allocation2 + $0x4] sm:$0xf] }
 0x1ae   : > { %v3617_v0 = vpop.f32.mrb[36].mxu0  ;;  %v2805_v22 = vld [vmem:[#allocation2 + $0x4] sm:$0xf]  ;;  %v9419_v63 = vpop.permute.xlu1 %2766 }
 0x1af   : > { %v3621_v2 = vadd.f32 %v3617_v0, %v3544_v62  ;;  %v8092_v3 = vpop.f32.mrb[37].mxu0  ;;  %v2819_v27 = vld [vmem:[#allocation2 + $0x4] sm:$0xf] }
 0x1b0   : > { %v3696_v1 = vpop.f32.mrb[36].mxu1  ;;  %v2833_v35 = vld [vmem:[#allocation2 + $0x4] sm:$0xf] }
 0x1b1   : > { %v3700_v4 = vadd.f32 %v3696_v1, %v3621_v2  ;;  %2771 = vrot.lane.b32.xlu0 %v2725_v61, %s8432_s0  ;;  %2752 = vrot.lane.b32.xlu1 %v2725_v61, %s8433_s22  ;;  %v8097_v5 = vpop.f32.mrb[37].mxu1 }
 0x1b2   : > { %v3774_v6 = vpop.f32.mrb[38].mxu0 }
 0x1b3   : > { %v3778_v7 = vadd.f32 %v3774_v6, %v3700_v4  ;;  %v8102_v8 = vpop.f32.mrb[39].mxu0 }
 0x1b4   : > { %v3852_v11 = vpop.f32.mrb[38].mxu1 }
 0x1b5   : > { %v3856_v13 = vadd.f32 %v3852_v11, %v3778_v7  ;;  %2798 = vrot.lane.b32.xlu1 %v9396_v16, %s9603_s24  ;;  %2716 = vrot.lane.b32.xlu0 %v2713_v9, %s8431_s14  ;;  %v8107_v15 = vpop.f32.mrb[39].mxu1  ;;  %v4964_v7 = vstv %s4963_s1 }
 0x1b6   : > { %v3930_v17 = vpop.f32.mrb[40].mxu0  ;;  %v9422_v15 = vpop.permute.xlu1 %2785 }
 0x1b7   : > { %v3934_v19 = vadd.f32 %v3930_v17, %v3856_v13  ;;  %v8112_v20 = vpop.f32.mrb[41].mxu0 }
 0x1b8   : > { %v4008_v21 = vpop.f32.mrb[40].mxu1 }
 0x1b9   : > { %v4012_v23 = vadd.f32 %v4008_v21, %v3934_v19  ;;  %2812 = vrot.lane.b32.xlu1 %v2805_v22, %s8434_s26  ;;  %2754 = vrot.lane.b32.xlu0 %v2713_v9, %s8433_s22  ;;  %v8117_v10 = vpop.f32.mrb[41].mxu1 }
 0x1ba   : > { %v4086_v24 = vpop.f32.mrb[42].mxu0 }
 0x1bb   : > { %v4090_v25 = vadd.f32 %v4086_v24, %v4012_v23  ;;  %v8122_v26 = vpop.f32.mrb[43].mxu0  ;;  %v9424_v23 = vpop.permute.xlu0 %2709 }
 0x1bc   : > { %v4164_v18 = vpop.f32.mrb[42].mxu1 }
 0x1bd   : > { %v4168_v28 = vadd.f32 %v4164_v18, %v4090_v25  ;;  %2826 = vrot.lane.b32.xlu1 %v2819_v27, %s8422_s12  ;;  %v8127_v29 = vpop.f32.mrb[43].mxu1  ;;  %v9427_v25 = vpop.permute.xlu1 %2822 }
 0x1be   : > { %v4242_v30 = vpop.f32.mrb[44].mxu0 }
 0x1bf   : > { %v4246_v31 = vadd.f32 %v4242_v30, %v4168_v28  ;;  %v8132_v32 = vpop.f32.mrb[45].mxu0 }
 0x1c0   : > { %v4319_v34 = vpop.f32.mrb[44].mxu1  ;;  %v9429_v32 = vpop.permute.xlu0 %2747 }
 0x1c1   : > { %v4323_v37 = vadd.f32 %v4319_v34, %v4246_v31  ;;  %2840 = vrot.lane.b32.xlu1 %v2833_v35, %s9598_s27  ;;  %v8137_v38 = vpop.f32.mrb[45].mxu1  ;;  %v5045_v35 = vpop.permute.xlu1 %5044 }
 0x1c2   : > { %v4398_v57 = vpop.f32.mrb[46].mxu0 }
 0x1c3   : > { %v4402_v12 = vadd.f32 %v4398_v57, %v4323_v37  ;;  %v8142_v39 = vpop.f32.mrb[47].mxu0 }
 0x1c4   : > { %v4476_v40 = vpop.f32.mrb[46].mxu1 }
 0x1c5   : > { %v4480_v41 = vadd.f32 %v4476_v40, %v4402_v12  ;;  %2735 = vrot.lane.b32.xlu1 %v2713_v9, %s8430_s23  ;;  %v8147_v42 = vpop.f32.mrb[47].mxu1 }
 0x1c6   : > { %v4554_v44 = vpop.f32.mrb[48].mxu0 }
 0x1c7   : > { %v4558_v45 = vadd.f32 %v4554_v44, %v4480_v41  ;;  %v8152_v48 = vpop.f32.mrb[49].mxu0 }
 0x1c8   : > { %v4632_v46 = vpop.f32.mrb[48].mxu1  ;;  %v9435_v48 = vpop.permute.xlu0 %2794 }
 0x1c9   : > { %v4636_v47 = vadd.f32 %v4632_v46, %v4558_v45  ;;  %2773 = vrot.lane.b32.xlu1 %v2713_v9, %s8432_s0  ;;  %v8157_v49 = vpop.f32.mrb[49].mxu1 }
 0x1ca   : > { %v4710_v50 = vpop.f32.mrb[50].mxu0 }
 0x1cb   : > { %v4714_v51 = vadd.f32 %v4710_v50, %v4636_v47  ;;  %v8162_v52 = vpop.f32.mrb[51].mxu0 }
 0x1cc   : > { %v4788_v54 = vpop.f32.mrb[50].mxu1 }
 0x1cd   : > { %v4792_v14 = vadd.f32 %v4788_v54, %v4714_v51  ;;  %v8167_v55 = vpop.f32.mrb[51].mxu1 }
 0x1ce   : > { %v4866_v56 = vpop.f32.mrb[52].mxu0 }
 0x1cf   : > { %v4870_v58 = vadd.f32 %v4866_v56, %v4792_v14  ;;  %v8172_v59 = vpop.f32.mrb[53].mxu0 }
 0x1d0   : > { %v4944_v60 = vpop.f32.mrb[52].mxu1 }
 0x1d1   : > { %v4948_v61 = vadd.f32 %v4944_v60, %v4870_v58  ;;  %v8177_v62 = vpop.f32.mrb[53].mxu1  ;;  %v9441_v58 = vpop.permute.xlu0 %2808 }
 0x1d2   : > { %v5181_v0 = vpop.f32.mrb[54].mxu0 }
 0x1d3   : > { %v4959_v2 = vadd.f32 %v4957_v33, %v4948_v61  ;;  %v8182_v3 = vpop.f32.mrb[55].mxu0 }
 0x1d4   : > { %v5254_v1 = vpop.f32.mrb[54].mxu1  ;;  %v7739_v3 = vld [vmem:[%s9577_s7 + $0x5c] sm:$0xf] }
 0x1d5   : > { %v4960_v4 = vmax.f32 %v4959_v2, 0.0  ;;  %v5255_v5 = vadd.f32 %v5254_v1, %v5181_v0  ;;  %v8187_v6 = vpop.f32.mrb[55].mxu1 }
 0x1d6   : > { %v5331_v8 = vpop.f32.mrb[56].mxu0 }
 0x1d7   : > { %v4961_v9 = vmul.f32 %v9388_v36, %v4960_v4  ;;  %v5335_v11 = vadd.f32 %v5331_v8, %v5255_v5  ;;  %v8192_v13 = vpop.f32.mrb[57].mxu0 }
 0x1d8   : > { %v5409_v17 = vpop.f32.mrb[56].mxu1 }
 0x1d9   : > { %v4965_v19 = vmul.f32 %v4964_v7, %v4961_v9  ;;  %v5413_v20 = vadd.f32 %v5409_v17, %v5335_v11  ;;  %v8197_v21 = vpop.f32.mrb[57].mxu1  ;;  %v9448_v7 = vpop.permute.xlu0 %2836 }
 0x1da   : > { %v5487_v22 = vpop.f32.mrb[58].mxu0 }
 0x1db   : > { %4966 = vst.msk [vmem:[#allocation2 + $0x4] sm:$0xf] %vm2703_vm5, %v4965_v19  ;;  %v5491_v10 = vadd.f32 %v5487_v22, %v5413_v20  ;;  %v8202_v24 = vpop.f32.mrb[59].mxu0 }
 0x1dc   : > { %v5565_v26 = vpop.f32.mrb[58].mxu1 }
 0x1dd   : > { %v5569_v18 = vadd.f32 %v5565_v26, %v5491_v10  ;;  %v8207_v27 = vpop.f32.mrb[59].mxu1  ;;  %v9452_v22 = vpop.permute.xlu0 %4972 }
 0x1de   : > { %v5643_v28 = vpop.f32.mrb[60].mxu0 }
 0x1df   : > { %v5647_v29 = vadd.f32 %v5643_v28, %v5569_v18  ;;  %v8212_v30 = vpop.f32.mrb[61].mxu0  ;;  %v7740_v28 = vld [vmem:[%s9577_s7 + $0x60] sm:$0xf] }
 0x1e0   : > { %v5721_v31 = vpop.f32.mrb[60].mxu1 }
 0x1e1   : > { %v5725_v33 = vadd.f32 %v5721_v31, %v5647_v29  ;;  %v8217_v34 = vpop.f32.mrb[61].mxu1 }
 0x1e2   : > { %v5799_v37 = vpop.f32.mrb[62].mxu0  ;;  %v4987_v38 = vld [vmem:[#allocation2] sm:$0xff] }
 0x1e3   : > { %v5041_v57 = vld [vmem:[#allocation2 + $0x4] sm:$0xf]  ;;  %v5803_v12 = vadd.f32 %v5799_v37, %v5725_v33  ;;  %4995 = vrot.lane.b32.xlu1 %v4987_v38, %s8430_s23  ;;  %4977 = vrot.lane.b32.xlu0 %v4987_v38, %s8431_s14  ;;  %v8222_v39 = vpop.f32.mrb[63].mxu0  ;;  %v4994_v50 = vcombine.high %v4987_v38, %v4987_v38  ;;  %v9458_v33 = vpop.permute.xlu0 %4990 }
 0x1e4   : > { %v9433_v40 = vmul.f32 %v5045_v35, %v5041_v57  ;;  %v5876_v41 = vpop.f32.mrb[62].mxu1  ;;  %v5064_v62 = vld [vmem:[#allocation2 + $0x4] sm:$0xf] }
 0x1e5   : > { %v5880_v42 = vadd.f32 %v5876_v41, %v5803_v12  ;;  %v8227_v44 = vpop.f32.mrb[63].mxu1  ;;  %v5078_v5 = vld [vmem:[#allocation2 + $0x4] sm:$0xf] }
 0x1e6   : > { %v5955_v45 = vpop.f32.mrb[64].mxu0  ;;  %v5092_v17 = vld [vmem:[#allocation2 + $0x4] sm:$0xf] }
 0x1e7   : > { %v5959_v46 = vadd.f32 %v5955_v45, %v5880_v42  ;;  %5031 = vrot.lane.b32.xlu1 %v4987_v38, %s8432_s0  ;;  %5013 = vrot.lane.b32.xlu0 %v4987_v38, %s8433_s22  ;;  %v8232_v47 = vpop.f32.mrb[65].mxu0  ;;  %v9460_v38 = vpop.permute.xlu1 %5067 }
 0x1e8   : > { %v6033_v49 = vpop.f32.mrb[64].mxu1  ;;  %v9465_v42 = vpop.permute.xlu0 %5008 }
 0x1e9   : > { %v6037_v51 = vadd.f32 %v6033_v49, %v5959_v46  ;;  %v8237_v52 = vpop.f32.mrb[65].mxu1 }
 0x1ea   : > { %v6111_v54 = vpop.f32.mrb[66].mxu0 }
 0x1eb   : > { %v6115_v14 = vadd.f32 %v6111_v54, %v6037_v51  ;;  %5057 = vrot.lane.b32.xlu0 %v5041_v57, %s9603_s24  ;;  %4979 = vrot.lane.b32.xlu1 %v4994_v50, %s8431_s14  ;;  %v8242_v55 = vpop.f32.mrb[67].mxu0  ;;  %v9471_v47 = vpop.permute.xlu1 %5095 }
 0x1ec   : > { %v6189_v56 = vpop.f32.mrb[66].mxu1 }
 0x1ed   : > { %v6193_v59 = vadd.f32 %v6189_v56, %v6115_v14  ;;  %v8247_v60 = vpop.f32.mrb[67].mxu1  ;;  %v9475_v14 = vpop.permute.xlu0 %5026 }
 0x1ee   : > { %v6267_v61 = vpop.f32.mrb[68].mxu0 }
 0x1ef   : > { %v6271_v0 = vadd.f32 %v6267_v61, %v6193_v59  ;;  %5071 = vrot.lane.b32.xlu0 %v5064_v62, %s8434_s26  ;;  %5015 = vrot.lane.b32.xlu1 %v4994_v50, %s8433_s22  ;;  %v8252_v2 = vpop.f32.mrb[69].mxu0  ;;  %v9477_v60 = vpop.permute.xlu1 %7232 }
 0x1f0   : > { %v7224_v2 = vstv %s7223_s30 }
 0x1f1   : > { %v6345_v1 = vpop.f32.mrb[68].mxu1 }
 0x1f2   : > { %v6349_v4 = vadd.f32 %v6345_v1, %v6271_v0  ;;  %v8257_v6 = vpop.f32.mrb[69].mxu1  ;;  %v9480_v0 = vpop.permute.xlu0 %5053 }
 0x1f3   : > { %5085 = vrot.lane.b32.xlu0 %v5078_v5, %s8422_s12  ;;  %7313 = vperm.xlu1 %8371, %v7739_v3   ;;  %v9483_v1 = vpop.permute.xlu1 %7250 }
 0x1f4   : > { %v6423_v8 = vpop.f32.mrb[70].mxu0 }
 0x1f5   : > { %v6427_v9 = vadd.f32 %v6423_v8, %v6349_v4  ;;  %v8262_v11 = vpop.f32.mrb[71].mxu0 }
 0x1f6   : > { %v6501_v13 = vpop.f32.mrb[70].mxu1  ;;  %v9486_v5 = vpop.permute.xlu0 %5081 }
 0x1f7   : > { %v6505_v19 = vadd.f32 %v6501_v13, %v6427_v9  ;;  %5099 = vrot.lane.b32.xlu0 %v5092_v17, %s9598_s27  ;;  %v8267_v20 = vpop.f32.mrb[71].mxu1  ;;  %v9488_v6 = vpop.permute.xlu1 %7268 }
 0x1f8   : > { %v6578_v21 = vpop.f32.mrb[72].mxu0  ;;  %v7741_v20 = vld [vmem:[%s9577_s7 + $0x64] sm:$0xf] }
 0x1f9   : > { %v6582_v10 = vadd.f32 %v6578_v21, %v6505_v19  ;;  %v8272_v24 = vpop.f32.mrb[73].mxu0  ;;  %v7742_v21 = vld [vmem:[%s9577_s7 + $0x68] sm:$0xf] }
 0x1fa   : > { %v6657_v26 = vpop.f32.mrb[72].mxu1  ;;  %v7305_v8 = vpop.permute.xlu0 %7304 }
 0x1fb   : > { %v6661_v18 = vadd.f32 %v6657_v26, %v6582_v10  ;;  %4997 = vrot.lane.b32.xlu0 %v4994_v50, %s8430_s23  ;;  %v8277_v27 = vpop.f32.mrb[73].mxu1  ;;  %v9494_v13 = vpop.permute.xlu1 %7286 }
 0x1fd   : > { %v6735_v29 = vpop.f32.mrb[74].mxu0 }
 0x1fe   : > { %v6739_v30 = vadd.f32 %v6735_v29, %v6661_v18  ;;  %v8282_v31 = vpop.f32.mrb[75].mxu0 }
 0x1ff   : > { %v6813_v34 = vpop.f32.mrb[74].mxu1  ;;  %7327 = vperm.xlu0 %8370, %v7740_v28   ;;  %v7371_v28 = vld [vmem:[#allocation3] sm:$0x1] }
 0x200   : > { %v6817_v35 = vadd.f32 %v6813_v34, %v6739_v30  ;;  %v8287_v37 = vpop.f32.mrb[75].mxu1 }
 0x201   : > { %v6891_v57 = vpop.f32.mrb[76].mxu0 }
 0x202   : > { %v6895_v12 = vadd.f32 %v6891_v57, %v6817_v35  ;;  %v8292_v39 = vpop.f32.mrb[77].mxu0 }
 0x203   : > { %5033 = vrot.lane.b32.xlu0 %v4994_v50, %s8432_s0 }
 0x204   : > { %v6969_v41 = vpop.f32.mrb[76].mxu1 }
 0x205   : > { %v6973_v44 = vadd.f32 %v6969_v41, %v6895_v12  ;;  %v8297_v45 = vpop.f32.mrb[77].mxu1 }
 0x206   : > { %v7047_v46 = vpop.f32.mrb[78].mxu0 }
 0x207   : > { %v7051_v49 = vadd.f32 %v7047_v46, %v6973_v44  ;;  %v8302_v51 = vpop.f32.mrb[79].mxu0 }
 0x209   : > { %v7125_v52 = vpop.f32.mrb[78].mxu1 }
 0x20a   : > { %v7129_v54 = vadd.f32 %v7125_v52, %v7051_v49  ;;  %v8307_v50 = vpop.f32.mrb[79].mxu1 }
 0x20b   : > { %v7203_v55 = vpop.f32.mrb[80].mxu0 }
 0x20c   : > { %v7207_v56 = vadd.f32 %v7203_v55, %v7129_v54  ;;  %v8312_v59 = vpop.f32.mrb[81].mxu0 }
 0x20e   : > { %v7219_v61 = vadd.f32 %v9406_v43, %v7207_v56 }
 0x210   : > { %v7220_v62 = vmax.f32 %v7219_v61, 0.0 }
 0x212   : > { %v7221_v3 = vmul.f32 %v9388_v36, %v7220_v62 }
 0x214   : > { %v7225_v4 = vmul.f32 %v7224_v2, %v7221_v3 }
 0x216   : > { %7226 = vst.msk [vmem:[#allocation2 + $0x4] sm:$0xf] %vm2703_vm5, %v7225_v4 }
 0x21d   : > { %v7247_v9 = vld [vmem:[#allocation2] sm:$0xff] }
 0x21e   : > { %v7301_v11 = vld [vmem:[#allocation2 + $0x4] sm:$0xf]  ;;  %7255 = vrot.lane.b32.xlu0 %v7247_v9, %s8430_s23  ;;  %7237 = vrot.lane.b32.xlu1 %v7247_v9, %s8431_s14  ;;  %v7254_v17 = vcombine.high %v7247_v9, %v7247_v9 }
 0x21f   : > { %v9492_v43 = vmul.f32 %v7305_v8, %v7301_v11  ;;  %v2715_v36 = vpop.permute.xlu1 %2714  ;;  %v7324_v24 = vld [vmem:[#allocation2 + $0x4] sm:$0xf]  ;;  %v2734_v29 = vpop.permute.xlu0 %2733 }
 0x220   : > { %v7338_v18 = vld [vmem:[#allocation2 + $0x4] sm:$0xf] }
 0x221   : > { %v7352_v27 = vld [vmem:[#allocation2 + $0x4] sm:$0xf] }
 0x222   : > { %7291 = vrot.lane.b32.xlu0 %v7247_v9, %s8432_s0  ;;  %7273 = vrot.lane.b32.xlu1 %v7247_v9, %s8433_s22 }
 0x223   : > { %v2753_v19 = vpop.permute.xlu1 %2752  ;;  %v2772_v31 = vpop.permute.xlu0 %2771 }
 0x226   : > { %7257 = vrot.lane.b32.xlu1 %v7254_v17, %s8430_s23  ;;  %7239 = vrot.lane.b32.xlu0 %v7254_v17, %s8431_s14 }
 0x227   : > { %v2799_v10 = vpop.permute.xlu1 %2798  ;;  %v2717_v35 = vpop.permute.xlu0 %2716 }
 0x228   : > { %v2719_v12 = vsel %vm2718_vm7, %v2715_v36, %v2717_v35  ;;  %v2801_v2 = vmul.f32 %v2799_v10, %v9435_v48 }
 0x229   : > { %v2721_v44 = vmul.f32 %v2719_v12, %v9424_v23 }
 0x22a   : > { %7293 = vrot.lane.b32.xlu1 %v7254_v17, %s8432_s0  ;;  %7275 = vrot.lane.b32.xlu0 %v7254_v17, %s8433_s22 }
 0x22b   : > { %v2813_v26 = vpop.permute.xlu1 %2812  ;;  %v2755_v39 = vpop.permute.xlu0 %2754 }
 0x22c   : > { %v2757_v46 = vsel %vm2756_vm8, %v2753_v19, %v2755_v39  ;;  %v2815_v9 = vmul.f32 %v2813_v26, %v9441_v58 }
 0x22d   : > { %v2759_v52 = vmul.f32 %v2757_v46, %v9429_v32 }
 0x22e   : > { %7341 = vperm.xlu1 %8371, %v7741_v20   ;;  %7355 = vperm.xlu0 %8370, %v7742_v21  }
 0x22f   : > { %v2827_v30 = vpop.permute.xlu1 %2826 }
 0x232   : > { %7317 = vrot.lane.b32.xlu1 %v7301_v11, %s9603_s24  ;;  %7331 = vrot.lane.b32.xlu0 %v7324_v24, %s8434_s26 }
 0x233   : > { %v2841_v34 = vpop.permute.xlu1 %2840 }
 0x236   : > { %7345 = vrot.lane.b32.xlu1 %v7338_v18, %s8422_s12  ;;  %7359 = vrot.lane.b32.xlu0 %v7352_v27, %s9598_s27  ;;  %s7552_s12 = sshll.u32 %s9619_s16, 3 }
 0x237   : > { %v2736_v37 = vpop.permute.xlu1 %2735  ;;  %s541_s27 = sadd.s32 %s7552_s12, %s9627_s15 }
 0x238   : > { %v2738_v57 = vsel %vm2737_vm6, %v2734_v29, %v2736_v37  ;;  %s542_s14 = scalar_lea.vmem %s9580_s10, %s541_s27 }
 0x239   : > { %v2740_v41 = vmul.f32 %v2738_v57, %v9415_v53  ;;  %v2788_v53 = vmul.f32 %v9422_v15, %v9396_v16  ;;  %v2843_v16 = vmul.f32 %v2841_v34, %v9448_v7 }
 0x23a   : > { %7374 = vperm.xlu1 %8371, %v7371_v28  }
 0x23b   : > { %v2774_v45 = vpop.permute.xlu1 %2773  ;;  %v2741_v49 = vadd.f32 %v2740_v41, %v2721_v44 }
 0x23c   : > { %v2776_v51 = vsel %vm2775_vm9, %v2772_v31, %v2774_v45 }
 0x23d   : > { %v2760_v54 = vadd.f32 %v2759_v52, %v2741_v49  ;;  %v2778_v50 = vmul.f32 %v2776_v51, %v9419_v63  ;;  %v2829_v63 = vmul.f32 %v2827_v30, %v9427_v25 }
 0x23f   : > { %v2779_v56 = vadd.f32 %v2778_v50, %v2760_v54 }
 0x241   : > { %v2789_v23 = vadd.f32 %v2788_v53, %v2779_v56 }
 0x243   : > { %v2802_v4 = vadd.f32 %v2801_v2, %v2789_v23 }
 0x245   : > { %v2816_v32 = vadd.f32 %v2815_v9, %v2802_v4 }
 0x247   : > { %v2830_v19 = vadd.f32 %v2829_v63, %v2816_v32 }
 0x249   : > { %v2844_v48 = vadd.f32 %v2843_v16, %v2830_v19  ;;  %v7377_v16 = vlaneseq }
 0x255   : > { %v4978_v55 = vpop.permute.xlu0 %4977  ;;  %v4996_v59 = vpop.permute.xlu1 %4995 }
 0x259   : > { %v5014_v61 = vpop.permute.xlu0 %5013  ;;  %v5032_v3 = vpop.permute.xlu1 %5031 }
 0x25d   : > { %v5058_v62 = vpop.permute.xlu0 %5057  ;;  %v4980_v11 = vpop.permute.xlu1 %4979 }
 0x25e   : > { %v4981_v17 = vsel %vm2718_vm7, %v4978_v55, %v4980_v11  ;;  %v5060_v34 = vmul.f32 %v5058_v62, %v9480_v0 }
 0x25f   : > { %v4983_v15 = vmul.f32 %v4981_v17, %v9452_v22 }
 0x261   : > { %v5072_v8 = vpop.permute.xlu0 %5071  ;;  %v5016_v21 = vpop.permute.xlu1 %5015  ;;  %v4984_v26 = vadd.f32 %v4983_v15, %v2844_v48 }
 0x262   : > { %v5017_v24 = vsel %vm2756_vm8, %v5014_v61, %v5016_v21  ;;  %v5074_v37 = vmul.f32 %v5072_v8, %v9460_v38  ;;  %v7378_v21 = vshrl.u32 %v7377_v16, 7 }
 0x263   : > { %v5019_v25 = vmul.f32 %v5017_v24, %v9465_v42 }
 0x265   : > { %v5086_v36 = vpop.permute.xlu0 %5085 }
 0x269   : > { %v5100_v20 = vpop.permute.xlu0 %5099 }
 0x26a   : > { %v5102_v49 = vmul.f32 %v5100_v20, %v9471_v47 }
 0x26d   : > { %v4998_v10 = vpop.permute.xlu0 %4997 }
 0x26e   : > { %v4999_v58 = vsel %vm2737_vm6, %v4996_v59, %v4998_v10  ;;  %v7379_v10 = vsub.s32 0, %v7378_v21 }
 0x26f   : > { %v5001_v18 = vmul.f32 %v4999_v58, %v9458_v33  ;;  %v5088_v33 = vmul.f32 %v5086_v36, %v9486_v5 }
 0x271   : > { %v5002_v27 = vadd.f32 %v5001_v18, %v4984_v26 }
 0x272   : > { %v7314_v12 = vpop.permute.xlu1 %7313 }
 0x273   : > { %v5020_v28 = vadd.f32 %v5019_v25, %v5002_v27 }
 0x27e   : > { %v7328_v29 = vpop.permute.xlu0 %7327 }
 0x282   : > { %v5034_v30 = vpop.permute.xlu0 %5033 }
 0x283   : > { %v5035_v7 = vsel %vm2775_vm9, %v5032_v3, %v5034_v30 }
 0x284   : > { %v5037_v22 = vmul.f32 %v5035_v7, %v9475_v14 }
 0x286   : > { %v5038_v31 = vadd.f32 %v5037_v22, %v5020_v28 }
 0x288   : > { %v5048_v35 = vadd.f32 %v9433_v40, %v5038_v31 }
 0x28a   : > { %v5061_v57 = vadd.f32 %v5060_v34, %v5048_v35 }
 0x28c   : > { %v5075_v42 = vadd.f32 %v5074_v37, %v5061_v57 }
 0x28e   : > { %v5089_v39 = vadd.f32 %v5088_v33, %v5075_v42 }
 0x290   : > { %v7256_v41 = vpop.permute.xlu0 %7255  ;;  %v7238_v44 = vpop.permute.xlu1 %7237  ;;  %v5103_v52 = vadd.f32 %v5102_v49, %v5089_v39 }
 0x294   : > { %v7292_v45 = vpop.permute.xlu0 %7291  ;;  %v7274_v46 = vpop.permute.xlu1 %7273 }
 0x298   : > { %v7258_v14 = vpop.permute.xlu1 %7257  ;;  %v7240_v51 = vpop.permute.xlu0 %7239 }
 0x299   : > { %v7259_v0 = vsel %vm2737_vm6, %v7256_v41, %v7258_v14  ;;  %v7241_v40 = vsel %vm2718_vm7, %v7238_v44, %v7240_v51 }
 0x29a   : > { %v7243_v38 = vmul.f32 %v7241_v40, %v9477_v60  ;;  %v7261_v5 = vmul.f32 %v7259_v0, %v9483_v1 }
 0x29c   : > { %v7244_v54 = vadd.f32 %v7243_v38, %v5103_v52  ;;  %v7294_v50 = vpop.permute.xlu1 %7293  ;;  %v7276_v55 = vpop.permute.xlu0 %7275 }
 0x29d   : > { %v7295_v56 = vsel %vm2775_vm9, %v7292_v45, %v7294_v50  ;;  %v7277_v59 = vsel %vm2756_vm8, %v7274_v46, %v7276_v55 }
 0x29e   : > { %v7262_v61 = vadd.f32 %v7261_v5, %v7244_v54  ;;  %v7279_v47 = vmul.f32 %v7277_v59, %v9488_v6  ;;  %v7297_v53 = vmul.f32 %v7295_v56, %v9494_v13 }
 0x2a0   : > { %v7280_v23 = vadd.f32 %v7279_v47, %v7262_v61 }
 0x2a2   : > { %v7298_v62 = vadd.f32 %v7297_v53, %v7280_v23 }
 0x2a4   : > { %v7308_v2 = vadd.f32 %v9492_v43, %v7298_v62 }
 0x2ad   : > { %v7342_v3 = vpop.permute.xlu1 %7341  ;;  %v7356_v60 = vpop.permute.xlu0 %7355 }
 0x2b1   : > { %v7318_v4 = vpop.permute.xlu1 %7317  ;;  %v7332_v1 = vpop.permute.xlu0 %7331 }
 0x2b2   : > { %v7320_v8 = vmul.f32 %v7318_v4, %v7314_v12  ;;  %v7334_v32 = vmul.f32 %v7332_v1, %v7328_v29 }
 0x2b4   : > { %v7321_v9 = vadd.f32 %v7320_v8, %v7308_v2 }
 0x2b5   : > { %v7346_v11 = vpop.permute.xlu1 %7345  ;;  %v7360_v36 = vpop.permute.xlu0 %7359 }
 0x2b6   : > { %v7335_v63 = vadd.f32 %v7334_v32, %v7321_v9  ;;  %v7348_v17 = vmul.f32 %v7346_v11, %v7342_v3  ;;  %v7362_v20 = vmul.f32 %v7360_v36, %v7356_v60 }
 0x2b8   : > { %v7349_v19 = vadd.f32 %v7348_v17, %v7335_v63 }
 0x2b9   : > { %v7375_v58 = vpop.permute.xlu1 %7374 }
 0x2ba   : > { %v7363_v6 = vadd.f32 %v7362_v20, %v7349_v19  ;;  %v7380_v25 = vrot.slane %v7375_v58, %v7379_v10 }
 0x2bc   : > { %v7364_v13 = vsel %vm2703_vm5, %v7363_v6, 0.0 }
 0x2bd   : > { %v7365_v15 = vrot.slane %v7364_v13, 4 }
 0x2bf   : > { %v7366_v43 = vadd.f32 %v7365_v15, %v7364_v13 }
 0x2c1   : > { %v7367_v48 = vrot.slane %v7366_v43, 2 }
 0x2c3   : > { %v7368_v24 = vadd.f32 %v7367_v48, %v7366_v43 }
 0x2c5   : > { %v7369_v26 = vrot.slane %v7368_v24, 1 }
 0x2c7   : > { %v7370_v18 = vadd.f32 %v7369_v26, %v7368_v24 }
 0x2c9   : > { %v7381_v27 = vadd.f32 %v7380_v25, %v7370_v18 }
 0x2cb   : > { %v7743_v28 = vmul.f32 -1.442695, %v7381_v27 }
 0x2cd   : > { %8375 = vpow2.f32 %v7743_v28 }
 0x2d7   : > { %v8376_v29 = vpop.eup %8375 }
 0x2d8   : > { %v7385_v30 = vadd.f32 1.0, %v8376_v29 }
 0x2da   : > { %8377 = vrcp.f32 %v7385_v30 }
 0x2e4   : > { %v8378_v7 = vpop.eup %8377 }
 0x2e5   : > { %7389 = vst.msk [vmem:[%s542_s14] sm:$0x1] %vm7388_vm10, %v8378_v7 }
 0x2e6 PF: > { %s22_s19 = sadd.s32 1, %s8417_s19   ;;  %s9608_s15 = smov %s8409_s17 }
 0x2e7   : > { %p19_p7 = scmp.ge.s32.totalorder %s22_s19, 18   ;;  %s9609_s16 = smov %s8413_s18 }
 0x2e8   : > { %s9610_s17 = smov %s9613_s8  ;;  %s9611_s18 = smov %s9617_s20 }
 0x2e9   :  { %21 = sbr.rel (!%p19_p7) target bundleno = 4 (0x4), region = 154 }

</bundles_post_ra>
